<compile_context>
chip_gen: v7x
topology: tpu7x:2x2x1
jax: 0.10.0
libtpu: 0.0.40
codegen_flags: <defaults>
</compile_context>

<pallas_src>
import jax
import jax.numpy as jnp
from jax.experimental import pallas as pl
from jax.experimental.pallas import tpu as pltpu

DECODER_SCALE_FACTOR = 2


def _round_up(x, m):
    return (x + m - 1) // m * m


# ----------------------------------------------------------------------------
# Feature probe: single-buffered (non-double-buffered) constant operands.
# ----------------------------------------------------------------------------
_BUFFERED_ONE_OK = None


def _single_buffer_supported():
    """Probe once whether pipeline_mode=pl.Buffered(1) works on this JAX/TPU.

    Used for the grid-constant weight/bias blocks so they are not
    double-buffered in VMEM (matters for the ~19 MiB layer-1 weights on v7x).
    Falls back gracefully to default buffering."""
    global _BUFFERED_ONE_OK
    if _BUFFERED_ONE_OK is None:
        try:
            def _probe_kernel(x_ref, o_ref):
                o_ref[...] = x_ref[...] * 2.0

            x = jnp.arange(8 * 128, dtype=jnp.float32).reshape(8, 128)
            out = pl.pallas_call(
                _probe_kernel,
                out_shape=jax.ShapeDtypeStruct((8, 128), jnp.float32),
                grid=(2,),
                in_specs=[pl.BlockSpec((8, 128), lambda i: (0, 0),
                                       pipeline_mode=pl.Buffered(1))],
                out_specs=pl.BlockSpec((8, 128), lambda i: (0, 0)),
            )(x)
            jax.block_until_ready(out)
            _BUFFERED_ONE_OK = bool(jnp.array_equal(out, x * 2.0))
        except Exception:
            _BUFFERED_ONE_OK = False
    return _BUFFERED_ONE_OK


def _constant_specs(k9, cout4):
    """BlockSpecs for the grid-constant weight / bias operands."""
    kwargs = {}
    if _single_buffer_supported():
        kwargs = dict(pipeline_mode=pl.Buffered(1))   # no double-buffering
    w_spec = pl.BlockSpec((k9, cout4), lambda bb, s: (0, 0), **kwargs)
    b_spec = pl.BlockSpec((1, cout4), lambda bb, s: (0, 0), **kwargs)
    return w_spec, b_spec


# ----------------------------------------------------------------------------
# Per-generation VMEM budget (v5e/v6e: 128 MiB, v7x: 64 MiB physical VMEM).
# ----------------------------------------------------------------------------
def _vmem_budget():
    """Returns (vmem_limit_bytes, per-step block target bytes)."""
    try:
        cap = int(pltpu.get_tpu_info().vmem_capacity_bytes)
    except Exception:
        cap = 64 << 20                      # unknown -> be v7x-conservative
    if cap >= (100 << 20):                  # v5e / v6e
        return 100 << 20, 6 << 20
    return 48 << 20, 2 << 20                # v7x


def _pick_tiles(batch, hin, win, cin, cout2, itemsize, *, target_bytes,
                max_strip_rows=None):
    """Pick (bt, th): batch tile and pre-upsample rows per grid step.

    Keeps the (lane-padded) per-step VMEM blocks around `target_bytes` so the
    double-buffered blocks stay well inside scoped VMEM, while making the
    matmul M-dim (bt*th*win) large enough to fill MXU rows on the tiny early
    layers (review item: M = Bt*Hin*Win >= 256)."""
    lane = 128
    out_row_b = 2 * win * max(cout2, lane) * itemsize        # output rows
    in_img_b = hin * win * max(cin, lane) * itemsize         # whole input img
    pat_row_b = win * _round_up(9 * cin, lane) * itemsize    # patch rows
    pad_row_b = (win + 2) * max(cin, lane) * itemsize        # padded scratch

    per_row = out_row_b + pat_row_b + pad_row_b
    th = max(1, min(hin, int(target_bytes // max(per_row, 1))))
    if max_strip_rows is not None:
        th = max(1, min(th, int(max_strip_rows)))
    while hin % th:                                          # must tile Hin
        th -= 1

    bt = 1
    if th == hin:
        # Whole image fits per step: batch several images so the matmul M-dim
        # reaches the MXU height, as long as the budget allows.
        per_b = hin * per_row + in_img_b
        for cand in range(2, batch + 1):
            if batch % cand:
                continue
            if cand * per_b > target_bytes:
                break
            bt = cand
            if bt * hin * win >= 256:
                break
    return bt, th


# ----------------------------------------------------------------------------
# Pallas kernel: fused [nearest-2x upsample -> ConvTranspose2d(3,1,1) -> ReLU]
# ----------------------------------------------------------------------------
def _fused_upsample_deconv_relu_kernel(x_ref, w_ref, b_ref, o_ref,
                                       xp_ref, p_ref):
    # x_ref : (Bt, Hin, Win, Cin)       whole pre-upsample images of the batch
    #                                   tile (block index ignores the strip
    #                                   axis, so DMA'd once per batch tile)
    # w_ref : (9*Cin, 4*Cout)           phase-merged sub-pixel weights
    # b_ref : (1, 4*Cout)               bias tiled over the 4 output phases
    # o_ref : (Bt, TH, 2, Win, 2*Cout)  output strip; row phase is a separate
    #                                   axis so stores never interleave rows
    # xp_ref: (Bt, TH+2, Win+2, Cin)    strip-local zero-padded input (+halo)
    # p_ref : (Bt*TH*Win, 9*Cin)        im2col patch matrix
    bt, hin, win, cin = x_ref.shape
    th = o_ref.shape[1]
    cout2 = o_ref.shape[-1]
    mrows = th * win

    s = pl.program_id(1)
    n_strips = pl.num_programs(1)
    r0 = s * th                         # first pre-upsample row of this strip

    # ---- strip-local zero padding: only TH+2 rows are touched per step ----
    xp_ref[...] = jnp.zeros_like(xp_ref)
    for ib in range(bt):
        xp_ref[ib, 1:th + 1, 1:win + 1, :] = x_ref[ib, pl.ds(r0, th)]

        @pl.when(s > 0)
        def _top(ib=ib):                # halo row above the strip
            xp_ref[ib, 0:1, 1:win + 1, :] = (
                x_ref[ib, pl.ds(jnp.maximum(r0 - 1, 0), 1)])

        @pl.when(s < n_strips - 1)
        def _bot(ib=ib):                # halo row below the strip
            xp_ref[ib, th + 1:th + 2, 1:win + 1, :] = (
                x_ref[ib, pl.ds(jnp.minimum(r0 + th, hin - 1), 1)])

    # ---- strip-local im2col feeding ONE phase-merged MXU matmul ----
    # TODO(synk): for Cin >= 128 a 9-tap accumulating-dot variant (no p_ref
    # round trip) may be faster; for Cin in {32, 64} the t*Cin column offsets
    # are not 128-lane aligned (masked stores) — measure both on real shapes.
    for ib in range(bt):
        base = ib * mrows
        for ry in range(3):
            rows = xp_ref[ib, ry:ry + th, :, :]           # (TH, Win+2, Cin)
            for rx in range(3):
                t = 3 * ry + rx
                p_ref[base:base + mrows, t * cin:(t + 1) * cin] = (
                    rows[:, rx:rx + win, :].reshape(mrows, cin))

    # Single matmul: K = 9*Cin, N = 4*Cout (both row phases and both column
    # phases merged along N).  Bias + ReLU fused in the f32 epilogue.
    bias = b_ref[...].astype(jnp.float32)                 # (1, 4*Cout)
    y = jnp.dot(p_ref[...], w_ref[...],
                preferred_element_type=jnp.float32)       # (Bt*TH*Win, 4*Cout)
    y = jnp.maximum(y + bias, 0.0).astype(o_ref.dtype)

    # Per-phase sub-block stores: no row-interleave concat/reshape shuffle.
    for ib in range(bt):
        yb = y[ib * mrows:(ib + 1) * mrows]
        for a in range(2):
            o_ref[ib, :, a, :, :] = (
                yb[:, a * cout2:(a + 1) * cout2].reshape(th, win, cout2))


# ----------------------------------------------------------------------------
# Wrapper for one decoder layer
# ----------------------------------------------------------------------------
def upsample_deconv_relu(x_nhwc, w4, b4, *, compute_dtype=jnp.float32,
                         max_strip_rows=None):
    """One decoder layer: nearest-2x upsample + ConvTranspose2d(3,1,1) + ReLU.

    x_nhwc: (B, Hin, Win, Cin) -> returns (B, 2*Hin, 2*Win, Cout)."""
    B, hin, win, cin = x_nhwc.shape
    cout4 = w4.shape[-1]
    cout2 = cout4 // 2
    cout = cout4 // 4
    itemsize = jnp.dtype(compute_dtype).itemsize

    vmem_limit, target_bytes = _vmem_budget()
    bt, th = _pick_tiles(B, hin, win, cin, cout2, itemsize,
                         target_bytes=target_bytes,
                         max_strip_rows=max_strip_rows)
    grid = (B // bt, hin // th)
    # TODO(synk): on v7x (2 TCs) a Cout-tile grid axis would keep both cores
    # busy when grid == (1, 1) for the earliest layers.

    w_spec, b_spec = _constant_specs(9 * cin, cout4)

    out5 = pl.pallas_call(
        _fused_upsample_deconv_relu_kernel,
        out_shape=jax.ShapeDtypeStruct((B, hin, 2, win, cout2), compute_dtype),
        grid_spec=pltpu.PrefetchScalarGridSpec(
            num_scalar_prefetch=0,
            grid=grid,
            in_specs=[
                # Whole (small, pre-upsample) images of this batch tile; the
                # block index ignores the strip axis so the HBM->VMEM DMA only
                # happens once per batch tile; padding is strip-local in VMEM.
                pl.BlockSpec((bt, hin, win, cin),
                             lambda bb, s: (bb, 0, 0, 0)),
                w_spec,
                b_spec,
            ],
            out_specs=pl.BlockSpec((bt, th, 2, win, cout2),
                                   lambda bb, s: (bb, s, 0, 0, 0)),
            scratch_shapes=[
                pltpu.VMEM((bt, th + 2, win + 2, cin), compute_dtype),
                pltpu.VMEM((bt * th * win, 9 * cin), compute_dtype),
            ],
        ),
        compiler_params=pltpu.CompilerParams(
            dimension_semantics=("parallel", "parallel"),
            vmem_limit_bytes=vmem_limit,
        ),
    )(x_nhwc.astype(compute_dtype), w4.astype(compute_dtype),
      b4.astype(jnp.float32))

    # (B, Hin, 2, Win, 2*Cout) in row-major order is (b, i, a, j, b2, c),
    # exactly (B, 2*Hin, 2*Win, Cout): a free row-major reshape.
    return out5.reshape(B, 2 * hin, 2 * win, cout)


# ----------------------------------------------------------------------------
# Parameter construction (sub-pixel weight collapse) and decoder forward
# ----------------------------------------------------------------------------
def make_layer_params(w_t, bias):
    """Collapse [nearest-2x upsample -> ConvTranspose2d(k3,s1,p1)] into
    phase-merged sub-pixel matmul weights.

    w_t : (Cin, Cout, 3, 3)  PyTorch ConvTranspose2d weight layout
    bias: (Cout,)
    Returns w4 (9*Cin, 4*Cout) and b4 (1, 4*Cout); columns ordered (a, b, c)
    where a / b are the output row / column phases."""
    cin, cout = w_t.shape[0], w_t.shape[1]
    # ConvTranspose2d(stride=1, pad=1) == SAME conv with spatially flipped
    # kernel and swapped channel axes -> HWIO conv weight.
    # TODO(synk): cross-check this flip against a torch-generated golden
    # output (torch is not available in-script).
    wc = jnp.transpose(w_t[:, :, ::-1, ::-1], (2, 3, 0, 1))   # (3,3,Cin,Cout)
    w4 = jnp.zeros((9 * cin, 4 * cout), w_t.dtype)
    for a in range(2):
        for b in range(2):
            col = (2 * a + b) * cout
            for ky in range(3):
                ry = (a + ky + 1) // 2   # upsampled row 2i+a+ky-1 -> X row i+ry-1
                for kx in range(3):
                    rx = (b + kx + 1) // 2
                    t = 3 * ry + rx
                    w4 = w4.at[t * cin:(t + 1) * cin,
                               col:col + cout].add(wc[ky, kx])
    b4 = jnp.concatenate([bias] * 4).reshape(1, 4 * cout)
    return w4, b4


def init_decoder_params(key, base_in_channels, base_out_channels,
                        num_final_channels):
    """Deterministic init mirroring the 5 ConvTranspose2d layers of Decoder
    (raw PyTorch weight layout (Cin, Cout, kH, kW))."""
    layer_channels = [
        (base_in_channels, base_out_channels),
        (base_in_channels // 2, base_out_channels // 2),
        (base_in_channels // 4, base_out_channels // 4),
        (base_in_channels // 8, base_out_channels // 8),
        (base_in_channels // 16, num_final_channels),
    ]
    params = []
    for cin, cout in layer_channels:
        key, kw, kb = jax.random.split(key, 3)
        bound = 1.0 / (cin * 9) ** 0.5
        w_t = jax.random.uniform(kw, (cin, cout, 3, 3), jnp.float32,
                                 -bound, bound)
        bias = jax.random.uniform(kb, (cout,), jnp.float32, -bound, bound)
        params.append((w_t, bias))
    return params


def decoder_forward(x, params, in_channels, base_width, *,
                    compute_dtype=jnp.float32, max_strip_rows=None):
    B = x.shape[0]
    h = x.reshape(B, in_channels, base_width, base_width)    # .view(...)
    h = jnp.transpose(h, (0, 2, 3, 1))                       # NCHW -> NHWC
    for w_t, bias in params:
        w4, b4 = make_layer_params(w_t, bias)
        h = upsample_deconv_relu(h, w4, b4,
                                 compute_dtype=compute_dtype,
                                 max_strip_rows=max_strip_rows)
    out = jnp.transpose(h, (0, 3, 1, 2))                     # back to NCHW
    return out.astype(jnp.float32)


def decoder_forward_reference(x, params, in_channels, base_width):
    """Pure-JAX f32 reference: explicit upsample + lax conv."""
    B = x.shape[0]
    h = x.reshape(B, in_channels, base_width, base_width)
    h = jnp.transpose(h, (0, 2, 3, 1))
    for w_t, bias in params:
        h = jnp.repeat(jnp.repeat(h, DECODER_SCALE_FACTOR, axis=1),
                       DECODER_SCALE_FACTOR, axis=2)
        wc = jnp.transpose(w_t[:, :, ::-1, ::-1], (2, 3, 0, 1))
        h = jax.lax.conv_general_dilated(
            h, wc, (1, 1), 'SAME',
            dimension_numbers=('NHWC', 'HWIO', 'NHWC'))
        h = jnp.maximum(h + bias, 0.0)
    return jnp.transpose(h, (0, 3, 1, 2))


if __name__ == "__main__":
    # Small shapes consistent with the module (scaled down from 512/256/7).
    BASE_IN = 32
    BASE_OUT = 16
    BASE_WIDTH = 2
    NUM_FINAL = 3
    BATCH = 2

    key = jax.random.PRNGKey(0)
    key, kx, kp = jax.random.split(key, 3)
    x = jax.random.normal(kx, (BATCH, BASE_IN, BASE_WIDTH, BASE_WIDTH),
                          jnp.float32)
    params = init_decoder_params(kp, BASE_IN, BASE_OUT, NUM_FINAL)

    # f32 path (strict check); a small strip cap forces the multi-strip grid
    # (exercising the halo logic) while early layers exercise batch tiling.
    fwd_f32 = jax.jit(lambda xi: decoder_forward(
        xi, params, BASE_IN, BASE_WIDTH,
        compute_dtype=jnp.float32, max_strip_rows=8))
    out = jax.block_until_ready(fwd_f32(x))

    ref = jax.block_until_ready(
        decoder_forward_reference(x, params, BASE_IN, BASE_WIDTH))

    final_hw = BASE_WIDTH * DECODER_SCALE_FACTOR ** 5
    assert out.shape == (BATCH, NUM_FINAL, final_hw, final_hw), out.shape
    assert jnp.allclose(out, ref, atol=1e-3, rtol=1e-3), \
        float(jnp.max(jnp.abs(out - ref)))

    # bf16 fast path (half the HBM/VMEM traffic, bf16-native MXU on v5e);
    # accumulation stays f32 in-kernel, so a loose aggregate check is used.
    fwd_bf16 = jax.jit(lambda xi: decoder_forward(
        xi, params, BASE_IN, BASE_WIDTH, compute_dtype=jnp.bfloat16))
    out_bf16 = jax.block_until_ready(fwd_bf16(x))
    rel = float(jnp.linalg.norm(out_bf16 - ref) /
                (jnp.linalg.norm(ref) + 1e-12))
    assert rel < 5e-2, rel

    print("KERNEL_OK")
</pallas_src>

<mosaic_0001>
module attributes {stable_mosaic.version = 11 : i64} {
  func.func @_fused_upsample_deconv_relu_kernel(%arg0: i32, %arg1: i32, %arg2: memref<2x2x2x32xf32, #tpu.memory_space<vmem>>, %arg3: memref<288x64xf32, #tpu.memory_space<vmem>>, %arg4: memref<1x64xf32, #tpu.memory_space<vmem>>, %arg5: memref<2x2x2x2x32xf32, #tpu.memory_space<vmem>>, %arg6: memref<2x4x4x32xf32, #tpu.memory_space<vmem>>, %arg7: memref<8x288xf32, #tpu.memory_space<vmem>>) attributes {dimension_semantics = [#tpu.dimension_semantics<parallel>, #tpu.dimension_semantics<parallel>], iteration_bounds = array<i64: 1, 1>, scalar_prefetch = 0 : i64, scratch_operands = 2 : i64, tpu.core_type = #tpu.core_type<tc>, window_params = [{transform_indices = @transform_0, window_bounds = array<i64: 2, 2, 2, 32>}, {pipeline_mode = #tpu.pipeline_mode<synchronous>, transform_indices = @transform_1, window_bounds = array<i64: 288, 64>}, {pipeline_mode = #tpu.pipeline_mode<synchronous>, transform_indices = @transform_2, window_bounds = array<i64: 1, 64>}, {transform_indices = @transform_3, window_bounds = array<i64: 2, 2, 2, 2, 32>}]} {
    %c2_i32 = arith.constant 2 : i32
    %0 = arith.muli %arg1, %c2_i32 : i32
    %cst = arith.constant 0.000000e+00 : f32
    %1 = vector.broadcast %cst : f32 to vector<2x4x4x32xf32>
    %c0 = arith.constant 0 : index
    %c0_0 = arith.constant 0 : index
    %c0_1 = arith.constant 0 : index
    %c0_2 = arith.constant 0 : index
    %2 = vector.load %arg6[%c0, %c0_0, %c0_1, %c0_2] : memref<2x4x4x32xf32, #tpu.memory_space<vmem>>, vector<2x4x4x32xf32>
    tpu.vector_store %arg6[%c0, %c0_0, %c0_1, %c0_2], %1 {strides = array<i32>} : memref<2x4x4x32xf32, #tpu.memory_space<vmem>>, vector<2x4x4x32xf32>,
    %c0_3 = arith.constant 0 : index
    %3 = arith.index_cast %0 : i32 to index
    %c0_4 = arith.constant 0 : index
    %c0_5 = arith.constant 0 : index
    %4 = vector.load %arg2[%c0_3, %3, %c0_4, %c0_5] : memref<2x2x2x32xf32, #tpu.memory_space<vmem>>, vector<1x2x2x32xf32>
    %5 = vector.shape_cast %4 : vector<1x2x2x32xf32> to vector<2x2x32xf32>
    %c0_6 = arith.constant 0 : index
    %c1 = arith.constant 1 : index
    %c1_7 = arith.constant 1 : index
    %c0_8 = arith.constant 0 : index
    %6 = vector.load %arg6[%c0_6, %c1, %c1_7, %c0_8] : memref<2x4x4x32xf32, #tpu.memory_space<vmem>>, vector<1x2x2x32xf32>
    %7 = vector.shape_cast %6 : vector<1x2x2x32xf32> to vector<2x2x32xf32>
    %8 = vector.shape_cast %5 : vector<2x2x32xf32> to vector<1x2x2x32xf32>
    tpu.vector_store %arg6[%c0_6, %c1, %c1_7, %c0_8], %8 {strides = array<i32>} : memref<2x4x4x32xf32, #tpu.memory_space<vmem>>, vector<1x2x2x32xf32>,
    %c0_i32 = arith.constant 0 : i32
    %9 = arith.cmpi sgt, %arg1, %c0_i32 : i32
    %10 = arith.extui %9 : i1 to i32
    %c0_i32_9 = arith.constant 0 : i32
    %11 = arith.cmpi ne, %10, %c0_i32_9 : i32
    scf.if %11 {
      %c1_i32 = arith.constant 1 : i32
      %123 = arith.subi %0, %c1_i32 : i32
      %c0_i32_101 = arith.constant 0 : i32
      %124 = arith.maxsi %123, %c0_i32_101 : i32
      %c0_102 = arith.constant 0 : index
      %125 = arith.index_cast %124 : i32 to index
      %c0_103 = arith.constant 0 : index
      %c0_104 = arith.constant 0 : index
      %126 = vector.load %arg2[%c0_102, %125, %c0_103, %c0_104] : memref<2x2x2x32xf32, #tpu.memory_space<vmem>>, vector<1x1x2x32xf32>
      %127 = vector.shape_cast %126 : vector<1x1x2x32xf32> to vector<1x2x32xf32>
      %c0_105 = arith.constant 0 : index
      %c0_106 = arith.constant 0 : index
      %c1_107 = arith.constant 1 : index
      %c0_108 = arith.constant 0 : index
      %128 = vector.load %arg6[%c0_105, %c0_106, %c1_107, %c0_108] : memref<2x4x4x32xf32, #tpu.memory_space<vmem>>, vector<1x1x2x32xf32>
      %129 = vector.shape_cast %128 : vector<1x1x2x32xf32> to vector<1x2x32xf32>
      %130 = vector.shape_cast %127 : vector<1x2x32xf32> to vector<1x1x2x32xf32>
      tpu.vector_store %arg6[%c0_105, %c0_106, %c1_107, %c0_108], %130 {strides = array<i32>} : memref<2x4x4x32xf32, #tpu.memory_space<vmem>>, vector<1x1x2x32xf32>,
    } else {
    }
    %c0_i32_10 = arith.constant 0 : i32
    %12 = arith.cmpi slt, %arg1, %c0_i32_10 : i32
    %13 = arith.extui %12 : i1 to i32
    %c0_i32_11 = arith.constant 0 : i32
    %14 = arith.cmpi ne, %13, %c0_i32_11 : i32
    scf.if %14 {
      %c2_i32_101 = arith.constant 2 : i32
      %123 = arith.addi %0, %c2_i32_101 : i32
      %c1_i32 = arith.constant 1 : i32
      %124 = arith.minsi %123, %c1_i32 : i32
      %c0_102 = arith.constant 0 : index
      %125 = arith.index_cast %124 : i32 to index
      %c0_103 = arith.constant 0 : index
      %c0_104 = arith.constant 0 : index
      %126 = vector.load %arg2[%c0_102, %125, %c0_103, %c0_104] : memref<2x2x2x32xf32, #tpu.memory_space<vmem>>, vector<1x1x2x32xf32>
      %127 = vector.shape_cast %126 : vector<1x1x2x32xf32> to vector<1x2x32xf32>
      %c0_105 = arith.constant 0 : index
      %c3 = arith.constant 3 : index
      %c1_106 = arith.constant 1 : index
      %c0_107 = arith.constant 0 : index
      %128 = vector.load %arg6[%c0_105, %c3, %c1_106, %c0_107] : memref<2x4x4x32xf32, #tpu.memory_space<vmem>>, vector<1x1x2x32xf32>
      %129 = vector.shape_cast %128 : vector<1x1x2x32xf32> to vector<1x2x32xf32>
      %130 = vector.shape_cast %127 : vector<1x2x32xf32> to vector<1x1x2x32xf32>
      tpu.vector_store %arg6[%c0_105, %c3, %c1_106, %c0_107], %130 {strides = array<i32>} : memref<2x4x4x32xf32, #tpu.memory_space<vmem>>, vector<1x1x2x32xf32>,
    } else {
    }
    %c1_12 = arith.constant 1 : index
    %15 = arith.index_cast %0 : i32 to index
    %c0_13 = arith.constant 0 : index
    %c0_14 = arith.constant 0 : index
    %16 = vector.load %arg2[%c1_12, %15, %c0_13, %c0_14] : memref<2x2x2x32xf32, #tpu.memory_space<vmem>>, vector<1x2x2x32xf32>
    %17 = vector.shape_cast %16 : vector<1x2x2x32xf32> to vector<2x2x32xf32>
    %c1_15 = arith.constant 1 : index
    %c1_16 = arith.constant 1 : index
    %c1_17 = arith.constant 1 : index
    %c0_18 = arith.constant 0 : index
    %18 = vector.load %arg6[%c1_15, %c1_16, %c1_17, %c0_18] : memref<2x4x4x32xf32, #tpu.memory_space<vmem>>, vector<1x2x2x32xf32>
    %19 = vector.shape_cast %18 : vector<1x2x2x32xf32> to vector<2x2x32xf32>
    %20 = vector.shape_cast %17 : vector<2x2x32xf32> to vector<1x2x2x32xf32>
    tpu.vector_store %arg6[%c1_15, %c1_16, %c1_17, %c0_18], %20 {strides = array<i32>} : memref<2x4x4x32xf32, #tpu.memory_space<vmem>>, vector<1x2x2x32xf32>,
    %c0_i32_19 = arith.constant 0 : i32
    %21 = arith.cmpi sgt, %arg1, %c0_i32_19 : i32
    %22 = arith.extui %21 : i1 to i32
    %c0_i32_20 = arith.constant 0 : i32
    %23 = arith.cmpi ne, %22, %c0_i32_20 : i32
    scf.if %23 {
      %c1_i32 = arith.constant 1 : i32
      %123 = arith.subi %0, %c1_i32 : i32
      %c0_i32_101 = arith.constant 0 : i32
      %124 = arith.maxsi %123, %c0_i32_101 : i32
      %c1_102 = arith.constant 1 : index
      %125 = arith.index_cast %124 : i32 to index
      %c0_103 = arith.constant 0 : index
      %c0_104 = arith.constant 0 : index
      %126 = vector.load %arg2[%c1_102, %125, %c0_103, %c0_104] : memref<2x2x2x32xf32, #tpu.memory_space<vmem>>, vector<1x1x2x32xf32>
      %127 = vector.shape_cast %126 : vector<1x1x2x32xf32> to vector<1x2x32xf32>
      %c1_105 = arith.constant 1 : index
      %c0_106 = arith.constant 0 : index
      %c1_107 = arith.constant 1 : index
      %c0_108 = arith.constant 0 : index
      %128 = vector.load %arg6[%c1_105, %c0_106, %c1_107, %c0_108] : memref<2x4x4x32xf32, #tpu.memory_space<vmem>>, vector<1x1x2x32xf32>
      %129 = vector.shape_cast %128 : vector<1x1x2x32xf32> to vector<1x2x32xf32>
      %130 = vector.shape_cast %127 : vector<1x2x32xf32> to vector<1x1x2x32xf32>
      tpu.vector_store %arg6[%c1_105, %c0_106, %c1_107, %c0_108], %130 {strides = array<i32>} : memref<2x4x4x32xf32, #tpu.memory_space<vmem>>, vector<1x1x2x32xf32>,
    } else {
    }
    %c0_i32_21 = arith.constant 0 : i32
    %24 = arith.cmpi slt, %arg1, %c0_i32_21 : i32
    %25 = arith.extui %24 : i1 to i32
    %c0_i32_22 = arith.constant 0 : i32
    %26 = arith.cmpi ne, %25, %c0_i32_22 : i32
    scf.if %26 {
      %c2_i32_101 = arith.constant 2 : i32
      %123 = arith.addi %0, %c2_i32_101 : i32
      %c1_i32 = arith.constant 1 : i32
      %124 = arith.minsi %123, %c1_i32 : i32
      %c1_102 = arith.constant 1 : index
      %125 = arith.index_cast %124 : i32 to index
      %c0_103 = arith.constant 0 : index
      %c0_104 = arith.constant 0 : index
      %126 = vector.load %arg2[%c1_102, %125, %c0_103, %c0_104] : memref<2x2x2x32xf32, #tpu.memory_space<vmem>>, vector<1x1x2x32xf32>
      %127 = vector.shape_cast %126 : vector<1x1x2x32xf32> to vector<1x2x32xf32>
      %c1_105 = arith.constant 1 : index
      %c3 = arith.constant 3 : index
      %c1_106 = arith.constant 1 : index
      %c0_107 = arith.constant 0 : index
      %128 = vector.load %arg6[%c1_105, %c3, %c1_106, %c0_107] : memref<2x4x4x32xf32, #tpu.memory_space<vmem>>, vector<1x1x2x32xf32>
      %129 = vector.shape_cast %128 : vector<1x1x2x32xf32> to vector<1x2x32xf32>
      %130 = vector.shape_cast %127 : vector<1x2x32xf32> to vector<1x1x2x32xf32>
      tpu.vector_store %arg6[%c1_105, %c3, %c1_106, %c0_107], %130 {strides = array<i32>} : memref<2x4x4x32xf32, #tpu.memory_space<vmem>>, vector<1x1x2x32xf32>,
    } else {
    }
    %c0_23 = arith.constant 0 : index
    %c0_24 = arith.constant 0 : index
    %c0_25 = arith.constant 0 : index
    %c0_26 = arith.constant 0 : index
    %27 = vector.load %arg6[%c0_23, %c0_24, %c0_25, %c0_26] : memref<2x4x4x32xf32, #tpu.memory_space<vmem>>, vector<1x2x4x32xf32>
    %28 = vector.shape_cast %27 : vector<1x2x4x32xf32> to vector<2x4x32xf32>
    %29 = vector.extract_strided_slice %28 {offsets = [0, 0, 0], sizes = [2, 2, 32], strides = [1, 1, 1]} : vector<2x4x32xf32> to vector<2x2x32xf32>
    %30 = vector.shape_cast %29 : vector<2x2x32xf32> to vector<4x32xf32>
    %c0_27 = arith.constant 0 : index
    %c0_28 = arith.constant 0 : index
    %31 = vector.load %arg7[%c0_27, %c0_28] : memref<8x288xf32, #tpu.memory_space<vmem>>, vector<4x32xf32>
    tpu.vector_store %arg7[%c0_27, %c0_28], %30 {strides = array<i32>} : memref<8x288xf32, #tpu.memory_space<vmem>>, vector<4x32xf32>,
    %32 = vector.extract_strided_slice %28 {offsets = [0, 1, 0], sizes = [2, 2, 32], strides = [1, 1, 1]} : vector<2x4x32xf32> to vector<2x2x32xf32>
    %33 = vector.shape_cast %32 : vector<2x2x32xf32> to vector<4x32xf32>
    %c0_29 = arith.constant 0 : index
    %c32 = arith.constant 32 : index
    %34 = vector.load %arg7[%c0_29, %c32] : memref<8x288xf32, #tpu.memory_space<vmem>>, vector<4x32xf32>
    tpu.vector_store %arg7[%c0_29, %c32], %33 {strides = array<i32>} : memref<8x288xf32, #tpu.memory_space<vmem>>, vector<4x32xf32>,
    %35 = vector.extract_strided_slice %28 {offsets = [0, 2, 0], sizes = [2, 2, 32], strides = [1, 1, 1]} : vector<2x4x32xf32> to vector<2x2x32xf32>
    %36 = vector.shape_cast %35 : vector<2x2x32xf32> to vector<4x32xf32>
    %c0_30 = arith.constant 0 : index
    %c64 = arith.constant 64 : index
    %37 = vector.load %arg7[%c0_30, %c64] : memref<8x288xf32, #tpu.memory_space<vmem>>, vector<4x32xf32>
    tpu.vector_store %arg7[%c0_30, %c64], %36 {strides = array<i32>} : memref<8x288xf32, #tpu.memory_space<vmem>>, vector<4x32xf32>,
    %c0_31 = arith.constant 0 : index
    %c1_32 = arith.constant 1 : index
    %c0_33 = arith.constant 0 : index
    %c0_34 = arith.constant 0 : index
    %38 = vector.load %arg6[%c0_31, %c1_32, %c0_33, %c0_34] : memref<2x4x4x32xf32, #tpu.memory_space<vmem>>, vector<1x2x4x32xf32>
    %39 = vector.shape_cast %38 : vector<1x2x4x32xf32> to vector<2x4x32xf32>
    %40 = vector.extract_strided_slice %39 {offsets = [0, 0, 0], sizes = [2, 2, 32], strides = [1, 1, 1]} : vector<2x4x32xf32> to vector<2x2x32xf32>
    %41 = vector.shape_cast %40 : vector<2x2x32xf32> to vector<4x32xf32>
    %c0_35 = arith.constant 0 : index
    %c96 = arith.constant 96 : index
    %42 = vector.load %arg7[%c0_35, %c96] : memref<8x288xf32, #tpu.memory_space<vmem>>, vector<4x32xf32>
    tpu.vector_store %arg7[%c0_35, %c96], %41 {strides = array<i32>} : memref<8x288xf32, #tpu.memory_space<vmem>>, vector<4x32xf32>,
    %43 = vector.extract_strided_slice %39 {offsets = [0, 1, 0], sizes = [2, 2, 32], strides = [1, 1, 1]} : vector<2x4x32xf32> to vector<2x2x32xf32>
    %44 = vector.shape_cast %43 : vector<2x2x32xf32> to vector<4x32xf32>
    %c0_36 = arith.constant 0 : index
    %c128 = arith.constant 128 : index
    %45 = vector.load %arg7[%c0_36, %c128] : memref<8x288xf32, #tpu.memory_space<vmem>>, vector<4x32xf32>
    tpu.vector_store %arg7[%c0_36, %c128], %44 {strides = array<i32>} : memref<8x288xf32, #tpu.memory_space<vmem>>, vector<4x32xf32>,
    %46 = vector.extract_strided_slice %39 {offsets = [0, 2, 0], sizes = [2, 2, 32], strides = [1, 1, 1]} : vector<2x4x32xf32> to vector<2x2x32xf32>
    %47 = vector.shape_cast %46 : vector<2x2x32xf32> to vector<4x32xf32>
    %c0_37 = arith.constant 0 : index
    %c160 = arith.constant 160 : index
    %48 = vector.load %arg7[%c0_37, %c160] : memref<8x288xf32, #tpu.memory_space<vmem>>, vector<4x32xf32>
    tpu.vector_store %arg7[%c0_37, %c160], %47 {strides = array<i32>} : memref<8x288xf32, #tpu.memory_space<vmem>>, vector<4x32xf32>,
    %c0_38 = arith.constant 0 : index
    %c2 = arith.constant 2 : index
    %c0_39 = arith.constant 0 : index
    %c0_40 = arith.constant 0 : index
    %49 = vector.load %arg6[%c0_38, %c2, %c0_39, %c0_40] : memref<2x4x4x32xf32, #tpu.memory_space<vmem>>, vector<1x2x4x32xf32>
    %50 = vector.shape_cast %49 : vector<1x2x4x32xf32> to vector<2x4x32xf32>
    %51 = vector.extract_strided_slice %50 {offsets = [0, 0, 0], sizes = [2, 2, 32], strides = [1, 1, 1]} : vector<2x4x32xf32> to vector<2x2x32xf32>
    %52 = vector.shape_cast %51 : vector<2x2x32xf32> to vector<4x32xf32>
    %c0_41 = arith.constant 0 : index
    %c192 = arith.constant 192 : index
    %53 = vector.load %arg7[%c0_41, %c192] : memref<8x288xf32, #tpu.memory_space<vmem>>, vector<4x32xf32>
    tpu.vector_store %arg7[%c0_41, %c192], %52 {strides = array<i32>} : memref<8x288xf32, #tpu.memory_space<vmem>>, vector<4x32xf32>,
    %54 = vector.extract_strided_slice %50 {offsets = [0, 1, 0], sizes = [2, 2, 32], strides = [1, 1, 1]} : vector<2x4x32xf32> to vector<2x2x32xf32>
    %55 = vector.shape_cast %54 : vector<2x2x32xf32> to vector<4x32xf32>
    %c0_42 = arith.constant 0 : index
    %c224 = arith.constant 224 : index
    %56 = vector.load %arg7[%c0_42, %c224] : memref<8x288xf32, #tpu.memory_space<vmem>>, vector<4x32xf32>
    tpu.vector_store %arg7[%c0_42, %c224], %55 {strides = array<i32>} : memref<8x288xf32, #tpu.memory_space<vmem>>, vector<4x32xf32>,
    %57 = vector.extract_strided_slice %50 {offsets = [0, 2, 0], sizes = [2, 2, 32], strides = [1, 1, 1]} : vector<2x4x32xf32> to vector<2x2x32xf32>
    %58 = vector.shape_cast %57 : vector<2x2x32xf32> to vector<4x32xf32>
    %c0_43 = arith.constant 0 : index
    %c256 = arith.constant 256 : index
    %59 = vector.load %arg7[%c0_43, %c256] : memref<8x288xf32, #tpu.memory_space<vmem>>, vector<4x32xf32>
    tpu.vector_store %arg7[%c0_43, %c256], %58 {strides = array<i32>} : memref<8x288xf32, #tpu.memory_space<vmem>>, vector<4x32xf32>,
    %c1_44 = arith.constant 1 : index
    %c0_45 = arith.constant 0 : index
    %c0_46 = arith.constant 0 : index
    %c0_47 = arith.constant 0 : index
    %60 = vector.load %arg6[%c1_44, %c0_45, %c0_46, %c0_47] : memref<2x4x4x32xf32, #tpu.memory_space<vmem>>, vector<1x2x4x32xf32>
    %61 = vector.shape_cast %60 : vector<1x2x4x32xf32> to vector<2x4x32xf32>
    %62 = vector.extract_strided_slice %61 {offsets = [0, 0, 0], sizes = [2, 2, 32], strides = [1, 1, 1]} : vector<2x4x32xf32> to vector<2x2x32xf32>
    %63 = vector.shape_cast %62 : vector<2x2x32xf32> to vector<4x32xf32>
    %c4 = arith.constant 4 : index
    %c0_48 = arith.constant 0 : index
    %64 = vector.load %arg7[%c4, %c0_48] : memref<8x288xf32, #tpu.memory_space<vmem>>, vector<4x32xf32>
    tpu.vector_store %arg7[%c4, %c0_48], %63 {strides = array<i32>} : memref<8x288xf32, #tpu.memory_space<vmem>>, vector<4x32xf32>,
    %65 = vector.extract_strided_slice %61 {offsets = [0, 1, 0], sizes = [2, 2, 32], strides = [1, 1, 1]} : vector<2x4x32xf32> to vector<2x2x32xf32>
    %66 = vector.shape_cast %65 : vector<2x2x32xf32> to vector<4x32xf32>
    %c4_49 = arith.constant 4 : index
    %c32_50 = arith.constant 32 : index
    %67 = vector.load %arg7[%c4_49, %c32_50] : memref<8x288xf32, #tpu.memory_space<vmem>>, vector<4x32xf32>
    tpu.vector_store %arg7[%c4_49, %c32_50], %66 {strides = array<i32>} : memref<8x288xf32, #tpu.memory_space<vmem>>, vector<4x32xf32>,
    %68 = vector.extract_strided_slice %61 {offsets = [0, 2, 0], sizes = [2, 2, 32], strides = [1, 1, 1]} : vector<2x4x32xf32> to vector<2x2x32xf32>
    %69 = vector.shape_cast %68 : vector<2x2x32xf32> to vector<4x32xf32>
    %c4_51 = arith.constant 4 : index
    %c64_52 = arith.constant 64 : index
    %70 = vector.load %arg7[%c4_51, %c64_52] : memref<8x288xf32, #tpu.memory_space<vmem>>, vector<4x32xf32>
    tpu.vector_store %arg7[%c4_51, %c64_52], %69 {strides = array<i32>} : memref<8x288xf32, #tpu.memory_space<vmem>>, vector<4x32xf32>,
    %c1_53 = arith.constant 1 : index
    %c1_54 = arith.constant 1 : index
    %c0_55 = arith.constant 0 : index
    %c0_56 = arith.constant 0 : index
    %71 = vector.load %arg6[%c1_53, %c1_54, %c0_55, %c0_56] : memref<2x4x4x32xf32, #tpu.memory_space<vmem>>, vector<1x2x4x32xf32>
    %72 = vector.shape_cast %71 : vector<1x2x4x32xf32> to vector<2x4x32xf32>
    %73 = vector.extract_strided_slice %72 {offsets = [0, 0, 0], sizes = [2, 2, 32], strides = [1, 1, 1]} : vector<2x4x32xf32> to vector<2x2x32xf32>
    %74 = vector.shape_cast %73 : vector<2x2x32xf32> to vector<4x32xf32>
    %c4_57 = arith.constant 4 : index
    %c96_58 = arith.constant 96 : index
    %75 = vector.load %arg7[%c4_57, %c96_58] : memref<8x288xf32, #tpu.memory_space<vmem>>, vector<4x32xf32>
    tpu.vector_store %arg7[%c4_57, %c96_58], %74 {strides = array<i32>} : memref<8x288xf32, #tpu.memory_space<vmem>>, vector<4x32xf32>,
    %76 = vector.extract_strided_slice %72 {offsets = [0, 1, 0], sizes = [2, 2, 32], strides = [1, 1, 1]} : vector<2x4x32xf32> to vector<2x2x32xf32>
    %77 = vector.shape_cast %76 : vector<2x2x32xf32> to vector<4x32xf32>
    %c4_59 = arith.constant 4 : index
    %c128_60 = arith.constant 128 : index
    %78 = vector.load %arg7[%c4_59, %c128_60] : memref<8x288xf32, #tpu.memory_space<vmem>>, vector<4x32xf32>
    tpu.vector_store %arg7[%c4_59, %c128_60], %77 {strides = array<i32>} : memref<8x288xf32, #tpu.memory_space<vmem>>, vector<4x32xf32>,
    %79 = vector.extract_strided_slice %72 {offsets = [0, 2, 0], sizes = [2, 2, 32], strides = [1, 1, 1]} : vector<2x4x32xf32> to vector<2x2x32xf32>
    %80 = vector.shape_cast %79 : vector<2x2x32xf32> to vector<4x32xf32>
    %c4_61 = arith.constant 4 : index
    %c160_62 = arith.constant 160 : index
    %81 = vector.load %arg7[%c4_61, %c160_62] : memref<8x288xf32, #tpu.memory_space<vmem>>, vector<4x32xf32>
    tpu.vector_store %arg7[%c4_61, %c160_62], %80 {strides = array<i32>} : memref<8x288xf32, #tpu.memory_space<vmem>>, vector<4x32xf32>,
    %c1_63 = arith.constant 1 : index
    %c2_64 = arith.constant 2 : index
    %c0_65 = arith.constant 0 : index
    %c0_66 = arith.constant 0 : index
    %82 = vector.load %arg6[%c1_63, %c2_64, %c0_65, %c0_66] : memref<2x4x4x32xf32, #tpu.memory_space<vmem>>, vector<1x2x4x32xf32>
    %83 = vector.shape_cast %82 : vector<1x2x4x32xf32> to vector<2x4x32xf32>
    %84 = vector.extract_strided_slice %83 {offsets = [0, 0, 0], sizes = [2, 2, 32], strides = [1, 1, 1]} : vector<2x4x32xf32> to vector<2x2x32xf32>
    %85 = vector.shape_cast %84 : vector<2x2x32xf32> to vector<4x32xf32>
    %c4_67 = arith.constant 4 : index
    %c192_68 = arith.constant 192 : index
    %86 = vector.load %arg7[%c4_67, %c192_68] : memref<8x288xf32, #tpu.memory_space<vmem>>, vector<4x32xf32>
    tpu.vector_store %arg7[%c4_67, %c192_68], %85 {strides = array<i32>} : memref<8x288xf32, #tpu.memory_space<vmem>>, vector<4x32xf32>,
    %87 = vector.extract_strided_slice %83 {offsets = [0, 1, 0], sizes = [2, 2, 32], strides = [1, 1, 1]} : vector<2x4x32xf32> to vector<2x2x32xf32>
    %88 = vector.shape_cast %87 : vector<2x2x32xf32> to vector<4x32xf32>
    %c4_69 = arith.constant 4 : index
    %c224_70 = arith.constant 224 : index
    %89 = vector.load %arg7[%c4_69, %c224_70] : memref<8x288xf32, #tpu.memory_space<vmem>>, vector<4x32xf32>
    tpu.vector_store %arg7[%c4_69, %c224_70], %88 {strides = array<i32>} : memref<8x288xf32, #tpu.memory_space<vmem>>, vector<4x32xf32>,
    %90 = vector.extract_strided_slice %83 {offsets = [0, 2, 0], sizes = [2, 2, 32], strides = [1, 1, 1]} : vector<2x4x32xf32> to vector<2x2x32xf32>
    %91 = vector.shape_cast %90 : vector<2x2x32xf32> to vector<4x32xf32>
    %c4_71 = arith.constant 4 : index
    %c256_72 = arith.constant 256 : index
    %92 = vector.load %arg7[%c4_71, %c256_72] : memref<8x288xf32, #tpu.memory_space<vmem>>, vector<4x32xf32>
    tpu.vector_store %arg7[%c4_71, %c256_72], %91 {strides = array<i32>} : memref<8x288xf32, #tpu.memory_space<vmem>>, vector<4x32xf32>,
    %c0_73 = arith.constant 0 : index
    %c0_74 = arith.constant 0 : index
    %93 = vector.load %arg4[%c0_73, %c0_74] : memref<1x64xf32, #tpu.memory_space<vmem>>, vector<1x64xf32>
    %c0_75 = arith.constant 0 : index
    %c0_76 = arith.constant 0 : index
    %94 = vector.load %arg7[%c0_75, %c0_76] : memref<8x288xf32, #tpu.memory_space<vmem>>, vector<8x288xf32>
    %c0_77 = arith.constant 0 : index
    %c0_78 = arith.constant 0 : index
    %95 = vector.load %arg3[%c0_77, %c0_78] : memref<288x64xf32, #tpu.memory_space<vmem>>, vector<288x64xf32>
    %cst_79 = arith.constant dense<0.000000e+00> : vector<8x64xf32>
    %96 = tpu.matmul %94, %95, %cst_79 {dimension_numbers = #tpu.dot_dimension_numbers<[1], [0], [0], [1], [0, 0, 1, 1], [], []>} : vector<8x288xf32>, vector<288x64xf32>, vector<8x64xf32> -> vector<8x64xf32>
    %97 = vector.broadcast %93 : vector<1x64xf32> to vector<8x64xf32>
    %98 = arith.addf %96, %97 : vector<8x64xf32>
    %cst_80 = arith.constant 0.000000e+00 : f32
    %99 = vector.broadcast %cst_80 : f32 to vector<8x64xf32>
    %100 = arith.maximumf %98, %99 : vector<8x64xf32>
    %101 = vector.extract_strided_slice %100 {offsets = [0, 0], sizes = [4, 64], strides = [1, 1]} : vector<8x64xf32> to vector<4x64xf32>
    %102 = vector.extract_strided_slice %101 {offsets = [0, 0], sizes = [4, 32], strides = [1, 1]} : vector<4x64xf32> to vector<4x32xf32>
    %103 = vector.shape_cast %102 : vector<4x32xf32> to vector<2x2x32xf32>
    %c0_81 = arith.constant 0 : index
    %c0_82 = arith.constant 0 : index
    %c0_83 = arith.constant 0 : index
    %c0_84 = arith.constant 0 : index
    %c0_85 = arith.constant 0 : index
    %104 = vector.load %arg5[%c0_81, %c0_82, %c0_83, %c0_84, %c0_85] : memref<2x2x2x2x32xf32, #tpu.memory_space<vmem>>, vector<1x2x1x2x32xf32>
    %105 = vector.shape_cast %104 : vector<1x2x1x2x32xf32> to vector<2x2x32xf32>
    %106 = vector.shape_cast %103 : vector<2x2x32xf32> to vector<1x2x1x2x32xf32>
    tpu.vector_store %arg5[%c0_81, %c0_82, %c0_83, %c0_84, %c0_85], %106 {strides = array<i32>} : memref<2x2x2x2x32xf32, #tpu.memory_space<vmem>>, vector<1x2x1x2x32xf32>,
    %107 = vector.extract_strided_slice %101 {offsets = [0, 32], sizes = [4, 32], strides = [1, 1]} : vector<4x64xf32> to vector<4x32xf32>
    %108 = vector.shape_cast %107 : vector<4x32xf32> to vector<2x2x32xf32>
    %c0_86 = arith.constant 0 : index
    %c0_87 = arith.constant 0 : index
    %c1_88 = arith.constant 1 : index
    %c0_89 = arith.constant 0 : index
    %c0_90 = arith.constant 0 : index
    %109 = vector.load %arg5[%c0_86, %c0_87, %c1_88, %c0_89, %c0_90] : memref<2x2x2x2x32xf32, #tpu.memory_space<vmem>>, vector<1x2x1x2x32xf32>
    %110 = vector.shape_cast %109 : vector<1x2x1x2x32xf32> to vector<2x2x32xf32>
    %111 = vector.shape_cast %108 : vector<2x2x32xf32> to vector<1x2x1x2x32xf32>
    tpu.vector_store %arg5[%c0_86, %c0_87, %c1_88, %c0_89, %c0_90], %111 {strides = array<i32>} : memref<2x2x2x2x32xf32, #tpu.memory_space<vmem>>, vector<1x2x1x2x32xf32>,
    %112 = vector.extract_strided_slice %100 {offsets = [4, 0], sizes = [4, 64], strides = [1, 1]} : vector<8x64xf32> to vector<4x64xf32>
    %113 = vector.extract_strided_slice %112 {offsets = [0, 0], sizes = [4, 32], strides = [1, 1]} : vector<4x64xf32> to vector<4x32xf32>
    %114 = vector.shape_cast %113 : vector<4x32xf32> to vector<2x2x32xf32>
    %c1_91 = arith.constant 1 : index
    %c0_92 = arith.constant 0 : index
    %c0_93 = arith.constant 0 : index
    %c0_94 = arith.constant 0 : index
    %c0_95 = arith.constant 0 : index
    %115 = vector.load %arg5[%c1_91, %c0_92, %c0_93, %c0_94, %c0_95] : memref<2x2x2x2x32xf32, #tpu.memory_space<vmem>>, vector<1x2x1x2x32xf32>
    %116 = vector.shape_cast %115 : vector<1x2x1x2x32xf32> to vector<2x2x32xf32>
    %117 = vector.shape_cast %114 : vector<2x2x32xf32> to vector<1x2x1x2x32xf32>
    tpu.vector_store %arg5[%c1_91, %c0_92, %c0_93, %c0_94, %c0_95], %117 {strides = array<i32>} : memref<2x2x2x2x32xf32, #tpu.memory_space<vmem>>, vector<1x2x1x2x32xf32>,
    %118 = vector.extract_strided_slice %112 {offsets = [0, 32], sizes = [4, 32], strides = [1, 1]} : vector<4x64xf32> to vector<4x32xf32>
    %119 = vector.shape_cast %118 : vector<4x32xf32> to vector<2x2x32xf32>
    %c1_96 = arith.constant 1 : index
    %c0_97 = arith.constant 0 : index
    %c1_98 = arith.constant 1 : index
    %c0_99 = arith.constant 0 : index
    %c0_100 = arith.constant 0 : index
    %120 = vector.load %arg5[%c1_96, %c0_97, %c1_98, %c0_99, %c0_100] : memref<2x2x2x2x32xf32, #tpu.memory_space<vmem>>, vector<1x2x1x2x32xf32>
    %121 = vector.shape_cast %120 : vector<1x2x1x2x32xf32> to vector<2x2x32xf32>
    %122 = vector.shape_cast %119 : vector<2x2x32xf32> to vector<1x2x1x2x32xf32>
    tpu.vector_store %arg5[%c1_96, %c0_97, %c1_98, %c0_99, %c0_100], %122 {strides = array<i32>} : memref<2x2x2x2x32xf32, #tpu.memory_space<vmem>>, vector<1x2x1x2x32xf32>,
    return
  }
  func.func @transform_0(%arg0: i32, %arg1: i32) -> (i32, i32, i32, i32) {
    %c0_i32 = arith.constant 0 : i32
    %c0_i32_0 = arith.constant 0 : i32
    %c0_i32_1 = arith.constant 0 : i32
    %c0_i32_2 = arith.constant 0 : i32
    return %arg0, %c0_i32, %c0_i32_0, %c0_i32_1 : i32, i32, i32, i32
  }
  func.func @transform_1(%arg0: i32, %arg1: i32) -> (i32, i32) {
    %c0_i32 = arith.constant 0 : i32
    %c0_i32_0 = arith.constant 0 : i32
    %c0_i32_1 = arith.constant 0 : i32
    return %c0_i32, %c0_i32_0 : i32, i32
  }
  func.func @transform_2(%arg0: i32, %arg1: i32) -> (i32, i32) {
    %c0_i32 = arith.constant 0 : i32
    %c0_i32_0 = arith.constant 0 : i32
    %c0_i32_1 = arith.constant 0 : i32
    return %c0_i32, %c0_i32_0 : i32, i32
  }
  func.func @transform_3(%arg0: i32, %arg1: i32) -> (i32, i32, i32, i32, i32) {
    %c0_i32 = arith.constant 0 : i32
    %c0_i32_0 = arith.constant 0 : i32
    %c0_i32_1 = arith.constant 0 : i32
    %c0_i32_2 = arith.constant 0 : i32
    return %arg0, %arg1, %c0_i32, %c0_i32_0, %c0_i32_1 : i32, i32, i32, i32, i32
  }
}

module attributes {stable_mosaic.version = 11 : i64} {
  func.func @_fused_upsample_deconv_relu_kernel(%arg0: i32, %arg1: i32, %arg2: memref<2x4x4x16xf32, #tpu.memory_space<vmem>>, %arg3: memref<144x32xf32, #tpu.memory_space<vmem>>, %arg4: memref<1x32xf32, #tpu.memory_space<vmem>>, %arg5: memref<2x4x2x4x16xf32, #tpu.memory_space<vmem>>, %arg6: memref<2x6x6x16xf32, #tpu.memory_space<vmem>>, %arg7: memref<32x144xf32, #tpu.memory_space<vmem>>) attributes {dimension_semantics = [#tpu.dimension_semantics<parallel>, #tpu.dimension_semantics<parallel>], iteration_bounds = array<i64: 1, 1>, scalar_prefetch = 0 : i64, scratch_operands = 2 : i64, tpu.core_type = #tpu.core_type<tc>, window_params = [{transform_indices = @transform_0, window_bounds = array<i64: 2, 4, 4, 16>}, {pipeline_mode = #tpu.pipeline_mode<synchronous>, transform_indices = @transform_1, window_bounds = array<i64: 144, 32>}, {pipeline_mode = #tpu.pipeline_mode<synchronous>, transform_indices = @transform_2, window_bounds = array<i64: 1, 32>}, {transform_indices = @transform_3, window_bounds = array<i64: 2, 4, 2, 4, 16>}]} {
    %c4_i32 = arith.constant 4 : i32
    %0 = arith.muli %arg1, %c4_i32 : i32
    %cst = arith.constant 0.000000e+00 : f32
    %1 = vector.broadcast %cst : f32 to vector<2x6x6x16xf32>
    %c0 = arith.constant 0 : index
    %c0_0 = arith.constant 0 : index
    %c0_1 = arith.constant 0 : index
    %c0_2 = arith.constant 0 : index
    %2 = vector.load %arg6[%c0, %c0_0, %c0_1, %c0_2] : memref<2x6x6x16xf32, #tpu.memory_space<vmem>>, vector<2x6x6x16xf32>
    tpu.vector_store %arg6[%c0, %c0_0, %c0_1, %c0_2], %1 {strides = array<i32>} : memref<2x6x6x16xf32, #tpu.memory_space<vmem>>, vector<2x6x6x16xf32>,
    %c0_3 = arith.constant 0 : index
    %3 = arith.index_cast %0 : i32 to index
    %c0_4 = arith.constant 0 : index
    %c0_5 = arith.constant 0 : index
    %4 = vector.load %arg2[%c0_3, %3, %c0_4, %c0_5] : memref<2x4x4x16xf32, #tpu.memory_space<vmem>>, vector<1x4x4x16xf32>
    %5 = vector.shape_cast %4 : vector<1x4x4x16xf32> to vector<4x4x16xf32>
    %c0_6 = arith.constant 0 : index
    %c1 = arith.constant 1 : index
    %c1_7 = arith.constant 1 : index
    %c0_8 = arith.constant 0 : index
    %6 = vector.load %arg6[%c0_6, %c1, %c1_7, %c0_8] : memref<2x6x6x16xf32, #tpu.memory_space<vmem>>, vector<1x4x4x16xf32>
    %7 = vector.shape_cast %6 : vector<1x4x4x16xf32> to vector<4x4x16xf32>
    %8 = vector.shape_cast %5 : vector<4x4x16xf32> to vector<1x4x4x16xf32>
    tpu.vector_store %arg6[%c0_6, %c1, %c1_7, %c0_8], %8 {strides = array<i32>} : memref<2x6x6x16xf32, #tpu.memory_space<vmem>>, vector<1x4x4x16xf32>,
    %c0_i32 = arith.constant 0 : i32
    %9 = arith.cmpi sgt, %arg1, %c0_i32 : i32
    %10 = arith.extui %9 : i1 to i32
    %c0_i32_9 = arith.constant 0 : i32
    %11 = arith.cmpi ne, %10, %c0_i32_9 : i32
    scf.if %11 {
      %c1_i32 = arith.constant 1 : i32
      %123 = arith.subi %0, %c1_i32 : i32
      %c0_i32_102 = arith.constant 0 : i32
      %124 = arith.maxsi %123, %c0_i32_102 : i32
      %c0_103 = arith.constant 0 : index
      %125 = arith.index_cast %124 : i32 to index
      %c0_104 = arith.constant 0 : index
      %c0_105 = arith.constant 0 : index
      %126 = vector.load %arg2[%c0_103, %125, %c0_104, %c0_105] : memref<2x4x4x16xf32, #tpu.memory_space<vmem>>, vector<1x1x4x16xf32>
      %127 = vector.shape_cast %126 : vector<1x1x4x16xf32> to vector<1x4x16xf32>
      %c0_106 = arith.constant 0 : index
      %c0_107 = arith.constant 0 : index
      %c1_108 = arith.constant 1 : index
      %c0_109 = arith.constant 0 : index
      %128 = vector.load %arg6[%c0_106, %c0_107, %c1_108, %c0_109] : memref<2x6x6x16xf32, #tpu.memory_space<vmem>>, vector<1x1x4x16xf32>
      %129 = vector.shape_cast %128 : vector<1x1x4x16xf32> to vector<1x4x16xf32>
      %130 = vector.shape_cast %127 : vector<1x4x16xf32> to vector<1x1x4x16xf32>
      tpu.vector_store %arg6[%c0_106, %c0_107, %c1_108, %c0_109], %130 {strides = array<i32>} : memref<2x6x6x16xf32, #tpu.memory_space<vmem>>, vector<1x1x4x16xf32>,
    } else {
    }
    %c0_i32_10 = arith.constant 0 : i32
    %12 = arith.cmpi slt, %arg1, %c0_i32_10 : i32
    %13 = arith.extui %12 : i1 to i32
    %c0_i32_11 = arith.constant 0 : i32
    %14 = arith.cmpi ne, %13, %c0_i32_11 : i32
    scf.if %14 {
      %c4_i32_102 = arith.constant 4 : i32
      %123 = arith.addi %0, %c4_i32_102 : i32
      %c3_i32 = arith.constant 3 : i32
      %124 = arith.minsi %123, %c3_i32 : i32
      %c0_103 = arith.constant 0 : index
      %125 = arith.index_cast %124 : i32 to index
      %c0_104 = arith.constant 0 : index
      %c0_105 = arith.constant 0 : index
      %126 = vector.load %arg2[%c0_103, %125, %c0_104, %c0_105] : memref<2x4x4x16xf32, #tpu.memory_space<vmem>>, vector<1x1x4x16xf32>
      %127 = vector.shape_cast %126 : vector<1x1x4x16xf32> to vector<1x4x16xf32>
      %c0_106 = arith.constant 0 : index
      %c5 = arith.constant 5 : index
      %c1_107 = arith.constant 1 : index
      %c0_108 = arith.constant 0 : index
      %128 = vector.load %arg6[%c0_106, %c5, %c1_107, %c0_108] : memref<2x6x6x16xf32, #tpu.memory_space<vmem>>, vector<1x1x4x16xf32>
      %129 = vector.shape_cast %128 : vector<1x1x4x16xf32> to vector<1x4x16xf32>
      %130 = vector.shape_cast %127 : vector<1x4x16xf32> to vector<1x1x4x16xf32>
      tpu.vector_store %arg6[%c0_106, %c5, %c1_107, %c0_108], %130 {strides = array<i32>} : memref<2x6x6x16xf32, #tpu.memory_space<vmem>>, vector<1x1x4x16xf32>,
    } else {
    }
    %c1_12 = arith.constant 1 : index
    %15 = arith.index_cast %0 : i32 to index
    %c0_13 = arith.constant 0 : index
    %c0_14 = arith.constant 0 : index
    %16 = vector.load %arg2[%c1_12, %15, %c0_13, %c0_14] : memref<2x4x4x16xf32, #tpu.memory_space<vmem>>, vector<1x4x4x16xf32>
    %17 = vector.shape_cast %16 : vector<1x4x4x16xf32> to vector<4x4x16xf32>
    %c1_15 = arith.constant 1 : index
    %c1_16 = arith.constant 1 : index
    %c1_17 = arith.constant 1 : index
    %c0_18 = arith.constant 0 : index
    %18 = vector.load %arg6[%c1_15, %c1_16, %c1_17, %c0_18] : memref<2x6x6x16xf32, #tpu.memory_space<vmem>>, vector<1x4x4x16xf32>
    %19 = vector.shape_cast %18 : vector<1x4x4x16xf32> to vector<4x4x16xf32>
    %20 = vector.shape_cast %17 : vector<4x4x16xf32> to vector<1x4x4x16xf32>
    tpu.vector_store %arg6[%c1_15, %c1_16, %c1_17, %c0_18], %20 {strides = array<i32>} : memref<2x6x6x16xf32, #tpu.memory_space<vmem>>, vector<1x4x4x16xf32>,
    %c0_i32_19 = arith.constant 0 : i32
    %21 = arith.cmpi sgt, %arg1, %c0_i32_19 : i32
    %22 = arith.extui %21 : i1 to i32
    %c0_i32_20 = arith.constant 0 : i32
    %23 = arith.cmpi ne, %22, %c0_i32_20 : i32
    scf.if %23 {
      %c1_i32 = arith.constant 1 : i32
      %123 = arith.subi %0, %c1_i32 : i32
      %c0_i32_102 = arith.constant 0 : i32
      %124 = arith.maxsi %123, %c0_i32_102 : i32
      %c1_103 = arith.constant 1 : index
      %125 = arith.index_cast %124 : i32 to index
      %c0_104 = arith.constant 0 : index
      %c0_105 = arith.constant 0 : index
      %126 = vector.load %arg2[%c1_103, %125, %c0_104, %c0_105] : memref<2x4x4x16xf32, #tpu.memory_space<vmem>>, vector<1x1x4x16xf32>
      %127 = vector.shape_cast %126 : vector<1x1x4x16xf32> to vector<1x4x16xf32>
      %c1_106 = arith.constant 1 : index
      %c0_107 = arith.constant 0 : index
      %c1_108 = arith.constant 1 : index
      %c0_109 = arith.constant 0 : index
      %128 = vector.load %arg6[%c1_106, %c0_107, %c1_108, %c0_109] : memref<2x6x6x16xf32, #tpu.memory_space<vmem>>, vector<1x1x4x16xf32>
      %129 = vector.shape_cast %128 : vector<1x1x4x16xf32> to vector<1x4x16xf32>
      %130 = vector.shape_cast %127 : vector<1x4x16xf32> to vector<1x1x4x16xf32>
      tpu.vector_store %arg6[%c1_106, %c0_107, %c1_108, %c0_109], %130 {strides = array<i32>} : memref<2x6x6x16xf32, #tpu.memory_space<vmem>>, vector<1x1x4x16xf32>,
    } else {
    }
    %c0_i32_21 = arith.constant 0 : i32
    %24 = arith.cmpi slt, %arg1, %c0_i32_21 : i32
    %25 = arith.extui %24 : i1 to i32
    %c0_i32_22 = arith.constant 0 : i32
    %26 = arith.cmpi ne, %25, %c0_i32_22 : i32
    scf.if %26 {
      %c4_i32_102 = arith.constant 4 : i32
      %123 = arith.addi %0, %c4_i32_102 : i32
      %c3_i32 = arith.constant 3 : i32
      %124 = arith.minsi %123, %c3_i32 : i32
      %c1_103 = arith.constant 1 : index
      %125 = arith.index_cast %124 : i32 to index
      %c0_104 = arith.constant 0 : index
      %c0_105 = arith.constant 0 : index
      %126 = vector.load %arg2[%c1_103, %125, %c0_104, %c0_105] : memref<2x4x4x16xf32, #tpu.memory_space<vmem>>, vector<1x1x4x16xf32>
      %127 = vector.shape_cast %126 : vector<1x1x4x16xf32> to vector<1x4x16xf32>
      %c1_106 = arith.constant 1 : index
      %c5 = arith.constant 5 : index
      %c1_107 = arith.constant 1 : index
      %c0_108 = arith.constant 0 : index
      %128 = vector.load %arg6[%c1_106, %c5, %c1_107, %c0_108] : memref<2x6x6x16xf32, #tpu.memory_space<vmem>>, vector<1x1x4x16xf32>
      %129 = vector.shape_cast %128 : vector<1x1x4x16xf32> to vector<1x4x16xf32>
      %130 = vector.shape_cast %127 : vector<1x4x16xf32> to vector<1x1x4x16xf32>
      tpu.vector_store %arg6[%c1_106, %c5, %c1_107, %c0_108], %130 {strides = array<i32>} : memref<2x6x6x16xf32, #tpu.memory_space<vmem>>, vector<1x1x4x16xf32>,
    } else {
    }
    %c0_23 = arith.constant 0 : index
    %c0_24 = arith.constant 0 : index
    %c0_25 = arith.constant 0 : index
    %c0_26 = arith.constant 0 : index
    %27 = vector.load %arg6[%c0_23, %c0_24, %c0_25, %c0_26] : memref<2x6x6x16xf32, #tpu.memory_space<vmem>>, vector<1x4x6x16xf32>
    %28 = vector.shape_cast %27 : vector<1x4x6x16xf32> to vector<4x6x16xf32>
    %29 = vector.extract_strided_slice %28 {offsets = [0, 0, 0], sizes = [4, 4, 16], strides = [1, 1, 1]} : vector<4x6x16xf32> to vector<4x4x16xf32>
    %30 = vector.shape_cast %29 : vector<4x4x16xf32> to vector<16x16xf32>
    %c0_27 = arith.constant 0 : index
    %c0_28 = arith.constant 0 : index
    %31 = vector.load %arg7[%c0_27, %c0_28] : memref<32x144xf32, #tpu.memory_space<vmem>>, vector<16x16xf32>
    tpu.vector_store %arg7[%c0_27, %c0_28], %30 {strides = array<i32>} : memref<32x144xf32, #tpu.memory_space<vmem>>, vector<16x16xf32>,
    %32 = vector.extract_strided_slice %28 {offsets = [0, 1, 0], sizes = [4, 4, 16], strides = [1, 1, 1]} : vector<4x6x16xf32> to vector<4x4x16xf32>
    %33 = vector.shape_cast %32 : vector<4x4x16xf32> to vector<16x16xf32>
    %c0_29 = arith.constant 0 : index
    %c16 = arith.constant 16 : index
    %34 = vector.load %arg7[%c0_29, %c16] : memref<32x144xf32, #tpu.memory_space<vmem>>, vector<16x16xf32>
    tpu.vector_store %arg7[%c0_29, %c16], %33 {strides = array<i32>} : memref<32x144xf32, #tpu.memory_space<vmem>>, vector<16x16xf32>,
    %35 = vector.extract_strided_slice %28 {offsets = [0, 2, 0], sizes = [4, 4, 16], strides = [1, 1, 1]} : vector<4x6x16xf32> to vector<4x4x16xf32>
    %36 = vector.shape_cast %35 : vector<4x4x16xf32> to vector<16x16xf32>
    %c0_30 = arith.constant 0 : index
    %c32 = arith.constant 32 : index
    %37 = vector.load %arg7[%c0_30, %c32] : memref<32x144xf32, #tpu.memory_space<vmem>>, vector<16x16xf32>
    tpu.vector_store %arg7[%c0_30, %c32], %36 {strides = array<i32>} : memref<32x144xf32, #tpu.memory_space<vmem>>, vector<16x16xf32>,
    %c0_31 = arith.constant 0 : index
    %c1_32 = arith.constant 1 : index
    %c0_33 = arith.constant 0 : index
    %c0_34 = arith.constant 0 : index
    %38 = vector.load %arg6[%c0_31, %c1_32, %c0_33, %c0_34] : memref<2x6x6x16xf32, #tpu.memory_space<vmem>>, vector<1x4x6x16xf32>
    %39 = vector.shape_cast %38 : vector<1x4x6x16xf32> to vector<4x6x16xf32>
    %40 = vector.extract_strided_slice %39 {offsets = [0, 0, 0], sizes = [4, 4, 16], strides = [1, 1, 1]} : vector<4x6x16xf32> to vector<4x4x16xf32>
    %41 = vector.shape_cast %40 : vector<4x4x16xf32> to vector<16x16xf32>
    %c0_35 = arith.constant 0 : index
    %c48 = arith.constant 48 : index
    %42 = vector.load %arg7[%c0_35, %c48] : memref<32x144xf32, #tpu.memory_space<vmem>>, vector<16x16xf32>
    tpu.vector_store %arg7[%c0_35, %c48], %41 {strides = array<i32>} : memref<32x144xf32, #tpu.memory_space<vmem>>, vector<16x16xf32>,
    %43 = vector.extract_strided_slice %39 {offsets = [0, 1, 0], sizes = [4, 4, 16], strides = [1, 1, 1]} : vector<4x6x16xf32> to vector<4x4x16xf32>
    %44 = vector.shape_cast %43 : vector<4x4x16xf32> to vector<16x16xf32>
    %c0_36 = arith.constant 0 : index
    %c64 = arith.constant 64 : index
    %45 = vector.load %arg7[%c0_36, %c64] : memref<32x144xf32, #tpu.memory_space<vmem>>, vector<16x16xf32>
    tpu.vector_store %arg7[%c0_36, %c64], %44 {strides = array<i32>} : memref<32x144xf32, #tpu.memory_space<vmem>>, vector<16x16xf32>,
    %46 = vector.extract_strided_slice %39 {offsets = [0, 2, 0], sizes = [4, 4, 16], strides = [1, 1, 1]} : vector<4x6x16xf32> to vector<4x4x16xf32>
    %47 = vector.shape_cast %46 : vector<4x4x16xf32> to vector<16x16xf32>
    %c0_37 = arith.constant 0 : index
    %c80 = arith.constant 80 : index
    %48 = vector.load %arg7[%c0_37, %c80] : memref<32x144xf32, #tpu.memory_space<vmem>>, vector<16x16xf32>
    tpu.vector_store %arg7[%c0_37, %c80], %47 {strides = array<i32>} : memref<32x144xf32, #tpu.memory_space<vmem>>, vector<16x16xf32>,
    %c0_38 = arith.constant 0 : index
    %c2 = arith.constant 2 : index
    %c0_39 = arith.constant 0 : index
    %c0_40 = arith.constant 0 : index
    %49 = vector.load %arg6[%c0_38, %c2, %c0_39, %c0_40] : memref<2x6x6x16xf32, #tpu.memory_space<vmem>>, vector<1x4x6x16xf32>
    %50 = vector.shape_cast %49 : vector<1x4x6x16xf32> to vector<4x6x16xf32>
    %51 = vector.extract_strided_slice %50 {offsets = [0, 0, 0], sizes = [4, 4, 16], strides = [1, 1, 1]} : vector<4x6x16xf32> to vector<4x4x16xf32>
    %52 = vector.shape_cast %51 : vector<4x4x16xf32> to vector<16x16xf32>
    %c0_41 = arith.constant 0 : index
    %c96 = arith.constant 96 : index
    %53 = vector.load %arg7[%c0_41, %c96] : memref<32x144xf32, #tpu.memory_space<vmem>>, vector<16x16xf32>
    tpu.vector_store %arg7[%c0_41, %c96], %52 {strides = array<i32>} : memref<32x144xf32, #tpu.memory_space<vmem>>, vector<16x16xf32>,
    %54 = vector.extract_strided_slice %50 {offsets = [0, 1, 0], sizes = [4, 4, 16], strides = [1, 1, 1]} : vector<4x6x16xf32> to vector<4x4x16xf32>
    %55 = vector.shape_cast %54 : vector<4x4x16xf32> to vector<16x16xf32>
    %c0_42 = arith.constant 0 : index
    %c112 = arith.constant 112 : index
    %56 = vector.load %arg7[%c0_42, %c112] : memref<32x144xf32, #tpu.memory_space<vmem>>, vector<16x16xf32>
    tpu.vector_store %arg7[%c0_42, %c112], %55 {strides = array<i32>} : memref<32x144xf32, #tpu.memory_space<vmem>>, vector<16x16xf32>,
    %57 = vector.extract_strided_slice %50 {offsets = [0, 2, 0], sizes = [4, 4, 16], strides = [1, 1, 1]} : vector<4x6x16xf32> to vector<4x4x16xf32>
    %58 = vector.shape_cast %57 : vector<4x4x16xf32> to vector<16x16xf32>
    %c0_43 = arith.constant 0 : index
    %c128 = arith.constant 128 : index
    %59 = vector.load %arg7[%c0_43, %c128] : memref<32x144xf32, #tpu.memory_space<vmem>>, vector<16x16xf32>
    tpu.vector_store %arg7[%c0_43, %c128], %58 {strides = array<i32>} : memref<32x144xf32, #tpu.memory_space<vmem>>, vector<16x16xf32>,
    %c1_44 = arith.constant 1 : index
    %c0_45 = arith.constant 0 : index
    %c0_46 = arith.constant 0 : index
    %c0_47 = arith.constant 0 : index
    %60 = vector.load %arg6[%c1_44, %c0_45, %c0_46, %c0_47] : memref<2x6x6x16xf32, #tpu.memory_space<vmem>>, vector<1x4x6x16xf32>
    %61 = vector.shape_cast %60 : vector<1x4x6x16xf32> to vector<4x6x16xf32>
    %62 = vector.extract_strided_slice %61 {offsets = [0, 0, 0], sizes = [4, 4, 16], strides = [1, 1, 1]} : vector<4x6x16xf32> to vector<4x4x16xf32>
    %63 = vector.shape_cast %62 : vector<4x4x16xf32> to vector<16x16xf32>
    %c16_48 = arith.constant 16 : index
    %c0_49 = arith.constant 0 : index
    %64 = vector.load %arg7[%c16_48, %c0_49] : memref<32x144xf32, #tpu.memory_space<vmem>>, vector<16x16xf32>
    tpu.vector_store %arg7[%c16_48, %c0_49], %63 {strides = array<i32>} : memref<32x144xf32, #tpu.memory_space<vmem>>, vector<16x16xf32>,
    %65 = vector.extract_strided_slice %61 {offsets = [0, 1, 0], sizes = [4, 4, 16], strides = [1, 1, 1]} : vector<4x6x16xf32> to vector<4x4x16xf32>
    %66 = vector.shape_cast %65 : vector<4x4x16xf32> to vector<16x16xf32>
    %c16_50 = arith.constant 16 : index
    %c16_51 = arith.constant 16 : index
    %67 = vector.load %arg7[%c16_50, %c16_51] : memref<32x144xf32, #tpu.memory_space<vmem>>, vector<16x16xf32>
    tpu.vector_store %arg7[%c16_50, %c16_51], %66 {strides = array<i32>} : memref<32x144xf32, #tpu.memory_space<vmem>>, vector<16x16xf32>,
    %68 = vector.extract_strided_slice %61 {offsets = [0, 2, 0], sizes = [4, 4, 16], strides = [1, 1, 1]} : vector<4x6x16xf32> to vector<4x4x16xf32>
    %69 = vector.shape_cast %68 : vector<4x4x16xf32> to vector<16x16xf32>
    %c16_52 = arith.constant 16 : index
    %c32_53 = arith.constant 32 : index
    %70 = vector.load %arg7[%c16_52, %c32_53] : memref<32x144xf32, #tpu.memory_space<vmem>>, vector<16x16xf32>
    tpu.vector_store %arg7[%c16_52, %c32_53], %69 {strides = array<i32>} : memref<32x144xf32, #tpu.memory_space<vmem>>, vector<16x16xf32>,
    %c1_54 = arith.constant 1 : index
    %c1_55 = arith.constant 1 : index
    %c0_56 = arith.constant 0 : index
    %c0_57 = arith.constant 0 : index
    %71 = vector.load %arg6[%c1_54, %c1_55, %c0_56, %c0_57] : memref<2x6x6x16xf32, #tpu.memory_space<vmem>>, vector<1x4x6x16xf32>
    %72 = vector.shape_cast %71 : vector<1x4x6x16xf32> to vector<4x6x16xf32>
    %73 = vector.extract_strided_slice %72 {offsets = [0, 0, 0], sizes = [4, 4, 16], strides = [1, 1, 1]} : vector<4x6x16xf32> to vector<4x4x16xf32>
    %74 = vector.shape_cast %73 : vector<4x4x16xf32> to vector<16x16xf32>
    %c16_58 = arith.constant 16 : index
    %c48_59 = arith.constant 48 : index
    %75 = vector.load %arg7[%c16_58, %c48_59] : memref<32x144xf32, #tpu.memory_space<vmem>>, vector<16x16xf32>
    tpu.vector_store %arg7[%c16_58, %c48_59], %74 {strides = array<i32>} : memref<32x144xf32, #tpu.memory_space<vmem>>, vector<16x16xf32>,
    %76 = vector.extract_strided_slice %72 {offsets = [0, 1, 0], sizes = [4, 4, 16], strides = [1, 1, 1]} : vector<4x6x16xf32> to vector<4x4x16xf32>
    %77 = vector.shape_cast %76 : vector<4x4x16xf32> to vector<16x16xf32>
    %c16_60 = arith.constant 16 : index
    %c64_61 = arith.constant 64 : index
    %78 = vector.load %arg7[%c16_60, %c64_61] : memref<32x144xf32, #tpu.memory_space<vmem>>, vector<16x16xf32>
    tpu.vector_store %arg7[%c16_60, %c64_61], %77 {strides = array<i32>} : memref<32x144xf32, #tpu.memory_space<vmem>>, vector<16x16xf32>,
    %79 = vector.extract_strided_slice %72 {offsets = [0, 2, 0], sizes = [4, 4, 16], strides = [1, 1, 1]} : vector<4x6x16xf32> to vector<4x4x16xf32>
    %80 = vector.shape_cast %79 : vector<4x4x16xf32> to vector<16x16xf32>
    %c16_62 = arith.constant 16 : index
    %c80_63 = arith.constant 80 : index
    %81 = vector.load %arg7[%c16_62, %c80_63] : memref<32x144xf32, #tpu.memory_space<vmem>>, vector<16x16xf32>
    tpu.vector_store %arg7[%c16_62, %c80_63], %80 {strides = array<i32>} : memref<32x144xf32, #tpu.memory_space<vmem>>, vector<16x16xf32>,
    %c1_64 = arith.constant 1 : index
    %c2_65 = arith.constant 2 : index
    %c0_66 = arith.constant 0 : index
    %c0_67 = arith.constant 0 : index
    %82 = vector.load %arg6[%c1_64, %c2_65, %c0_66, %c0_67] : memref<2x6x6x16xf32, #tpu.memory_space<vmem>>, vector<1x4x6x16xf32>
    %83 = vector.shape_cast %82 : vector<1x4x6x16xf32> to vector<4x6x16xf32>
    %84 = vector.extract_strided_slice %83 {offsets = [0, 0, 0], sizes = [4, 4, 16], strides = [1, 1, 1]} : vector<4x6x16xf32> to vector<4x4x16xf32>
    %85 = vector.shape_cast %84 : vector<4x4x16xf32> to vector<16x16xf32>
    %c16_68 = arith.constant 16 : index
    %c96_69 = arith.constant 96 : index
    %86 = vector.load %arg7[%c16_68, %c96_69] : memref<32x144xf32, #tpu.memory_space<vmem>>, vector<16x16xf32>
    tpu.vector_store %arg7[%c16_68, %c96_69], %85 {strides = array<i32>} : memref<32x144xf32, #tpu.memory_space<vmem>>, vector<16x16xf32>,
    %87 = vector.extract_strided_slice %83 {offsets = [0, 1, 0], sizes = [4, 4, 16], strides = [1, 1, 1]} : vector<4x6x16xf32> to vector<4x4x16xf32>
    %88 = vector.shape_cast %87 : vector<4x4x16xf32> to vector<16x16xf32>
    %c16_70 = arith.constant 16 : index
    %c112_71 = arith.constant 112 : index
    %89 = vector.load %arg7[%c16_70, %c112_71] : memref<32x144xf32, #tpu.memory_space<vmem>>, vector<16x16xf32>
    tpu.vector_store %arg7[%c16_70, %c112_71], %88 {strides = array<i32>} : memref<32x144xf32, #tpu.memory_space<vmem>>, vector<16x16xf32>,
    %90 = vector.extract_strided_slice %83 {offsets = [0, 2, 0], sizes = [4, 4, 16], strides = [1, 1, 1]} : vector<4x6x16xf32> to vector<4x4x16xf32>
    %91 = vector.shape_cast %90 : vector<4x4x16xf32> to vector<16x16xf32>
    %c16_72 = arith.constant 16 : index
    %c128_73 = arith.constant 128 : index
    %92 = vector.load %arg7[%c16_72, %c128_73] : memref<32x144xf32, #tpu.memory_space<vmem>>, vector<16x16xf32>
    tpu.vector_store %arg7[%c16_72, %c128_73], %91 {strides = array<i32>} : memref<32x144xf32, #tpu.memory_space<vmem>>, vector<16x16xf32>,
    %c0_74 = arith.constant 0 : index
    %c0_75 = arith.constant 0 : index
    %93 = vector.load %arg4[%c0_74, %c0_75] : memref<1x32xf32, #tpu.memory_space<vmem>>, vector<1x32xf32>
    %c0_76 = arith.constant 0 : index
    %c0_77 = arith.constant 0 : index
    %94 = vector.load %arg7[%c0_76, %c0_77] : memref<32x144xf32, #tpu.memory_space<vmem>>, vector<32x144xf32>
    %c0_78 = arith.constant 0 : index
    %c0_79 = arith.constant 0 : index
    %95 = vector.load %arg3[%c0_78, %c0_79] : memref<144x32xf32, #tpu.memory_space<vmem>>, vector<144x32xf32>
    %cst_80 = arith.constant dense<0.000000e+00> : vector<32x32xf32>
    %96 = tpu.matmul %94, %95, %cst_80 {dimension_numbers = #tpu.dot_dimension_numbers<[1], [0], [0], [1], [0, 0, 1, 1], [], []>} : vector<32x144xf32>, vector<144x32xf32>, vector<32x32xf32> -> vector<32x32xf32>
    %97 = vector.broadcast %93 : vector<1x32xf32> to vector<32x32xf32>
    %98 = arith.addf %96, %97 : vector<32x32xf32>
    %cst_81 = arith.constant 0.000000e+00 : f32
    %99 = vector.broadcast %cst_81 : f32 to vector<32x32xf32>
    %100 = arith.maximumf %98, %99 : vector<32x32xf32>
    %101 = vector.extract_strided_slice %100 {offsets = [0, 0], sizes = [16, 32], strides = [1, 1]} : vector<32x32xf32> to vector<16x32xf32>
    %102 = vector.extract_strided_slice %101 {offsets = [0, 0], sizes = [16, 16], strides = [1, 1]} : vector<16x32xf32> to vector<16x16xf32>
    %103 = vector.shape_cast %102 : vector<16x16xf32> to vector<4x4x16xf32>
    %c0_82 = arith.constant 0 : index
    %c0_83 = arith.constant 0 : index
    %c0_84 = arith.constant 0 : index
    %c0_85 = arith.constant 0 : index
    %c0_86 = arith.constant 0 : index
    %104 = vector.load %arg5[%c0_82, %c0_83, %c0_84, %c0_85, %c0_86] : memref<2x4x2x4x16xf32, #tpu.memory_space<vmem>>, vector<1x4x1x4x16xf32>
    %105 = vector.shape_cast %104 : vector<1x4x1x4x16xf32> to vector<4x4x16xf32>
    %106 = vector.shape_cast %103 : vector<4x4x16xf32> to vector<1x4x1x4x16xf32>
    tpu.vector_store %arg5[%c0_82, %c0_83, %c0_84, %c0_85, %c0_86], %106 {strides = array<i32>} : memref<2x4x2x4x16xf32, #tpu.memory_space<vmem>>, vector<1x4x1x4x16xf32>,
    %107 = vector.extract_strided_slice %101 {offsets = [0, 16], sizes = [16, 16], strides = [1, 1]} : vector<16x32xf32> to vector<16x16xf32>
    %108 = vector.shape_cast %107 : vector<16x16xf32> to vector<4x4x16xf32>
    %c0_87 = arith.constant 0 : index
    %c0_88 = arith.constant 0 : index
    %c1_89 = arith.constant 1 : index
    %c0_90 = arith.constant 0 : index
    %c0_91 = arith.constant 0 : index
    %109 = vector.load %arg5[%c0_87, %c0_88, %c1_89, %c0_90, %c0_91] : memref<2x4x2x4x16xf32, #tpu.memory_space<vmem>>, vector<1x4x1x4x16xf32>
    %110 = vector.shape_cast %109 : vector<1x4x1x4x16xf32> to vector<4x4x16xf32>
    %111 = vector.shape_cast %108 : vector<4x4x16xf32> to vector<1x4x1x4x16xf32>
    tpu.vector_store %arg5[%c0_87, %c0_88, %c1_89, %c0_90, %c0_91], %111 {strides = array<i32>} : memref<2x4x2x4x16xf32, #tpu.memory_space<vmem>>, vector<1x4x1x4x16xf32>,
    %112 = vector.extract_strided_slice %100 {offsets = [16, 0], sizes = [16, 32], strides = [1, 1]} : vector<32x32xf32> to vector<16x32xf32>
    %113 = vector.extract_strided_slice %112 {offsets = [0, 0], sizes = [16, 16], strides = [1, 1]} : vector<16x32xf32> to vector<16x16xf32>
    %114 = vector.shape_cast %113 : vector<16x16xf32> to vector<4x4x16xf32>
    %c1_92 = arith.constant 1 : index
    %c0_93 = arith.constant 0 : index
    %c0_94 = arith.constant 0 : index
    %c0_95 = arith.constant 0 : index
    %c0_96 = arith.constant 0 : index
    %115 = vector.load %arg5[%c1_92, %c0_93, %c0_94, %c0_95, %c0_96] : memref<2x4x2x4x16xf32, #tpu.memory_space<vmem>>, vector<1x4x1x4x16xf32>
    %116 = vector.shape_cast %115 : vector<1x4x1x4x16xf32> to vector<4x4x16xf32>
    %117 = vector.shape_cast %114 : vector<4x4x16xf32> to vector<1x4x1x4x16xf32>
    tpu.vector_store %arg5[%c1_92, %c0_93, %c0_94, %c0_95, %c0_96], %117 {strides = array<i32>} : memref<2x4x2x4x16xf32, #tpu.memory_space<vmem>>, vector<1x4x1x4x16xf32>,
    %118 = vector.extract_strided_slice %112 {offsets = [0, 16], sizes = [16, 16], strides = [1, 1]} : vector<16x32xf32> to vector<16x16xf32>
    %119 = vector.shape_cast %118 : vector<16x16xf32> to vector<4x4x16xf32>
    %c1_97 = arith.constant 1 : index
    %c0_98 = arith.constant 0 : index
    %c1_99 = arith.constant 1 : index
    %c0_100 = arith.constant 0 : index
    %c0_101 = arith.constant 0 : index
    %120 = vector.load %arg5[%c1_97, %c0_98, %c1_99, %c0_100, %c0_101] : memref<2x4x2x4x16xf32, #tpu.memory_space<vmem>>, vector<1x4x1x4x16xf32>
    %121 = vector.shape_cast %120 : vector<1x4x1x4x16xf32> to vector<4x4x16xf32>
    %122 = vector.shape_cast %119 : vector<4x4x16xf32> to vector<1x4x1x4x16xf32>
    tpu.vector_store %arg5[%c1_97, %c0_98, %c1_99, %c0_100, %c0_101], %122 {strides = array<i32>} : memref<2x4x2x4x16xf32, #tpu.memory_space<vmem>>, vector<1x4x1x4x16xf32>,
    return
  }
  func.func @transform_0(%arg0: i32, %arg1: i32) -> (i32, i32, i32, i32) {
    %c0_i32 = arith.constant 0 : i32
    %c0_i32_0 = arith.constant 0 : i32
    %c0_i32_1 = arith.constant 0 : i32
    %c0_i32_2 = arith.constant 0 : i32
    return %arg0, %c0_i32, %c0_i32_0, %c0_i32_1 : i32, i32, i32, i32
  }
  func.func @transform_1(%arg0: i32, %arg1: i32) -> (i32, i32) {
    %c0_i32 = arith.constant 0 : i32
    %c0_i32_0 = arith.constant 0 : i32
    %c0_i32_1 = arith.constant 0 : i32
    return %c0_i32, %c0_i32_0 : i32, i32
  }
  func.func @transform_2(%arg0: i32, %arg1: i32) -> (i32, i32) {
    %c0_i32 = arith.constant 0 : i32
    %c0_i32_0 = arith.constant 0 : i32
    %c0_i32_1 = arith.constant 0 : i32
    return %c0_i32, %c0_i32_0 : i32, i32
  }
  func.func @transform_3(%arg0: i32, %arg1: i32) -> (i32, i32, i32, i32, i32) {
    %c0_i32 = arith.constant 0 : i32
    %c0_i32_0 = arith.constant 0 : i32
    %c0_i32_1 = arith.constant 0 : i32
    %c0_i32_2 = arith.constant 0 : i32
    return %arg0, %arg1, %c0_i32, %c0_i32_0, %c0_i32_1 : i32, i32, i32, i32, i32
  }
}

module attributes {stable_mosaic.version = 11 : i64} {
  func.func @_fused_upsample_deconv_relu_kernel(%arg0: i32, %arg1: i32, %arg2: memref<2x8x8x8xf32, #tpu.memory_space<vmem>>, %arg3: memref<72x16xf32, #tpu.memory_space<vmem>>, %arg4: memref<1x16xf32, #tpu.memory_space<vmem>>, %arg5: memref<2x8x2x8x8xf32, #tpu.memory_space<vmem>>, %arg6: memref<2x10x10x8xf32, #tpu.memory_space<vmem>>, %arg7: memref<128x72xf32, #tpu.memory_space<vmem>>) attributes {dimension_semantics = [#tpu.dimension_semantics<parallel>, #tpu.dimension_semantics<parallel>], iteration_bounds = array<i64: 1, 1>, scalar_prefetch = 0 : i64, scratch_operands = 2 : i64, tpu.core_type = #tpu.core_type<tc>, window_params = [{transform_indices = @transform_0, window_bounds = array<i64: 2, 8, 8, 8>}, {pipeline_mode = #tpu.pipeline_mode<synchronous>, transform_indices = @transform_1, window_bounds = array<i64: 72, 16>}, {pipeline_mode = #tpu.pipeline_mode<synchronous>, transform_indices = @transform_2, window_bounds = array<i64: 1, 16>}, {transform_indices = @transform_3, window_bounds = array<i64: 2, 8, 2, 8, 8>}]} {
    %c8_i32 = arith.constant 8 : i32
    %0 = arith.muli %arg1, %c8_i32 : i32
    %cst = arith.constant 0.000000e+00 : f32
    %1 = vector.broadcast %cst : f32 to vector<2x10x10x8xf32>
    %c0 = arith.constant 0 : index
    %c0_0 = arith.constant 0 : index
    %c0_1 = arith.constant 0 : index
    %c0_2 = arith.constant 0 : index
    %2 = vector.load %arg6[%c0, %c0_0, %c0_1, %c0_2] : memref<2x10x10x8xf32, #tpu.memory_space<vmem>>, vector<2x10x10x8xf32>
    tpu.vector_store %arg6[%c0, %c0_0, %c0_1, %c0_2], %1 {strides = array<i32>} : memref<2x10x10x8xf32, #tpu.memory_space<vmem>>, vector<2x10x10x8xf32>,
    %c0_3 = arith.constant 0 : index
    %3 = arith.index_cast %0 : i32 to index
    %c0_4 = arith.constant 0 : index
    %c0_5 = arith.constant 0 : index
    %4 = vector.load %arg2[%c0_3, %3, %c0_4, %c0_5] : memref<2x8x8x8xf32, #tpu.memory_space<vmem>>, vector<1x8x8x8xf32>
    %5 = vector.shape_cast %4 : vector<1x8x8x8xf32> to vector<8x8x8xf32>
    %c0_6 = arith.constant 0 : index
    %c1 = arith.constant 1 : index
    %c1_7 = arith.constant 1 : index
    %c0_8 = arith.constant 0 : index
    %6 = vector.load %arg6[%c0_6, %c1, %c1_7, %c0_8] : memref<2x10x10x8xf32, #tpu.memory_space<vmem>>, vector<1x8x8x8xf32>
    %7 = vector.shape_cast %6 : vector<1x8x8x8xf32> to vector<8x8x8xf32>
    %8 = vector.shape_cast %5 : vector<8x8x8xf32> to vector<1x8x8x8xf32>
    tpu.vector_store %arg6[%c0_6, %c1, %c1_7, %c0_8], %8 {strides = array<i32>} : memref<2x10x10x8xf32, #tpu.memory_space<vmem>>, vector<1x8x8x8xf32>,
    %c0_i32 = arith.constant 0 : i32
    %9 = arith.cmpi sgt, %arg1, %c0_i32 : i32
    %10 = arith.extui %9 : i1 to i32
    %c0_i32_9 = arith.constant 0 : i32
    %11 = arith.cmpi ne, %10, %c0_i32_9 : i32
    scf.if %11 {
      %c1_i32 = arith.constant 1 : i32
      %123 = arith.subi %0, %c1_i32 : i32
      %c0_i32_102 = arith.constant 0 : i32
      %124 = arith.maxsi %123, %c0_i32_102 : i32
      %c0_103 = arith.constant 0 : index
      %125 = arith.index_cast %124 : i32 to index
      %c0_104 = arith.constant 0 : index
      %c0_105 = arith.constant 0 : index
      %126 = vector.load %arg2[%c0_103, %125, %c0_104, %c0_105] : memref<2x8x8x8xf32, #tpu.memory_space<vmem>>, vector<1x1x8x8xf32>
      %127 = vector.shape_cast %126 : vector<1x1x8x8xf32> to vector<1x8x8xf32>
      %c0_106 = arith.constant 0 : index
      %c0_107 = arith.constant 0 : index
      %c1_108 = arith.constant 1 : index
      %c0_109 = arith.constant 0 : index
      %128 = vector.load %arg6[%c0_106, %c0_107, %c1_108, %c0_109] : memref<2x10x10x8xf32, #tpu.memory_space<vmem>>, vector<1x1x8x8xf32>
      %129 = vector.shape_cast %128 : vector<1x1x8x8xf32> to vector<1x8x8xf32>
      %130 = vector.shape_cast %127 : vector<1x8x8xf32> to vector<1x1x8x8xf32>
      tpu.vector_store %arg6[%c0_106, %c0_107, %c1_108, %c0_109], %130 {strides = array<i32>} : memref<2x10x10x8xf32, #tpu.memory_space<vmem>>, vector<1x1x8x8xf32>,
    } else {
    }
    %c0_i32_10 = arith.constant 0 : i32
    %12 = arith.cmpi slt, %arg1, %c0_i32_10 : i32
    %13 = arith.extui %12 : i1 to i32
    %c0_i32_11 = arith.constant 0 : i32
    %14 = arith.cmpi ne, %13, %c0_i32_11 : i32
    scf.if %14 {
      %c8_i32_102 = arith.constant 8 : i32
      %123 = arith.addi %0, %c8_i32_102 : i32
      %c7_i32 = arith.constant 7 : i32
      %124 = arith.minsi %123, %c7_i32 : i32
      %c0_103 = arith.constant 0 : index
      %125 = arith.index_cast %124 : i32 to index
      %c0_104 = arith.constant 0 : index
      %c0_105 = arith.constant 0 : index
      %126 = vector.load %arg2[%c0_103, %125, %c0_104, %c0_105] : memref<2x8x8x8xf32, #tpu.memory_space<vmem>>, vector<1x1x8x8xf32>
      %127 = vector.shape_cast %126 : vector<1x1x8x8xf32> to vector<1x8x8xf32>
      %c0_106 = arith.constant 0 : index
      %c9 = arith.constant 9 : index
      %c1_107 = arith.constant 1 : index
      %c0_108 = arith.constant 0 : index
      %128 = vector.load %arg6[%c0_106, %c9, %c1_107, %c0_108] : memref<2x10x10x8xf32, #tpu.memory_space<vmem>>, vector<1x1x8x8xf32>
      %129 = vector.shape_cast %128 : vector<1x1x8x8xf32> to vector<1x8x8xf32>
      %130 = vector.shape_cast %127 : vector<1x8x8xf32> to vector<1x1x8x8xf32>
      tpu.vector_store %arg6[%c0_106, %c9, %c1_107, %c0_108], %130 {strides = array<i32>} : memref<2x10x10x8xf32, #tpu.memory_space<vmem>>, vector<1x1x8x8xf32>,
    } else {
    }
    %c1_12 = arith.constant 1 : index
    %15 = arith.index_cast %0 : i32 to index
    %c0_13 = arith.constant 0 : index
    %c0_14 = arith.constant 0 : index
    %16 = vector.load %arg2[%c1_12, %15, %c0_13, %c0_14] : memref<2x8x8x8xf32, #tpu.memory_space<vmem>>, vector<1x8x8x8xf32>
    %17 = vector.shape_cast %16 : vector<1x8x8x8xf32> to vector<8x8x8xf32>
    %c1_15 = arith.constant 1 : index
    %c1_16 = arith.constant 1 : index
    %c1_17 = arith.constant 1 : index
    %c0_18 = arith.constant 0 : index
    %18 = vector.load %arg6[%c1_15, %c1_16, %c1_17, %c0_18] : memref<2x10x10x8xf32, #tpu.memory_space<vmem>>, vector<1x8x8x8xf32>
    %19 = vector.shape_cast %18 : vector<1x8x8x8xf32> to vector<8x8x8xf32>
    %20 = vector.shape_cast %17 : vector<8x8x8xf32> to vector<1x8x8x8xf32>
    tpu.vector_store %arg6[%c1_15, %c1_16, %c1_17, %c0_18], %20 {strides = array<i32>} : memref<2x10x10x8xf32, #tpu.memory_space<vmem>>, vector<1x8x8x8xf32>,
    %c0_i32_19 = arith.constant 0 : i32
    %21 = arith.cmpi sgt, %arg1, %c0_i32_19 : i32
    %22 = arith.extui %21 : i1 to i32
    %c0_i32_20 = arith.constant 0 : i32
    %23 = arith.cmpi ne, %22, %c0_i32_20 : i32
    scf.if %23 {
      %c1_i32 = arith.constant 1 : i32
      %123 = arith.subi %0, %c1_i32 : i32
      %c0_i32_102 = arith.constant 0 : i32
      %124 = arith.maxsi %123, %c0_i32_102 : i32
      %c1_103 = arith.constant 1 : index
      %125 = arith.index_cast %124 : i32 to index
      %c0_104 = arith.constant 0 : index
      %c0_105 = arith.constant 0 : index
      %126 = vector.load %arg2[%c1_103, %125, %c0_104, %c0_105] : memref<2x8x8x8xf32, #tpu.memory_space<vmem>>, vector<1x1x8x8xf32>
      %127 = vector.shape_cast %126 : vector<1x1x8x8xf32> to vector<1x8x8xf32>
      %c1_106 = arith.constant 1 : index
      %c0_107 = arith.constant 0 : index
      %c1_108 = arith.constant 1 : index
      %c0_109 = arith.constant 0 : index
      %128 = vector.load %arg6[%c1_106, %c0_107, %c1_108, %c0_109] : memref<2x10x10x8xf32, #tpu.memory_space<vmem>>, vector<1x1x8x8xf32>
      %129 = vector.shape_cast %128 : vector<1x1x8x8xf32> to vector<1x8x8xf32>
      %130 = vector.shape_cast %127 : vector<1x8x8xf32> to vector<1x1x8x8xf32>
      tpu.vector_store %arg6[%c1_106, %c0_107, %c1_108, %c0_109], %130 {strides = array<i32>} : memref<2x10x10x8xf32, #tpu.memory_space<vmem>>, vector<1x1x8x8xf32>,
    } else {
    }
    %c0_i32_21 = arith.constant 0 : i32
    %24 = arith.cmpi slt, %arg1, %c0_i32_21 : i32
    %25 = arith.extui %24 : i1 to i32
    %c0_i32_22 = arith.constant 0 : i32
    %26 = arith.cmpi ne, %25, %c0_i32_22 : i32
    scf.if %26 {
      %c8_i32_102 = arith.constant 8 : i32
      %123 = arith.addi %0, %c8_i32_102 : i32
      %c7_i32 = arith.constant 7 : i32
      %124 = arith.minsi %123, %c7_i32 : i32
      %c1_103 = arith.constant 1 : index
      %125 = arith.index_cast %124 : i32 to index
      %c0_104 = arith.constant 0 : index
      %c0_105 = arith.constant 0 : index
      %126 = vector.load %arg2[%c1_103, %125, %c0_104, %c0_105] : memref<2x8x8x8xf32, #tpu.memory_space<vmem>>, vector<1x1x8x8xf32>
      %127 = vector.shape_cast %126 : vector<1x1x8x8xf32> to vector<1x8x8xf32>
      %c1_106 = arith.constant 1 : index
      %c9 = arith.constant 9 : index
      %c1_107 = arith.constant 1 : index
      %c0_108 = arith.constant 0 : index
      %128 = vector.load %arg6[%c1_106, %c9, %c1_107, %c0_108] : memref<2x10x10x8xf32, #tpu.memory_space<vmem>>, vector<1x1x8x8xf32>
      %129 = vector.shape_cast %128 : vector<1x1x8x8xf32> to vector<1x8x8xf32>
      %130 = vector.shape_cast %127 : vector<1x8x8xf32> to vector<1x1x8x8xf32>
      tpu.vector_store %arg6[%c1_106, %c9, %c1_107, %c0_108], %130 {strides = array<i32>} : memref<2x10x10x8xf32, #tpu.memory_space<vmem>>, vector<1x1x8x8xf32>,
    } else {
    }
    %c0_23 = arith.constant 0 : index
    %c0_24 = arith.constant 0 : index
    %c0_25 = arith.constant 0 : index
    %c0_26 = arith.constant 0 : index
    %27 = vector.load %arg6[%c0_23, %c0_24, %c0_25, %c0_26] : memref<2x10x10x8xf32, #tpu.memory_space<vmem>>, vector<1x8x10x8xf32>
    %28 = vector.shape_cast %27 : vector<1x8x10x8xf32> to vector<8x10x8xf32>
    %29 = vector.extract_strided_slice %28 {offsets = [0, 0, 0], sizes = [8, 8, 8], strides = [1, 1, 1]} : vector<8x10x8xf32> to vector<8x8x8xf32>
    %30 = vector.shape_cast %29 : vector<8x8x8xf32> to vector<64x8xf32>
    %c0_27 = arith.constant 0 : index
    %c0_28 = arith.constant 0 : index
    %31 = vector.load %arg7[%c0_27, %c0_28] : memref<128x72xf32, #tpu.memory_space<vmem>>, vector<64x8xf32>
    tpu.vector_store %arg7[%c0_27, %c0_28], %30 {strides = array<i32>} : memref<128x72xf32, #tpu.memory_space<vmem>>, vector<64x8xf32>,
    %32 = vector.extract_strided_slice %28 {offsets = [0, 1, 0], sizes = [8, 8, 8], strides = [1, 1, 1]} : vector<8x10x8xf32> to vector<8x8x8xf32>
    %33 = vector.shape_cast %32 : vector<8x8x8xf32> to vector<64x8xf32>
    %c0_29 = arith.constant 0 : index
    %c8 = arith.constant 8 : index
    %34 = vector.load %arg7[%c0_29, %c8] : memref<128x72xf32, #tpu.memory_space<vmem>>, vector<64x8xf32>
    tpu.vector_store %arg7[%c0_29, %c8], %33 {strides = array<i32>} : memref<128x72xf32, #tpu.memory_space<vmem>>, vector<64x8xf32>,
    %35 = vector.extract_strided_slice %28 {offsets = [0, 2, 0], sizes = [8, 8, 8], strides = [1, 1, 1]} : vector<8x10x8xf32> to vector<8x8x8xf32>
    %36 = vector.shape_cast %35 : vector<8x8x8xf32> to vector<64x8xf32>
    %c0_30 = arith.constant 0 : index
    %c16 = arith.constant 16 : index
    %37 = vector.load %arg7[%c0_30, %c16] : memref<128x72xf32, #tpu.memory_space<vmem>>, vector<64x8xf32>
    tpu.vector_store %arg7[%c0_30, %c16], %36 {strides = array<i32>} : memref<128x72xf32, #tpu.memory_space<vmem>>, vector<64x8xf32>,
    %c0_31 = arith.constant 0 : index
    %c1_32 = arith.constant 1 : index
    %c0_33 = arith.constant 0 : index
    %c0_34 = arith.constant 0 : index
    %38 = vector.load %arg6[%c0_31, %c1_32, %c0_33, %c0_34] : memref<2x10x10x8xf32, #tpu.memory_space<vmem>>, vector<1x8x10x8xf32>
    %39 = vector.shape_cast %38 : vector<1x8x10x8xf32> to vector<8x10x8xf32>
    %40 = vector.extract_strided_slice %39 {offsets = [0, 0, 0], sizes = [8, 8, 8], strides = [1, 1, 1]} : vector<8x10x8xf32> to vector<8x8x8xf32>
    %41 = vector.shape_cast %40 : vector<8x8x8xf32> to vector<64x8xf32>
    %c0_35 = arith.constant 0 : index
    %c24 = arith.constant 24 : index
    %42 = vector.load %arg7[%c0_35, %c24] : memref<128x72xf32, #tpu.memory_space<vmem>>, vector<64x8xf32>
    tpu.vector_store %arg7[%c0_35, %c24], %41 {strides = array<i32>} : memref<128x72xf32, #tpu.memory_space<vmem>>, vector<64x8xf32>,
    %43 = vector.extract_strided_slice %39 {offsets = [0, 1, 0], sizes = [8, 8, 8], strides = [1, 1, 1]} : vector<8x10x8xf32> to vector<8x8x8xf32>
    %44 = vector.shape_cast %43 : vector<8x8x8xf32> to vector<64x8xf32>
    %c0_36 = arith.constant 0 : index
    %c32 = arith.constant 32 : index
    %45 = vector.load %arg7[%c0_36, %c32] : memref<128x72xf32, #tpu.memory_space<vmem>>, vector<64x8xf32>
    tpu.vector_store %arg7[%c0_36, %c32], %44 {strides = array<i32>} : memref<128x72xf32, #tpu.memory_space<vmem>>, vector<64x8xf32>,
    %46 = vector.extract_strided_slice %39 {offsets = [0, 2, 0], sizes = [8, 8, 8], strides = [1, 1, 1]} : vector<8x10x8xf32> to vector<8x8x8xf32>
    %47 = vector.shape_cast %46 : vector<8x8x8xf32> to vector<64x8xf32>
    %c0_37 = arith.constant 0 : index
    %c40 = arith.constant 40 : index
    %48 = vector.load %arg7[%c0_37, %c40] : memref<128x72xf32, #tpu.memory_space<vmem>>, vector<64x8xf32>
    tpu.vector_store %arg7[%c0_37, %c40], %47 {strides = array<i32>} : memref<128x72xf32, #tpu.memory_space<vmem>>, vector<64x8xf32>,
    %c0_38 = arith.constant 0 : index
    %c2 = arith.constant 2 : index
    %c0_39 = arith.constant 0 : index
    %c0_40 = arith.constant 0 : index
    %49 = vector.load %arg6[%c0_38, %c2, %c0_39, %c0_40] : memref<2x10x10x8xf32, #tpu.memory_space<vmem>>, vector<1x8x10x8xf32>
    %50 = vector.shape_cast %49 : vector<1x8x10x8xf32> to vector<8x10x8xf32>
    %51 = vector.extract_strided_slice %50 {offsets = [0, 0, 0], sizes = [8, 8, 8], strides = [1, 1, 1]} : vector<8x10x8xf32> to vector<8x8x8xf32>
    %52 = vector.shape_cast %51 : vector<8x8x8xf32> to vector<64x8xf32>
    %c0_41 = arith.constant 0 : index
    %c48 = arith.constant 48 : index
    %53 = vector.load %arg7[%c0_41, %c48] : memref<128x72xf32, #tpu.memory_space<vmem>>, vector<64x8xf32>
    tpu.vector_store %arg7[%c0_41, %c48], %52 {strides = array<i32>} : memref<128x72xf32, #tpu.memory_space<vmem>>, vector<64x8xf32>,
    %54 = vector.extract_strided_slice %50 {offsets = [0, 1, 0], sizes = [8, 8, 8], strides = [1, 1, 1]} : vector<8x10x8xf32> to vector<8x8x8xf32>
    %55 = vector.shape_cast %54 : vector<8x8x8xf32> to vector<64x8xf32>
    %c0_42 = arith.constant 0 : index
    %c56 = arith.constant 56 : index
    %56 = vector.load %arg7[%c0_42, %c56] : memref<128x72xf32, #tpu.memory_space<vmem>>, vector<64x8xf32>
    tpu.vector_store %arg7[%c0_42, %c56], %55 {strides = array<i32>} : memref<128x72xf32, #tpu.memory_space<vmem>>, vector<64x8xf32>,
    %57 = vector.extract_strided_slice %50 {offsets = [0, 2, 0], sizes = [8, 8, 8], strides = [1, 1, 1]} : vector<8x10x8xf32> to vector<8x8x8xf32>
    %58 = vector.shape_cast %57 : vector<8x8x8xf32> to vector<64x8xf32>
    %c0_43 = arith.constant 0 : index
    %c64 = arith.constant 64 : index
    %59 = vector.load %arg7[%c0_43, %c64] : memref<128x72xf32, #tpu.memory_space<vmem>>, vector<64x8xf32>
    tpu.vector_store %arg7[%c0_43, %c64], %58 {strides = array<i32>} : memref<128x72xf32, #tpu.memory_space<vmem>>, vector<64x8xf32>,
    %c1_44 = arith.constant 1 : index
    %c0_45 = arith.constant 0 : index
    %c0_46 = arith.constant 0 : index
    %c0_47 = arith.constant 0 : index
    %60 = vector.load %arg6[%c1_44, %c0_45, %c0_46, %c0_47] : memref<2x10x10x8xf32, #tpu.memory_space<vmem>>, vector<1x8x10x8xf32>
    %61 = vector.shape_cast %60 : vector<1x8x10x8xf32> to vector<8x10x8xf32>
    %62 = vector.extract_strided_slice %61 {offsets = [0, 0, 0], sizes = [8, 8, 8], strides = [1, 1, 1]} : vector<8x10x8xf32> to vector<8x8x8xf32>
    %63 = vector.shape_cast %62 : vector<8x8x8xf32> to vector<64x8xf32>
    %c64_48 = arith.constant 64 : index
    %c0_49 = arith.constant 0 : index
    %64 = vector.load %arg7[%c64_48, %c0_49] : memref<128x72xf32, #tpu.memory_space<vmem>>, vector<64x8xf32>
    tpu.vector_store %arg7[%c64_48, %c0_49], %63 {strides = array<i32>} : memref<128x72xf32, #tpu.memory_space<vmem>>, vector<64x8xf32>,
    %65 = vector.extract_strided_slice %61 {offsets = [0, 1, 0], sizes = [8, 8, 8], strides = [1, 1, 1]} : vector<8x10x8xf32> to vector<8x8x8xf32>
    %66 = vector.shape_cast %65 : vector<8x8x8xf32> to vector<64x8xf32>
    %c64_50 = arith.constant 64 : index
    %c8_51 = arith.constant 8 : index
    %67 = vector.load %arg7[%c64_50, %c8_51] : memref<128x72xf32, #tpu.memory_space<vmem>>, vector<64x8xf32>
    tpu.vector_store %arg7[%c64_50, %c8_51], %66 {strides = array<i32>} : memref<128x72xf32, #tpu.memory_space<vmem>>, vector<64x8xf32>,
    %68 = vector.extract_strided_slice %61 {offsets = [0, 2, 0], sizes = [8, 8, 8], strides = [1, 1, 1]} : vector<8x10x8xf32> to vector<8x8x8xf32>
    %69 = vector.shape_cast %68 : vector<8x8x8xf32> to vector<64x8xf32>
    %c64_52 = arith.constant 64 : index
    %c16_53 = arith.constant 16 : index
    %70 = vector.load %arg7[%c64_52, %c16_53] : memref<128x72xf32, #tpu.memory_space<vmem>>, vector<64x8xf32>
    tpu.vector_store %arg7[%c64_52, %c16_53], %69 {strides = array<i32>} : memref<128x72xf32, #tpu.memory_space<vmem>>, vector<64x8xf32>,
    %c1_54 = arith.constant 1 : index
    %c1_55 = arith.constant 1 : index
    %c0_56 = arith.constant 0 : index
    %c0_57 = arith.constant 0 : index
    %71 = vector.load %arg6[%c1_54, %c1_55, %c0_56, %c0_57] : memref<2x10x10x8xf32, #tpu.memory_space<vmem>>, vector<1x8x10x8xf32>
    %72 = vector.shape_cast %71 : vector<1x8x10x8xf32> to vector<8x10x8xf32>
    %73 = vector.extract_strided_slice %72 {offsets = [0, 0, 0], sizes = [8, 8, 8], strides = [1, 1, 1]} : vector<8x10x8xf32> to vector<8x8x8xf32>
    %74 = vector.shape_cast %73 : vector<8x8x8xf32> to vector<64x8xf32>
    %c64_58 = arith.constant 64 : index
    %c24_59 = arith.constant 24 : index
    %75 = vector.load %arg7[%c64_58, %c24_59] : memref<128x72xf32, #tpu.memory_space<vmem>>, vector<64x8xf32>
    tpu.vector_store %arg7[%c64_58, %c24_59], %74 {strides = array<i32>} : memref<128x72xf32, #tpu.memory_space<vmem>>, vector<64x8xf32>,
    %76 = vector.extract_strided_slice %72 {offsets = [0, 1, 0], sizes = [8, 8, 8], strides = [1, 1, 1]} : vector<8x10x8xf32> to vector<8x8x8xf32>
    %77 = vector.shape_cast %76 : vector<8x8x8xf32> to vector<64x8xf32>
    %c64_60 = arith.constant 64 : index
    %c32_61 = arith.constant 32 : index
    %78 = vector.load %arg7[%c64_60, %c32_61] : memref<128x72xf32, #tpu.memory_space<vmem>>, vector<64x8xf32>
    tpu.vector_store %arg7[%c64_60, %c32_61], %77 {strides = array<i32>} : memref<128x72xf32, #tpu.memory_space<vmem>>, vector<64x8xf32>,
    %79 = vector.extract_strided_slice %72 {offsets = [0, 2, 0], sizes = [8, 8, 8], strides = [1, 1, 1]} : vector<8x10x8xf32> to vector<8x8x8xf32>
    %80 = vector.shape_cast %79 : vector<8x8x8xf32> to vector<64x8xf32>
    %c64_62 = arith.constant 64 : index
    %c40_63 = arith.constant 40 : index
    %81 = vector.load %arg7[%c64_62, %c40_63] : memref<128x72xf32, #tpu.memory_space<vmem>>, vector<64x8xf32>
    tpu.vector_store %arg7[%c64_62, %c40_63], %80 {strides = array<i32>} : memref<128x72xf32, #tpu.memory_space<vmem>>, vector<64x8xf32>,
    %c1_64 = arith.constant 1 : index
    %c2_65 = arith.constant 2 : index
    %c0_66 = arith.constant 0 : index
    %c0_67 = arith.constant 0 : index
    %82 = vector.load %arg6[%c1_64, %c2_65, %c0_66, %c0_67] : memref<2x10x10x8xf32, #tpu.memory_space<vmem>>, vector<1x8x10x8xf32>
    %83 = vector.shape_cast %82 : vector<1x8x10x8xf32> to vector<8x10x8xf32>
    %84 = vector.extract_strided_slice %83 {offsets = [0, 0, 0], sizes = [8, 8, 8], strides = [1, 1, 1]} : vector<8x10x8xf32> to vector<8x8x8xf32>
    %85 = vector.shape_cast %84 : vector<8x8x8xf32> to vector<64x8xf32>
    %c64_68 = arith.constant 64 : index
    %c48_69 = arith.constant 48 : index
    %86 = vector.load %arg7[%c64_68, %c48_69] : memref<128x72xf32, #tpu.memory_space<vmem>>, vector<64x8xf32>
    tpu.vector_store %arg7[%c64_68, %c48_69], %85 {strides = array<i32>} : memref<128x72xf32, #tpu.memory_space<vmem>>, vector<64x8xf32>,
    %87 = vector.extract_strided_slice %83 {offsets = [0, 1, 0], sizes = [8, 8, 8], strides = [1, 1, 1]} : vector<8x10x8xf32> to vector<8x8x8xf32>
    %88 = vector.shape_cast %87 : vector<8x8x8xf32> to vector<64x8xf32>
    %c64_70 = arith.constant 64 : index
    %c56_71 = arith.constant 56 : index
    %89 = vector.load %arg7[%c64_70, %c56_71] : memref<128x72xf32, #tpu.memory_space<vmem>>, vector<64x8xf32>
    tpu.vector_store %arg7[%c64_70, %c56_71], %88 {strides = array<i32>} : memref<128x72xf32, #tpu.memory_space<vmem>>, vector<64x8xf32>,
    %90 = vector.extract_strided_slice %83 {offsets = [0, 2, 0], sizes = [8, 8, 8], strides = [1, 1, 1]} : vector<8x10x8xf32> to vector<8x8x8xf32>
    %91 = vector.shape_cast %90 : vector<8x8x8xf32> to vector<64x8xf32>
    %c64_72 = arith.constant 64 : index
    %c64_73 = arith.constant 64 : index
    %92 = vector.load %arg7[%c64_72, %c64_73] : memref<128x72xf32, #tpu.memory_space<vmem>>, vector<64x8xf32>
    tpu.vector_store %arg7[%c64_72, %c64_73], %91 {strides = array<i32>} : memref<128x72xf32, #tpu.memory_space<vmem>>, vector<64x8xf32>,
    %c0_74 = arith.constant 0 : index
    %c0_75 = arith.constant 0 : index
    %93 = vector.load %arg4[%c0_74, %c0_75] : memref<1x16xf32, #tpu.memory_space<vmem>>, vector<1x16xf32>
    %c0_76 = arith.constant 0 : index
    %c0_77 = arith.constant 0 : index
    %94 = vector.load %arg7[%c0_76, %c0_77] : memref<128x72xf32, #tpu.memory_space<vmem>>, vector<128x72xf32>
    %c0_78 = arith.constant 0 : index
    %c0_79 = arith.constant 0 : index
    %95 = vector.load %arg3[%c0_78, %c0_79] : memref<72x16xf32, #tpu.memory_space<vmem>>, vector<72x16xf32>
    %cst_80 = arith.constant dense<0.000000e+00> : vector<128x16xf32>
    %96 = tpu.matmul %94, %95, %cst_80 {dimension_numbers = #tpu.dot_dimension_numbers<[1], [0], [0], [1], [0, 0, 1, 1], [], []>} : vector<128x72xf32>, vector<72x16xf32>, vector<128x16xf32> -> vector<128x16xf32>
    %97 = vector.broadcast %93 : vector<1x16xf32> to vector<128x16xf32>
    %98 = arith.addf %96, %97 : vector<128x16xf32>
    %cst_81 = arith.constant 0.000000e+00 : f32
    %99 = vector.broadcast %cst_81 : f32 to vector<128x16xf32>
    %100 = arith.maximumf %98, %99 : vector<128x16xf32>
    %101 = vector.extract_strided_slice %100 {offsets = [0, 0], sizes = [64, 16], strides = [1, 1]} : vector<128x16xf32> to vector<64x16xf32>
    %102 = vector.extract_strided_slice %101 {offsets = [0, 0], sizes = [64, 8], strides = [1, 1]} : vector<64x16xf32> to vector<64x8xf32>
    %103 = vector.shape_cast %102 : vector<64x8xf32> to vector<8x8x8xf32>
    %c0_82 = arith.constant 0 : index
    %c0_83 = arith.constant 0 : index
    %c0_84 = arith.constant 0 : index
    %c0_85 = arith.constant 0 : index
    %c0_86 = arith.constant 0 : index
    %104 = vector.load %arg5[%c0_82, %c0_83, %c0_84, %c0_85, %c0_86] : memref<2x8x2x8x8xf32, #tpu.memory_space<vmem>>, vector<1x8x1x8x8xf32>
    %105 = vector.shape_cast %104 : vector<1x8x1x8x8xf32> to vector<8x8x8xf32>
    %106 = vector.shape_cast %103 : vector<8x8x8xf32> to vector<1x8x1x8x8xf32>
    tpu.vector_store %arg5[%c0_82, %c0_83, %c0_84, %c0_85, %c0_86], %106 {strides = array<i32>} : memref<2x8x2x8x8xf32, #tpu.memory_space<vmem>>, vector<1x8x1x8x8xf32>,
    %107 = vector.extract_strided_slice %101 {offsets = [0, 8], sizes = [64, 8], strides = [1, 1]} : vector<64x16xf32> to vector<64x8xf32>
    %108 = vector.shape_cast %107 : vector<64x8xf32> to vector<8x8x8xf32>
    %c0_87 = arith.constant 0 : index
    %c0_88 = arith.constant 0 : index
    %c1_89 = arith.constant 1 : index
    %c0_90 = arith.constant 0 : index
    %c0_91 = arith.constant 0 : index
    %109 = vector.load %arg5[%c0_87, %c0_88, %c1_89, %c0_90, %c0_91] : memref<2x8x2x8x8xf32, #tpu.memory_space<vmem>>, vector<1x8x1x8x8xf32>
    %110 = vector.shape_cast %109 : vector<1x8x1x8x8xf32> to vector<8x8x8xf32>
    %111 = vector.shape_cast %108 : vector<8x8x8xf32> to vector<1x8x1x8x8xf32>
    tpu.vector_store %arg5[%c0_87, %c0_88, %c1_89, %c0_90, %c0_91], %111 {strides = array<i32>} : memref<2x8x2x8x8xf32, #tpu.memory_space<vmem>>, vector<1x8x1x8x8xf32>,
    %112 = vector.extract_strided_slice %100 {offsets = [64, 0], sizes = [64, 16], strides = [1, 1]} : vector<128x16xf32> to vector<64x16xf32>
    %113 = vector.extract_strided_slice %112 {offsets = [0, 0], sizes = [64, 8], strides = [1, 1]} : vector<64x16xf32> to vector<64x8xf32>
    %114 = vector.shape_cast %113 : vector<64x8xf32> to vector<8x8x8xf32>
    %c1_92 = arith.constant 1 : index
    %c0_93 = arith.constant 0 : index
    %c0_94 = arith.constant 0 : index
    %c0_95 = arith.constant 0 : index
    %c0_96 = arith.constant 0 : index
    %115 = vector.load %arg5[%c1_92, %c0_93, %c0_94, %c0_95, %c0_96] : memref<2x8x2x8x8xf32, #tpu.memory_space<vmem>>, vector<1x8x1x8x8xf32>
    %116 = vector.shape_cast %115 : vector<1x8x1x8x8xf32> to vector<8x8x8xf32>
    %117 = vector.shape_cast %114 : vector<8x8x8xf32> to vector<1x8x1x8x8xf32>
    tpu.vector_store %arg5[%c1_92, %c0_93, %c0_94, %c0_95, %c0_96], %117 {strides = array<i32>} : memref<2x8x2x8x8xf32, #tpu.memory_space<vmem>>, vector<1x8x1x8x8xf32>,
    %118 = vector.extract_strided_slice %112 {offsets = [0, 8], sizes = [64, 8], strides = [1, 1]} : vector<64x16xf32> to vector<64x8xf32>
    %119 = vector.shape_cast %118 : vector<64x8xf32> to vector<8x8x8xf32>
    %c1_97 = arith.constant 1 : index
    %c0_98 = arith.constant 0 : index
    %c1_99 = arith.constant 1 : index
    %c0_100 = arith.constant 0 : index
    %c0_101 = arith.constant 0 : index
    %120 = vector.load %arg5[%c1_97, %c0_98, %c1_99, %c0_100, %c0_101] : memref<2x8x2x8x8xf32, #tpu.memory_space<vmem>>, vector<1x8x1x8x8xf32>
    %121 = vector.shape_cast %120 : vector<1x8x1x8x8xf32> to vector<8x8x8xf32>
    %122 = vector.shape_cast %119 : vector<8x8x8xf32> to vector<1x8x1x8x8xf32>
    tpu.vector_store %arg5[%c1_97, %c0_98, %c1_99, %c0_100, %c0_101], %122 {strides = array<i32>} : memref<2x8x2x8x8xf32, #tpu.memory_space<vmem>>, vector<1x8x1x8x8xf32>,
    return
  }
  func.func @transform_0(%arg0: i32, %arg1: i32) -> (i32, i32, i32, i32) {
    %c0_i32 = arith.constant 0 : i32
    %c0_i32_0 = arith.constant 0 : i32
    %c0_i32_1 = arith.constant 0 : i32
    %c0_i32_2 = arith.constant 0 : i32
    return %arg0, %c0_i32, %c0_i32_0, %c0_i32_1 : i32, i32, i32, i32
  }
  func.func @transform_1(%arg0: i32, %arg1: i32) -> (i32, i32) {
    %c0_i32 = arith.constant 0 : i32
    %c0_i32_0 = arith.constant 0 : i32
    %c0_i32_1 = arith.constant 0 : i32
    return %c0_i32, %c0_i32_0 : i32, i32
  }
  func.func @transform_2(%arg0: i32, %arg1: i32) -> (i32, i32) {
    %c0_i32 = arith.constant 0 : i32
    %c0_i32_0 = arith.constant 0 : i32
    %c0_i32_1 = arith.constant 0 : i32
    return %c0_i32, %c0_i32_0 : i32, i32
  }
  func.func @transform_3(%arg0: i32, %arg1: i32) -> (i32, i32, i32, i32, i32) {
    %c0_i32 = arith.constant 0 : i32
    %c0_i32_0 = arith.constant 0 : i32
    %c0_i32_1 = arith.constant 0 : i32
    %c0_i32_2 = arith.constant 0 : i32
    return %arg0, %arg1, %c0_i32, %c0_i32_0, %c0_i32_1 : i32, i32, i32, i32, i32
  }
}

module attributes {stable_mosaic.version = 11 : i64} {
  func.func @_fused_upsample_deconv_relu_kernel(%arg0: i32, %arg1: i32, %arg2: memref<1x16x16x4xf32, #tpu.memory_space<vmem>>, %arg3: memref<36x8xf32, #tpu.memory_space<vmem>>, %arg4: memref<1x8xf32, #tpu.memory_space<vmem>>, %arg5: memref<1x8x2x16x4xf32, #tpu.memory_space<vmem>>, %arg6: memref<1x10x18x4xf32, #tpu.memory_space<vmem>>, %arg7: memref<128x36xf32, #tpu.memory_space<vmem>>) attributes {dimension_semantics = [#tpu.dimension_semantics<parallel>, #tpu.dimension_semantics<parallel>], iteration_bounds = array<i64: 2, 2>, scalar_prefetch = 0 : i64, scratch_operands = 2 : i64, tpu.core_type = #tpu.core_type<tc>, window_params = [{transform_indices = @transform_0, window_bounds = array<i64: 1, 16, 16, 4>}, {pipeline_mode = #tpu.pipeline_mode<synchronous>, transform_indices = @transform_1, window_bounds = array<i64: 36, 8>}, {pipeline_mode = #tpu.pipeline_mode<synchronous>, transform_indices = @transform_2, window_bounds = array<i64: 1, 8>}, {transform_indices = @transform_3, window_bounds = array<i64: 1, 8, 2, 16, 4>}]} {
    %c8_i32 = arith.constant 8 : i32
    %0 = arith.muli %arg1, %c8_i32 : i32
    %cst = arith.constant 0.000000e+00 : f32
    %1 = vector.broadcast %cst : f32 to vector<1x10x18x4xf32>
    %c0 = arith.constant 0 : index
    %c0_0 = arith.constant 0 : index
    %c0_1 = arith.constant 0 : index
    %c0_2 = arith.constant 0 : index
    %2 = vector.load %arg6[%c0, %c0_0, %c0_1, %c0_2] : memref<1x10x18x4xf32, #tpu.memory_space<vmem>>, vector<1x10x18x4xf32>
    tpu.vector_store %arg6[%c0, %c0_0, %c0_1, %c0_2], %1 {strides = array<i32>} : memref<1x10x18x4xf32, #tpu.memory_space<vmem>>, vector<1x10x18x4xf32>,
    %c0_3 = arith.constant 0 : index
    %3 = arith.index_cast %0 : i32 to index
    %c0_4 = arith.constant 0 : index
    %c0_5 = arith.constant 0 : index
    %4 = vector.load %arg2[%c0_3, %3, %c0_4, %c0_5] : memref<1x16x16x4xf32, #tpu.memory_space<vmem>>, vector<1x8x16x4xf32>
    %5 = vector.shape_cast %4 : vector<1x8x16x4xf32> to vector<8x16x4xf32>
    %c0_6 = arith.constant 0 : index
    %c1 = arith.constant 1 : index
    %c1_7 = arith.constant 1 : index
    %c0_8 = arith.constant 0 : index
    %6 = vector.load %arg6[%c0_6, %c1, %c1_7, %c0_8] : memref<1x10x18x4xf32, #tpu.memory_space<vmem>>, vector<1x8x16x4xf32>
    %7 = vector.shape_cast %6 : vector<1x8x16x4xf32> to vector<8x16x4xf32>
    %8 = vector.shape_cast %5 : vector<8x16x4xf32> to vector<1x8x16x4xf32>
    tpu.vector_store %arg6[%c0_6, %c1, %c1_7, %c0_8], %8 {strides = array<i32>} : memref<1x10x18x4xf32, #tpu.memory_space<vmem>>, vector<1x8x16x4xf32>,
    %c0_i32 = arith.constant 0 : i32
    %9 = arith.cmpi sgt, %arg1, %c0_i32 : i32
    %10 = arith.extui %9 : i1 to i32
    %c0_i32_9 = arith.constant 0 : i32
    %11 = arith.cmpi ne, %10, %c0_i32_9 : i32
    scf.if %11 {
      %c1_i32_50 = arith.constant 1 : i32
      %66 = arith.subi %0, %c1_i32_50 : i32
      %c0_i32_51 = arith.constant 0 : i32
      %67 = arith.maxsi %66, %c0_i32_51 : i32
      %c0_52 = arith.constant 0 : index
      %68 = arith.index_cast %67 : i32 to index
      %c0_53 = arith.constant 0 : index
      %c0_54 = arith.constant 0 : index
      %69 = vector.load %arg2[%c0_52, %68, %c0_53, %c0_54] : memref<1x16x16x4xf32, #tpu.memory_space<vmem>>, vector<1x1x16x4xf32>
      %70 = vector.shape_cast %69 : vector<1x1x16x4xf32> to vector<1x16x4xf32>
      %c0_55 = arith.constant 0 : index
      %c0_56 = arith.constant 0 : index
      %c1_57 = arith.constant 1 : index
      %c0_58 = arith.constant 0 : index
      %71 = vector.load %arg6[%c0_55, %c0_56, %c1_57, %c0_58] : memref<1x10x18x4xf32, #tpu.memory_space<vmem>>, vector<1x1x16x4xf32>
      %72 = vector.shape_cast %71 : vector<1x1x16x4xf32> to vector<1x16x4xf32>
      %73 = vector.shape_cast %70 : vector<1x16x4xf32> to vector<1x1x16x4xf32>
      tpu.vector_store %arg6[%c0_55, %c0_56, %c1_57, %c0_58], %73 {strides = array<i32>} : memref<1x10x18x4xf32, #tpu.memory_space<vmem>>, vector<1x1x16x4xf32>,
    } else {
    }
    %c1_i32 = arith.constant 1 : i32
    %12 = arith.cmpi slt, %arg1, %c1_i32 : i32
    %13 = arith.extui %12 : i1 to i32
    %c0_i32_10 = arith.constant 0 : i32
    %14 = arith.cmpi ne, %13, %c0_i32_10 : i32
    scf.if %14 {
      %c8_i32_50 = arith.constant 8 : i32
      %66 = arith.addi %0, %c8_i32_50 : i32
      %c15_i32 = arith.constant 15 : i32
      %67 = arith.minsi %66, %c15_i32 : i32
      %c0_51 = arith.constant 0 : index
      %68 = arith.index_cast %67 : i32 to index
      %c0_52 = arith.constant 0 : index
      %c0_53 = arith.constant 0 : index
      %69 = vector.load %arg2[%c0_51, %68, %c0_52, %c0_53] : memref<1x16x16x4xf32, #tpu.memory_space<vmem>>, vector<1x1x16x4xf32>
      %70 = vector.shape_cast %69 : vector<1x1x16x4xf32> to vector<1x16x4xf32>
      %c0_54 = arith.constant 0 : index
      %c9 = arith.constant 9 : index
      %c1_55 = arith.constant 1 : index
      %c0_56 = arith.constant 0 : index
      %71 = vector.load %arg6[%c0_54, %c9, %c1_55, %c0_56] : memref<1x10x18x4xf32, #tpu.memory_space<vmem>>, vector<1x1x16x4xf32>
      %72 = vector.shape_cast %71 : vector<1x1x16x4xf32> to vector<1x16x4xf32>
      %73 = vector.shape_cast %70 : vector<1x16x4xf32> to vector<1x1x16x4xf32>
      tpu.vector_store %arg6[%c0_54, %c9, %c1_55, %c0_56], %73 {strides = array<i32>} : memref<1x10x18x4xf32, #tpu.memory_space<vmem>>, vector<1x1x16x4xf32>,
    } else {
    }
    %c0_11 = arith.constant 0 : index
    %c0_12 = arith.constant 0 : index
    %c0_13 = arith.constant 0 : index
    %c0_14 = arith.constant 0 : index
    %15 = vector.load %arg6[%c0_11, %c0_12, %c0_13, %c0_14] : memref<1x10x18x4xf32, #tpu.memory_space<vmem>>, vector<1x8x18x4xf32>
    %16 = vector.shape_cast %15 : vector<1x8x18x4xf32> to vector<8x18x4xf32>
    %17 = vector.extract_strided_slice %16 {offsets = [0, 0, 0], sizes = [8, 16, 4], strides = [1, 1, 1]} : vector<8x18x4xf32> to vector<8x16x4xf32>
    %18 = vector.shape_cast %17 : vector<8x16x4xf32> to vector<128x4xf32>
    %c0_15 = arith.constant 0 : index
    %c0_16 = arith.constant 0 : index
    %19 = vector.load %arg7[%c0_15, %c0_16] : memref<128x36xf32, #tpu.memory_space<vmem>>, vector<128x4xf32>
    tpu.vector_store %arg7[%c0_15, %c0_16], %18 {strides = array<i32>} : memref<128x36xf32, #tpu.memory_space<vmem>>, vector<128x4xf32>,
    %20 = vector.extract_strided_slice %16 {offsets = [0, 1, 0], sizes = [8, 16, 4], strides = [1, 1, 1]} : vector<8x18x4xf32> to vector<8x16x4xf32>
    %21 = vector.shape_cast %20 : vector<8x16x4xf32> to vector<128x4xf32>
    %c0_17 = arith.constant 0 : index
    %c4 = arith.constant 4 : index
    %22 = vector.load %arg7[%c0_17, %c4] : memref<128x36xf32, #tpu.memory_space<vmem>>, vector<128x4xf32>
    tpu.vector_store %arg7[%c0_17, %c4], %21 {strides = array<i32>} : memref<128x36xf32, #tpu.memory_space<vmem>>, vector<128x4xf32>,
    %23 = vector.extract_strided_slice %16 {offsets = [0, 2, 0], sizes = [8, 16, 4], strides = [1, 1, 1]} : vector<8x18x4xf32> to vector<8x16x4xf32>
    %24 = vector.shape_cast %23 : vector<8x16x4xf32> to vector<128x4xf32>
    %c0_18 = arith.constant 0 : index
    %c8 = arith.constant 8 : index
    %25 = vector.load %arg7[%c0_18, %c8] : memref<128x36xf32, #tpu.memory_space<vmem>>, vector<128x4xf32>
    tpu.vector_store %arg7[%c0_18, %c8], %24 {strides = array<i32>} : memref<128x36xf32, #tpu.memory_space<vmem>>, vector<128x4xf32>,
    %c0_19 = arith.constant 0 : index
    %c1_20 = arith.constant 1 : index
    %c0_21 = arith.constant 0 : index
    %c0_22 = arith.constant 0 : index
    %26 = vector.load %arg6[%c0_19, %c1_20, %c0_21, %c0_22] : memref<1x10x18x4xf32, #tpu.memory_space<vmem>>, vector<1x8x18x4xf32>
    %27 = vector.shape_cast %26 : vector<1x8x18x4xf32> to vector<8x18x4xf32>
    %28 = vector.extract_strided_slice %27 {offsets = [0, 0, 0], sizes = [8, 16, 4], strides = [1, 1, 1]} : vector<8x18x4xf32> to vector<8x16x4xf32>
    %29 = vector.shape_cast %28 : vector<8x16x4xf32> to vector<128x4xf32>
    %c0_23 = arith.constant 0 : index
    %c12 = arith.constant 12 : index
    %30 = vector.load %arg7[%c0_23, %c12] : memref<128x36xf32, #tpu.memory_space<vmem>>, vector<128x4xf32>
    tpu.vector_store %arg7[%c0_23, %c12], %29 {strides = array<i32>} : memref<128x36xf32, #tpu.memory_space<vmem>>, vector<128x4xf32>,
    %31 = vector.extract_strided_slice %27 {offsets = [0, 1, 0], sizes = [8, 16, 4], strides = [1, 1, 1]} : vector<8x18x4xf32> to vector<8x16x4xf32>
    %32 = vector.shape_cast %31 : vector<8x16x4xf32> to vector<128x4xf32>
    %c0_24 = arith.constant 0 : index
    %c16 = arith.constant 16 : index
    %33 = vector.load %arg7[%c0_24, %c16] : memref<128x36xf32, #tpu.memory_space<vmem>>, vector<128x4xf32>
    tpu.vector_store %arg7[%c0_24, %c16], %32 {strides = array<i32>} : memref<128x36xf32, #tpu.memory_space<vmem>>, vector<128x4xf32>,
    %34 = vector.extract_strided_slice %27 {offsets = [0, 2, 0], sizes = [8, 16, 4], strides = [1, 1, 1]} : vector<8x18x4xf32> to vector<8x16x4xf32>
    %35 = vector.shape_cast %34 : vector<8x16x4xf32> to vector<128x4xf32>
    %c0_25 = arith.constant 0 : index
    %c20 = arith.constant 20 : index
    %36 = vector.load %arg7[%c0_25, %c20] : memref<128x36xf32, #tpu.memory_space<vmem>>, vector<128x4xf32>
    tpu.vector_store %arg7[%c0_25, %c20], %35 {strides = array<i32>} : memref<128x36xf32, #tpu.memory_space<vmem>>, vector<128x4xf32>,
    %c0_26 = arith.constant 0 : index
    %c2 = arith.constant 2 : index
    %c0_27 = arith.constant 0 : index
    %c0_28 = arith.constant 0 : index
    %37 = vector.load %arg6[%c0_26, %c2, %c0_27, %c0_28] : memref<1x10x18x4xf32, #tpu.memory_space<vmem>>, vector<1x8x18x4xf32>
    %38 = vector.shape_cast %37 : vector<1x8x18x4xf32> to vector<8x18x4xf32>
    %39 = vector.extract_strided_slice %38 {offsets = [0, 0, 0], sizes = [8, 16, 4], strides = [1, 1, 1]} : vector<8x18x4xf32> to vector<8x16x4xf32>
    %40 = vector.shape_cast %39 : vector<8x16x4xf32> to vector<128x4xf32>
    %c0_29 = arith.constant 0 : index
    %c24 = arith.constant 24 : index
    %41 = vector.load %arg7[%c0_29, %c24] : memref<128x36xf32, #tpu.memory_space<vmem>>, vector<128x4xf32>
    tpu.vector_store %arg7[%c0_29, %c24], %40 {strides = array<i32>} : memref<128x36xf32, #tpu.memory_space<vmem>>, vector<128x4xf32>,
    %42 = vector.extract_strided_slice %38 {offsets = [0, 1, 0], sizes = [8, 16, 4], strides = [1, 1, 1]} : vector<8x18x4xf32> to vector<8x16x4xf32>
    %43 = vector.shape_cast %42 : vector<8x16x4xf32> to vector<128x4xf32>
    %c0_30 = arith.constant 0 : index
    %c28 = arith.constant 28 : index
    %44 = vector.load %arg7[%c0_30, %c28] : memref<128x36xf32, #tpu.memory_space<vmem>>, vector<128x4xf32>
    tpu.vector_store %arg7[%c0_30, %c28], %43 {strides = array<i32>} : memref<128x36xf32, #tpu.memory_space<vmem>>, vector<128x4xf32>,
    %45 = vector.extract_strided_slice %38 {offsets = [0, 2, 0], sizes = [8, 16, 4], strides = [1, 1, 1]} : vector<8x18x4xf32> to vector<8x16x4xf32>
    %46 = vector.shape_cast %45 : vector<8x16x4xf32> to vector<128x4xf32>
    %c0_31 = arith.constant 0 : index
    %c32 = arith.constant 32 : index
    %47 = vector.load %arg7[%c0_31, %c32] : memref<128x36xf32, #tpu.memory_space<vmem>>, vector<128x4xf32>
    tpu.vector_store %arg7[%c0_31, %c32], %46 {strides = array<i32>} : memref<128x36xf32, #tpu.memory_space<vmem>>, vector<128x4xf32>,
    %c0_32 = arith.constant 0 : index
    %c0_33 = arith.constant 0 : index
    %48 = vector.load %arg4[%c0_32, %c0_33] : memref<1x8xf32, #tpu.memory_space<vmem>>, vector<1x8xf32>
    %c0_34 = arith.constant 0 : index
    %c0_35 = arith.constant 0 : index
    %49 = vector.load %arg7[%c0_34, %c0_35] : memref<128x36xf32, #tpu.memory_space<vmem>>, vector<128x36xf32>
    %c0_36 = arith.constant 0 : index
    %c0_37 = arith.constant 0 : index
    %50 = vector.load %arg3[%c0_36, %c0_37] : memref<36x8xf32, #tpu.memory_space<vmem>>, vector<36x8xf32>
    %cst_38 = arith.constant dense<0.000000e+00> : vector<128x8xf32>
    %51 = tpu.matmul %49, %50, %cst_38 {dimension_numbers = #tpu.dot_dimension_numbers<[1], [0], [0], [1], [0, 0, 1, 1], [], []>} : vector<128x36xf32>, vector<36x8xf32>, vector<128x8xf32> -> vector<128x8xf32>
    %52 = vector.broadcast %48 : vector<1x8xf32> to vector<128x8xf32>
    %53 = arith.addf %51, %52 : vector<128x8xf32>
    %cst_39 = arith.constant 0.000000e+00 : f32
    %54 = vector.broadcast %cst_39 : f32 to vector<128x8xf32>
    %55 = arith.maximumf %53, %54 : vector<128x8xf32>
    %56 = vector.extract_strided_slice %55 {offsets = [0, 0], sizes = [128, 4], strides = [1, 1]} : vector<128x8xf32> to vector<128x4xf32>
    %57 = vector.shape_cast %56 : vector<128x4xf32> to vector<8x16x4xf32>
    %c0_40 = arith.constant 0 : index
    %c0_41 = arith.constant 0 : index
    %c0_42 = arith.constant 0 : index
    %c0_43 = arith.constant 0 : index
    %c0_44 = arith.constant 0 : index
    %58 = vector.load %arg5[%c0_40, %c0_41, %c0_42, %c0_43, %c0_44] : memref<1x8x2x16x4xf32, #tpu.memory_space<vmem>>, vector<1x8x1x16x4xf32>
    %59 = vector.shape_cast %58 : vector<1x8x1x16x4xf32> to vector<8x16x4xf32>
    %60 = vector.shape_cast %57 : vector<8x16x4xf32> to vector<1x8x1x16x4xf32>
    tpu.vector_store %arg5[%c0_40, %c0_41, %c0_42, %c0_43, %c0_44], %60 {strides = array<i32>} : memref<1x8x2x16x4xf32, #tpu.memory_space<vmem>>, vector<1x8x1x16x4xf32>,
    %61 = vector.extract_strided_slice %55 {offsets = [0, 4], sizes = [128, 4], strides = [1, 1]} : vector<128x8xf32> to vector<128x4xf32>
    %62 = vector.shape_cast %61 : vector<128x4xf32> to vector<8x16x4xf32>
    %c0_45 = arith.constant 0 : index
    %c0_46 = arith.constant 0 : index
    %c1_47 = arith.constant 1 : index
    %c0_48 = arith.constant 0 : index
    %c0_49 = arith.constant 0 : index
    %63 = vector.load %arg5[%c0_45, %c0_46, %c1_47, %c0_48, %c0_49] : memref<1x8x2x16x4xf32, #tpu.memory_space<vmem>>, vector<1x8x1x16x4xf32>
    %64 = vector.shape_cast %63 : vector<1x8x1x16x4xf32> to vector<8x16x4xf32>
    %65 = vector.shape_cast %62 : vector<8x16x4xf32> to vector<1x8x1x16x4xf32>
    tpu.vector_store %arg5[%c0_45, %c0_46, %c1_47, %c0_48, %c0_49], %65 {strides = array<i32>} : memref<1x8x2x16x4xf32, #tpu.memory_space<vmem>>, vector<1x8x1x16x4xf32>,
    return
  }
  func.func @transform_0(%arg0: i32, %arg1: i32) -> (i32, i32, i32, i32) {
    %c0_i32 = arith.constant 0 : i32
    %c0_i32_0 = arith.constant 0 : i32
    %c0_i32_1 = arith.constant 0 : i32
    %c0_i32_2 = arith.constant 0 : i32
    return %arg0, %c0_i32, %c0_i32_0, %c0_i32_1 : i32, i32, i32, i32
  }
  func.func @transform_1(%arg0: i32, %arg1: i32) -> (i32, i32) {
    %c0_i32 = arith.constant 0 : i32
    %c0_i32_0 = arith.constant 0 : i32
    %c0_i32_1 = arith.constant 0 : i32
    return %c0_i32, %c0_i32_0 : i32, i32
  }
  func.func @transform_2(%arg0: i32, %arg1: i32) -> (i32, i32) {
    %c0_i32 = arith.constant 0 : i32
    %c0_i32_0 = arith.constant 0 : i32
    %c0_i32_1 = arith.constant 0 : i32
    return %c0_i32, %c0_i32_0 : i32, i32
  }
  func.func @transform_3(%arg0: i32, %arg1: i32) -> (i32, i32, i32, i32, i32) {
    %c0_i32 = arith.constant 0 : i32
    %c0_i32_0 = arith.constant 0 : i32
    %c0_i32_1 = arith.constant 0 : i32
    %c0_i32_2 = arith.constant 0 : i32
    return %arg0, %arg1, %c0_i32, %c0_i32_0, %c0_i32_1 : i32, i32, i32, i32, i32
  }
}

module attributes {stable_mosaic.version = 11 : i64} {
  func.func @_fused_upsample_deconv_relu_kernel(%arg0: i32, %arg1: i32, %arg2: memref<1x32x32x2xf32, #tpu.memory_space<vmem>>, %arg3: memref<18x12xf32, #tpu.memory_space<vmem>>, %arg4: memref<1x12xf32, #tpu.memory_space<vmem>>, %arg5: memref<1x8x2x32x6xf32, #tpu.memory_space<vmem>>, %arg6: memref<1x10x34x2xf32, #tpu.memory_space<vmem>>, %arg7: memref<256x18xf32, #tpu.memory_space<vmem>>) attributes {dimension_semantics = [#tpu.dimension_semantics<parallel>, #tpu.dimension_semantics<parallel>], iteration_bounds = array<i64: 2, 4>, scalar_prefetch = 0 : i64, scratch_operands = 2 : i64, tpu.core_type = #tpu.core_type<tc>, window_params = [{transform_indices = @transform_0, window_bounds = array<i64: 1, 32, 32, 2>}, {pipeline_mode = #tpu.pipeline_mode<synchronous>, transform_indices = @transform_1, window_bounds = array<i64: 18, 12>}, {pipeline_mode = #tpu.pipeline_mode<synchronous>, transform_indices = @transform_2, window_bounds = array<i64: 1, 12>}, {transform_indices = @transform_3, window_bounds = array<i64: 1, 8, 2, 32, 6>}]} {
    %c8_i32 = arith.constant 8 : i32
    %0 = arith.muli %arg1, %c8_i32 : i32
    %cst = arith.constant 0.000000e+00 : f32
    %1 = vector.broadcast %cst : f32 to vector<1x10x34x2xf32>
    %c0 = arith.constant 0 : index
    %c0_0 = arith.constant 0 : index
    %c0_1 = arith.constant 0 : index
    %c0_2 = arith.constant 0 : index
    %2 = vector.load %arg6[%c0, %c0_0, %c0_1, %c0_2] : memref<1x10x34x2xf32, #tpu.memory_space<vmem>>, vector<1x10x34x2xf32>
    tpu.vector_store %arg6[%c0, %c0_0, %c0_1, %c0_2], %1 {strides = array<i32>} : memref<1x10x34x2xf32, #tpu.memory_space<vmem>>, vector<1x10x34x2xf32>,
    %c0_3 = arith.constant 0 : index
    %3 = arith.index_cast %0 : i32 to index
    %c0_4 = arith.constant 0 : index
    %c0_5 = arith.constant 0 : index
    %4 = vector.load %arg2[%c0_3, %3, %c0_4, %c0_5] : memref<1x32x32x2xf32, #tpu.memory_space<vmem>>, vector<1x8x32x2xf32>
    %5 = vector.shape_cast %4 : vector<1x8x32x2xf32> to vector<8x32x2xf32>
    %c0_6 = arith.constant 0 : index
    %c1 = arith.constant 1 : index
    %c1_7 = arith.constant 1 : index
    %c0_8 = arith.constant 0 : index
    %6 = vector.load %arg6[%c0_6, %c1, %c1_7, %c0_8] : memref<1x10x34x2xf32, #tpu.memory_space<vmem>>, vector<1x8x32x2xf32>
    %7 = vector.shape_cast %6 : vector<1x8x32x2xf32> to vector<8x32x2xf32>
    %8 = vector.shape_cast %5 : vector<8x32x2xf32> to vector<1x8x32x2xf32>
    tpu.vector_store %arg6[%c0_6, %c1, %c1_7, %c0_8], %8 {strides = array<i32>} : memref<1x10x34x2xf32, #tpu.memory_space<vmem>>, vector<1x8x32x2xf32>,
    %c0_i32 = arith.constant 0 : i32
    %9 = arith.cmpi sgt, %arg1, %c0_i32 : i32
    %10 = arith.extui %9 : i1 to i32
    %c0_i32_9 = arith.constant 0 : i32
    %11 = arith.cmpi ne, %10, %c0_i32_9 : i32
    scf.if %11 {
      %c1_i32 = arith.constant 1 : i32
      %66 = arith.subi %0, %c1_i32 : i32
      %c0_i32_51 = arith.constant 0 : i32
      %67 = arith.maxsi %66, %c0_i32_51 : i32
      %c0_52 = arith.constant 0 : index
      %68 = arith.index_cast %67 : i32 to index
      %c0_53 = arith.constant 0 : index
      %c0_54 = arith.constant 0 : index
      %69 = vector.load %arg2[%c0_52, %68, %c0_53, %c0_54] : memref<1x32x32x2xf32, #tpu.memory_space<vmem>>, vector<1x1x32x2xf32>
      %70 = vector.shape_cast %69 : vector<1x1x32x2xf32> to vector<1x32x2xf32>
      %c0_55 = arith.constant 0 : index
      %c0_56 = arith.constant 0 : index
      %c1_57 = arith.constant 1 : index
      %c0_58 = arith.constant 0 : index
      %71 = vector.load %arg6[%c0_55, %c0_56, %c1_57, %c0_58] : memref<1x10x34x2xf32, #tpu.memory_space<vmem>>, vector<1x1x32x2xf32>
      %72 = vector.shape_cast %71 : vector<1x1x32x2xf32> to vector<1x32x2xf32>
      %73 = vector.shape_cast %70 : vector<1x32x2xf32> to vector<1x1x32x2xf32>
      tpu.vector_store %arg6[%c0_55, %c0_56, %c1_57, %c0_58], %73 {strides = array<i32>} : memref<1x10x34x2xf32, #tpu.memory_space<vmem>>, vector<1x1x32x2xf32>,
    } else {
    }
    %c3_i32 = arith.constant 3 : i32
    %12 = arith.cmpi slt, %arg1, %c3_i32 : i32
    %13 = arith.extui %12 : i1 to i32
    %c0_i32_10 = arith.constant 0 : i32
    %14 = arith.cmpi ne, %13, %c0_i32_10 : i32
    scf.if %14 {
      %c8_i32_51 = arith.constant 8 : i32
      %66 = arith.addi %0, %c8_i32_51 : i32
      %c31_i32 = arith.constant 31 : i32
      %67 = arith.minsi %66, %c31_i32 : i32
      %c0_52 = arith.constant 0 : index
      %68 = arith.index_cast %67 : i32 to index
      %c0_53 = arith.constant 0 : index
      %c0_54 = arith.constant 0 : index
      %69 = vector.load %arg2[%c0_52, %68, %c0_53, %c0_54] : memref<1x32x32x2xf32, #tpu.memory_space<vmem>>, vector<1x1x32x2xf32>
      %70 = vector.shape_cast %69 : vector<1x1x32x2xf32> to vector<1x32x2xf32>
      %c0_55 = arith.constant 0 : index
      %c9 = arith.constant 9 : index
      %c1_56 = arith.constant 1 : index
      %c0_57 = arith.constant 0 : index
      %71 = vector.load %arg6[%c0_55, %c9, %c1_56, %c0_57] : memref<1x10x34x2xf32, #tpu.memory_space<vmem>>, vector<1x1x32x2xf32>
      %72 = vector.shape_cast %71 : vector<1x1x32x2xf32> to vector<1x32x2xf32>
      %73 = vector.shape_cast %70 : vector<1x32x2xf32> to vector<1x1x32x2xf32>
      tpu.vector_store %arg6[%c0_55, %c9, %c1_56, %c0_57], %73 {strides = array<i32>} : memref<1x10x34x2xf32, #tpu.memory_space<vmem>>, vector<1x1x32x2xf32>,
    } else {
    }
    %c0_11 = arith.constant 0 : index
    %c0_12 = arith.constant 0 : index
    %c0_13 = arith.constant 0 : index
    %c0_14 = arith.constant 0 : index
    %15 = vector.load %arg6[%c0_11, %c0_12, %c0_13, %c0_14] : memref<1x10x34x2xf32, #tpu.memory_space<vmem>>, vector<1x8x34x2xf32>
    %16 = vector.shape_cast %15 : vector<1x8x34x2xf32> to vector<8x34x2xf32>
    %17 = vector.extract_strided_slice %16 {offsets = [0, 0, 0], sizes = [8, 32, 2], strides = [1, 1, 1]} : vector<8x34x2xf32> to vector<8x32x2xf32>
    %18 = vector.shape_cast %17 : vector<8x32x2xf32> to vector<256x2xf32>
    %c0_15 = arith.constant 0 : index
    %c0_16 = arith.constant 0 : index
    %19 = vector.load %arg7[%c0_15, %c0_16] : memref<256x18xf32, #tpu.memory_space<vmem>>, vector<256x2xf32>
    tpu.vector_store %arg7[%c0_15, %c0_16], %18 {strides = array<i32>} : memref<256x18xf32, #tpu.memory_space<vmem>>, vector<256x2xf32>,
    %20 = vector.extract_strided_slice %16 {offsets = [0, 1, 0], sizes = [8, 32, 2], strides = [1, 1, 1]} : vector<8x34x2xf32> to vector<8x32x2xf32>
    %21 = vector.shape_cast %20 : vector<8x32x2xf32> to vector<256x2xf32>
    %c0_17 = arith.constant 0 : index
    %c2 = arith.constant 2 : index
    %22 = vector.load %arg7[%c0_17, %c2] : memref<256x18xf32, #tpu.memory_space<vmem>>, vector<256x2xf32>
    tpu.vector_store %arg7[%c0_17, %c2], %21 {strides = array<i32>} : memref<256x18xf32, #tpu.memory_space<vmem>>, vector<256x2xf32>,
    %23 = vector.extract_strided_slice %16 {offsets = [0, 2, 0], sizes = [8, 32, 2], strides = [1, 1, 1]} : vector<8x34x2xf32> to vector<8x32x2xf32>
    %24 = vector.shape_cast %23 : vector<8x32x2xf32> to vector<256x2xf32>
    %c0_18 = arith.constant 0 : index
    %c4 = arith.constant 4 : index
    %25 = vector.load %arg7[%c0_18, %c4] : memref<256x18xf32, #tpu.memory_space<vmem>>, vector<256x2xf32>
    tpu.vector_store %arg7[%c0_18, %c4], %24 {strides = array<i32>} : memref<256x18xf32, #tpu.memory_space<vmem>>, vector<256x2xf32>,
    %c0_19 = arith.constant 0 : index
    %c1_20 = arith.constant 1 : index
    %c0_21 = arith.constant 0 : index
    %c0_22 = arith.constant 0 : index
    %26 = vector.load %arg6[%c0_19, %c1_20, %c0_21, %c0_22] : memref<1x10x34x2xf32, #tpu.memory_space<vmem>>, vector<1x8x34x2xf32>
    %27 = vector.shape_cast %26 : vector<1x8x34x2xf32> to vector<8x34x2xf32>
    %28 = vector.extract_strided_slice %27 {offsets = [0, 0, 0], sizes = [8, 32, 2], strides = [1, 1, 1]} : vector<8x34x2xf32> to vector<8x32x2xf32>
    %29 = vector.shape_cast %28 : vector<8x32x2xf32> to vector<256x2xf32>
    %c0_23 = arith.constant 0 : index
    %c6 = arith.constant 6 : index
    %30 = vector.load %arg7[%c0_23, %c6] : memref<256x18xf32, #tpu.memory_space<vmem>>, vector<256x2xf32>
    tpu.vector_store %arg7[%c0_23, %c6], %29 {strides = array<i32>} : memref<256x18xf32, #tpu.memory_space<vmem>>, vector<256x2xf32>,
    %31 = vector.extract_strided_slice %27 {offsets = [0, 1, 0], sizes = [8, 32, 2], strides = [1, 1, 1]} : vector<8x34x2xf32> to vector<8x32x2xf32>
    %32 = vector.shape_cast %31 : vector<8x32x2xf32> to vector<256x2xf32>
    %c0_24 = arith.constant 0 : index
    %c8 = arith.constant 8 : index
    %33 = vector.load %arg7[%c0_24, %c8] : memref<256x18xf32, #tpu.memory_space<vmem>>, vector<256x2xf32>
    tpu.vector_store %arg7[%c0_24, %c8], %32 {strides = array<i32>} : memref<256x18xf32, #tpu.memory_space<vmem>>, vector<256x2xf32>,
    %34 = vector.extract_strided_slice %27 {offsets = [0, 2, 0], sizes = [8, 32, 2], strides = [1, 1, 1]} : vector<8x34x2xf32> to vector<8x32x2xf32>
    %35 = vector.shape_cast %34 : vector<8x32x2xf32> to vector<256x2xf32>
    %c0_25 = arith.constant 0 : index
    %c10 = arith.constant 10 : index
    %36 = vector.load %arg7[%c0_25, %c10] : memref<256x18xf32, #tpu.memory_space<vmem>>, vector<256x2xf32>
    tpu.vector_store %arg7[%c0_25, %c10], %35 {strides = array<i32>} : memref<256x18xf32, #tpu.memory_space<vmem>>, vector<256x2xf32>,
    %c0_26 = arith.constant 0 : index
    %c2_27 = arith.constant 2 : index
    %c0_28 = arith.constant 0 : index
    %c0_29 = arith.constant 0 : index
    %37 = vector.load %arg6[%c0_26, %c2_27, %c0_28, %c0_29] : memref<1x10x34x2xf32, #tpu.memory_space<vmem>>, vector<1x8x34x2xf32>
    %38 = vector.shape_cast %37 : vector<1x8x34x2xf32> to vector<8x34x2xf32>
    %39 = vector.extract_strided_slice %38 {offsets = [0, 0, 0], sizes = [8, 32, 2], strides = [1, 1, 1]} : vector<8x34x2xf32> to vector<8x32x2xf32>
    %40 = vector.shape_cast %39 : vector<8x32x2xf32> to vector<256x2xf32>
    %c0_30 = arith.constant 0 : index
    %c12 = arith.constant 12 : index
    %41 = vector.load %arg7[%c0_30, %c12] : memref<256x18xf32, #tpu.memory_space<vmem>>, vector<256x2xf32>
    tpu.vector_store %arg7[%c0_30, %c12], %40 {strides = array<i32>} : memref<256x18xf32, #tpu.memory_space<vmem>>, vector<256x2xf32>,
    %42 = vector.extract_strided_slice %38 {offsets = [0, 1, 0], sizes = [8, 32, 2], strides = [1, 1, 1]} : vector<8x34x2xf32> to vector<8x32x2xf32>
    %43 = vector.shape_cast %42 : vector<8x32x2xf32> to vector<256x2xf32>
    %c0_31 = arith.constant 0 : index
    %c14 = arith.constant 14 : index
    %44 = vector.load %arg7[%c0_31, %c14] : memref<256x18xf32, #tpu.memory_space<vmem>>, vector<256x2xf32>
    tpu.vector_store %arg7[%c0_31, %c14], %43 {strides = array<i32>} : memref<256x18xf32, #tpu.memory_space<vmem>>, vector<256x2xf32>,
    %45 = vector.extract_strided_slice %38 {offsets = [0, 2, 0], sizes = [8, 32, 2], strides = [1, 1, 1]} : vector<8x34x2xf32> to vector<8x32x2xf32>
    %46 = vector.shape_cast %45 : vector<8x32x2xf32> to vector<256x2xf32>
    %c0_32 = arith.constant 0 : index
    %c16 = arith.constant 16 : index
    %47 = vector.load %arg7[%c0_32, %c16] : memref<256x18xf32, #tpu.memory_space<vmem>>, vector<256x2xf32>
    tpu.vector_store %arg7[%c0_32, %c16], %46 {strides = array<i32>} : memref<256x18xf32, #tpu.memory_space<vmem>>, vector<256x2xf32>,
    %c0_33 = arith.constant 0 : index
    %c0_34 = arith.constant 0 : index
    %48 = vector.load %arg4[%c0_33, %c0_34] : memref<1x12xf32, #tpu.memory_space<vmem>>, vector<1x12xf32>
    %c0_35 = arith.constant 0 : index
    %c0_36 = arith.constant 0 : index
    %49 = vector.load %arg7[%c0_35, %c0_36] : memref<256x18xf32, #tpu.memory_space<vmem>>, vector<256x18xf32>
    %c0_37 = arith.constant 0 : index
    %c0_38 = arith.constant 0 : index
    %50 = vector.load %arg3[%c0_37, %c0_38] : memref<18x12xf32, #tpu.memory_space<vmem>>, vector<18x12xf32>
    %cst_39 = arith.constant dense<0.000000e+00> : vector<256x12xf32>
    %51 = tpu.matmul %49, %50, %cst_39 {dimension_numbers = #tpu.dot_dimension_numbers<[1], [0], [0], [1], [0, 0, 1, 1], [], []>} : vector<256x18xf32>, vector<18x12xf32>, vector<256x12xf32> -> vector<256x12xf32>
    %52 = vector.broadcast %48 : vector<1x12xf32> to vector<256x12xf32>
    %53 = arith.addf %51, %52 : vector<256x12xf32>
    %cst_40 = arith.constant 0.000000e+00 : f32
    %54 = vector.broadcast %cst_40 : f32 to vector<256x12xf32>
    %55 = arith.maximumf %53, %54 : vector<256x12xf32>
    %56 = vector.extract_strided_slice %55 {offsets = [0, 0], sizes = [256, 6], strides = [1, 1]} : vector<256x12xf32> to vector<256x6xf32>
    %57 = vector.shape_cast %56 : vector<256x6xf32> to vector<8x32x6xf32>
    %c0_41 = arith.constant 0 : index
    %c0_42 = arith.constant 0 : index
    %c0_43 = arith.constant 0 : index
    %c0_44 = arith.constant 0 : index
    %c0_45 = arith.constant 0 : index
    %58 = vector.load %arg5[%c0_41, %c0_42, %c0_43, %c0_44, %c0_45] : memref<1x8x2x32x6xf32, #tpu.memory_space<vmem>>, vector<1x8x1x32x6xf32>
    %59 = vector.shape_cast %58 : vector<1x8x1x32x6xf32> to vector<8x32x6xf32>
    %60 = vector.shape_cast %57 : vector<8x32x6xf32> to vector<1x8x1x32x6xf32>
    tpu.vector_store %arg5[%c0_41, %c0_42, %c0_43, %c0_44, %c0_45], %60 {strides = array<i32>} : memref<1x8x2x32x6xf32, #tpu.memory_space<vmem>>, vector<1x8x1x32x6xf32>,
    %61 = vector.extract_strided_slice %55 {offsets = [0, 6], sizes = [256, 6], strides = [1, 1]} : vector<256x12xf32> to vector<256x6xf32>
    %62 = vector.shape_cast %61 : vector<256x6xf32> to vector<8x32x6xf32>
    %c0_46 = arith.constant 0 : index
    %c0_47 = arith.constant 0 : index
    %c1_48 = arith.constant 1 : index
    %c0_49 = arith.constant 0 : index
    %c0_50 = arith.constant 0 : index
    %63 = vector.load %arg5[%c0_46, %c0_47, %c1_48, %c0_49, %c0_50] : memref<1x8x2x32x6xf32, #tpu.memory_space<vmem>>, vector<1x8x1x32x6xf32>
    %64 = vector.shape_cast %63 : vector<1x8x1x32x6xf32> to vector<8x32x6xf32>
    %65 = vector.shape_cast %62 : vector<8x32x6xf32> to vector<1x8x1x32x6xf32>
    tpu.vector_store %arg5[%c0_46, %c0_47, %c1_48, %c0_49, %c0_50], %65 {strides = array<i32>} : memref<1x8x2x32x6xf32, #tpu.memory_space<vmem>>, vector<1x8x1x32x6xf32>,
    return
  }
  func.func @transform_0(%arg0: i32, %arg1: i32) -> (i32, i32, i32, i32) {
    %c0_i32 = arith.constant 0 : i32
    %c0_i32_0 = arith.constant 0 : i32
    %c0_i32_1 = arith.constant 0 : i32
    %c0_i32_2 = arith.constant 0 : i32
    return %arg0, %c0_i32, %c0_i32_0, %c0_i32_1 : i32, i32, i32, i32
  }
  func.func @transform_1(%arg0: i32, %arg1: i32) -> (i32, i32) {
    %c0_i32 = arith.constant 0 : i32
    %c0_i32_0 = arith.constant 0 : i32
    %c0_i32_1 = arith.constant 0 : i32
    return %c0_i32, %c0_i32_0 : i32, i32
  }
  func.func @transform_2(%arg0: i32, %arg1: i32) -> (i32, i32) {
    %c0_i32 = arith.constant 0 : i32
    %c0_i32_0 = arith.constant 0 : i32
    %c0_i32_1 = arith.constant 0 : i32
    return %c0_i32, %c0_i32_0 : i32, i32
  }
  func.func @transform_3(%arg0: i32, %arg1: i32) -> (i32, i32, i32, i32, i32) {
    %c0_i32 = arith.constant 0 : i32
    %c0_i32_0 = arith.constant 0 : i32
    %c0_i32_1 = arith.constant 0 : i32
    %c0_i32_2 = arith.constant 0 : i32
    return %arg0, %arg1, %c0_i32, %c0_i32_0, %c0_i32_1 : i32, i32, i32, i32, i32
  }
}

</mosaic_0001>

<bundles_post_ra>
// kernel: _lambda_.5
= control target key start
LH: loop header
LB: loop body
LE: loop exit
PB: predicated region body
PF: predicated region fallthrough
CT: control target
= control target key end

     0   :  { %8 = vsyncpa [#allocation5], 0  ;;  %s1341_s0 = inlined_call_operand.hbm [shape: f32[2,2,2,32], index: 0, kind: input, shape index: {}]   ;;  %s1342_s1 = inlined_call_operand.hbm [shape: f32[288,64], index: 1, kind: input, shape index: {}]   ;;  %s1343_s2 = inlined_call_operand.hbm [shape: f32[1,64], index: 2, kind: input, shape index: {}]   ;;  %s1344_s3 = inlined_call_operand.vmem [shape: f32[2,2,2,2,32], index: 3, kind: output, shape index: {}]  }
   0x1   :  { %9 = vsyncpa [#allocation7], 0  ;;  %s1007_s12 = smov [#allocation6]   ;;  %s937_s16 = scalar_lea.hbm %s1342_s1, 4608 }
   0x2   :  { %s27_s13 = sshll.u32 %s1007_s12, 4  ;;  %p938_p0 = scmp.ne.s32.totalorder %s1342_s1, %s937_s16  ;;  %s28_s13 = int_to_ptr.vmem [resolvable:$true] %s27_s13 }
   0x3   :  { %p941_p1 = scmp.lt.u32.totalorder %s937_s16, %s1342_s1 }
   0x5   :  { %p943_p2 = pnand %p941_p1, %p938_p0 }
   0x7   :  { %946 = shalt.err (!%p943_p2)
}
   0x8   :  { %s947_s21 = scalar_lea.vmem %s28_s13, 4608  ;;  %p952_p4 = scmp.lt.s32.totalorder %s28_s13, %s28_s13 }
   0x9   :  { %p948_p3 = scmp.ne.s32.totalorder %s28_s13, %s947_s21  ;;  %p953_p5 = scmp.lt.s32.totalorder %s947_s21, %s947_s21 }
   0xb   :  { %p954_p6 = por %p953_p5, %p952_p4 }
   0xd   :  { %p955_p7 = pnand %p954_p6, %p948_p3 }
   0xf   :  { %958 = shalt.err (!%p955_p7)
}
  0x10   :  { %s1008_s22 = smov 128   ;;  %s1009_s23 = smov 8  }
  0x11   :  { %33 = dma.hbm_to_vmem [thread:$0]  %s1342_s1, 4608, %s28_s13, [#allocation7], %s1008_s22, %s1008_s22, %s1009_s23  }
  0x12   :  { %s1010_s26 = smov [#allocation4]   ;;  %s959_s30 = scalar_lea.hbm %s1341_s0, 128 }
  0x13   :  { %s15_s27 = sshll.u32 %s1010_s26, 4  ;;  %p960_p8 = scmp.ne.s32.totalorder %s1341_s0, %s959_s30  ;;  %s16_s27 = int_to_ptr.vmem [resolvable:$true] %s15_s27 }
  0x14   :  { %p963_p9 = scmp.lt.u32.totalorder %s959_s30, %s1341_s0 }
  0x16   :  { %p965_p10 = pnand %p963_p9, %p960_p8 }
  0x18   :  { %968 = shalt.err (!%p965_p10)
}
  0x19   :  { %s969_s8 = scalar_lea.vmem %s16_s27, 128  ;;  %p974_p12 = scmp.lt.s32.totalorder %s16_s27, %s16_s27 }
  0x1a   :  { %p970_p11 = scmp.ne.s32.totalorder %s16_s27, %s969_s8  ;;  %p975_p13 = scmp.lt.s32.totalorder %s969_s8, %s969_s8 }
  0x1c   :  { %p976_p0 = por %p975_p13, %p974_p12 }
  0x1e   :  { %p977_p1 = pnand %p976_p0, %p970_p11 }
  0x20   :  { %980 = shalt.err (!%p977_p1)
}
  0x21   :  { %s1011_s1 = smov 32   ;;  %s1012_s9 = smov 2  }
  0x22   :  { %21 = dma.hbm_to_vmem [thread:$0]  %s1341_s0, 128, %s16_s27, [#allocation5], %s1011_s1, %s1011_s1, %s1012_s9  }
  0x23   :  { %s1013_s12 = smov [#allocation8]   ;;  %s981_s16 = scalar_lea.hbm %s1343_s2, 16 }
  0x24   :  { %s40_s13 = sshll.u32 %s1013_s12, 4  ;;  %p982_p2 = scmp.ne.s32.totalorder %s1343_s2, %s981_s16  ;;  %s41_s13 = int_to_ptr.vmem [resolvable:$true] %s40_s13 }
  0x25   :  { %p985_p3 = scmp.lt.u32.totalorder %s981_s16, %s1343_s2 }
  0x27   :  { %p987_p4 = pnand %p985_p3, %p982_p2 }
  0x29   :  { %990 = shalt.err (!%p987_p4)
}
  0x2a   :  { %s991_s21 = scalar_lea.vmem %s41_s13, 16  ;;  %s995_s0 = scalar_lea.vmem %s41_s13, 32 }
  0x2b   :  { %p992_p5 = scmp.ne.s32.totalorder %s41_s13, %s991_s21  ;;  %p996_p6 = scmp.lt.s32.totalorder %s41_s13, %s41_s13 }
  0x2c   :  { %p997_p7 = scmp.lt.s32.totalorder %s995_s0, %s991_s21 }
  0x2e   :  { %p998_p8 = por %p997_p7, %p996_p6 }
  0x30   :  { %p999_p9 = pnand %p998_p8, %p992_p5 }
  0x32   :  { %1002 = shalt.err (!%p999_p9)
}
  0x33   :  { %43 = dma.hbm_to_vmem [thread:$0]  %s1343_s2, 16, %s41_s13, [#allocation7]  }
  0x34   :  { %1003 = dma.done.wait [#allocation5], 128  }
  0x35   :  { %1004 = vsyncadd [#allocation5], 4294967168 }
  0x36   :  { %1005 = dma.done.wait [#allocation7], 4624  }
  0x37   :  { %1006 = vsyncadd [#allocation7], 4294962672  ;;  %vm54_vm0 = vcmask 257024   ;;  %v133_v0 = vlaneseq  ;;  %v1014_v1 = vmov 0.0   ;;  %vm155_vm1 = vcmask 1040384   ;;  %v543_v19 = vld [vmem:[#allocation6 + $0x80] sm:$0xff] }
  0x38   :  { %57 = vst.msk [vmem:[#allocation2 + $0x8] sm:$0xf] %vm54_vm0, %v1014_v1  ;;  %58 = vst.msk [vmem:[#allocation2 + $0xc] sm:$0xf] %vm54_vm0, %v1014_v1  ;;  %vm156_vm2 = vcmask 1042434   ;;  %vm158_vm4 = vcmask 1044484  }
  0x39   :  { %55 = vst.msk [vmem:[#allocation2] sm:$0xf] %vm54_vm0, %v1014_v1  ;;  %56 = vst.msk [vmem:[#allocation2 + $0x4] sm:$0xf] %vm54_vm0, %v1014_v1  ;;  %v1015_v2 = vmov 1983009808  }
  0x3a   :  { %59 = vst.msk [vmem:[#allocation2 + $0x10] sm:$0xf] %vm54_vm0, %v1014_v1  ;;  %60 = vst.msk [vmem:[#allocation2 + $0x14] sm:$0xf] %vm54_vm0, %v1014_v1  ;;  %v131_v3 = vunpack.c.l.s4 %v1015_v2  ;;  %v134_v4 = vshrl.u32 %v133_v0, 7  ;;  %vm68_vm5 = vcmask 254976  }
  0x3b   :  { %61 = vst.msk [vmem:[#allocation2 + $0x18] sm:$0xf] %vm54_vm0, %v1014_v1  ;;  %62 = vst.msk [vmem:[#allocation2 + $0x1c] sm:$0xf] %vm54_vm0, %v1014_v1  ;;  %v66_v8 = vld [vmem:[#allocation4 + $0x2] sm:$0x3] }
  0x3c   :  { %vm157_vm3 = vmor %vm155_vm1, %vm156_vm2  ;;  %v132_v5 = vunpack.c.0.s8 %v131_v3  ;;  %v65_v9 = vld [vmem:[#allocation4] sm:$0x3]  ;;  %v97_v10 = vld [vmem:[#allocation4 + $0x6] sm:$0x3]  ;;  %70 = vst.msk [vmem:[#allocation2 + $0x9] sm:$0x3] %vm68_vm5, %v66_v8 }
  0x3d   :  { %vm1096_vm6 = vmor %vm157_vm3, %vm158_vm4  ;;  %69 = vst.msk [vmem:[#allocation2 + $0x5] sm:$0x3] %vm68_vm5, %v65_v9  ;;  %vm160_vm7 = vcmask 1046534   ;;  %v96_v17 = vld [vmem:[#allocation4 + $0x4] sm:$0x3]  ;;  %v544_v21 = vld [vmem:[#allocation6 + $0x88] sm:$0xff] }
  0x3e   :  { %v1094_v6 = vsub.s32 %v132_v5, %v134_v4  ;;  %100 = vst.msk [vmem:[#allocation2 + $0x19] sm:$0x3] %vm68_vm5, %v97_v10  ;;  %99 = vst.msk [vmem:[#allocation2 + $0x15] sm:$0x3] %vm68_vm5, %v96_v17  ;;  %v527_v22 = vld [vmem:[#allocation6] sm:$0xff]  ;;  %v528_v23 = vld [vmem:[#allocation6 + $0x8] sm:$0xff]  ;;  %v881_v38 = vpack.c.bf16 %v544_v21, %v543_v19 }
  0x3f   :  { %v261_v11 = vld [vmem:[#allocation2 + $0xc] sm:$0xf]  ;;  %v545_v28 = vld [vmem:[#allocation6 + $0x90] sm:$0xff]  ;;  %v546_v29 = vld [vmem:[#allocation6 + $0x98] sm:$0xff]  ;;  %v883_v39 = vpack.c.bf16 %v528_v23, %v527_v22  ;;  %s1016_s2 = smov 64   ;;  %vm337_vm9 = vcmask 261124  }
  0x40   :  { %v1105_v13 = vld [vmem:[#allocation2] sm:$0xf]  ;;  %v1108_v14 = vrot.slane %v261_v11, %v1094_v6  ;;  %vm1134_vm8 = vmor %vm1096_vm6, %vm160_vm7  ;;  %v529_v34 = vld [vmem:[#allocation6 + $0x10] sm:$0xff]  ;;  %v885_v44 = vpack.c.bf16 %v546_v29, %v545_v28  ;;  %882 = vmatprep.subr.bf16.mxu0 %v881_v38  ;;  %s1017_s24 = smov 96   ;;  %vm1019_vm10 = vmmov 0   ;;  %vm569_vm11 = vcmask 261120  }
  0x41   :  { %v1116_v16 = vrot.slane %v1105_v13, %v1094_v6  ;;  %v1118_v18 = vld [vmem:[#allocation2 + $0x10] sm:$0xf]  ;;  %v530_v35 = vld [vmem:[#allocation6 + $0x18] sm:$0xff]  ;;  %v547_v40 = vld [vmem:[#allocation6 + $0xa0] sm:$0xff]  ;;  %884 = vmatpush3.bf16.msra.mxu0 %v883_v39  ;;  %878 = vmatprep.mubr.msk.f32.mxu1 %vm1019_vm10, %v1014_v1  ;;  %vm181_vm12 = vcmask 519424   ;;  %vm194_vm13 = vcmask 781824  }
  0x42   :  { %v1103_v12 = vld [vmem:[#allocation2 + $0x1c] sm:$0xf]  ;;  %v1123_v20 = vrot.slane %v1118_v18, %v1094_v6  ;;  %v291_v24 = vcombine.high %v1108_v14, %v1108_v14  ;;  %v811_v25 = vrot.slane %v1108_v14, 9  ;;  %v548_v45 = vld [vmem:[#allocation6 + $0xa8] sm:$0xff]  ;;  %v531_v46 = vld [vmem:[#allocation6 + $0x20] sm:$0xff]  ;;  %v887_v53 = vpack.c.bf16 %v530_v35, %v529_v34  ;;  %886 = vmatprep.subr.bf16.mxu0 %v885_v44 }
  0x43   :  { %v1112_v15 = vrot.slane %v1103_v12, %v1094_v6  ;;  %v146_v26 = vcombine.high %v1116_v16, %v1116_v16  ;;  %v804_v27 = vrot.slane %v1116_v16, 9  ;;  %v532_v47 = vld [vmem:[#allocation6 + $0x28] sm:$0xff]  ;;  %v889_v62 = vpack.c.bf16 %v548_v45, %v547_v40 }
  0x44   :  { %v346_v33 = vcombine.high %v1123_v20, %v1123_v20  ;;  %v298_v36 = vrot.slane %v291_v24, 7  ;;  %v813_v42 = vrot.slane %v1123_v20, 9  ;;  %v260_v48 = vld [vmem:[#allocation2 + $0x8] sm:$0xf]  ;;  %v1148_v49 = vld [vmem:[#allocation2 + $0x4] sm:$0xf]  ;;  %v891_v63 = vpack.c.bf16 %v532_v47, %v531_v46 }
  0x45   :  { %v490_v31 = vcombine.high %v1112_v15, %v1112_v15  ;;  %v820_v32 = vrot.slane %v1112_v15, 9  ;;  %v164_v37 = vrot.slane %v146_v26, 7  ;;  %v1150_v50 = vld [vmem:[#allocation2 + $0x8] sm:$0xf]  ;;  %v264_v54 = vcombine.low %v260_v48, %v261_v11  ;;  %v458_v58 = vld [vmem:[#allocation2 + $0x18] sm:$0xf]  ;;  %888 = vmatpush3.bf16.msra.mxu0 %v887_v53 }
  0x46   :  { %v1146_v43 = vrot.slane %v346_v33, 7  ;;  %v1158_v52 = vsel %vm1134_vm8, %v811_v25, %v298_v36  ;;  %v282_v55 = vrot.slane %v260_v48, %v1094_v6  ;;  %v1163_v56 = vrot.slane %v1148_v49, %v1094_v6  ;;  %v1169_v59 = vld [vmem:[#allocation2 + $0x4] sm:$0xf]  ;;  %v1189_v17 = vld [vmem:[#allocation2 + $0x14] sm:$0xf]  ;;  %890 = vmatprep.subr.bf16.mxu0 %v889_v62 }
  0x47   :  { %v1143_v41 = vrot.slane %v490_v31, 7  ;;  %v1154_v51 = vsel %vm1134_vm8, %v804_v27, %v164_v37  ;;  %v1167_v57 = vrot.slane %v1150_v50, %v1094_v6  ;;  %v462_v60 = vcombine.low %v458_v58, %v1103_v12  ;;  %v1191_v19 = vld [vmem:[#allocation2 + $0x18] sm:$0xf]  ;;  %v1218_v38 = vld [vmem:[#allocation2 + $0x14] sm:$0xf] }
  0x48   :  { %v1173_v61 = vrot.slane %v458_v58, %v1094_v6  ;;  %v271_v0 = vrot.slane %v264_v54, %v1094_v6  ;;  %v283_v2 = vcombine.high %v282_v55, %v282_v55  ;;  %v812_v3 = vcombine.high %v282_v55, %v1108_v14 }
  0x49   :  { %v153_v4 = vrot.slane %v1169_v59, %v1094_v6  ;;  %v810_v5 = vrot.slane %v282_v55, 9  ;;  %v228_v7 = vcombine.high %v1167_v57, %v1167_v57  ;;  %v809_v8 = vcombine.high %v1163_v56, %v1167_v57  ;;  %892 = vmatpush3.bf16.msra.mxu0 %v891_v63 }
  0x4a   :  { %v129_v9 = vcombine.low %v1105_v13, %v1169_v59  ;;  %v294_v10 = vrot.slane %v283_v2, 7  ;;  %v319_v11 = vrot.slane %v812_v3, %v1094_v6  ;;  %272 = vrot.lane.b32.xlu1 %v271_v0, %s1016_s2  ;;  %v808_v12 = vrot.slane %v1167_v57, 9  ;;  %v533_v13 = vld [vmem:[#allocation6 + $0x30] sm:$0xff]  ;;  %v534_v59 = vld [vmem:[#allocation6 + $0x38] sm:$0xff] }
  0x4b   :  { %v469_v14 = vrot.slane %v462_v60, %v1094_v6  ;;  %v254_v21 = vrot.slane %v809_v8, %v1094_v6  ;;  %v220_v22 = vcombine.high %v1163_v56, %v1163_v56  ;;  %v807_v23 = vrot.slane %v1163_v56, 9 }
  0x4c   :  { %v821_v24 = vcombine.high %v1173_v61, %v1112_v15  ;;  %321 = vst.msk [vmem:[#allocation3 + $0x10] sm:$0xf] %vm54_vm0, %v319_v11  ;;  %v806_v26 = vcombine.high %v1116_v16, %v153_v4  ;;  %v154_v27 = vcombine.high %v153_v4, %v153_v4  ;;  %v805_v28 = vrot.slane %v153_v4, 9 }
  0x4d   :  { %v470_v25 = vcombine.low %v469_v14, %v469_v14  ;;  %255 = vrot.lane.b32.xlu0 %v254_v21, %s1011_s1  ;;  %v1207_v31 = vrot.slane %v1189_v17, %v1094_v6  ;;  %v1211_v33 = vrot.slane %v1191_v19, %v1094_v6  ;;  %v295_v34 = vsel %vm1134_vm8, %v810_v5, %v294_v10  ;;  %v549_v14 = vld [vmem:[#allocation6 + $0xb0] sm:$0xff] }
  0x4e   :  { %v1203_v29 = vrot.slane %v821_v24, %v1094_v6  ;;  %v235_v35 = vrot.slane %v228_v7, 7  ;;  %v190_v16 = vrot.slane %v806_v26, %v1094_v6  ;;  %v168_v36 = vrot.slane %v154_v27, 7 }
  0x4f   :  { %471 = vrot.lane.b32.xlu1 %v470_v25, %s1016_s2  ;;  %v300_v37 = vcombine.low %v295_v34, %v1158_v52  ;;  %v231_v39 = vrot.slane %v220_v22, 7  ;;  %v416_v44 = vcombine.high %v1207_v31, %v1207_v31  ;;  %v424_v45 = vcombine.high %v1211_v33, %v1211_v33 }
  0x50   :  { %v520_v40 = vcombine.low %v1203_v29, %v1203_v29  ;;  %v169_v46 = vsel %vm1134_vm8, %v805_v28, %v168_v36  ;;  %v816_v47 = vrot.slane %v1207_v31, 9  ;;  %v817_v48 = vrot.slane %v1211_v33, 9  ;;  %v535_v29 = vld [vmem:[#allocation6 + $0x40] sm:$0xff] }
  0x51   :  { %v818_v52 = vcombine.high %v1207_v31, %v1211_v33  ;;  %191 = vrot.lane.b32.xlu0 %v190_v16, %s1016_s2  ;;  %v170_v53 = vcombine.low %v1154_v51, %v169_v46  ;;  %v427_v54 = vrot.slane %v416_v44, 7  ;;  %v307_v55 = vrot.slane %v300_v37, %v1094_v6  ;;  %v536_v31 = vld [vmem:[#allocation6 + $0x48] sm:$0xff]  ;;  %v554_v16 = vld [vmem:[#allocation6 + $0xd8] sm:$0xff]  ;;  %v559_v44 = vld [vmem:[#allocation6 + $0x100] sm:$0xff] }
  0x52   :  { %v353_v56 = vrot.slane %v1218_v38, %v1094_v6  ;;  %v431_v57 = vrot.slane %v424_v45, 7  ;;  %v482_v60 = vcombine.high %v1173_v61, %v1173_v61  ;;  %v819_v62 = vrot.slane %v1173_v61, 9  ;;  %522 = vst.msk [vmem:[#allocation3 + $0x10] sm:$0xf0] %vm337_vm9, %v520_v40  ;;  %v560_v45 = vld [vmem:[#allocation6 + $0x108] sm:$0xff] }
  0x53   :  { %v451_v58 = vrot.slane %v818_v52, %v1094_v6  ;;  %v177_v63 = vrot.slane %v170_v53, %v1094_v6  ;;  %v498_v51 = vsel %vm1134_vm8, %v820_v32, %v1143_v41  ;;  %v358_v5 = vsel %vm1134_vm8, %v813_v42, %v1146_v43  ;;  %v537_v52 = vld [vmem:[#allocation6 + $0x50] sm:$0xff]  ;;  %v538_v53 = vld [vmem:[#allocation6 + $0x58] sm:$0xff] }
  0x54   :  { %v815_v0 = vcombine.high %v1123_v20, %v353_v56  ;;  %v354_v2 = vcombine.high %v353_v56, %v353_v56  ;;  %v493_v4 = vrot.slane %v482_v60, 7  ;;  %v814_v61 = vrot.slane %v353_v56, 9  ;;  %v556_v56 = vld [vmem:[#allocation6 + $0xe8] sm:$0xff]  ;;  %v561_v60 = vld [vmem:[#allocation6 + $0x110] sm:$0xff] }
  0x55   :  { %v452_v3 = vcombine.low %v451_v58, %v451_v58  ;;  %178 = vrot.lane.b32.xlu1 %v177_v63, %s1011_s1  ;;  %v395_v15 = vcombine.low %v1189_v17, %v1191_v19  ;;  %v236_v32 = vsel %vm1134_vm8, %v808_v12, %v235_v35  ;;  %v232_v41 = vsel %vm1134_vm8, %v807_v23, %v231_v39  ;;  %v550_v17 = vld [vmem:[#allocation6 + $0xb8] sm:$0xff]  ;;  %v553_v35 = vld [vmem:[#allocation6 + $0xd0] sm:$0xff] }
  0x56   :  { %v384_v7 = vrot.slane %v815_v0, %v1094_v6  ;;  %v361_v8 = vrot.slane %v354_v2, 7  ;;  %v494_v20 = vsel %vm1134_vm8, %v819_v62, %v493_v4  ;;  %v136_v42 = vrot.slane %v129_v9, %v1094_v6  ;;  %v562_v62 = vld [vmem:[#allocation6 + $0x118] sm:$0xff]  ;;  %v540_v2 = vld [vmem:[#allocation6 + $0x68] sm:$0xff] }
  0x57   :  { %453 = vrot.lane.b32.xlu0 %v452_v3, %s1011_s1  ;;  %v327_v43 = vcombine.low %v1118_v18, %v1218_v38  ;;  %v499_v11 = vcombine.low %v494_v20, %v498_v51  ;;  %v200_v21 = vcombine.low %v1148_v49, %v1150_v50  ;;  %v237_v22 = vcombine.low %v232_v41, %v236_v32  ;;  %v551_v49 = vld [vmem:[#allocation6 + $0xc0] sm:$0xff]  ;;  %v552_v50 = vld [vmem:[#allocation6 + $0xc8] sm:$0xff]  ;;  %v557_v3 = vld [vmem:[#allocation6 + $0xf0] sm:$0xff] }
  0x58   :  { %v385_v10 = vcombine.low %v384_v7, %v384_v7  ;;  %v362_v12 = vsel %vm1134_vm8, %v814_v61, %v361_v8  ;;  %138 = vst.msk [vmem:[#allocation3] sm:$0xf] %vm54_vm0, %v136_v42  ;;  %v402_v9 = vrot.slane %v395_v15, %v1094_v6  ;;  %v428_v23 = vsel %vm1134_vm8, %v816_v47, %v427_v54  ;;  %v539_v51 = vld [vmem:[#allocation6 + $0x60] sm:$0xff]  ;;  %v558_v4 = vld [vmem:[#allocation6 + $0xf8] sm:$0xff]  ;;  %v541_v8 = vld [vmem:[#allocation6 + $0x70] sm:$0xff] }
  0x59   :  { %v363_v19 = vcombine.low %v358_v5, %v362_v12  ;;  %308 = vrot.lane.b32.xlu1 %v307_v55, %s1017_s24  ;;  %v506_v18 = vrot.slane %v499_v11, %v1094_v6  ;;  %v432_v24 = vsel %vm1134_vm8, %v817_v48, %v431_v57  ;;  %v244_v26 = vrot.slane %v237_v22, %v1094_v6  ;;  %v555_v55 = vld [vmem:[#allocation6 + $0xe0] sm:$0xff]  ;;  %v542_v15 = vld [vmem:[#allocation6 + $0x78] sm:$0xff]  ;;  %v526_v32 = vld [vmem:[#allocation3 + $0x10] sm:$0xff] }
  0x5a   :  { %v433_v27 = vcombine.low %v428_v23, %v432_v24  ;;  %v893_v28 = vpack.c.bf16 %v550_v17, %v549_v14  ;;  %v895_v34 = vpack.c.bf16 %v534_v59, %v533_v13  ;;  %v897_v37 = vpack.c.bf16 %v552_v50, %v551_v49  ;;  %v822_v49 = vld [vmem:[#allocation8] ss:$0 sm:$0xff] }
  0x5b   :  { %386 = vrot.lane.b32.xlu0 %v385_v10, %s1016_s2  ;;  %v370_v25 = vrot.slane %v363_v19, %v1094_v6  ;;  %v507_v33 = vcombine.low %v506_v18, %v506_v18  ;;  %246 = vst.msk [vmem:[#allocation3 + $0x8] sm:$0xf] %vm54_vm0, %v244_v26  ;;  %v403_v38 = vcombine.low %v402_v9, %v402_v9  ;;  %v1018_v57 = vmov 0.0|0.0  }
  0x5c   :  { %v440_v36 = vrot.slane %v433_v27, %v1094_v6  ;;  %894 = vmatprep.subr.bf16.mxu0 %v893_v28  ;;  %v899_v39 = vpack.c.bf16 %v536_v31, %v535_v29  ;;  %v334_v40 = vrot.slane %v327_v43, %v1094_v6  ;;  %v207_v46 = vrot.slane %v200_v21, %v1094_v6 }
  0x5d   :  { %v371_v30 = vcombine.low %v370_v25, %v370_v25  ;;  %508 = vrot.lane.b32.xlu1 %v507_v33, %s1017_s24  ;;  %896 = vmatpush3.bf16.msra.mxu0 %v895_v34  ;;  %v901_v48 = vpack.c.bf16 %v554_v16, %v553_v35  ;;  %v914_v58 = vpack.c.bf16 %v560_v45, %v559_v44  ;;  %vm375_vm14 = vcmask 523524  }
  0x5e   :  { %v441_v47 = vcombine.low %v440_v36, %v440_v36  ;;  %898 = vmatprep.subr.bf16.mxu0 %v897_v37  ;;  %v335_v54 = vcombine.low %v334_v40, %v334_v40  ;;  %913 = vmatprep.subr.bf16.mxu1 %v1018_v57  ;;  %v903_v63 = vpack.c.bf16 %v538_v53, %v537_v52  ;;  %vm389_vm15 = vcmask 785924  }
  0x5f   :  { %372 = vrot.lane.b32.xlu0 %v371_v30, %s1011_s1  ;;  %v905_v0 = vpack.c.bf16 %v556_v56, %v555_v55  ;;  %915 = vmatpush3.bf16.msra.mxu1 %v914_v58  ;;  %v917_v5 = vpack.c.bf16 %v562_v62, %v561_v60  ;;  %v907_v61 = vpack.c.bf16 %v540_v2, %v539_v51  ;;  %vm211_vm0 = vcmask 1044224  }
  0x60   :  { %443 = vst.msk [vmem:[#allocation3 + $0x8] sm:$0xf0] %vm337_vm9, %v441_v47  ;;  %338 = vst.msk [vmem:[#allocation3] sm:$0xf0] %vm337_vm9, %v335_v54  ;;  %916 = vmatprep.subr.bf16.mxu1 %v1018_v57  ;;  %v909_v7 = vpack.c.bf16 %v558_v4, %v557_v3  ;;  %v911_v20 = vpack.c.bf16 %v542_v15, %v541_v8  ;;  %vm407_vm1 = vcmask 1048324  }
  0x61   :  { %404 = vrot.lane.b32.xlu1 %v403_v38, %s1017_s24  ;;  %900 = vmatpush3.bf16.msra.mxu0 %v899_v39 }
  0x62   :  { %902 = vmatprep.subr.bf16.mxu0 %v901_v48 }
  0x63   :  { %208 = vrot.lane.b32.xlu0 %v207_v46, %s1017_s24  ;;  %918 = vmatpush3.bf16.msra.mxu1 %v917_v5 }
  0x65   :  { %904 = vmatpush3.bf16.msra.mxu0 %v903_v63 }
  0x66   :  { %906 = vmatprep.subr.bf16.mxu0 %v905_v0  ;;  %879 = vmatmul.mubr.msk.f32.vlgmr.msra.gmra.mrb[0].mxu1 %vm569_vm11, %v526_v32 }
  0x69   :  { %908 = vmatpush3.bf16.msra.mxu0 %v907_v61 }
  0x6a   :  { %910 = vmatprep.subr.bf16.mxu0 %v909_v7 }
  0x6d   :  { %912 = vmatpush3.bf16.msra.mxu0 %v911_v20 }
  0xbc   :  { %v273_v41 = vpop.permute.xlu1 %272 }
  0xbf   :  { %v256_v42 = vpop.permute.xlu0 %255 }
  0xc0   :  { %258 = vst.msk [vmem:[#allocation3 + $0x8] sm:$0xf] %vm181_vm12, %v256_v42 }
  0xc1   :  { %v472_v1 = vpop.permute.xlu1 %471  ;;  %275 = vst.msk [vmem:[#allocation3 + $0x8] sm:$0xf] %vm194_vm13, %v273_v41 }
  0xc3   :  { %v192_v43 = vpop.permute.xlu0 %191 }
  0xc7   :  { %v179_v10 = vpop.permute.xlu1 %178 }
  0xc8   :  { %182 = vst.msk [vmem:[#allocation3] sm:$0xf] %vm181_vm12, %v179_v10 }
  0xc9   :  { %v454_v11 = vpop.permute.xlu0 %453  ;;  %195 = vst.msk [vmem:[#allocation3] sm:$0xf] %vm194_vm13, %v192_v43 }
  0xca   :  { %456 = vst.msk [vmem:[#allocation3 + $0x8] sm:$0xf0] %vm375_vm14, %v454_v11 }
  0xcb   :  { %474 = vst.msk [vmem:[#allocation3 + $0x8] sm:$0xf0] %vm389_vm15, %v472_v1  ;;  %v309_v12 = vpop.permute.xlu1 %308 }
  0xcc   :  { %311 = vst.msk [vmem:[#allocation3 + $0x8] sm:$0xf] %vm211_vm0, %v309_v12 }
  0xcd   :  { %v387_v14 = vpop.permute.xlu0 %386 }
  0xcf   :  { %v509_v17 = vpop.permute.xlu1 %508 }
  0xd0   :  { %511 = vst.msk [vmem:[#allocation3 + $0x8] sm:$0xf0] %vm407_vm1, %v509_v17 }
  0xd1   :  { %v373_v19 = vpop.permute.xlu0 %372 }
  0xd2   :  { %376 = vst.msk [vmem:[#allocation3] sm:$0xf0] %vm375_vm14, %v373_v19 }
  0xd3   :  { %390 = vst.msk [vmem:[#allocation3] sm:$0xf0] %vm389_vm15, %v387_v14  ;;  %v405_v21 = vpop.permute.xlu1 %404 }
  0xd4   :  { %408 = vst.msk [vmem:[#allocation3] sm:$0xf0] %vm407_vm1, %v405_v21 }
  0xd5   :  { %v209_v22 = vpop.permute.xlu0 %208 }
  0xd6   :  { %212 = vst.msk [vmem:[#allocation3] sm:$0xf] %vm211_vm0, %v209_v22 }
  0xd7   :  { %v525_v13 = vld [vmem:[#allocation3 + $0x8] sm:$0xff] }
  0xd8   :  { %637 = vmatprep.mubr.f32.mxu0 %v525_v13 }
  0xdd   :  { %v524_v59 = vld [vmem:[#allocation3] sm:$0xff] }
  0xde   :  { %638 = vmatmul.mubr.f32.vlgmr.msra.gmra.mrb[0].mxu0 %v524_v59 }
 0x139   :  { %v709_v18 = vpop.f32.mrb[0].mxu1 }
 0x13a   :  { %v880_v9 = vpop.f32.mrb[1].mxu1 }
 0x1b1   :  { %v862_v23 = vpop.f32.mrb[0].mxu0 }
 0x1b2   :  { %v863_v24 = vpop.f32.mrb[1].mxu0 }
 0x1b3   :  { %v864_v50 = vadd.f32 %v863_v24, %v862_v23 }
 0x1b5   :  { %v640_v25 = vadd.f32 %v864_v50, %v822_v49 }
 0x1b7   :  { %v710_v26 = vadd.f32 %v709_v18, %v640_v25 }
 0x1b9   :  { %v713_v27 = vmax.f32 %v710_v26, 0.0 }
 0x1bb   :  { %v721_v28 = vrot.slane %v713_v27, %v1094_v6  ;;  %v750_v29 = vcombine.high %v713_v27, %v713_v27 }
 0x1bd   :  { %725 = vst.msk [vmem:[%s1344_s3] sm:$0x3] %vm68_vm5, %v721_v28  ;;  %v757_v31 = vrot.slane %v750_v29, %v1094_v6  ;;  %v733_v33 = vrot.slane %v721_v28, %v1094_v6  ;;  %v722_v34 = vcombine.high %v721_v28, %v721_v28 }
 0x1bf   :  { %826 = vst.msk [vmem:[%s1344_s3 + $0x8] sm:$0x3] %vm68_vm5, %v757_v31  ;;  %741 = vrot.lane.b32.xlu0 %v733_v33, %s1017_s24  ;;  %v740_v35 = vrot.slane %v722_v34, %v1094_v6  ;;  %726 = vst.msk [vmem:[%s1344_s3 + $0x4] sm:$0x3] %vm68_vm5, %v722_v34  ;;  %v758_v16 = vcombine.high %v757_v31, %v757_v31  ;;  %v770_v30 = vrot.slane %v757_v31, %v1094_v6 }
 0x1c1   :  { %743 = vrot.lane.b32.xlu1 %v740_v35, %s1017_s24  ;;  %827 = vst.msk [vmem:[%s1344_s3 + $0xc] sm:$0x3] %vm68_vm5, %v758_v16  ;;  %v777_v36 = vrot.slane %v758_v16, %v1094_v6 }
 0x1c3   :  { %778 = vrot.lane.b32.xlu0 %v770_v30, %s1017_s24 }
 0x1c5   :  { %780 = vrot.lane.b32.xlu1 %v777_v36, %s1017_s24 }
 0x231   :  { %v742_v37 = vpop.permute.xlu0 %741 }
 0x232   :  { %824 = vst.msk [vmem:[%s1344_s3 + $0x2] sm:$0x3] %vm68_vm5, %v742_v37 }
 0x233   :  { %v744_v38 = vpop.permute.xlu1 %743 }
 0x234   :  { %825 = vst.msk [vmem:[%s1344_s3 + $0x6] sm:$0x3] %vm68_vm5, %v744_v38 }
 0x235   :  { %v779_v39 = vpop.permute.xlu0 %778 }
 0x236   :  { %828 = vst.msk [vmem:[%s1344_s3 + $0xa] sm:$0x3] %vm68_vm5, %v779_v39 }
 0x237   :  { %v781_v6 = vpop.permute.xlu1 %780 }
 0x238   :  { %829 = vst.msk [vmem:[%s1344_s3 + $0xe] sm:$0x3] %vm68_vm5, %v781_v6 }
 0x239   :  { %791 = vsyncpa [#allocation5], 1 }
 0x23a   :  { %792 = vsyncpa [#allocation7], 1 }

// kernel: _lambda_.6
= control target key start
LH: loop header
LB: loop body
LE: loop exit
PB: predicated region body
PF: predicated region fallthrough
CT: control target
= control target key end

     0   :  { %8 = vsyncpa [#allocation5], 0  ;;  %s1507_s0 = inlined_call_operand.vmem [shape: f32[2,4,4,16], index: 0, kind: input, shape index: {}]   ;;  %s1508_s1 = inlined_call_operand.hbm [shape: f32[144,32], index: 1, kind: input, shape index: {}]   ;;  %s1509_s2 = inlined_call_operand.hbm [shape: f32[1,32], index: 2, kind: input, shape index: {}]   ;;  %s1510_s3 = inlined_call_operand.vmem [shape: f32[2,4,2,4,16], index: 3, kind: output, shape index: {}]  }
   0x1   :  { %9 = vsyncpa [#allocation7], 0  ;;  %s976_s12 = smov [#allocation4]   ;;  %s928_s16 = scalar_lea.hbm %s1508_s1, 2304 }
   0x2   :  { %s17_s13 = sshll.u32 %s976_s12, 4  ;;  %p929_p0 = scmp.ne.s32.totalorder %s1508_s1, %s928_s16  ;;  %s18_s13 = int_to_ptr.vmem [resolvable:$true] %s17_s13 }
   0x3   :  { %p932_p1 = scmp.lt.u32.totalorder %s928_s16, %s1508_s1 }
   0x5   :  { %p934_p2 = pnand %p932_p1, %p929_p0 }
   0x7   :  { %937 = shalt.err (!%p934_p2)
}
   0x8   :  { %s938_s21 = scalar_lea.vmem %s18_s13, 2304  ;;  %p943_p4 = scmp.lt.s32.totalorder %s18_s13, %s18_s13 }
   0x9   :  { %p939_p3 = scmp.ne.s32.totalorder %s18_s13, %s938_s21  ;;  %p944_p5 = scmp.lt.s32.totalorder %s938_s21, %s938_s21 }
   0xb   :  { %p945_p6 = por %p944_p5, %p943_p4 }
   0xd   :  { %p946_p7 = pnand %p945_p6, %p939_p3 }
   0xf   :  { %949 = shalt.err (!%p946_p7)
}
  0x10   :  { %s977_s22 = smov 128   ;;  %s978_s23 = smov 8  }
  0x11   :  { %23 = dma.hbm_to_vmem [thread:$0]  %s1508_s1, 2304, %s18_s13, [#allocation5], %s977_s22, %s977_s22, %s978_s23  }
  0x12   :  { %s979_s26 = smov [#allocation6]   ;;  %s950_s30 = scalar_lea.hbm %s1509_s2, 16 }
  0x13   :  { %s30_s27 = sshll.u32 %s979_s26, 4  ;;  %p951_p8 = scmp.ne.s32.totalorder %s1509_s2, %s950_s30  ;;  %s31_s27 = int_to_ptr.vmem [resolvable:$true] %s30_s27 }
  0x14   :  { %p954_p9 = scmp.lt.u32.totalorder %s950_s30, %s1509_s2 }
  0x16   :  { %p956_p10 = pnand %p954_p9, %p951_p8 }
  0x18   :  { %959 = shalt.err (!%p956_p10)
}
  0x19   :  { %s960_s8 = scalar_lea.vmem %s31_s27, 16  ;;  %s964_s1 = scalar_lea.vmem %s31_s27, 32 }
  0x1a   :  { %p961_p11 = scmp.ne.s32.totalorder %s31_s27, %s960_s8  ;;  %p965_p12 = scmp.lt.s32.totalorder %s31_s27, %s31_s27 }
  0x1b   :  { %p966_p13 = scmp.lt.s32.totalorder %s964_s1, %s960_s8 }
  0x1d   :  { %p967_p0 = por %p966_p13, %p965_p12 }
  0x1f   :  { %p968_p1 = pnand %p967_p0, %p961_p11 }
  0x21   :  { %971 = shalt.err (!%p968_p1)
}
  0x22   :  { %33 = dma.hbm_to_vmem [thread:$0]  %s1509_s2, 16, %s31_s27, [#allocation7]  }
  0x23   :  { %972 = dma.done.wait [#allocation5], 2304  }
  0x24   :  { %973 = vsyncadd [#allocation5], 4294964992 }
  0x25   :  { %974 = dma.done.wait [#allocation7], 16  }
  0x26   :  { %975 = vsyncadd [#allocation7], 4294967280  ;;  %vm41_vm0 = vcmask 128000   ;;  %v980_v0 = vmov 0.0   ;;  %vm61_vm1 = vcmask 125952   ;;  %vm143_vm2 = vcmask 1042432  }
  0x27   :  { %43 = vst.msk [vmem:[#allocation2 + $0x8] sm:$0x3f] %vm41_vm0, %v980_v0  ;;  %44 = vst.msk [vmem:[#allocation2 + $0x10] sm:$0x3f] %vm41_vm0, %v980_v0  ;;  %vm144_vm3 = vcmask 1046532   ;;  %vm173_vm4 = vcmask 1041408  }
  0x28   :  { %42 = vst.msk [vmem:[#allocation2] sm:$0x3f] %vm41_vm0, %v980_v0  ;;  %45 = vst.msk [vmem:[#allocation2 + $0x18] sm:$0x3f] %vm41_vm0, %v980_v0  ;;  %vm174_vm5 = vcmask 1045508   ;;  %s982_s26 = smov 16  }
  0x29   :  { %46 = vst.msk [vmem:[#allocation2 + $0x20] sm:$0x3f] %vm41_vm0, %v980_v0  ;;  %47 = vst.msk [vmem:[#allocation2 + $0x28] sm:$0x3f] %vm41_vm0, %v980_v0  ;;  %v56_v1 = vld [vmem:[%s1507_s0] sm:$0xf] }
  0x2a   :  { %48 = vst.msk [vmem:[#allocation2 + $0x30] sm:$0x3f] %vm41_vm0, %v980_v0  ;;  %49 = vst.msk [vmem:[#allocation2 + $0x38] sm:$0x3f] %vm41_vm0, %v980_v0  ;;  %v57_v2 = vld [vmem:[%s1507_s0 + $0x4] sm:$0xf] }
  0x2b   :  { %50 = vst.msk [vmem:[#allocation2 + $0x40] sm:$0x3f] %vm41_vm0, %v980_v0  ;;  %51 = vst.msk [vmem:[#allocation2 + $0x48] sm:$0x3f] %vm41_vm0, %v980_v0  ;;  %v776_v3 = vld [vmem:[%s1507_s0 + $0x10] sm:$0xf] }
  0x2c   :  { %52 = vst.msk [vmem:[#allocation2 + $0x50] sm:$0x3f] %vm41_vm0, %v980_v0  ;;  %53 = vst.msk [vmem:[#allocation2 + $0x58] sm:$0x3f] %vm41_vm0, %v980_v0  ;;  %v777_v4 = vld [vmem:[%s1507_s0 + $0x14] sm:$0xf] }
  0x2d   :  { %62 = vst.msk [vmem:[#allocation2 + $0x9] sm:$0xf] %vm61_vm1, %v56_v1  ;;  %63 = vst.msk [vmem:[#allocation2 + $0x11] sm:$0xf] %vm61_vm1, %v57_v2  ;;  %v58_v11 = vld [vmem:[%s1507_s0 + $0x8] sm:$0xf] }
  0x2e   :  { %96 = vst.msk [vmem:[#allocation2 + $0x39] sm:$0xf] %vm61_vm1, %v776_v3  ;;  %97 = vst.msk [vmem:[#allocation2 + $0x41] sm:$0xf] %vm61_vm1, %v777_v4  ;;  %v778_v12 = vld [vmem:[%s1507_s0 + $0x18] sm:$0xf] }
  0x2f   :  { %v1048_v5 = vld [vmem:[#allocation2] sm:$0x3f]  ;;  %64 = vst.msk [vmem:[#allocation2 + $0x19] sm:$0xf] %vm61_vm1, %v58_v11  ;;  %98 = vst.msk [vmem:[#allocation2 + $0x49] sm:$0xf] %vm61_vm1, %v778_v12 }
  0x30   :  { %v139_v7 = vcombine.high %v1048_v5, %v1048_v5  ;;  %v783_v8 = vrot.slane %v1048_v5, 9  ;;  %v787_v9 = vrot.slane %v1048_v5, 10  ;;  %v59_v15 = vld [vmem:[%s1507_s0 + $0xc] sm:$0xf]  ;;  %v779_v16 = vld [vmem:[%s1507_s0 + $0x1c] sm:$0xf]  ;;  %vm1077_vm6 = vmor %vm143_vm2, %vm144_vm3 }
  0x31   :  { %v1050_v6 = vld [vmem:[#allocation2 + $0x30] sm:$0x3f]  ;;  %65 = vst.msk [vmem:[#allocation2 + $0x21] sm:$0xf] %vm61_vm1, %v59_v15  ;;  %99 = vst.msk [vmem:[#allocation2 + $0x51] sm:$0xf] %vm61_vm1, %v779_v16 }
  0x32   :  { %v368_v10 = vcombine.high %v1050_v6, %v1050_v6  ;;  %v807_v13 = vrot.slane %v1050_v6, 9  ;;  %v811_v14 = vrot.slane %v1050_v6, 10  ;;  %v148_v18 = vrot.slane %v139_v7, 5  ;;  %v1083_v22 = vld [vmem:[#allocation2 + $0x28] sm:$0x3f]  ;;  %vm1087_vm7 = vmor %vm173_vm4, %vm174_vm5  ;;  %s981_s0 = smov 48  }
  0x33   :  { %v178_v19 = vrot.slane %v139_v7, 6  ;;  %v1093_v24 = vcombine.high %v1083_v22, %v1083_v22  ;;  %s983_s27 = smov 32   ;;  %s984_s28 = smov 64   ;;  %vm136_vm8 = vcmask 130048   ;;  %vm170_vm9 = vcmask 261248  }
  0x34   :  { %v374_v20 = vrot.slane %v368_v10, 5  ;;  %v400_v21 = vrot.slane %v368_v10, 6  ;;  %v1095_v25 = vld [vmem:[#allocation2 + $0x8] sm:$0x3f]  ;;  %v1097_v26 = vld [vmem:[#allocation2 + $0x10] sm:$0x3f]  ;;  %v149_v28 = vsel %vm1077_vm6, %v783_v8, %v148_v18 }
  0x35   :  { %v1099_v27 = vld [vmem:[#allocation2 + $0x38] sm:$0x3f]  ;;  %v179_v29 = vsel %vm1087_vm7, %v787_v9, %v178_v19  ;;  %v211_v32 = vcombine.low %v1095_v25, %v1097_v26  ;;  %v1117_v33 = vcombine.high %v1095_v25, %v1095_v25  ;;  %v1121_v34 = vcombine.high %v1097_v26, %v1097_v26  ;;  %v1123_v35 = vld [vmem:[#allocation2 + $0x40] sm:$0x3f]  ;;  %v1129_v37 = vld [vmem:[#allocation2 + $0x8] sm:$0x3f] }
  0x36   :  { %v1107_v30 = vsel %vm1077_vm6, %v807_v13, %v374_v20  ;;  %v1111_v31 = vsel %vm1087_vm7, %v811_v14, %v400_v21  ;;  %v1127_v36 = vcombine.high %v1099_v27, %v1099_v27  ;;  %v1131_v38 = vld [vmem:[#allocation2 + $0x38] sm:$0x3f]  ;;  %v432_v39 = vcombine.low %v1099_v27, %v1123_v35  ;;  %v1160_v59 = vld [vmem:[#allocation2 + $0x10] sm:$0x3f]  ;;  %v1185_v15 = vld [vmem:[#allocation2 + $0x40] sm:$0x3f] }
  0x37   :  { %v1137_v40 = vcombine.high %v1123_v35, %v1123_v35  ;;  %v140_v41 = vcombine.high %v1129_v37, %v1129_v37  ;;  %v784_v42 = vrot.slane %v1129_v37, 9  ;;  %213 = vrot.lane.b32.xlu0 %v211_v32, %s981_s0  ;;  %v788_v43 = vrot.slane %v1129_v37, 10  ;;  %v1166_v0 = vld [vmem:[#allocation2 + $0x18] sm:$0x3f]  ;;  %v1191_v21 = vld [vmem:[#allocation2 + $0x48] sm:$0x3f] }
  0x38   :  { %v369_v44 = vcombine.high %v1131_v38, %v1131_v38  ;;  %v808_v45 = vrot.slane %v1131_v38, 9  ;;  %v812_v46 = vrot.slane %v1131_v38, 10  ;;  %434 = vrot.lane.b32.xlu1 %v432_v39, %s981_s0  ;;  %v791_v49 = vrot.slane %v1095_v25, 9  ;;  %s985_s29 = smov 80   ;;  %s986_s30 = smov 96  }
  0x39   :  { %v152_v47 = vrot.slane %v140_v41, 5  ;;  %v182_v48 = vrot.slane %v140_v41, 6  ;;  %v228_v50 = vrot.slane %v1117_v33, 5  ;;  %v792_v53 = vrot.slane %v1097_v26, 9  ;;  %s987_s4 = smov 112  }
  0x3a   :  { %v378_v51 = vrot.slane %v369_v44, 5  ;;  %v404_v52 = vrot.slane %v369_v44, 6  ;;  %v232_v54 = vrot.slane %v1121_v34, 5  ;;  %v815_v58 = vrot.slane %v1099_v27, 9 }
  0x3b   :  { %v153_v55 = vsel %vm1077_vm6, %v784_v42, %v152_v47  ;;  %v183_v56 = vsel %vm1087_vm7, %v788_v43, %v182_v48  ;;  %v229_v57 = vsel %vm1077_vm6, %v791_v49, %v228_v50  ;;  %v448_v4 = vrot.slane %v1127_v36, 5 }
  0x3c   :  { %v162_v60 = vcombine.low %v149_v28, %v153_v55  ;;  %v192_v61 = vcombine.low %v179_v29, %v183_v56  ;;  %v379_v62 = vsel %vm1077_vm6, %v808_v45, %v378_v51  ;;  %v405_v63 = vsel %vm1087_vm7, %v812_v46, %v404_v52  ;;  %v281_v56 = vld [vmem:[#allocation2 + $0x10] sm:$0x3f] }
  0x3d   :  { %v388_v1 = vcombine.low %v1107_v30, %v379_v62  ;;  %v414_v2 = vcombine.low %v1111_v31, %v405_v63  ;;  %v233_v3 = vsel %vm1077_vm6, %v792_v53, %v232_v54  ;;  %v816_v8 = vrot.slane %v1123_v35, 9  ;;  %v1233_v63 = vld [vmem:[#allocation2 + $0x40] sm:$0x3f] }
  0x3e   :  { %164 = vrot.lane.b32.xlu0 %v162_v60, %s982_s26  ;;  %194 = vrot.lane.b32.xlu1 %v192_v61, %s983_s27  ;;  %v242_v7 = vcombine.low %v229_v57, %v233_v3  ;;  %v452_v9 = vrot.slane %v1137_v40, 5  ;;  %v141_v10 = vcombine.high %v1160_v59, %v1160_v59  ;;  %v449_v11 = vsel %vm1077_vm6, %v815_v58, %v448_v4  ;;  %v282_v57 = vld [vmem:[#allocation2 + $0x18] sm:$0x3f] }
  0x3f   :  { %v142_v12 = vcombine.high %v1166_v0, %v1166_v0  ;;  %v785_v13 = vrot.slane %v1160_v59, 9  ;;  %v786_v14 = vrot.slane %v1166_v0, 9  ;;  %v795_v19 = vrot.slane %v1095_v25, 10 }
  0x40   :  { %v453_v16 = vsel %vm1077_vm6, %v816_v8, %v452_v9  ;;  %v156_v18 = vrot.slane %v141_v10, 5  ;;  %v255_v20 = vrot.slane %v1117_v33, 6  ;;  %v796_v30 = vrot.slane %v1097_v26, 10 }
  0x41   :  { %v462_v28 = vcombine.low %v449_v11, %v453_v16  ;;  %v160_v29 = vrot.slane %v142_v12, 5  ;;  %v259_v31 = vrot.slane %v1121_v34, 6  ;;  %v370_v33 = vcombine.high %v1185_v15, %v1185_v15 }
  0x42   :  { %390 = vrot.lane.b32.xlu0 %v388_v1, %s982_s26  ;;  %416 = vrot.lane.b32.xlu1 %v414_v2, %s983_s27  ;;  %v157_v32 = vsel %vm1077_vm6, %v785_v13, %v156_v18  ;;  %v256_v25 = vsel %vm1087_vm7, %v795_v19, %v255_v20  ;;  %v809_v39 = vrot.slane %v1185_v15, 9  ;;  %v371_v41 = vcombine.high %v1191_v21, %v1191_v21  ;;  %v1235_v1 = vld [vmem:[#allocation2 + $0x48] sm:$0x3f] }
  0x43   :  { %v161_v26 = vsel %vm1077_vm6, %v786_v14, %v160_v29  ;;  %v260_v34 = vsel %vm1087_vm7, %v796_v30, %v259_v31  ;;  %v810_v42 = vrot.slane %v1191_v21, 9  ;;  %v382_v45 = vrot.slane %v370_v33, 5 }
  0x44   :  { %v163_v43 = vcombine.low %v157_v32, %v161_v26  ;;  %v269_v44 = vcombine.low %v256_v25, %v260_v34  ;;  %v819_v46 = vrot.slane %v1099_v27, 10  ;;  %v386_v47 = vrot.slane %v371_v41, 5 }
  0x45   :  { %v474_v48 = vrot.slane %v1127_v36, 6  ;;  %v820_v49 = vrot.slane %v1123_v35, 10  ;;  %v478_v50 = vrot.slane %v1137_v40, 6  ;;  %v383_v51 = vsel %vm1077_vm6, %v809_v39, %v382_v45  ;;  %v1261_v45 = vld [vmem:[#allocation2 + $0x18] sm:$0x3f] }
  0x46   :  { %244 = vrot.lane.b32.xlu0 %v242_v7, %s984_s28  ;;  %464 = vrot.lane.b32.xlu1 %v462_v28, %s984_s28  ;;  %v789_v52 = vrot.slane %v1160_v59, 10  ;;  %v186_v53 = vrot.slane %v141_v10, 6  ;;  %v790_v27 = vrot.slane %v1166_v0, 10  ;;  %v387_v36 = vsel %vm1077_vm6, %v810_v42, %v386_v47 }
  0x47   :  { %v475_v35 = vsel %vm1087_vm7, %v819_v46, %v474_v48  ;;  %v479_v40 = vsel %vm1087_vm7, %v820_v49, %v478_v50  ;;  %v190_v54 = vrot.slane %v142_v12, 6  ;;  %v806_v58 = vrot.slane %v1083_v22, 10  ;;  %v1263_v46 = vld [vmem:[#allocation2 + $0x20] sm:$0x3f] }
  0x48   :  { %v187_v55 = vsel %vm1087_vm7, %v789_v52, %v186_v53  ;;  %v389_v60 = vcombine.low %v383_v51, %v387_v36  ;;  %v813_v62 = vrot.slane %v1185_v15, 10  ;;  %v345_v2 = vrot.slane %v1093_v24, 6 }
  0x49   :  { %v191_v61 = vsel %vm1087_vm7, %v790_v27, %v190_v54  ;;  %v488_v3 = vcombine.low %v475_v35, %v479_v40  ;;  %v408_v4 = vrot.slane %v370_v33, 6  ;;  %v814_v7 = vrot.slane %v1191_v21, 10 }
  0x4a   :  { %166 = vrot.lane.b32.xlu0 %v163_v43, %s982_s26  ;;  %271 = vrot.lane.b32.xlu1 %v269_v44, %s985_s29  ;;  %v412_v8 = vrot.slane %v371_v41, 6  ;;  %v193_v9 = vcombine.low %v187_v55, %v191_v61  ;;  %v289_v10 = vcombine.low %v281_v56, %v282_v57  ;;  %v803_v11 = vrot.slane %v281_v56, 10  ;;  %v426_v55 = vld [vmem:[#allocation2 + $0x48] sm:$0x3f] }
  0x4b   :  { %v804_v12 = vrot.slane %v282_v57, 10  ;;  %v507_v13 = vcombine.low %v1233_v63, %v1235_v1  ;;  %v827_v14 = vrot.slane %v1233_v63, 10  ;;  %v300_v16 = vcombine.high %v281_v56, %v281_v56 }
  0x4c   :  { %v301_v18 = vcombine.high %v282_v57, %v282_v57  ;;  %v409_v19 = vsel %vm1087_vm7, %v813_v62, %v408_v4  ;;  %v413_v20 = vsel %vm1087_vm7, %v814_v7, %v412_v8  ;;  %v799_v28 = vrot.slane %v281_v56, 9  ;;  %v427_v56 = vld [vmem:[#allocation2 + $0x50] sm:$0x3f] }
  0x4d   :  { %v800_v29 = vrot.slane %v282_v57, 9  ;;  %v306_v30 = vrot.slane %v300_v16, 5  ;;  %v333_v32 = vrot.slane %v300_v16, 6  ;;  %v517_v33 = vcombine.high %v1233_v63, %v1233_v63 }
  0x4e   :  { %392 = vrot.lane.b32.xlu0 %v389_v60, %s982_s26  ;;  %490 = vrot.lane.b32.xlu1 %v488_v3, %s985_s29  ;;  %v310_v31 = vrot.slane %v301_v18, 5  ;;  %v337_v25 = vrot.slane %v301_v18, 6  ;;  %v518_v39 = vcombine.high %v1235_v1, %v1235_v1  ;;  %v823_v26 = vrot.slane %v1233_v63, 9 }
  0x4f   :  { %v824_v34 = vrot.slane %v1235_v1, 9  ;;  %v415_v41 = vcombine.low %v409_v19, %v413_v20  ;;  %v828_v42 = vrot.slane %v1235_v1, 10  ;;  %v334_v43 = vsel %vm1087_vm7, %v803_v11, %v333_v32 }
  0x50   :  { %v338_v44 = vsel %vm1087_vm7, %v804_v12, %v337_v25  ;;  %v307_v47 = vsel %vm1077_vm6, %v799_v28, %v306_v30  ;;  %v523_v49 = vrot.slane %v517_v33, 5  ;;  %v527_v50 = vrot.slane %v518_v39, 5  ;;  %v1296_v28 = vld [vmem:[#allocation2 + $0x58] sm:$0x3f]  ;;  %v1299_v25 = vld [vmem:[#allocation2 + $0x20] sm:$0x3f] }
  0x51   :  { %v347_v48 = vcombine.low %v334_v43, %v338_v44  ;;  %v549_v51 = vrot.slane %v517_v33, 6  ;;  %v553_v52 = vrot.slane %v518_v39, 6  ;;  %v224_v53 = vcombine.high %v1261_v45, %v1261_v45 }
  0x52   :  { %196 = vrot.lane.b32.xlu0 %v193_v9, %s983_s27  ;;  %291 = vrot.lane.b32.xlu1 %v289_v10, %s986_s30  ;;  %v225_v27 = vcombine.high %v1263_v46, %v1263_v46  ;;  %v311_v36 = vsel %vm1077_vm6, %v800_v29, %v310_v31  ;;  %v524_v35 = vsel %vm1077_vm6, %v823_v26, %v523_v49  ;;  %v793_v54 = vrot.slane %v1261_v45, 9 }
  0x53   :  { %351 = vst.msk [vmem:[#allocation3 + $0x8] sm:$0xff] %vm136_vm8, %v347_v48  ;;  %v528_v40 = vsel %vm1077_vm6, %v824_v34, %v527_v50  ;;  %v550_v57 = vsel %vm1087_vm7, %v827_v14, %v549_v51  ;;  %v554_v60 = vsel %vm1087_vm7, %v828_v42, %v553_v52  ;;  %v236_v61 = vrot.slane %v224_v53, 5  ;;  %v1307_v42 = vld [vmem:[#allocation2 + $0x50] sm:$0x3f]  ;;  %v578_v50 = vld [vmem:[#allocation4] sm:$0xff]  ;;  %v579_v51 = vld [vmem:[#allocation4 + $0x8] sm:$0xff] }
  0x54   :  { %v794_v62 = vrot.slane %v1263_v46, 9  ;;  %v563_v63 = vcombine.low %v550_v57, %v554_v60  ;;  %v240_v1 = vrot.slane %v225_v27, 5  ;;  %v444_v3 = vcombine.high %v426_v55, %v426_v55 }
  0x55   :  { %v445_v4 = vcombine.high %v427_v56, %v427_v56  ;;  %v212_v7 = vcombine.low %v1261_v45, %v1263_v46  ;;  %v320_v8 = vcombine.low %v307_v47, %v311_v36  ;;  %v817_v9 = vrot.slane %v426_v55, 9 }
  0x56   :  { %418 = vrot.lane.b32.xlu0 %v415_v41, %s983_s27  ;;  %509 = vrot.lane.b32.xlu1 %v507_v13, %s986_s30  ;;  %v818_v10 = vrot.slane %v427_v56, 9  ;;  %v433_v11 = vcombine.low %v426_v55, %v427_v56  ;;  %v537_v12 = vcombine.low %v524_v35, %v528_v40  ;;  %567 = vst.msk [vmem:[#allocation3 + $0x28] sm:$0xff] %vm136_vm8, %v563_v63  ;;  %v456_v14 = vrot.slane %v444_v3, 5 }
  0x57   :  { %v460_v16 = vrot.slane %v445_v4, 5  ;;  %v237_v18 = vsel %vm1077_vm6, %v793_v54, %v236_v61  ;;  %v241_v19 = vsel %vm1077_vm6, %v794_v62, %v240_v1  ;;  %v797_v13 = vrot.slane %v1261_v45, 10 }
  0x58   :  { %v263_v20 = vrot.slane %v224_v53, 6  ;;  %v798_v29 = vrot.slane %v1263_v46, 10  ;;  %v267_v30 = vrot.slane %v225_v27, 6  ;;  %v821_v31 = vrot.slane %v426_v55, 10 }
  0x59   :  { %v482_v32 = vrot.slane %v444_v3, 6  ;;  %v457_v33 = vsel %vm1077_vm6, %v817_v9, %v456_v14  ;;  %v461_v39 = vsel %vm1077_vm6, %v818_v10, %v460_v16  ;;  %v822_v26 = vrot.slane %v427_v56, 10 }
  0x5a   :  { %215 = vrot.lane.b32.xlu0 %v212_v7, %s981_s0  ;;  %322 = vrot.lane.b32.xlu1 %v320_v8, %s987_s4  ;;  %v486_v34 = vrot.slane %v445_v4, 6  ;;  %v571_v41 = vld [vmem:[#allocation3 + $0x8] sm:$0xff]  ;;  %v830_v43 = vrot.slane %v1296_v28, 10  ;;  %v802_v44 = vrot.slane %v1083_v22, 9  ;;  %v1313_v45 = vcombine.high %v1296_v28, %v1296_v28  ;;  %v580_v8 = vld [vmem:[#allocation4 + $0x10] sm:$0xff] }
  0x5b   :  { %832 = vmatprep.mubr.msk.f32.mxu0 %vm136_vm8, %v571_v41  ;;  %v243_v46 = vcombine.low %v237_v18, %v241_v19  ;;  %v264_v47 = vsel %vm1087_vm7, %v797_v13, %v263_v20  ;;  %v805_v48 = vrot.slane %v1299_v25, 10  ;;  %v302_v49 = vcombine.high %v1299_v25, %v1299_v25  ;;  %v583_v19 = vld [vmem:[#allocation4 + $0x28] sm:$0xff] }
  0x5c   :  { %v463_v52 = vcombine.low %v457_v33, %v461_v39  ;;  %v268_v53 = vsel %vm1087_vm7, %v798_v29, %v267_v30  ;;  %v483_v27 = vsel %vm1087_vm7, %v821_v31, %v482_v32  ;;  %v487_v36 = vsel %vm1087_vm7, %v822_v26, %v486_v34  ;;  %v584_v30 = vld [vmem:[#allocation4 + $0x30] sm:$0xff]  ;;  %v587_v33 = vld [vmem:[#allocation4 + $0x48] sm:$0xff]  ;;  %v589_v34 = vld [vmem:[#allocation4 + $0x58] sm:$0xff] }
  0x5d   :  { %v829_v35 = vrot.slane %v1307_v42, 10  ;;  %v341_v40 = vrot.slane %v302_v49, 6  ;;  %v346_v54 = vsel %vm1087_vm7, %v806_v58, %v345_v2  ;;  %v519_v55 = vcombine.high %v1307_v42, %v1307_v42  ;;  %v575_v56 = vld [vmem:[#allocation3 + $0x28] sm:$0xff]  ;;  %v588_v26 = vld [vmem:[#allocation4 + $0x50] sm:$0xff] }
  0x5e   :  { %436 = vrot.lane.b32.xlu0 %v433_v11, %s981_s0  ;;  %539 = vrot.lane.b32.xlu1 %v537_v12, %s987_s4  ;;  %v318_v57 = vrot.slane %v1093_v24, 5  ;;  %v561_v60 = vrot.slane %v1313_v45, 6  ;;  %v132_v61 = vcombine.low %v1048_v5, %v1129_v37  ;;  %v849_v62 = vpack.c.bf16 %v579_v51, %v578_v50  ;;  %v581_v5 = vld [vmem:[#allocation4 + $0x18] sm:$0xff] }
  0x5f   :  { %834 = vmatprep.mubr.msk.f32.mxu1 %vm136_vm8, %v575_v56  ;;  %v270_v63 = vcombine.low %v264_v47, %v268_v53  ;;  %v489_v1 = vcombine.low %v483_v27, %v487_v36  ;;  %v342_v3 = vsel %vm1087_vm7, %v805_v48, %v341_v40  ;;  %v557_v58 = vrot.slane %v519_v55, 6  ;;  %v594_v48 = vld [vmem:[#allocation4 + $0x80] sm:$0xff] }
  0x60   :  { %v801_v2 = vrot.slane %v1299_v25, 9  ;;  %v314_v4 = vrot.slane %v302_v49, 5  ;;  %v348_v7 = vcombine.low %v342_v3, %v346_v54  ;;  %v562_v24 = vsel %vm1087_vm7, %v830_v43, %v561_v60  ;;  %137 = vst.msk [vmem:[#allocation3] sm:$0xff] %vm136_vm8, %v132_v61  ;;  %v591_v43 = vld [vmem:[#allocation4 + $0x68] sm:$0xff] }
  0x61   :  { %v825_v37 = vrot.slane %v1307_v42, 9  ;;  %v558_v9 = vsel %vm1087_vm7, %v829_v35, %v557_v58  ;;  %v362_v10 = vcombine.low %v1050_v6, %v1131_v38  ;;  %v531_v11 = vrot.slane %v519_v55, 5  ;;  %v582_v38 = vld [vmem:[#allocation4 + $0x20] sm:$0xff]  ;;  %v595_v49 = vld [vmem:[#allocation4 + $0x88] sm:$0xff] }
  0x62   :  { %246 = vrot.lane.b32.xlu0 %v243_v46, %s984_s28  ;;  %466 = vrot.lane.b32.xlu1 %v463_v52, %s984_s28  ;;  %352 = vst.msk [vmem:[#allocation3 + $0x18] sm:$0xff] %vm136_vm8, %v348_v7  ;;  %v826_v12 = vrot.slane %v1296_v28, 9  ;;  %v535_v14 = vrot.slane %v1313_v45, 5  ;;  %v564_v16 = vcombine.low %v558_v9, %v562_v24  ;;  %v988_v18 = vmov 0.0|0.0   ;;  %v592_v45 = vld [vmem:[#allocation4 + $0x70] sm:$0xff]  ;;  %v593_v46 = vld [vmem:[#allocation4 + $0x78] sm:$0xff] }
  0x63   :  { %848 = vmatprep.subr.bf16.mxu0 %v988_v18  ;;  %875 = vmatprep.subr.bf16.mxu1 %v988_v18  ;;  %366 = vst.msk [vmem:[#allocation3 + $0x20] sm:$0xff] %vm136_vm8, %v362_v10  ;;  %v852_v23 = vpack.c.bf16 %v581_v5, %v580_v8  ;;  %v133_v6 = vcombine.low %v1160_v59, %v1166_v0  ;;  %vm200_vm10 = vcmask 392448   ;;  %vm219_vm11 = vcmask 523648  }
  0x64   :  { %850 = vmatpush1.bf16.msra.mxu0 %v849_v62  ;;  %884 = vmatpush1.bf16.msra.mxu1 %v849_v62  ;;  %568 = vst.msk [vmem:[#allocation3 + $0x38] sm:$0xff] %vm136_vm8, %v564_v16  ;;  %v363_v13 = vcombine.low %v1185_v15, %v1191_v21  ;;  %v290_v20 = vcombine.low %v1299_v25, %v1083_v22  ;;  %v585_v22 = vld [vmem:[#allocation4 + $0x38] sm:$0xff]  ;;  %v586_v25 = vld [vmem:[#allocation4 + $0x40] sm:$0xff]  ;;  %vm250_vm12 = vcmask 654848   ;;  %vm277_vm13 = vcmask 786048  }
  0x65   :  { %851 = vmatprep.subr.bf16.mxu0 %v988_v18  ;;  %876 = vmatprep.subr.bf16.mxu1 %v988_v18  ;;  %v508_v59 = vcombine.low %v1307_v42, %v1296_v28  ;;  %138 = vst.msk [vmem:[#allocation3 + $0x10] sm:$0xff] %vm136_vm8, %v133_v6  ;;  %v315_v0 = vsel %vm1077_vm6, %v801_v2, %v314_v4  ;;  %v590_v42 = vld [vmem:[#allocation4 + $0x60] sm:$0xff]  ;;  %vm297_vm14 = vcmask 917248   ;;  %vm328_vm15 = vcmask 1048448  }
  0x66   :  { %273 = vrot.lane.b32.xlu0 %v270_v63, %s985_s29  ;;  %492 = vrot.lane.b32.xlu1 %v489_v1, %s985_s29  ;;  %v319_v15 = vsel %vm1077_vm6, %v802_v44, %v318_v57  ;;  %v532_v21 = vsel %vm1077_vm6, %v825_v37, %v531_v11  ;;  %v536_v29 = vsel %vm1077_vm6, %v826_v12, %v535_v14 }
  0x67   :  { %367 = vst.msk [vmem:[#allocation3 + $0x30] sm:$0xff] %vm136_vm8, %v363_v13  ;;  %v855_v28 = vpack.c.bf16 %v583_v19, %v582_v38  ;;  %v321_v31 = vcombine.low %v315_v0, %v319_v15  ;;  %v538_v32 = vcombine.low %v532_v21, %v536_v29  ;;  %v858_v17 = vpack.c.bf16 %v585_v22, %v584_v30  ;;  %v831_v38 = vld [vmem:[#allocation6] ss:$0 sm:$0xff] }
  0x68   :  { %853 = vmatpush1.bf16.msra.mxu0 %v852_v23  ;;  %885 = vmatpush1.bf16.msra.mxu1 %v852_v23  ;;  %v861_v39 = vpack.c.bf16 %v587_v33, %v586_v25  ;;  %v864_v41 = vpack.c.bf16 %v589_v34, %v588_v26  ;;  %v867_v44 = vpack.c.bf16 %v591_v43, %v590_v42 }
  0x69   :  { %854 = vmatprep.subr.bf16.mxu0 %v988_v18  ;;  %877 = vmatprep.subr.bf16.mxu1 %v988_v18  ;;  %v870_v47 = vpack.c.bf16 %v593_v46, %v592_v45  ;;  %v873_v50 = vpack.c.bf16 %v595_v49, %v594_v48  ;;  %v573_v7 = vld [vmem:[#allocation3 + $0x18] sm:$0xff] }
  0x6a   :  { %293 = vrot.lane.b32.xlu0 %v290_v20, %s986_s30  ;;  %511 = vrot.lane.b32.xlu1 %v508_v59, %s986_s30 }
  0x6b   :  { %v577_v37 = vld [vmem:[#allocation3 + $0x38] sm:$0xff] }
  0x6c   :  { %856 = vmatpush1.bf16.msra.mxu0 %v855_v28  ;;  %886 = vmatpush1.bf16.msra.mxu1 %v855_v28 }
  0x6d   :  { %857 = vmatprep.subr.bf16.mxu0 %v988_v18  ;;  %878 = vmatprep.subr.bf16.mxu1 %v988_v18 }
  0x6e   :  { %324 = vrot.lane.b32.xlu0 %v321_v31, %s987_s4  ;;  %541 = vrot.lane.b32.xlu1 %v538_v32, %s987_s4 }
  0x70   :  { %859 = vmatpush1.bf16.msra.mxu0 %v858_v17  ;;  %887 = vmatpush1.bf16.msra.mxu1 %v858_v17 }
  0x71   :  { %860 = vmatprep.subr.bf16.mxu0 %v988_v18  ;;  %879 = vmatprep.subr.bf16.mxu1 %v988_v18 }
  0x74   :  { %862 = vmatpush1.bf16.msra.mxu0 %v861_v39  ;;  %888 = vmatpush1.bf16.msra.mxu1 %v861_v39 }
  0x75   :  { %863 = vmatprep.subr.bf16.mxu0 %v988_v18  ;;  %880 = vmatprep.subr.bf16.mxu1 %v988_v18 }
  0x78   :  { %865 = vmatpush1.bf16.msra.mxu0 %v864_v41  ;;  %889 = vmatpush1.bf16.msra.mxu1 %v864_v41 }
  0x79   :  { %866 = vmatprep.subr.bf16.mxu0 %v988_v18  ;;  %881 = vmatprep.subr.bf16.mxu1 %v988_v18 }
  0x7c   :  { %868 = vmatpush1.bf16.msra.mxu0 %v867_v44  ;;  %890 = vmatpush1.bf16.msra.mxu1 %v867_v44 }
  0x7d   :  { %869 = vmatprep.subr.bf16.mxu0 %v988_v18  ;;  %882 = vmatprep.subr.bf16.mxu1 %v988_v18 }
  0x80   :  { %871 = vmatpush1.bf16.msra.mxu0 %v870_v47  ;;  %891 = vmatpush1.bf16.msra.mxu1 %v870_v47 }
  0x81   :  { %872 = vmatprep.subr.bf16.mxu0 %v988_v18  ;;  %883 = vmatprep.subr.bf16.mxu1 %v988_v18 }
  0x84   :  { %874 = vmatpush1.bf16.msra.mxu0 %v873_v50  ;;  %892 = vmatpush1.bf16.msra.mxu1 %v873_v50 }
  0xa9   :  { %v214_v51 = vpop.permute.xlu0 %213 }
  0xaa   :  { %v435_v52 = vpop.permute.xlu1 %434 }
  0xb0   :  { %v165_v53 = vpop.permute.xlu0 %164  ;;  %v195_v27 = vpop.permute.xlu1 %194 }
  0xb1   :  { %171 = vst.msk [vmem:[#allocation3] sm:$0xff] %vm170_vm9, %v165_v53 }
  0xb2   :  { %201 = vst.msk [vmem:[#allocation3] sm:$0xff] %vm200_vm10, %v195_v27 }
  0xb3   :  { %220 = vst.msk [vmem:[#allocation3] sm:$0xff] %vm219_vm11, %v214_v51 }
  0xb4   :  { %v391_v36 = vpop.permute.xlu0 %390  ;;  %v417_v35 = vpop.permute.xlu1 %416 }
  0xb5   :  { %396 = vst.msk [vmem:[#allocation3 + $0x20] sm:$0xff] %vm170_vm9, %v391_v36 }
  0xb6   :  { %422 = vst.msk [vmem:[#allocation3 + $0x20] sm:$0xff] %vm200_vm10, %v417_v35 }
  0xb7   :  { %440 = vst.msk [vmem:[#allocation3 + $0x20] sm:$0xff] %vm219_vm11, %v435_v52 }
  0xb8   :  { %v245_v40 = vpop.permute.xlu0 %244  ;;  %v465_v54 = vpop.permute.xlu1 %464 }
  0xb9   :  { %251 = vst.msk [vmem:[#allocation3] sm:$0xff] %vm250_vm12, %v245_v40  ;;  %470 = vst.msk [vmem:[#allocation3 + $0x20] sm:$0xff] %vm250_vm12, %v465_v54 }
  0xbc   :  { %v167_v55 = vpop.permute.xlu0 %166  ;;  %v272_v56 = vpop.permute.xlu1 %271 }
  0xbd   :  { %172 = vst.msk [vmem:[#allocation3 + $0x10] sm:$0xff] %vm170_vm9, %v167_v55 }
  0xbe   :  { %278 = vst.msk [vmem:[#allocation3] sm:$0xff] %vm277_vm13, %v272_v56 }
  0xc0   :  { %v393_v57 = vpop.permute.xlu0 %392  ;;  %v491_v60 = vpop.permute.xlu1 %490 }
  0xc1   :  { %397 = vst.msk [vmem:[#allocation3 + $0x30] sm:$0xff] %vm170_vm9, %v393_v57 }
  0xc2   :  { %496 = vst.msk [vmem:[#allocation3 + $0x20] sm:$0xff] %vm277_vm13, %v491_v60 }
  0xc4   :  { %v197_v61 = vpop.permute.xlu0 %196  ;;  %v292_v62 = vpop.permute.xlu1 %291 }
  0xc5   :  { %202 = vst.msk [vmem:[#allocation3 + $0x10] sm:$0xff] %vm200_vm10, %v197_v61 }
  0xc6   :  { %298 = vst.msk [vmem:[#allocation3] sm:$0xff] %vm297_vm14, %v292_v62 }
  0xc8   :  { %v419_v63 = vpop.permute.xlu0 %418  ;;  %v510_v1 = vpop.permute.xlu1 %509 }
  0xc9   :  { %423 = vst.msk [vmem:[#allocation3 + $0x30] sm:$0xff] %vm200_vm10, %v419_v63 }
  0xca   :  { %515 = vst.msk [vmem:[#allocation3 + $0x20] sm:$0xff] %vm297_vm14, %v510_v1 }
  0xcc   :  { %v216_v3 = vpop.permute.xlu0 %215  ;;  %v323_v58 = vpop.permute.xlu1 %322 }
  0xcd   :  { %221 = vst.msk [vmem:[#allocation3 + $0x10] sm:$0xff] %vm219_vm11, %v216_v3 }
  0xce   :  { %329 = vst.msk [vmem:[#allocation3] sm:$0xff] %vm328_vm15, %v323_v58 }
  0xd0   :  { %v437_v2 = vpop.permute.xlu0 %436  ;;  %v540_v4 = vpop.permute.xlu1 %539 }
  0xd1   :  { %441 = vst.msk [vmem:[#allocation3 + $0x30] sm:$0xff] %vm219_vm11, %v437_v2 }
  0xd2   :  { %545 = vst.msk [vmem:[#allocation3 + $0x20] sm:$0xff] %vm328_vm15, %v540_v4 }
  0xd4   :  { %v247_v24 = vpop.permute.xlu0 %246  ;;  %v467_v8 = vpop.permute.xlu1 %466 }
  0xd5   :  { %v570_v5 = vld [vmem:[#allocation3] sm:$0xff]  ;;  %252 = vst.msk [vmem:[#allocation3 + $0x10] sm:$0xff] %vm250_vm12, %v247_v24  ;;  %471 = vst.msk [vmem:[#allocation3 + $0x30] sm:$0xff] %vm250_vm12, %v467_v8 }
  0xd6   :  { %679 = vmatmul.mubr.f32.vlgmr.msra.gmra.mrb[0].mxu0 %v570_v5 }
  0xd7   :  { %833 = vmatprep.mubr.msk.f32.mxu0 %vm136_vm8, %v573_v7 }
  0xd8   :  { %v274_v9 = vpop.permute.xlu0 %273  ;;  %v493_v10 = vpop.permute.xlu1 %492 }
  0xd9   :  { %v574_v11 = vld [vmem:[#allocation3 + $0x20] sm:$0xff]  ;;  %279 = vst.msk [vmem:[#allocation3 + $0x10] sm:$0xff] %vm277_vm13, %v274_v9  ;;  %497 = vst.msk [vmem:[#allocation3 + $0x30] sm:$0xff] %vm277_vm13, %v493_v10 }
  0xda   :  { %689 = vmatmul.mubr.f32.vlgmr.msra.gmra.mrb[0].mxu1 %v574_v11 }
  0xdb   :  { %835 = vmatprep.mubr.msk.f32.mxu1 %vm136_vm8, %v577_v37 }
  0xdc   :  { %v294_v12 = vpop.permute.xlu0 %293  ;;  %v512_v14 = vpop.permute.xlu1 %511 }
  0xdd   :  { %299 = vst.msk [vmem:[#allocation3 + $0x10] sm:$0xff] %vm297_vm14, %v294_v12  ;;  %516 = vst.msk [vmem:[#allocation3 + $0x30] sm:$0xff] %vm297_vm14, %v512_v14 }
  0xe0   :  { %v325_v16 = vpop.permute.xlu0 %324  ;;  %v542_v18 = vpop.permute.xlu1 %541 }
  0xe1   :  { %330 = vst.msk [vmem:[#allocation3 + $0x10] sm:$0xff] %vm328_vm15, %v325_v16  ;;  %546 = vst.msk [vmem:[#allocation3 + $0x30] sm:$0xff] %vm328_vm15, %v542_v18 }
  0xe8   :  { %v572_v23 = vld [vmem:[#allocation3 + $0x10] sm:$0xff] }
  0xe9   :  { %v576_v6 = vld [vmem:[#allocation3 + $0x30] sm:$0xff]  ;;  %684 = vmatmul.mubr.f32.gmra.mrb[2].mxu0 %v572_v23 }
  0xea   :  { %694 = vmatmul.mubr.f32.gmra.mrb[2].mxu1 %v576_v6 }
 0x1a9   :  { %v680_v19 = vpop.f32.mrb[0].mxu0 }
 0x1aa   :  { %v681_v13 = vadd.f32 %v831_v38, %v680_v19  ;;  %v682_v20 = vpop.f32.mrb[1].mxu0 }
 0x1ac   :  { %v699_v59 = vmax.f32 %v681_v13, 0.0 }
 0x1ad   :  { %v690_v0 = vpop.f32.mrb[0].mxu1 }
 0x1ae   :  { %709 = vst.msk [vmem:[%s1510_s3] sm:$0xf] %vm61_vm1, %v699_v59  ;;  %v691_v15 = vadd.f32 %v831_v38, %v690_v0  ;;  %v692_v21 = vpop.f32.mrb[1].mxu1  ;;  %713 = vrot.lane.b32.xlu0 %v699_v59, %s987_s4  ;;  %v705_v29 = vcombine.high %v699_v59, %v699_v59 }
 0x1b0   :  { %v701_v28 = vmax.f32 %v691_v15, 0.0  ;;  %715 = vrot.lane.b32.xlu1 %v705_v29, %s987_s4  ;;  %710 = vst.msk [vmem:[%s1510_s3 + $0x8] sm:$0xf] %vm61_vm1, %v705_v29 }
 0x1b2   :  { %840 = vst.msk [vmem:[%s1510_s3 + $0x20] sm:$0xf] %vm61_vm1, %v701_v28  ;;  %741 = vrot.lane.b32.xlu0 %v701_v28, %s987_s4  ;;  %v732_v30 = vcombine.high %v701_v28, %v701_v28 }
 0x1b4   :  { %841 = vst.msk [vmem:[%s1510_s3 + $0x28] sm:$0xf] %vm61_vm1, %v732_v30  ;;  %743 = vrot.lane.b32.xlu1 %v732_v30, %s987_s4 }
 0x1bc   :  { %v685_v22 = vpop.f32.mrb[2].mxu0 }
 0x1bd   :  { %v695_v31 = vpop.f32.mrb[2].mxu1  ;;  %v686_v32 = vadd.f32 %v831_v38, %v685_v22  ;;  %v687_v17 = vpop.f32.mrb[3].mxu0 }
 0x1be   :  { %v696_v25 = vadd.f32 %v831_v38, %v695_v31  ;;  %v697_v33 = vpop.f32.mrb[3].mxu1 }
 0x1bf   :  { %v700_v39 = vmax.f32 %v686_v32, 0.0 }
 0x1c0   :  { %v702_v26 = vmax.f32 %v696_v25, 0.0 }
 0x1c1   :  { %711 = vst.msk [vmem:[%s1510_s3 + $0x10] sm:$0xf] %vm61_vm1, %v700_v39  ;;  %717 = vrot.lane.b32.xlu0 %v700_v39, %s987_s4  ;;  %v706_v34 = vcombine.high %v700_v39, %v700_v39 }
 0x1c2   :  { %842 = vst.msk [vmem:[%s1510_s3 + $0x30] sm:$0xf] %vm61_vm1, %v702_v26  ;;  %v733_v41 = vcombine.high %v702_v26, %v702_v26 }
 0x1c3   :  { %712 = vst.msk [vmem:[%s1510_s3 + $0x18] sm:$0xf] %vm61_vm1, %v706_v34  ;;  %719 = vrot.lane.b32.xlu1 %v706_v34, %s987_s4 }
 0x1c4   :  { %843 = vst.msk [vmem:[%s1510_s3 + $0x38] sm:$0xf] %vm61_vm1, %v733_v41 }
 0x1c5   :  { %745 = vrot.lane.b32.xlu0 %v702_v26, %s987_s4 }
 0x1c7   :  { %747 = vrot.lane.b32.xlu1 %v733_v41, %s987_s4 }
 0x220   :  { %v714_v42 = vpop.permute.xlu0 %713 }
 0x221   :  { %836 = vst.msk [vmem:[%s1510_s3 + $0x4] sm:$0xf] %vm61_vm1, %v714_v42 }
 0x222   :  { %v716_v43 = vpop.permute.xlu1 %715 }
 0x223   :  { %837 = vst.msk [vmem:[%s1510_s3 + $0xc] sm:$0xf] %vm61_vm1, %v716_v43 }
 0x224   :  { %v742_v44 = vpop.permute.xlu0 %741 }
 0x225   :  { %844 = vst.msk [vmem:[%s1510_s3 + $0x24] sm:$0xf] %vm61_vm1, %v742_v44 }
 0x226   :  { %v744_v45 = vpop.permute.xlu1 %743 }
 0x227   :  { %845 = vst.msk [vmem:[%s1510_s3 + $0x2c] sm:$0xf] %vm61_vm1, %v744_v45 }
 0x233   :  { %v718_v46 = vpop.permute.xlu0 %717 }
 0x234   :  { %838 = vst.msk [vmem:[%s1510_s3 + $0x14] sm:$0xf] %vm61_vm1, %v718_v46 }
 0x235   :  { %v720_v47 = vpop.permute.xlu1 %719 }
 0x236   :  { %839 = vst.msk [vmem:[%s1510_s3 + $0x1c] sm:$0xf] %vm61_vm1, %v720_v47 }
 0x237   :  { %v746_v48 = vpop.permute.xlu0 %745 }
 0x238   :  { %846 = vst.msk [vmem:[%s1510_s3 + $0x34] sm:$0xf] %vm61_vm1, %v746_v48 }
 0x239   :  { %v748_v49 = vpop.permute.xlu1 %747 }
 0x23a   :  { %847 = vst.msk [vmem:[%s1510_s3 + $0x3c] sm:$0xf] %vm61_vm1, %v748_v49 }
 0x23b   :  { %762 = vsyncpa [#allocation5], 1 }
 0x23c   :  { %763 = vsyncpa [#allocation7], 1 }

// kernel: _lambda_.7
= control target key start
LH: loop header
LB: loop body
LE: loop exit
PB: predicated region body
PF: predicated region fallthrough
CT: control target
= control target key end

     0   :  { %8 = vsyncpa [#allocation5], 0  ;;  %s2778_s0 = inlined_call_operand.vmem [shape: f32[2,8,8,8], index: 0, kind: input, shape index: {}]   ;;  %s2779_s1 = inlined_call_operand.hbm [shape: f32[72,16], index: 1, kind: input, shape index: {}]   ;;  %s2780_s2 = inlined_call_operand.hbm [shape: f32[1,16], index: 2, kind: input, shape index: {}]   ;;  %s2781_s3 = inlined_call_operand.vmem [shape: f32[2,8,2,8,8], index: 3, kind: output, shape index: {}]  }
   0x1   :  { %9 = vsyncpa [#allocation7], 0  ;;  %s1754_s12 = smov [#allocation4]   ;;  %s1706_s16 = scalar_lea.hbm %s2779_s1, 1152 }
   0x2   :  { %s17_s13 = sshll.u32 %s1754_s12, 4  ;;  %p1707_p0 = scmp.ne.s32.totalorder %s2779_s1, %s1706_s16  ;;  %s18_s13 = int_to_ptr.vmem [resolvable:$true] %s17_s13 }
   0x3   :  { %p1710_p1 = scmp.lt.u32.totalorder %s1706_s16, %s2779_s1 }
   0x5   :  { %p1712_p2 = pnand %p1710_p1, %p1707_p0 }
   0x7   :  { %1715 = shalt.err (!%p1712_p2)
}
   0x8   :  { %s1716_s21 = scalar_lea.vmem %s18_s13, 1152  ;;  %p1721_p4 = scmp.lt.s32.totalorder %s18_s13, %s18_s13 }
   0x9   :  { %p1717_p3 = scmp.ne.s32.totalorder %s18_s13, %s1716_s21  ;;  %p1722_p5 = scmp.lt.s32.totalorder %s1716_s21, %s1716_s21 }
   0xb   :  { %p1723_p6 = por %p1722_p5, %p1721_p4 }
   0xd   :  { %p1724_p7 = pnand %p1723_p6, %p1717_p3 }
   0xf   :  { %1727 = shalt.err (!%p1724_p7)
}
  0x10   :  { %s1755_s22 = smov 128   ;;  %s1756_s23 = smov 8  }
  0x11   :  { %23 = dma.hbm_to_vmem [thread:$0]  %s2779_s1, 1152, %s18_s13, [#allocation5], %s1755_s22, %s1755_s22, %s1756_s23  }
  0x12   :  { %s1757_s26 = smov [#allocation6]   ;;  %s1728_s30 = scalar_lea.hbm %s2780_s2, 16 }
  0x13   :  { %s30_s27 = sshll.u32 %s1757_s26, 4  ;;  %p1729_p8 = scmp.ne.s32.totalorder %s2780_s2, %s1728_s30  ;;  %s31_s27 = int_to_ptr.vmem [resolvable:$true] %s30_s27 }
  0x14   :  { %p1732_p9 = scmp.lt.u32.totalorder %s1728_s30, %s2780_s2 }
  0x16   :  { %p1734_p10 = pnand %p1732_p9, %p1729_p8 }
  0x18   :  { %1737 = shalt.err (!%p1734_p10)
}
  0x19   :  { %s1738_s8 = scalar_lea.vmem %s31_s27, 16  ;;  %s1742_s1 = scalar_lea.vmem %s31_s27, 32 }
  0x1a   :  { %p1739_p11 = scmp.ne.s32.totalorder %s31_s27, %s1738_s8  ;;  %p1743_p12 = scmp.lt.s32.totalorder %s31_s27, %s31_s27 }
  0x1b   :  { %p1744_p13 = scmp.lt.s32.totalorder %s1742_s1, %s1738_s8 }
  0x1d   :  { %p1745_p0 = por %p1744_p13, %p1743_p12 }
  0x1f   :  { %p1746_p1 = pnand %p1745_p0, %p1739_p11 }
  0x21   :  { %1749 = shalt.err (!%p1746_p1)
}
  0x22   :  { %33 = dma.hbm_to_vmem [thread:$0]  %s2780_s2, 16, %s31_s27, [#allocation7]  }
  0x23   :  { %1750 = dma.done.wait [#allocation5], 1152  }
  0x24   :  { %1751 = vsyncadd [#allocation5], 4294966144 }
  0x25   :  { %1752 = dma.done.wait [#allocation7], 16  }
  0x26   :  { %1753 = vsyncadd [#allocation7], 4294967280  ;;  %vm41_vm0 = vcmask 64512   ;;  %vm43_vm1 = vcmask 58368   ;;  %v1758_v0 = vmov 0.0   ;;  %vm266_vm2 = vcmask 1045504  }
  0x27   :  { %42 = vst.msk [vmem:[#allocation2] sm:$0xff] %vm41_vm0, %v1758_v0  ;;  %45 = vst.msk [vmem:[#allocation2 + $0x10] sm:$0xff] %vm41_vm0, %v1758_v0  ;;  %v85_v1 = vld [vmem:[%s2778_s0] sm:$0xff]  ;;  %v86_v3 = vld [vmem:[%s2778_s0 + $0x8] sm:$0xff]  ;;  %vm208_vm3 = vcmask 1046528   ;;  %s1759_s27 = smov 16  }
  0x28   :  { %44 = vst.msk [vmem:[#allocation2 + $0x8] sm:$0x3] %vm43_vm1, %v1758_v0  ;;  %46 = vst.msk [vmem:[#allocation2 + $0x18] sm:$0x3] %vm43_vm1, %v1758_v0  ;;  %v1548_v2 = vld [vmem:[%s2778_s0 + $0x40] sm:$0xff]  ;;  %v1549_v16 = vld [vmem:[%s2778_s0 + $0x48] sm:$0xff] }
  0x29   :  { %47 = vst.msk [vmem:[#allocation2 + $0x20] sm:$0xff] %vm41_vm0, %v1758_v0  ;;  %49 = vst.msk [vmem:[#allocation2 + $0x30] sm:$0xff] %vm41_vm0, %v1758_v0  ;;  %v87_v17 = vld [vmem:[%s2778_s0 + $0x10] sm:$0xff]  ;;  %v88_v21 = vld [vmem:[%s2778_s0 + $0x18] sm:$0xff]  ;;  %s1760_s7 = smov 24   ;;  %s1761_s8 = smov 32  }
  0x2a   :  { %48 = vst.msk [vmem:[#allocation2 + $0x28] sm:$0x3] %vm43_vm1, %v1758_v0  ;;  %50 = vst.msk [vmem:[#allocation2 + $0x38] sm:$0x3] %vm43_vm1, %v1758_v0  ;;  %v1550_v20 = vld [vmem:[%s2778_s0 + $0x50] sm:$0xff]  ;;  %v1551_v22 = vld [vmem:[%s2778_s0 + $0x58] sm:$0xff] }
  0x2b   :  { %51 = vst.msk [vmem:[#allocation2 + $0x40] sm:$0xff] %vm41_vm0, %v1758_v0  ;;  %53 = vst.msk [vmem:[#allocation2 + $0x50] sm:$0xff] %vm41_vm0, %v1758_v0  ;;  %v89_v23 = vld [vmem:[%s2778_s0 + $0x20] sm:$0xff]  ;;  %v90_v27 = vld [vmem:[%s2778_s0 + $0x28] sm:$0xff]  ;;  %s1762_s11 = smov 40   ;;  %s1763_s14 = smov 48  }
  0x2c   :  { %52 = vst.msk [vmem:[#allocation2 + $0x48] sm:$0x3] %vm43_vm1, %v1758_v0  ;;  %54 = vst.msk [vmem:[#allocation2 + $0x58] sm:$0x3] %vm43_vm1, %v1758_v0  ;;  %v1552_v24 = vld [vmem:[%s2778_s0 + $0x60] sm:$0xff]  ;;  %s1764_s15 = smov 56  }
  0x2d   :  { %55 = vst.msk [vmem:[#allocation2 + $0x60] sm:$0xff] %vm41_vm0, %v1758_v0  ;;  %57 = vst.msk [vmem:[#allocation2 + $0x70] sm:$0xff] %vm41_vm0, %v1758_v0  ;;  %vm257_vm4 = vcmask 130112   ;;  %vm315_vm5 = vcmask 195712   ;;  %vm372_vm6 = vcmask 261312   ;;  %vm437_vm7 = vcmask 326912  }
  0x2e   :  { %56 = vst.msk [vmem:[#allocation2 + $0x68] sm:$0x3] %vm43_vm1, %v1758_v0  ;;  %58 = vst.msk [vmem:[#allocation2 + $0x78] sm:$0x3] %vm43_vm1, %v1758_v0  ;;  %v168_v4 = vld [vmem:[#allocation2] sm:$0xff]  ;;  %vm494_vm8 = vcmask 392512  }
  0x2f   :  { %59 = vst.msk [vmem:[#allocation2 + $0x80] sm:$0xff] %vm41_vm0, %v1758_v0  ;;  %61 = vst.msk [vmem:[#allocation2 + $0x90] sm:$0xff] %vm41_vm0, %v1758_v0  ;;  %v169_v5 = vld [vmem:[#allocation2 + $0x8] sm:$0x3]  ;;  %v267_v7 = vrot.slane %v168_v4, 2  ;;  %v209_v9 = vrot.slane %v168_v4, 1 }
  0x30   :  { %60 = vst.msk [vmem:[#allocation2 + $0x88] sm:$0x3] %vm43_vm1, %v1758_v0  ;;  %62 = vst.msk [vmem:[#allocation2 + $0x98] sm:$0x3] %vm43_vm1, %v1758_v0  ;;  %v268_v8 = vrot.slane %v169_v5, 2  ;;  %v210_v10 = vrot.slane %v169_v5, 1 }
  0x31   :  { %63 = vst.msk [vmem:[#allocation2 + $0xa0] sm:$0xff] %vm41_vm0, %v1758_v0  ;;  %65 = vst.msk [vmem:[#allocation2 + $0xb0] sm:$0xff] %vm41_vm0, %v1758_v0  ;;  %vm552_vm9 = vcmask 458112   ;;  %vm617_vm10 = vcmask 523712   ;;  %vm674_vm11 = vcmask 589312   ;;  %vm1221_vm12 = vcmask 588800  }
  0x32   :  { %64 = vst.msk [vmem:[#allocation2 + $0xa8] sm:$0x3] %vm43_vm1, %v1758_v0  ;;  %66 = vst.msk [vmem:[#allocation2 + $0xb8] sm:$0x3] %vm43_vm1, %v1758_v0  ;;  %v269_v18 = vsel %vm266_vm2, %v267_v7, %v268_v8  ;;  %v211_v19 = vsel %vm208_vm3, %v209_v9, %v210_v10  ;;  %v91_v8 = vld [vmem:[%s2778_s0 + $0x30] sm:$0xff]  ;;  %s1766_s21 = smov 120  }
  0x33   :  { %67 = vst.msk [vmem:[#allocation2 + $0xc0] sm:$0xff] %vm41_vm0, %v1758_v0  ;;  %69 = vst.msk [vmem:[#allocation2 + $0xd0] sm:$0xff] %vm41_vm0, %v1758_v0  ;;  %291 = vrot.lane.b32.xlu1 %v269_v18, %s1759_s27  ;;  %233 = vrot.lane.b32.xlu0 %v211_v19, %s1756_s23 }
  0x34   :  { %68 = vst.msk [vmem:[#allocation2 + $0xc8] sm:$0x3] %vm43_vm1, %v1758_v0  ;;  %70 = vst.msk [vmem:[#allocation2 + $0xd8] sm:$0x3] %vm43_vm1, %v1758_v0 }
  0x35   :  { %71 = vst.msk [vmem:[#allocation2 + $0xe0] sm:$0xff] %vm41_vm0, %v1758_v0  ;;  %73 = vst.msk [vmem:[#allocation2 + $0xf0] sm:$0xff] %vm41_vm0, %v1758_v0 }
  0x36   :  { %72 = vst.msk [vmem:[#allocation2 + $0xe8] sm:$0x3] %vm43_vm1, %v1758_v0  ;;  %74 = vst.msk [vmem:[#allocation2 + $0xf8] sm:$0x3] %vm43_vm1, %v1758_v0 }
  0x37   :  { %75 = vst.msk [vmem:[#allocation2 + $0x100] sm:$0xff] %vm41_vm0, %v1758_v0  ;;  %77 = vst.msk [vmem:[#allocation2 + $0x110] sm:$0xff] %vm41_vm0, %v1758_v0 }
  0x38   :  { %76 = vst.msk [vmem:[#allocation2 + $0x108] sm:$0x3] %vm43_vm1, %v1758_v0  ;;  %78 = vst.msk [vmem:[#allocation2 + $0x118] sm:$0x3] %vm43_vm1, %v1758_v0  ;;  %v684_v6 = vld [vmem:[#allocation2 + $0xa0] sm:$0xff] }
  0x39   :  { %79 = vst.msk [vmem:[#allocation2 + $0x120] sm:$0xff] %vm41_vm0, %v1758_v0  ;;  %81 = vst.msk [vmem:[#allocation2 + $0x130] sm:$0xff] %vm41_vm0, %v1758_v0  ;;  %v685_v11 = vld [vmem:[#allocation2 + $0xa8] sm:$0x3]  ;;  %v780_v12 = vrot.slane %v684_v6, 2  ;;  %v724_v14 = vrot.slane %v684_v6, 1 }
  0x3a   :  { %80 = vst.msk [vmem:[#allocation2 + $0x128] sm:$0x3] %vm43_vm1, %v1758_v0  ;;  %82 = vst.msk [vmem:[#allocation2 + $0x138] sm:$0x3] %vm43_vm1, %v1758_v0  ;;  %v781_v13 = vrot.slane %v685_v11, 2  ;;  %v725_v15 = vrot.slane %v685_v11, 1 }
  0x3b   :  { %94 = vst.msk [vmem:[#allocation2 + $0x11] sm:$0xff] %vm41_vm0, %v85_v1  ;;  %136 = vst.msk [vmem:[#allocation2 + $0xb1] sm:$0xff] %vm41_vm0, %v1548_v2  ;;  %v1553_v0 = vld [vmem:[%s2778_s0 + $0x68] sm:$0xff] }
  0x3c   :  { %95 = vst.msk [vmem:[#allocation2 + $0x21] sm:$0xff] %vm41_vm0, %v86_v3  ;;  %184 = vst.msk [vmem:[#allocation3] sm:$0xff] %vm41_vm0, %v168_v4  ;;  %v782_v25 = vsel %vm266_vm2, %v780_v12, %v781_v13  ;;  %v726_v26 = vsel %vm208_vm3, %v724_v14, %v725_v15 }
  0x3d   :  { %700 = vst.msk [vmem:[#allocation3 + $0x40] sm:$0xff] %vm41_vm0, %v684_v6  ;;  %137 = vst.msk [vmem:[#allocation2 + $0xc1] sm:$0xff] %vm41_vm0, %v1549_v16  ;;  %804 = vrot.lane.b32.xlu1 %v782_v25, %s1759_s27  ;;  %748 = vrot.lane.b32.xlu0 %v726_v26, %s1756_s23  ;;  %v1554_v25 = vld [vmem:[%s2778_s0 + $0x70] sm:$0xff] }
  0x3e   :  { %96 = vst.msk [vmem:[#allocation2 + $0x31] sm:$0xff] %vm41_vm0, %v87_v17  ;;  %138 = vst.msk [vmem:[#allocation2 + $0xd1] sm:$0xff] %vm41_vm0, %v1550_v20 }
  0x3f   :  { %97 = vst.msk [vmem:[#allocation2 + $0x41] sm:$0xff] %vm41_vm0, %v88_v21  ;;  %139 = vst.msk [vmem:[#allocation2 + $0xe1] sm:$0xff] %vm41_vm0, %v1551_v22 }
  0x40   :  { %98 = vst.msk [vmem:[#allocation2 + $0x51] sm:$0xff] %vm41_vm0, %v89_v23  ;;  %140 = vst.msk [vmem:[#allocation2 + $0xf1] sm:$0xff] %vm41_vm0, %v1552_v24 }
  0x41   :  { %99 = vst.msk [vmem:[#allocation2 + $0x61] sm:$0xff] %vm41_vm0, %v90_v27  ;;  %141 = vst.msk [vmem:[#allocation2 + $0x101] sm:$0xff] %vm41_vm0, %v1553_v0 }
  0x42   :  { %v1904_v28 = vld [vmem:[#allocation2 + $0x10] sm:$0xff]  ;;  %v687_v30 = vld [vmem:[#allocation2 + $0xb8] sm:$0x3]  ;;  %100 = vst.msk [vmem:[#allocation2 + $0x71] sm:$0xff] %vm41_vm0, %v91_v8  ;;  %142 = vst.msk [vmem:[#allocation2 + $0x111] sm:$0xff] %vm41_vm0, %v1554_v25 }
  0x43   :  { %v1906_v29 = vld [vmem:[#allocation2 + $0xb0] sm:$0xff]  ;;  %v728_v32 = vrot.slane %v687_v30, 1  ;;  %v171_v33 = vld [vmem:[#allocation2 + $0x18] sm:$0x3]  ;;  %185 = vst.msk [vmem:[#allocation3 + $0x8] sm:$0xff] %vm41_vm0, %v1904_v28  ;;  %v446_v34 = vrot.slane %v1904_v28, 2  ;;  %348 = vrot.lane.b32.xlu1 %v1904_v28, %s1760_s7 }
  0x44   :  { %v727_v31 = vrot.slane %v1906_v29, 1  ;;  %701 = vst.msk [vmem:[#allocation3 + $0x48] sm:$0xff] %vm41_vm0, %v1906_v29  ;;  %v271_v35 = vrot.slane %v171_v33, 2  ;;  %v1916_v36 = vld [vmem:[#allocation2 + $0x20] sm:$0xff]  ;;  %v389_v41 = vrot.slane %v1904_v28, 1  ;;  %v956_v42 = vrot.slane %v1906_v29, 2 }
  0x45   :  { %v1919_v38 = vld [vmem:[#allocation2 + $0xc0] sm:$0xff]  ;;  %186 = vst.msk [vmem:[#allocation3 + $0x10] sm:$0xff] %vm41_vm0, %v1916_v36  ;;  %v1923_v39 = vld [vmem:[#allocation2 + $0x30] sm:$0xff]  ;;  %v213_v44 = vrot.slane %v171_v33, 1  ;;  %v784_v45 = vrot.slane %v687_v30, 2  ;;  %v1975_v60 = vrot.slane %v1916_v36, 1 }
  0x46   :  { %v729_v37 = vsel %vm208_vm3, %v727_v31, %v728_v32  ;;  %702 = vst.msk [vmem:[#allocation3 + $0x50] sm:$0xff] %vm41_vm0, %v1919_v38  ;;  %187 = vst.msk [vmem:[#allocation3 + $0x18] sm:$0xff] %vm41_vm0, %v1923_v39  ;;  %v1929_v40 = vld [vmem:[#allocation2 + $0xd0] sm:$0xff]  ;;  %v272_v43 = vsel %vm266_vm2, %v446_v34, %v271_v35  ;;  %v325_v46 = vld [vmem:[#allocation2 + $0x18] sm:$0x3]  ;;  %v1983_v2 = vrot.slane %v1919_v38, 1 }
  0x47   :  { %750 = vrot.lane.b32.xlu0 %v729_v37, %s1756_s23  ;;  %703 = vst.msk [vmem:[#allocation3 + $0x58] sm:$0xff] %vm41_vm0, %v1929_v40  ;;  %860 = vrot.lane.b32.xlu1 %v1906_v29, %s1760_s7  ;;  %v1944_v47 = vld [vmem:[#allocation2 + $0x40] sm:$0xff]  ;;  %v214_v49 = vsel %vm208_vm3, %v389_v41, %v213_v44  ;;  %v785_v50 = vsel %vm266_vm2, %v956_v42, %v784_v45  ;;  %v390_v51 = vrot.slane %v325_v46, 1  ;;  %v1956_v52 = vld [vmem:[#allocation2 + $0x50] sm:$0xff]  ;;  %v837_v53 = vld [vmem:[#allocation2 + $0xb8] sm:$0x3] }
  0x48   :  { %v1946_v48 = vld [vmem:[#allocation2 + $0xe0] sm:$0xff]  ;;  %188 = vst.msk [vmem:[#allocation3 + $0x20] sm:$0xff] %vm41_vm0, %v1944_v47  ;;  %189 = vst.msk [vmem:[#allocation3 + $0x28] sm:$0xff] %vm41_vm0, %v1956_v52  ;;  %v901_v55 = vrot.slane %v837_v53, 1  ;;  %v1963_v56 = vld [vmem:[#allocation2 + $0xf0] sm:$0xff]  ;;  %v447_v5 = vrot.slane %v325_v46, 2 }
  0x49   :  { %704 = vst.msk [vmem:[#allocation3 + $0x60] sm:$0xff] %vm41_vm0, %v1946_v48  ;;  %v391_v54 = vsel %vm208_vm3, %v389_v41, %v390_v51  ;;  %v173_v57 = vld [vmem:[#allocation2 + $0x28] sm:$0x3]  ;;  %705 = vst.msk [vmem:[#allocation3 + $0x68] sm:$0xff] %vm41_vm0, %v1963_v56  ;;  %v1967_v59 = vld [vmem:[#allocation2 + $0x60] sm:$0xff]  ;;  %v957_v12 = vrot.slane %v837_v53, 2 }
  0x4a   :  { %v327_v58 = vld [vmem:[#allocation2 + $0x28] sm:$0x3]  ;;  %190 = vst.msk [vmem:[#allocation3 + $0x30] sm:$0xff] %vm41_vm0, %v1967_v59  ;;  %v902_v61 = vsel %vm208_vm3, %v727_v31, %v901_v55  ;;  %v216_v62 = vrot.slane %v173_v57, 1  ;;  %v448_v9 = vsel %vm266_vm2, %v446_v34, %v447_v5  ;;  %v2002_v13 = vld [vmem:[#allocation2 + $0x100] sm:$0xff]  ;;  %v2008_v15 = vrot.slane %v1916_v36, 2 }
  0x4b   :  { %293 = vrot.lane.b32.xlu0 %v272_v43, %s1759_s27  ;;  %235 = vrot.lane.b32.xlu1 %v214_v49, %s1756_s23  ;;  %v393_v63 = vrot.slane %v327_v58, 1  ;;  %v689_v1 = vld [vmem:[#allocation2 + $0xc8] sm:$0x3]  ;;  %v175_v14 = vld [vmem:[#allocation2 + $0x38] sm:$0x3]  ;;  %706 = vst.msk [vmem:[#allocation3 + $0x70] sm:$0xff] %vm41_vm0, %v2002_v13  ;;  %v958_v18 = vsel %vm266_vm2, %v956_v42, %v957_v12 }
  0x4c   :  { %v217_v3 = vsel %vm208_vm3, %v1975_v60, %v216_v62  ;;  %v731_v6 = vrot.slane %v689_v1, 1  ;;  %v839_v7 = vld [vmem:[#allocation2 + $0xc8] sm:$0x3]  ;;  %v2013_v16 = vrot.slane %v1923_v39, 1  ;;  %v219_v19 = vrot.slane %v175_v14, 1  ;;  %v2022_v21 = vld [vmem:[#allocation2 + $0x70] sm:$0xff] }
  0x4d   :  { %v394_v4 = vsel %vm208_vm3, %v1975_v60, %v393_v63  ;;  %v904_v11 = vrot.slane %v839_v7, 1  ;;  %v274_v20 = vrot.slane %v173_v57, 2  ;;  %v450_v24 = vrot.slane %v327_v58, 2  ;;  %191 = vst.msk [vmem:[#allocation3 + $0x38] sm:$0xff] %vm41_vm0, %v2022_v21  ;;  %v691_v26 = vld [vmem:[#allocation2 + $0xd8] sm:$0x3] }
  0x4e   :  { %v732_v10 = vsel %vm208_vm3, %v1983_v2, %v731_v6  ;;  %v220_v22 = vsel %vm208_vm3, %v2013_v16, %v219_v19  ;;  %v2035_v27 = vrot.slane %v1919_v38, 2  ;;  %v2042_v29 = vrot.slane %v1929_v40, 1  ;;  %v2051_v35 = vld [vmem:[#allocation2 + $0x110] sm:$0xff]  ;;  %v505_v42 = vld [vmem:[#allocation2 + $0x28] sm:$0x3]  ;;  %v1206_v62 = vld [vmem:[#allocation4] sm:$0xff] }
  0x4f   :  { %806 = vrot.lane.b32.xlu0 %v785_v50, %s1759_s27  ;;  %413 = vrot.lane.b32.xlu1 %v391_v54, %s1761_s8  ;;  %v905_v17 = vsel %vm208_vm3, %v1983_v2, %v904_v11  ;;  %v275_v23 = vsel %vm266_vm2, %v2008_v15, %v274_v20  ;;  %v451_v28 = vsel %vm266_vm2, %v2008_v15, %v450_v24  ;;  %v734_v30 = vrot.slane %v691_v26, 1  ;;  %v1014_v50 = vld [vmem:[#allocation2 + $0xc8] sm:$0x3]  ;;  %v2080_v53 = vld [vmem:[#allocation2 + $0x38] sm:$0x3]  ;;  %v1208_v5 = vld [vmem:[#allocation4 + $0x10] sm:$0xff] }
  0x50   :  { %v787_v31 = vrot.slane %v689_v1, 2  ;;  %v960_v34 = vrot.slane %v839_v7, 2  ;;  %707 = vst.msk [vmem:[#allocation3 + $0x78] sm:$0xff] %vm41_vm0, %v2051_v35  ;;  %v277_v41 = vrot.slane %v175_v14, 2  ;;  %v570_v44 = vrot.slane %v505_v42, 1  ;;  %v92_v54 = vld [vmem:[%s2778_s0 + $0x38] sm:$0xff] }
  0x51   :  { %v735_v32 = vsel %vm208_vm3, %v2042_v29, %v734_v30  ;;  %v2073_v46 = vrot.slane %v1929_v40, 2  ;;  %v790_v49 = vrot.slane %v691_v26, 2  ;;  %v1078_v51 = vrot.slane %v1014_v50, 1  ;;  %101 = vst.msk [vmem:[#allocation2 + $0x81] sm:$0xff] %vm41_vm0, %v92_v54  ;;  %v2092_v57 = vld [vmem:[#allocation2 + $0x38] sm:$0x3] }
  0x52   :  { %v788_v33 = vsel %vm266_vm2, %v2035_v27, %v787_v31  ;;  %v961_v37 = vsel %vm266_vm2, %v2035_v27, %v960_v34  ;;  %v571_v45 = vsel %vm208_vm3, %v1975_v60, %v570_v44  ;;  %v396_v55 = vrot.slane %v2080_v53, 1  ;;  %v1207_v63 = vld [vmem:[#allocation4 + $0x8] sm:$0xff]  ;;  %v2100_v0 = vld [vmem:[#allocation2 + $0xd8] sm:$0x3]  ;;  %v1210_v12 = vld [vmem:[#allocation4 + $0x20] sm:$0xff] }
  0x53   :  { %350 = vrot.lane.b32.xlu0 %v1916_v36, %s1760_s7  ;;  %924 = vrot.lane.b32.xlu1 %v902_v61, %s1761_s8  ;;  %v573_v60 = vrot.slane %v2092_v57, 1  ;;  %v627_v61 = vrot.slane %v505_v42, 2  ;;  %v1667_v1 = vpack.c.bf16 %v1207_v63, %v1206_v62  ;;  %v1209_v6 = vld [vmem:[#allocation4 + $0x18] sm:$0xff]  ;;  %v1134_v11 = vrot.slane %v1014_v50, 2  ;;  %v1211_v14 = vld [vmem:[#allocation4 + $0x28] sm:$0xff]  ;;  %v1212_v24 = vld [vmem:[#allocation4 + $0x30] sm:$0xff] }
  0x54   :  { %v397_v58 = vsel %vm208_vm3, %v2013_v16, %v396_v55  ;;  %v2114_v7 = vld [vmem:[#allocation2 + $0xd8] sm:$0x3]  ;;  %v1671_v8 = vpack.c.bf16 %v1209_v6, %v1208_v5  ;;  %v630_v30 = vrot.slane %v2092_v57, 2  ;;  %v693_v31 = vld [vmem:[#allocation2 + $0xe8] sm:$0x3]  ;;  %v2146_v34 = vrot.slane %v1946_v48, 1 }
  0x55   :  { %1668 = vmatprep.subr.bf16.mxu0 %v1667_v1  ;;  %1683 = vmatprep.subr.bf16.mxu1 %v1667_v1  ;;  %v1135_v20 = vsel %vm266_vm2, %v2035_v27, %v1134_v11  ;;  %v1213_v25 = vld [vmem:[#allocation4 + $0x38] sm:$0xff]  ;;  %v737_v42 = vrot.slane %v693_v31, 1  ;;  %v2183_v62 = vrot.slane %v1946_v48, 2  ;;  %v2190_v63 = vrot.slane %v1963_v56, 1 }
  0x56   :  { %1670 = vmatpush3.bf16.msra.mxu0 %v1667_v1  ;;  %1688 = vmatpush3.bf16.msra.mxu1 %v1667_v1  ;;  %v1679_v26 = vpack.c.bf16 %v1213_v25, %v1212_v24  ;;  %v179_v50 = vld [vmem:[#allocation2 + $0x58] sm:$0x3]  ;;  %v793_v1 = vrot.slane %v693_v31, 2  ;;  %v2204_v5 = vrot.slane %v1956_v52, 2 }
  0x57   :  { %862 = vrot.lane.b32.xlu0 %v1919_v38, %s1760_s7  ;;  %415 = vrot.lane.b32.xlu1 %v394_v4, %s1761_s8  ;;  %v907_v4 = vrot.slane %v2100_v0, 1  ;;  %v738_v44 = vsel %vm208_vm3, %v2146_v34, %v737_v42  ;;  %v283_v6 = vrot.slane %v179_v50, 2  ;;  %v2230_v24 = vld [vmem:[#allocation2 + $0x58] sm:$0x3] }
  0x58   :  { %1672 = vmatprep.subr.bf16.mxu0 %v1671_v8  ;;  %1684 = vmatprep.subr.bf16.mxu1 %v1671_v8  ;;  %v402_v25 = vrot.slane %v2230_v24, 1 }
  0x5a   :  { %1674 = vmatpush3.bf16.msra.mxu0 %v1671_v8  ;;  %1689 = vmatpush3.bf16.msra.mxu1 %v1671_v8  ;;  %v509_v8 = vld [vmem:[#allocation2 + $0x48] sm:$0x3] }
  0x5b   :  { %237 = vrot.lane.b32.xlu0 %v217_v3, %s1756_s23  ;;  %752 = vrot.lane.b32.xlu1 %v732_v10, %s1756_s23  ;;  %v628_v3 = vsel %vm266_vm2, %v2008_v15, %v627_v61  ;;  %v1081_v10 = vrot.slane %v2114_v7, 1  ;;  %v2121_v15 = vld [vmem:[#allocation2 + $0x48] sm:$0x3]  ;;  %v695_v61 = vld [vmem:[#allocation2 + $0xf8] sm:$0x3]  ;;  %v633_v31 = vrot.slane %v509_v8, 2 }
  0x5c   :  { %v280_v55 = vrot.slane %v2121_v15, 2 }
  0x5d   :  { %v1082_v19 = vsel %vm208_vm3, %v2042_v29, %v1081_v10  ;;  %v576_v10 = vrot.slane %v509_v8, 1 }
  0x5f   :  { %470 = vrot.lane.b32.xlu0 %v448_v9, %s1762_s11  ;;  %980 = vrot.lane.b32.xlu1 %v958_v18, %s1762_s11  ;;  %v908_v9 = vsel %vm208_vm3, %v2042_v29, %v907_v4  ;;  %v2126_v18 = vrot.slane %v1944_v47, 1  ;;  %v453_v29 = vrot.slane %v2080_v53, 2 }
  0x63   :  { %926 = vrot.lane.b32.xlu0 %v905_v17, %s1761_s8  ;;  %295 = vrot.lane.b32.xlu1 %v275_v23, %s1759_s27  ;;  %v1675_v17 = vpack.c.bf16 %v1211_v14, %v1210_v12  ;;  %v2221_v14 = vrot.slane %v1963_v56, 2 }
  0x65   :  { %1676 = vmatprep.subr.bf16.mxu0 %v1675_v17  ;;  %1685 = vmatprep.subr.bf16.mxu1 %v1675_v17 }
  0x66   :  { %1678 = vmatpush3.bf16.msra.mxu0 %v1675_v17  ;;  %1690 = vmatpush3.bf16.msra.mxu1 %v1675_v17 }
  0x67   :  { %239 = vrot.lane.b32.xlu0 %v220_v22, %s1756_s23  ;;  %528 = vrot.lane.b32.xlu1 %v1916_v36, %s1763_s14  ;;  %v2060_v36 = vrot.slane %v1923_v39, 2  ;;  %v222_v22 = vrot.slane %v2121_v15, 1  ;;  %v796_v15 = vrot.slane %v695_v61, 2 }
  0x68   :  { %1680 = vmatprep.subr.bf16.mxu0 %v1679_v26  ;;  %1686 = vmatprep.subr.bf16.mxu1 %v1679_v26 }
  0x69   :  { %v278_v43 = vsel %vm266_vm2, %v2060_v36, %v277_v41  ;;  %v631_v41 = vsel %vm266_vm2, %v2060_v36, %v630_v30 }
  0x6a   :  { %1682 = vmatpush3.bf16.msra.mxu0 %v1679_v26  ;;  %1691 = vmatpush3.bf16.msra.mxu1 %v1679_v26 }
  0x6b   :  { %472 = vrot.lane.b32.xlu0 %v451_v28, %s1762_s11  ;;  %808 = vrot.lane.b32.xlu1 %v788_v33, %s1759_s27  ;;  %v223_v28 = vsel %vm208_vm3, %v2126_v18, %v222_v22  ;;  %v1214_v33 = vld [vmem:[#allocation4 + $0x40] sm:$0xff] }
  0x6c   :  { %1641 = vmatprep.subr.mxu0 %v1214_v33  ;;  %1687 = vmatprep.subr.mxu1 %v1214_v33 }
  0x6e   :  { %1642 = vmatpush3.msra.mxu0 %v1214_v33  ;;  %1692 = vmatpush3.msra.mxu1 %v1214_v33 }
  0x6f   :  { %754 = vrot.lane.b32.xlu0 %v735_v32, %s1756_s23  ;;  %1037 = vrot.lane.b32.xlu1 %v1919_v38, %s1763_s14  ;;  %v791_v38 = vsel %vm266_vm2, %v2073_v46, %v790_v49  ;;  %v843_v32 = vld [vmem:[#allocation2 + $0xe8] sm:$0x3]  ;;  %v963_v49 = vrot.slane %v2100_v0, 2  ;;  %v740_v0 = vrot.slane %v695_v61, 1 }
  0x71   :  { %v964_v53 = vsel %vm266_vm2, %v2073_v46, %v963_v49 }
  0x73   :  { %982 = vrot.lane.b32.xlu0 %v961_v37, %s1762_s11  ;;  %352 = vrot.lane.b32.xlu1 %v1923_v39, %s1760_s7  ;;  %v454_v37 = vsel %vm266_vm2, %v2060_v36, %v453_v29  ;;  %v1137_v36 = vrot.slane %v2114_v7, 2 }
  0x75   :  { %v1138_v54 = vsel %vm266_vm2, %v2073_v46, %v1137_v36 }
  0x77   :  { %297 = vrot.lane.b32.xlu0 %v278_v43, %s1759_s27  ;;  %593 = vrot.lane.b32.xlu1 %v571_v45, %s1764_s15  ;;  %v910_v43 = vrot.slane %v843_v32, 1 }
  0x79   :  { %v911_v45 = vsel %vm208_vm3, %v2146_v34, %v910_v43 }
  0x7b   :  { %530 = vrot.lane.b32.xlu0 %v1923_v39, %s1763_s14  ;;  %864 = vrot.lane.b32.xlu1 %v1929_v40, %s1760_s7  ;;  %v1079_v39 = vsel %vm208_vm3, %v1983_v2, %v1078_v51  ;;  %v1555_v2 = vld [vmem:[%s2778_s0 + $0x78] sm:$0xff]  ;;  %s1765_s0 = smov 64   ;;  %v2168_v51 = vrot.slane %v1956_v52, 1 }
  0x7c   :  { %143 = vst.msk [vmem:[#allocation2 + $0x121] sm:$0xff] %vm41_vm0, %v1555_v2  ;;  %v741_v2 = vsel %vm208_vm3, %v2190_v63, %v740_v0 }
  0x7d   :  { %v403_v29 = vsel %vm208_vm3, %v2168_v51, %v402_v25 }
  0x7f   :  { %810 = vrot.lane.b32.xlu0 %v791_v38, %s1759_s27  ;;  %1101 = vrot.lane.b32.xlu1 %v1079_v39, %s1764_s15  ;;  %v2163_v38 = vrot.slane %v1944_v47, 2  ;;  %v225_v39 = vrot.slane %v179_v50, 1 }
  0x81   :  { %v226_v57 = vsel %vm208_vm3, %v2168_v51, %v225_v39 }
  0x83   :  { %1039 = vrot.lane.b32.xlu0 %v1929_v40, %s1763_s14  ;;  %417 = vrot.lane.b32.xlu1 %v397_v58, %s1761_s8  ;;  %v574_v40 = vsel %vm208_vm3, %v2013_v16, %v573_v60  ;;  %v2123_v16 = vld [vmem:[#allocation2 + $0x48] sm:$0x3]  ;;  %v281_v58 = vsel %vm266_vm2, %v2163_v38, %v280_v55 }
  0x84   :  { %v399_v23 = vrot.slane %v2123_v16, 1  ;;  %v456_v60 = vrot.slane %v2123_v16, 2 }
  0x86   :  { %v400_v27 = vsel %vm208_vm3, %v2126_v18, %v399_v23  ;;  %v457_v46 = vsel %vm266_vm2, %v2163_v38, %v456_v60 }
  0x87   :  { %354 = vrot.lane.b32.xlu0 %v1944_v47, %s1760_s7  ;;  %650 = vrot.lane.b32.xlu1 %v628_v3, %s1765_s0  ;;  %v966_v3 = vrot.slane %v843_v32, 2 }
  0x89   :  { %v967_v4 = vsel %vm266_vm2, %v2183_v62, %v966_v3  ;;  %v2301_v3 = vld [vmem:[#allocation2 + $0x108] sm:$0x3] }
  0x8a   :  { %v916_v8 = vrot.slane %v2301_v3, 1 }
  0x8b   :  { %595 = vrot.lane.b32.xlu0 %v574_v40, %s1764_s15  ;;  %928 = vrot.lane.b32.xlu1 %v908_v9, %s1761_s8  ;;  %v794_v40 = vsel %vm266_vm2, %v2183_v62, %v793_v1  ;;  %v284_v9 = vsel %vm266_vm2, %v2204_v5, %v283_v6 }
  0x8f   :  { %866 = vrot.lane.b32.xlu0 %v1946_v48, %s1760_s7  ;;  %1157 = vrot.lane.b32.xlu1 %v1135_v20, %s1765_s0  ;;  %v797_v20 = vsel %vm266_vm2, %v2221_v14, %v796_v15 }
  0x93   :  { %1103 = vrot.lane.b32.xlu0 %v1082_v19, %s1764_s15  ;;  %419 = vrot.lane.b32.xlu1 %v400_v27, %s1761_s8  ;;  %v1018_v19 = vld [vmem:[#allocation2 + $0xe8] sm:$0x3]  ;;  %v2239_v27 = vld [vmem:[#allocation2 + $0x58] sm:$0x3] }
  0x94   :  { %v579_v30 = vrot.slane %v2239_v27, 1  ;;  %v1140_v36 = vrot.slane %v1018_v19, 2  ;;  %v636_v0 = vrot.slane %v2239_v27, 2 }
  0x96   :  { %v1141_v55 = vsel %vm266_vm2, %v2183_v62, %v1140_v36  ;;  %v2380_v36 = vrot.slane %v2022_v21, 2 }
  0x97   :  { %241 = vrot.lane.b32.xlu0 %v223_v28, %s1756_s23  ;;  %652 = vrot.lane.b32.xlu1 %v631_v41, %s1765_s0 }
  0x9b   :  { %474 = vrot.lane.b32.xlu0 %v454_v37, %s1762_s11  ;;  %930 = vrot.lane.b32.xlu1 %v911_v45, %s1761_s8  ;;  %v634_v37 = vsel %vm266_vm2, %v2163_v38, %v633_v31  ;;  %v2353_v31 = vrot.slane %v2002_v13, 2 }
  0x9f   :  { %756 = vrot.lane.b32.xlu0 %v738_v44, %s1756_s23  ;;  %1159 = vrot.lane.b32.xlu1 %v1138_v54, %s1765_s0  ;;  %v2262_v44 = vld [vmem:[#allocation2 + $0xf8] sm:$0x3]  ;;  %v2278_v54 = vrot.slane %v1967_v59, 1 }
  0xa0   :  { %v1087_v49 = vrot.slane %v2262_v44, 1 }
  0xa2   :  { %v1088_v39 = vsel %vm208_vm3, %v2190_v63, %v1087_v49 }
  0xa3   :  { %984 = vrot.lane.b32.xlu0 %v964_v53, %s1762_s11  ;;  %299 = vrot.lane.b32.xlu1 %v281_v58, %s1759_s27  ;;  %v2273_v53 = vld [vmem:[#allocation2 + $0x68] sm:$0x3] }
  0xa4   :  { %v405_v58 = vrot.slane %v2273_v53, 1 }
  0xa5   :  { %v234_v7 = vpop.permute.xlu0 %233 }
  0xa6   :  { %258 = vst.msk [vmem:[#allocation3] sm:$0xff] %vm257_vm4, %v234_v7  ;;  %v406_v62 = vsel %vm208_vm3, %v2278_v54, %v405_v58 }
  0xa7   :  { %243 = vrot.lane.b32.xlu0 %v226_v57, %s1756_s23  ;;  %532 = vrot.lane.b32.xlu1 %v1944_v47, %s1763_s14  ;;  %v292_v47 = vpop.permute.xlu1 %291 }
  0xa8   :  { %316 = vst.msk [vmem:[#allocation3] sm:$0xff] %vm315_vm5, %v292_v47  ;;  %v637_v47 = vsel %vm266_vm2, %v2204_v5, %v636_v0 }
  0xab   :  { %476 = vrot.lane.b32.xlu0 %v457_v46, %s1762_s11  ;;  %812 = vrot.lane.b32.xlu1 %v794_v40, %s1759_s27  ;;  %v2299_v40 = vld [vmem:[#allocation2 + $0x108] sm:$0x3] }
  0xac   :  { %v743_v7 = vrot.slane %v2299_v40, 1 }
  0xaf   :  { %758 = vrot.lane.b32.xlu0 %v741_v2, %s1756_s23  ;;  %1041 = vrot.lane.b32.xlu1 %v1946_v48, %s1763_s14  ;;  %v805_v11 = vpop.permute.xlu1 %804  ;;  %v749_v12 = vpop.permute.xlu0 %748  ;;  %v577_v48 = vsel %vm208_vm3, %v2126_v18, %v576_v10  ;;  %v1084_v18 = vrot.slane %v1018_v19, 1  ;;  %v2329_v19 = vrot.slane %v1967_v59, 2 }
  0xb0   :  { %772 = vst.msk [vmem:[#allocation3 + $0x40] sm:$0xff] %vm257_vm4, %v749_v12 }
  0xb1   :  { %828 = vst.msk [vmem:[#allocation3 + $0x40] sm:$0xff] %vm315_vm5, %v805_v11 }
  0xb3   :  { %986 = vrot.lane.b32.xlu0 %v967_v4, %s1762_s11  ;;  %356 = vrot.lane.b32.xlu1 %v1956_v52, %s1760_s7  ;;  %v2306_v4 = vrot.slane %v2002_v13, 1 }
  0xb5   :  { %v349_v16 = vpop.permute.xlu1 %348  ;;  %v744_v11 = vsel %vm208_vm3, %v2306_v4, %v743_v7  ;;  %v2419_v7 = vld [vmem:[#allocation2 + $0x78] sm:$0x3] }
  0xb6   :  { %373 = vst.msk [vmem:[#allocation3] sm:$0xff] %vm372_vm6, %v349_v16 }
  0xb7   :  { %301 = vrot.lane.b32.xlu0 %v284_v9, %s1759_s27  ;;  %597 = vrot.lane.b32.xlu1 %v577_v48, %s1764_s15  ;;  %v1143_v48 = vrot.slane %v2262_v44, 2  ;;  %v972_v44 = vrot.slane %v2301_v3, 2 }
  0xb9   :  { %v751_v17 = vpop.permute.xlu0 %750  ;;  %v861_v22 = vpop.permute.xlu1 %860 }
  0xba   :  { %773 = vst.msk [vmem:[#allocation3 + $0x48] sm:$0xff] %vm257_vm4, %v751_v17  ;;  %v183_v17 = vld [vmem:[#allocation2 + $0x78] sm:$0x3] }
  0xbb   :  { %534 = vrot.lane.b32.xlu0 %v1956_v52, %s1763_s14  ;;  %884 = vst.msk [vmem:[#allocation3 + $0x40] sm:$0xff] %vm372_vm6, %v861_v22  ;;  %868 = vrot.lane.b32.xlu1 %v1963_v56, %s1760_s7  ;;  %v1085_v52 = vsel %vm208_vm3, %v2146_v34, %v1084_v18  ;;  %v2250_v34 = vld [vmem:[#allocation2 + $0xf8] sm:$0x3]  ;;  %v1144_v22 = vsel %vm266_vm2, %v2221_v14, %v1143_v48 }
  0xbc   :  { %v913_v41 = vrot.slane %v2250_v34, 1  ;;  %v969_v12 = vrot.slane %v2250_v34, 2  ;;  %v2431_v48 = vld [vmem:[#allocation2 + $0x118] sm:$0x3] }
  0xbd   :  { %v294_v23 = vpop.permute.xlu0 %293  ;;  %v236_v26 = vpop.permute.xlu1 %235 }
  0xbe   :  { %259 = vst.msk [vmem:[#allocation3 + $0x8] sm:$0xff] %vm257_vm4, %v236_v26  ;;  %v914_v45 = vsel %vm208_vm3, %v2190_v63, %v913_v41  ;;  %v459_v63 = vrot.slane %v2230_v24, 2  ;;  %v970_v18 = vsel %vm266_vm2, %v2221_v14, %v969_v12  ;;  %v462_v14 = vrot.slane %v2273_v53, 2  ;;  %v513_v53 = vld [vmem:[#allocation2 + $0x68] sm:$0x3] }
  0xbf   :  { %814 = vrot.lane.b32.xlu0 %v797_v20, %s1759_s27  ;;  %317 = vst.msk [vmem:[#allocation3 + $0x8] sm:$0xff] %vm315_vm5, %v294_v23  ;;  %1105 = vrot.lane.b32.xlu1 %v1085_v52, %s1764_s15  ;;  %v2334_v20 = vrot.slane %v2022_v21, 1  ;;  %v231_v23 = vrot.slane %v183_v17, 1 }
  0xc0   :  { %v460_v6 = vsel %vm266_vm2, %v2204_v5, %v459_v63  ;;  %v917_v5 = vsel %vm208_vm3, %v2306_v4, %v916_v8  ;;  %v2399_v63 = vld [vmem:[#allocation2 + $0x108] sm:$0x3]  ;;  %v2426_v8 = vld [vmem:[#allocation2 + $0x80] sm:$0xff] }
  0xc1   :  { %v807_v28 = vpop.permute.xlu0 %806  ;;  %v414_v33 = vpop.permute.xlu1 %413  ;;  %v232_v26 = vsel %vm208_vm3, %v2334_v20, %v231_v23  ;;  %v1090_v0 = vrot.slane %v2399_v63, 1  ;;  %v2448_v23 = vld [vmem:[#allocation2 + $0x120] sm:$0xff] }
  0xc2   :  { %829 = vst.msk [vmem:[#allocation3 + $0x48] sm:$0xff] %vm315_vm5, %v807_v28 }
  0xc3   :  { %1043 = vrot.lane.b32.xlu0 %v1963_v56, %s1763_s14  ;;  %438 = vst.msk [vmem:[#allocation3] sm:$0xff] %vm437_vm7, %v414_v33  ;;  %421 = vrot.lane.b32.xlu1 %v403_v29, %s1761_s8  ;;  %v580_v56 = vsel %vm208_vm3, %v2168_v51, %v579_v30  ;;  %v2271_v51 = vld [vmem:[#allocation2 + $0x68] sm:$0x3]  ;;  %v699_v30 = vld [vmem:[#allocation2 + $0x118] sm:$0x3]  ;;  %v2360_v33 = vrot.slane %v2051_v35, 1 }
  0xc4   :  { %v228_v57 = vrot.slane %v2271_v51, 1  ;;  %v286_v24 = vrot.slane %v2271_v51, 2  ;;  %v746_v34 = vrot.slane %v699_v30, 1 }
  0xc5   :  { %v351_v32 = vpop.permute.xlu0 %350  ;;  %v925_v43 = vpop.permute.xlu1 %924 }
  0xc6   :  { %374 = vst.msk [vmem:[#allocation3 + $0x8] sm:$0xff] %vm372_vm6, %v351_v32  ;;  %v229_v46 = vsel %vm208_vm3, %v2278_v54, %v228_v57  ;;  %v287_v28 = vsel %vm266_vm2, %v2329_v19, %v286_v24  ;;  %v463_v32 = vsel %vm266_vm2, %v2329_v19, %v462_v14  ;;  %v410_v14 = vrot.slane %v2426_v8, 1 }
  0xc7   :  { %358 = vrot.lane.b32.xlu0 %v1967_v59, %s1760_s7  ;;  %948 = vst.msk [vmem:[#allocation3 + $0x40] sm:$0xff] %vm437_vm7, %v925_v43  ;;  %654 = vrot.lane.b32.xlu1 %v634_v37, %s1765_s0 }
  0xc9   :  { %v863_v42 = vpop.permute.xlu0 %862  ;;  %v416_v38 = vpop.permute.xlu1 %415 }
  0xca   :  { %885 = vst.msk [vmem:[#allocation3 + $0x48] sm:$0xff] %vm372_vm6, %v863_v42  ;;  %v747_v42 = vsel %vm208_vm3, %v2360_v33, %v746_v34 }
  0xcb   :  { %599 = vrot.lane.b32.xlu0 %v580_v56, %s1764_s15  ;;  %439 = vst.msk [vmem:[#allocation3 + $0x8] sm:$0xff] %vm437_vm7, %v416_v38  ;;  %932 = vrot.lane.b32.xlu1 %v914_v45, %s1761_s8  ;;  %v799_v56 = vrot.slane %v2299_v40, 2  ;;  %v2409_v40 = vld [vmem:[#allocation2 + $0x78] sm:$0x3] }
  0xcc   :  { %v408_v3 = vrot.slane %v2409_v40, 1 }
  0xcd   :  { %v238_v50 = vpop.permute.xlu0 %237  ;;  %v753_v61 = vpop.permute.xlu1 %752  ;;  %v800_v43 = vsel %vm266_vm2, %v2353_v31, %v799_v56 }
  0xce   :  { %260 = vst.msk [vmem:[#allocation3 + $0x10] sm:$0xff] %vm257_vm4, %v238_v50  ;;  %774 = vst.msk [vmem:[#allocation3 + $0x50] sm:$0xff] %vm257_vm4, %v753_v61  ;;  %v289_v50 = vrot.slane %v183_v17, 2  ;;  %v802_v61 = vrot.slane %v699_v30, 2 }
  0xcf   :  { %870 = vrot.lane.b32.xlu0 %v2002_v13, %s1760_s7  ;;  %1161 = vrot.lane.b32.xlu1 %v1141_v55, %s1765_s0  ;;  %v582_v55 = vrot.slane %v513_v53, 1 }
  0xd1   :  { %v471_v60 = vpop.permute.xlu0 %470  ;;  %v981_v2 = vpop.permute.xlu1 %980 }
  0xd2   :  { %495 = vst.msk [vmem:[#allocation3] sm:$0xff] %vm494_vm8, %v471_v60  ;;  %1004 = vst.msk [vmem:[#allocation3 + $0x40] sm:$0xff] %vm494_vm8, %v981_v2  ;;  %v583_v60 = vsel %vm208_vm3, %v2278_v54, %v582_v55  ;;  %v467_v55 = vrot.slane %v2426_v8, 2 }
  0xd3   :  { %1107 = vrot.lane.b32.xlu0 %v1088_v39, %s1764_s15  ;;  %423 = vrot.lane.b32.xlu1 %v406_v62, %s1761_s8  ;;  %v290_v39 = vsel %vm266_vm2, %v2380_v36, %v289_v50 }
  0xd5   :  { %v927_v1 = vpop.permute.xlu0 %926  ;;  %v296_v10 = vpop.permute.xlu1 %295 }
  0xd6   :  { %949 = vst.msk [vmem:[#allocation3 + $0x48] sm:$0xff] %vm437_vm7, %v927_v1 }
  0xd7   :  { %245 = vrot.lane.b32.xlu0 %v229_v46, %s1756_s23  ;;  %318 = vst.msk [vmem:[#allocation3 + $0x10] sm:$0xff] %vm315_vm5, %v296_v10  ;;  %656 = vrot.lane.b32.xlu1 %v637_v47, %s1765_s0  ;;  %v639_v10 = vrot.slane %v513_v53, 2 }
  0xd9   :  { %v240_v9 = vpop.permute.xlu0 %239  ;;  %v529_v16 = vpop.permute.xlu1 %528 }
  0xda   :  { %261 = vst.msk [vmem:[#allocation3 + $0x18] sm:$0xff] %vm257_vm4, %v240_v9  ;;  %v585_v9 = vrot.slane %v2419_v7, 1 }
  0xdb   :  { %478 = vrot.lane.b32.xlu0 %v460_v6, %s1762_s11  ;;  %553 = vst.msk [vmem:[#allocation3] sm:$0xff] %vm552_vm9, %v529_v16  ;;  %934 = vrot.lane.b32.xlu1 %v917_v5, %s1761_s8  ;;  %v919_v16 = vrot.slane %v2431_v48, 1 }
  0xdd   :  { %v473_v15 = vpop.permute.xlu0 %472  ;;  %v809_v25 = vpop.permute.xlu1 %808 }
  0xde   :  { %496 = vst.msk [vmem:[#allocation3 + $0x8] sm:$0xff] %vm494_vm8, %v473_v15  ;;  %v640_v15 = vsel %vm266_vm2, %v2329_v19, %v639_v10  ;;  %v1146_v19 = vrot.slane %v2399_v63, 2 }
  0xdf   :  { %760 = vrot.lane.b32.xlu0 %v744_v11, %s1756_s23  ;;  %830 = vst.msk [vmem:[#allocation3 + $0x50] sm:$0xff] %vm315_vm5, %v809_v25  ;;  %1163 = vrot.lane.b32.xlu1 %v1144_v22, %s1765_s0  ;;  %v1024_v22 = vld [vmem:[#allocation2 + $0x118] sm:$0x3] }
  0xe0   :  { %v1093_v24 = vrot.slane %v1024_v22, 1 }
  0xe1   :  { %v755_v52 = vpop.permute.xlu0 %754  ;;  %v1038_v29 = vpop.permute.xlu1 %1037 }
  0xe2   :  { %775 = vst.msk [vmem:[#allocation3 + $0x58] sm:$0xff] %vm257_vm4, %v755_v52 }
  0xe3   :  { %988 = vrot.lane.b32.xlu0 %v970_v18, %s1762_s11  ;;  %1061 = vst.msk [vmem:[#allocation3 + $0x40] sm:$0xff] %vm552_vm9, %v1038_v29  ;;  %303 = vrot.lane.b32.xlu1 %v287_v28, %s1759_s27  ;;  %v339_v28 = vld [vmem:[#allocation2 + $0x88] sm:$0x3]  ;;  %v1147_v29 = vsel %vm266_vm2, %v2353_v31, %v1146_v19 }
  0xe4   :  { %v411_v30 = vrot.slane %v339_v28, 1 }
  0xe5   :  { %v983_v27 = vpop.permute.xlu0 %982  ;;  %v353_v41 = vpop.permute.xlu1 %352 }
  0xe6   :  { %1005 = vst.msk [vmem:[#allocation3 + $0x48] sm:$0xff] %vm494_vm8, %v983_v27  ;;  %v1094_v27 = vsel %vm208_vm3, %v2360_v33, %v1093_v24 }
  0xe7   :  { %247 = vrot.lane.b32.xlu0 %v232_v26, %s1756_s23  ;;  %375 = vst.msk [vmem:[#allocation3 + $0x10] sm:$0xff] %vm372_vm6, %v353_v41  ;;  %536 = vrot.lane.b32.xlu1 %v1967_v59, %s1763_s14  ;;  %v973_v59 = vsel %vm266_vm2, %v2353_v31, %v972_v44  ;;  %v921_v41 = vrot.slane %v2448_v23, 1  ;;  %v412_v31 = vsel %vm208_vm3, %v410_v14, %v411_v30 }
  0xe9   :  { %v298_v37 = vpop.permute.xlu0 %297  ;;  %v594_v49 = vpop.permute.xlu1 %593 }
  0xea   :  { %319 = vst.msk [vmem:[#allocation3 + $0x18] sm:$0xff] %vm315_vm5, %v298_v37  ;;  %v851_v37 = vld [vmem:[#allocation2 + $0x128] sm:$0x3] }
  0xeb   :  { %480 = vrot.lane.b32.xlu0 %v463_v32, %s1762_s11  ;;  %618 = vst.msk [vmem:[#allocation3] sm:$0xff] %vm617_vm10, %v594_v49  ;;  %816 = vrot.lane.b32.xlu1 %v800_v43, %s1759_s27  ;;  %v465_v32 = vrot.slane %v2409_v40, 2  ;;  %v922_v43 = vrot.slane %v851_v37, 1 }
  0xed   :  { %v531_v45 = vpop.permute.xlu0 %530  ;;  %v865_v51 = vpop.permute.xlu1 %864  ;;  %v923_v50 = vsel %vm208_vm3, %v921_v41, %v922_v43 }
  0xee   :  { %554 = vst.msk [vmem:[#allocation3 + $0x8] sm:$0xff] %vm552_vm9, %v531_v45 }
  0xef   :  { %762 = vrot.lane.b32.xlu0 %v747_v42, %s1756_s23  ;;  %886 = vst.msk [vmem:[#allocation3 + $0x50] sm:$0xff] %vm372_vm6, %v865_v51  ;;  %1045 = vrot.lane.b32.xlu1 %v2002_v13, %s1763_s14  ;;  %v2397_v13 = vrot.slane %v2051_v35, 2  ;;  %v642_v42 = vrot.slane %v2419_v7, 2  ;;  %v1149_v51 = vrot.slane %v1024_v22, 2 }
  0xf1   :  { %v811_v38 = vpop.permute.xlu0 %810  ;;  %v1102_v58 = vpop.permute.xlu1 %1101  ;;  %v803_v54 = vsel %vm266_vm2, %v2397_v13, %v802_v61 }
  0xf2   :  { %831 = vst.msk [vmem:[#allocation3 + $0x58] sm:$0xff] %vm315_vm5, %v811_v38  ;;  %v975_v38 = vrot.slane %v2431_v48, 2 }
  0xf3   :  { %990 = vrot.lane.b32.xlu0 %v973_v59, %s1762_s11  ;;  %1125 = vst.msk [vmem:[#allocation3 + $0x40] sm:$0xff] %vm617_vm10, %v1102_v58  ;;  %360 = vrot.lane.b32.xlu1 %v2022_v21, %s1760_s7  ;;  %v643_v59 = vsel %vm266_vm2, %v2380_v36, %v642_v42  ;;  %v468_v58 = vrot.slane %v339_v28, 2 }
  0xf5   :  { %v1040_v57 = vpop.permute.xlu0 %1039  ;;  %v418_v62 = vpop.permute.xlu1 %417  ;;  %v469_v63 = vsel %vm266_vm2, %v467_v55, %v468_v58 }
  0xf6   :  { %1062 = vst.msk [vmem:[#allocation3 + $0x48] sm:$0xff] %vm552_vm9, %v1040_v57  ;;  %v1150_v57 = vsel %vm266_vm2, %v2397_v13, %v1149_v51 }
  0xf7   :  { %305 = vrot.lane.b32.xlu0 %v290_v39, %s1759_s27  ;;  %440 = vst.msk [vmem:[#allocation3 + $0x10] sm:$0xff] %vm437_vm7, %v418_v62  ;;  %601 = vrot.lane.b32.xlu1 %v583_v60, %s1764_s15  ;;  %v977_v62 = vrot.slane %v2448_v23, 2 }
  0xf9   :  { %v355_v46 = vpop.permute.xlu0 %354  ;;  %v651_v2 = vpop.permute.xlu1 %650 }
  0xfa   :  { %376 = vst.msk [vmem:[#allocation3 + $0x18] sm:$0xff] %vm372_vm6, %v355_v46 }
  0xfb   :  { %538 = vrot.lane.b32.xlu0 %v2022_v21, %s1763_s14  ;;  %675 = vst.msk [vmem:[#allocation3] sm:$0xff] %vm674_vm11, %v651_v2  ;;  %872 = vrot.lane.b32.xlu1 %v2051_v35, %s1760_s7  ;;  %v1091_v21 = vsel %vm208_vm3, %v2306_v4, %v1090_v0  ;;  %v409_v4 = vsel %vm208_vm3, %v2334_v20, %v408_v3 }
  0xfd   :  { %v596_v1 = vpop.permute.xlu0 %595  ;;  %v929_v47 = vpop.permute.xlu1 %928 }
  0xfe   :  { %619 = vst.msk [vmem:[#allocation3 + $0x8] sm:$0xff] %vm617_vm10, %v596_v1  ;;  %v517_v1 = vld [vmem:[#allocation2 + $0x88] sm:$0x3] }
  0xff   :  { %818 = vrot.lane.b32.xlu0 %v803_v54, %s1759_s27  ;;  %950 = vst.msk [vmem:[#allocation3 + $0x50] sm:$0xff] %vm437_vm7, %v929_v47  ;;  %1109 = vrot.lane.b32.xlu1 %v1091_v21, %s1764_s15  ;;  %v978_v54 = vrot.slane %v851_v37, 2  ;;  %v588_v40 = vrot.slane %v517_v1, 1  ;;  %v518_v47 = vld [vmem:[#allocation2 + $0x90] sm:$0xff] }
 0x101   :  { %v867_v6 = vpop.permute.xlu0 %866  ;;  %v1158_v5 = vpop.permute.xlu1 %1157  ;;  %v979_v2 = vsel %vm266_vm2, %v977_v62, %v978_v54  ;;  %v589_v7 = vsel %vm208_vm3, %v410_v14, %v588_v40 }
 0x102   :  { %887 = vst.msk [vmem:[#allocation3 + $0x58] sm:$0xff] %vm372_vm6, %v867_v6  ;;  %v1190_v12 = vld [vmem:[#allocation3] sm:$0xff]  ;;  %v1026_v6 = vld [vmem:[#allocation2 + $0x128] sm:$0x3] }
 0x103   :  { %1047 = vrot.lane.b32.xlu0 %v2051_v35, %s1763_s14  ;;  %1181 = vst.msk [vmem:[#allocation3 + $0x40] sm:$0xff] %vm674_vm11, %v1158_v5  ;;  %1643 = vmatprep.mubr.msk.f32.mxu0 %vm1221_vm12, %v1190_v12  ;;  %v586_v35 = vsel %vm208_vm3, %v2334_v20, %v585_v9  ;;  %v920_v20 = vsel %vm208_vm3, %v2360_v33, %v919_v16  ;;  %v590_v5 = vrot.slane %v518_v47, 1  ;;  %v1027_v12 = vld [vmem:[#allocation2 + $0x130] sm:$0xff]  ;;  %v1152_v24 = vrot.slane %v1026_v6, 2 }
 0x104   :  { %425 = vrot.lane.b32.xlu1 %v409_v4, %s1761_s8  ;;  %v466_v33 = vsel %vm266_vm2, %v2380_v36, %v465_v32  ;;  %v976_v36 = vsel %vm266_vm2, %v2397_v13, %v975_v38  ;;  %v1096_v4 = vrot.slane %v1026_v6, 1 }
 0x105   :  { %v1104_v11 = vpop.permute.xlu0 %1103  ;;  %v420_v18 = vpop.permute.xlu1 %419  ;;  %v1153_v14 = vsel %vm266_vm2, %v977_v62, %v1152_v24 }
 0x106   :  { %1126 = vst.msk [vmem:[#allocation3 + $0x48] sm:$0xff] %vm617_vm10, %v1104_v11  ;;  %v519_v11 = vld [vmem:[#allocation2 + $0x98] sm:$0x3] }
 0x107   :  { %362 = vrot.lane.b32.xlu0 %v2426_v8, %s1760_s7  ;;  %441 = vst.msk [vmem:[#allocation3 + $0x18] sm:$0xff] %vm437_vm7, %v420_v18  ;;  %v591_v48 = vrot.slane %v519_v11, 1  ;;  %v1098_v18 = vrot.slane %v1027_v12, 1 }
 0x108   :  { %658 = vrot.lane.b32.xlu1 %v640_v15, %s1765_s0 }
 0x109   :  { %v242_v17 = vpop.permute.xlu0 %241  ;;  %v653_v25 = vpop.permute.xlu1 %652  ;;  %v592_v22 = vsel %vm208_vm3, %v590_v5, %v591_v48 }
 0x10a   :  { %262 = vst.msk [vmem:[#allocation3 + $0x20] sm:$0xff] %vm257_vm4, %v242_v17  ;;  %v1198_v26 = vld [vmem:[#allocation3 + $0x40] sm:$0xff]  ;;  %v1028_v17 = vld [vmem:[#allocation2 + $0x138] sm:$0x3] }
 0x10b   :  { %603 = vrot.lane.b32.xlu0 %v586_v35, %s1764_s15  ;;  %676 = vst.msk [vmem:[#allocation3 + $0x8] sm:$0xff] %vm674_vm11, %v653_v25  ;;  %1655 = vmatprep.mubr.msk.f32.mxu1 %vm1221_vm12, %v1198_v26  ;;  %v645_v35 = vrot.slane %v517_v1, 2  ;;  %v647_v25 = vrot.slane %v518_v47, 2  ;;  %v1154_v26 = vrot.slane %v1027_v12, 2 }
 0x10c   :  { %936 = vrot.lane.b32.xlu1 %v920_v20, %s1761_s8  ;;  %v1099_v20 = vrot.slane %v1028_v17, 1 }
 0x10d   :  { %v475_v52 = vpop.permute.xlu0 %474  ;;  %v931_v56 = vpop.permute.xlu1 %930 }
 0x10e   :  { %497 = vst.msk [vmem:[#allocation3 + $0x10] sm:$0xff] %vm494_vm8, %v475_v52  ;;  %v1100_v28 = vsel %vm208_vm3, %v1098_v18, %v1099_v20 }
 0x10f   :  { %874 = vrot.lane.b32.xlu0 %v2448_v23, %s1760_s7  ;;  %951 = vst.msk [vmem:[#allocation3 + $0x58] sm:$0xff] %vm437_vm7, %v931_v56 }
 0x110   :  { %1165 = vrot.lane.b32.xlu1 %v1147_v29, %s1765_s0  ;;  %v1155_v29 = vrot.slane %v1028_v17, 2 }
 0x111   :  { %v757_v34 = vpop.permute.xlu0 %756  ;;  %v1160_v45 = vpop.permute.xlu1 %1159 }
 0x112   :  { %776 = vst.msk [vmem:[#allocation3 + $0x60] sm:$0xff] %vm257_vm4, %v757_v34  ;;  %v1191_v49 = vld [vmem:[#allocation3 + $0x8] sm:$0xff]  ;;  %v1156_v56 = vsel %vm266_vm2, %v1154_v26, %v1155_v29 }
 0x113   :  { %1111 = vrot.lane.b32.xlu0 %v1094_v27, %s1764_s15  ;;  %1182 = vst.msk [vmem:[#allocation3 + $0x48] sm:$0xff] %vm674_vm11, %v1160_v45  ;;  %1644 = vmatmul.mubr.msk.f32.vlgmr.msra.gmra.mrb[0].mxu0 %vm1221_vm12, %v1191_v49  ;;  %v648_v27 = vrot.slane %v519_v11, 2 }
 0x114   :  { %482 = vrot.lane.b32.xlu1 %v466_v33, %s1762_s11 }
 0x115   :  { %v985_v44 = vpop.permute.xlu0 %984  ;;  %v300_v39 = vpop.permute.xlu1 %299  ;;  %v649_v34 = vsel %vm266_vm2, %v647_v25, %v648_v27 }
 0x116   :  { %1006 = vst.msk [vmem:[#allocation3 + $0x50] sm:$0xff] %vm494_vm8, %v985_v44 }
 0x117   :  { %427 = vrot.lane.b32.xlu0 %v412_v31, %s1761_s8  ;;  %320 = vst.msk [vmem:[#allocation3 + $0x20] sm:$0xff] %vm315_vm5, %v300_v39 }
 0x118   :  { %938 = vrot.lane.b32.xlu1 %v923_v50, %s1761_s8 }
 0x119   :  { %v244_v53 = vpop.permute.xlu0 %243  ;;  %v533_v61 = vpop.permute.xlu1 %532 }
 0x11a   :  { %263 = vst.msk [vmem:[#allocation3 + $0x28] sm:$0xff] %vm257_vm4, %v244_v53  ;;  %v1199_v46 = vld [vmem:[#allocation3 + $0x48] sm:$0xff] }
 0x11b   :  { %660 = vrot.lane.b32.xlu0 %v643_v59, %s1765_s0  ;;  %555 = vst.msk [vmem:[#allocation3 + $0x10] sm:$0xff] %vm552_vm9, %v533_v61  ;;  %1656 = vmatmul.mubr.msk.f32.vlgmr.msra.gmra.mrb[0].mxu1 %vm1221_vm12, %v1199_v46 }
 0x11c   :  { %1167 = vrot.lane.b32.xlu1 %v1150_v57, %s1765_s0 }
 0x11d   :  { %v477_v60 = vpop.permute.xlu0 %476  ;;  %v813_v0 = vpop.permute.xlu1 %812 }
 0x11e   :  { %498 = vst.msk [vmem:[#allocation3 + $0x18] sm:$0xff] %vm494_vm8, %v477_v60 }
 0x11f   :  { %992 = vrot.lane.b32.xlu0 %v976_v36, %s1762_s11  ;;  %832 = vst.msk [vmem:[#allocation3 + $0x60] sm:$0xff] %vm315_vm5, %v813_v0 }
 0x120   :  { %540 = vrot.lane.b32.xlu1 %v2426_v8, %s1763_s14  ;;  %v1097_v8 = vsel %vm208_vm3, %v921_v41, %v1096_v4 }
 0x121   :  { %v759_v13 = vpop.permute.xlu0 %758  ;;  %v1042_v3 = vpop.permute.xlu1 %1041 }
 0x122   :  { %777 = vst.msk [vmem:[#allocation3 + $0x68] sm:$0xff] %vm257_vm4, %v759_v13 }
 0x123   :  { %484 = vrot.lane.b32.xlu0 %v469_v63, %s1762_s11  ;;  %1063 = vst.msk [vmem:[#allocation3 + $0x50] sm:$0xff] %vm552_vm9, %v1042_v3 }
 0x124   :  { %1049 = vrot.lane.b32.xlu1 %v2448_v23, %s1763_s14  ;;  %v646_v23 = vsel %vm266_vm2, %v467_v55, %v645_v35 }
 0x125   :  { %v987_v21 = vpop.permute.xlu0 %986  ;;  %v357_v10 = vpop.permute.xlu1 %356 }
 0x126   :  { %1007 = vst.msk [vmem:[#allocation3 + $0x58] sm:$0xff] %vm494_vm8, %v987_v21 }
 0x127   :  { %994 = vrot.lane.b32.xlu0 %v979_v2, %s1762_s11  ;;  %377 = vst.msk [vmem:[#allocation3 + $0x20] sm:$0xff] %vm372_vm6, %v357_v10 }
 0x128   :  { %605 = vrot.lane.b32.xlu1 %v589_v7, %s1764_s15 }
 0x129   :  { %v302_v9 = vpop.permute.xlu0 %301  ;;  %v598_v16 = vpop.permute.xlu1 %597 }
 0x12a   :  { %321 = vst.msk [vmem:[#allocation3 + $0x28] sm:$0xff] %vm315_vm5, %v302_v9 }
 0x12b   :  { %542 = vrot.lane.b32.xlu0 %v518_v47, %s1763_s14  ;;  %620 = vst.msk [vmem:[#allocation3 + $0x10] sm:$0xff] %vm617_vm10, %v598_v16 }
 0x12c   :  { %1113 = vrot.lane.b32.xlu1 %v1097_v8, %s1764_s15 }
 0x12d   :  { %v535_v15 = vpop.permute.xlu0 %534  ;;  %v869_v52 = vpop.permute.xlu1 %868 }
 0x12e   :  { %556 = vst.msk [vmem:[#allocation3 + $0x18] sm:$0xff] %vm552_vm9, %v535_v15 }
 0x12f   :  { %1051 = vrot.lane.b32.xlu0 %v1027_v12, %s1763_s14  ;;  %888 = vst.msk [vmem:[#allocation3 + $0x60] sm:$0xff] %vm372_vm6, %v869_v52 }
 0x130   :  { %662 = vrot.lane.b32.xlu1 %v646_v23, %s1765_s0 }
 0x131   :  { %v815_v19 = vpop.permute.xlu0 %814  ;;  %v1106_v32 = vpop.permute.xlu1 %1105 }
 0x132   :  { %833 = vst.msk [vmem:[#allocation3 + $0x68] sm:$0xff] %vm315_vm5, %v815_v19 }
 0x133   :  { %607 = vrot.lane.b32.xlu0 %v592_v22, %s1764_s15  ;;  %1127 = vst.msk [vmem:[#allocation3 + $0x50] sm:$0xff] %vm617_vm10, %v1106_v32 }
 0x134   :  { %1169 = vrot.lane.b32.xlu1 %v1153_v14, %s1765_s0 }
 0x135   :  { %v1044_v30 = vpop.permute.xlu0 %1043  ;;  %v422_v41 = vpop.permute.xlu1 %421 }
 0x136   :  { %1064 = vst.msk [vmem:[#allocation3 + $0x58] sm:$0xff] %vm552_vm9, %v1044_v30 }
 0x137   :  { %1115 = vrot.lane.b32.xlu0 %v1100_v28, %s1764_s15  ;;  %442 = vst.msk [vmem:[#allocation3 + $0x20] sm:$0xff] %vm437_vm7, %v422_v41 }
 0x138   :  { %1171 = vrot.lane.b32.xlu1 %v1156_v56, %s1765_s0 }
 0x139   :  { %v359_v37 = vpop.permute.xlu0 %358  ;;  %v655_v33 = vpop.permute.xlu1 %654 }
 0x13a   :  { %378 = vst.msk [vmem:[#allocation3 + $0x28] sm:$0xff] %vm372_vm6, %v359_v37 }
 0x13b   :  { %664 = vrot.lane.b32.xlu0 %v649_v34, %s1765_s0  ;;  %677 = vst.msk [vmem:[#allocation3 + $0x10] sm:$0xff] %vm674_vm11, %v655_v33 }
 0x13d   :  { %v600_v31 = vpop.permute.xlu0 %599  ;;  %v933_v43 = vpop.permute.xlu1 %932 }
 0x13e   :  { %621 = vst.msk [vmem:[#allocation3 + $0x18] sm:$0xff] %vm617_vm10, %v600_v31 }
 0x13f   :  { %952 = vst.msk [vmem:[#allocation3 + $0x60] sm:$0xff] %vm437_vm7, %v933_v43 }
 0x141   :  { %v871_v42 = vpop.permute.xlu0 %870  ;;  %v1162_v45 = vpop.permute.xlu1 %1161 }
 0x142   :  { %889 = vst.msk [vmem:[#allocation3 + $0x68] sm:$0xff] %vm372_vm6, %v871_v42  ;;  %v1192_v49 = vld [vmem:[#allocation3 + $0x10] sm:$0xff] }
 0x143   :  { %1183 = vst.msk [vmem:[#allocation3 + $0x50] sm:$0xff] %vm674_vm11, %v1162_v45  ;;  %1646 = vmatprep.mubr.msk.f32.mxu0 %vm1221_vm12, %v1192_v49  ;;  %v2616_v49 = vld [vmem:[#allocation6] ss:$0 sm:$0xff] }
 0x145   :  { %v1108_v44 = vpop.permute.xlu0 %1107  ;;  %v424_v50 = vpop.permute.xlu1 %423 }
 0x146   :  { %1128 = vst.msk [vmem:[#allocation3 + $0x58] sm:$0xff] %vm617_vm10, %v1108_v44 }
 0x147   :  { %443 = vst.msk [vmem:[#allocation3 + $0x28] sm:$0xff] %vm437_vm7, %v424_v50 }
 0x149   :  { %v246_v59 = vpop.permute.xlu0 %245  ;;  %v657_v51 = vpop.permute.xlu1 %656 }
 0x14a   :  { %264 = vst.msk [vmem:[#allocation3 + $0x30] sm:$0xff] %vm257_vm4, %v246_v59  ;;  %v1200_v53 = vld [vmem:[#allocation3 + $0x50] sm:$0xff] }
 0x14b   :  { %678 = vst.msk [vmem:[#allocation3 + $0x18] sm:$0xff] %vm674_vm11, %v657_v51  ;;  %1658 = vmatprep.mubr.msk.f32.mxu1 %vm1221_vm12, %v1200_v53 }
 0x14d   :  { %v479_v38 = vpop.permute.xlu0 %478  ;;  %v935_v55 = vpop.permute.xlu1 %934 }
 0x14e   :  { %499 = vst.msk [vmem:[#allocation3 + $0x20] sm:$0xff] %vm494_vm8, %v479_v38 }
 0x14f   :  { %953 = vst.msk [vmem:[#allocation3 + $0x68] sm:$0xff] %vm437_vm7, %v935_v55 }
 0x151   :  { %v761_v39 = vpop.permute.xlu0 %760  ;;  %v1164_v57 = vpop.permute.xlu1 %1163 }
 0x152   :  { %778 = vst.msk [vmem:[#allocation3 + $0x70] sm:$0xff] %vm257_vm4, %v761_v39  ;;  %v1193_v58 = vld [vmem:[#allocation3 + $0x18] sm:$0xff] }
 0x153   :  { %1184 = vst.msk [vmem:[#allocation3 + $0x58] sm:$0xff] %vm674_vm11, %v1164_v57  ;;  %1647 = vmatmul.mubr.msk.f32.gmra.mrb[2].mxu0 %vm1221_vm12, %v1193_v58 }
 0x155   :  { %v989_v36 = vpop.permute.xlu0 %988  ;;  %v304_v61 = vpop.permute.xlu1 %303 }
 0x156   :  { %1008 = vst.msk [vmem:[#allocation3 + $0x60] sm:$0xff] %vm494_vm8, %v989_v36 }
 0x157   :  { %322 = vst.msk [vmem:[#allocation3 + $0x30] sm:$0xff] %vm315_vm5, %v304_v61 }
 0x159   :  { %v248_v60 = vpop.permute.xlu0 %247  ;;  %v537_v62 = vpop.permute.xlu1 %536 }
 0x15a   :  { %265 = vst.msk [vmem:[#allocation3 + $0x38] sm:$0xff] %vm257_vm4, %v248_v60  ;;  %v1201_v63 = vld [vmem:[#allocation3 + $0x58] sm:$0xff] }
 0x15b   :  { %557 = vst.msk [vmem:[#allocation3 + $0x20] sm:$0xff] %vm552_vm9, %v537_v62  ;;  %1659 = vmatmul.mubr.msk.f32.gmra.mrb[2].mxu1 %vm1221_vm12, %v1201_v63 }
 0x15d   :  { %v481_v46 = vpop.permute.xlu0 %480  ;;  %v817_v13 = vpop.permute.xlu1 %816 }
 0x15e   :  { %500 = vst.msk [vmem:[#allocation3 + $0x28] sm:$0xff] %vm494_vm8, %v481_v46 }
 0x15f   :  { %834 = vst.msk [vmem:[#allocation3 + $0x70] sm:$0xff] %vm315_vm5, %v817_v13 }
 0x161   :  { %v763_v54 = vpop.permute.xlu0 %762  ;;  %v1046_v1 = vpop.permute.xlu1 %1045 }
 0x162   :  { %779 = vst.msk [vmem:[#allocation3 + $0x78] sm:$0xff] %vm257_vm4, %v763_v54 }
 0x163   :  { %1065 = vst.msk [vmem:[#allocation3 + $0x60] sm:$0xff] %vm552_vm9, %v1046_v1 }
 0x165   :  { %v991_v0 = vpop.permute.xlu0 %990  ;;  %v361_v40 = vpop.permute.xlu1 %360 }
 0x166   :  { %1009 = vst.msk [vmem:[#allocation3 + $0x68] sm:$0xff] %vm494_vm8, %v991_v0 }
 0x167   :  { %379 = vst.msk [vmem:[#allocation3 + $0x30] sm:$0xff] %vm372_vm6, %v361_v40 }
 0x169   :  { %v306_v2 = vpop.permute.xlu0 %305  ;;  %v602_v3 = vpop.permute.xlu1 %601 }
 0x16a   :  { %323 = vst.msk [vmem:[#allocation3 + $0x38] sm:$0xff] %vm315_vm5, %v306_v2 }
 0x16b   :  { %622 = vst.msk [vmem:[#allocation3 + $0x20] sm:$0xff] %vm617_vm10, %v602_v3 }
 0x16d   :  { %v539_v21 = vpop.permute.xlu0 %538  ;;  %v873_v47 = vpop.permute.xlu1 %872 }
 0x16e   :  { %558 = vst.msk [vmem:[#allocation3 + $0x28] sm:$0xff] %vm552_vm9, %v539_v21 }
 0x16f   :  { %890 = vst.msk [vmem:[#allocation3 + $0x70] sm:$0xff] %vm372_vm6, %v873_v47 }
 0x171   :  { %v819_v6 = vpop.permute.xlu0 %818  ;;  %v1110_v4 = vpop.permute.xlu1 %1109 }
 0x172   :  { %835 = vst.msk [vmem:[#allocation3 + $0x78] sm:$0xff] %vm315_vm5, %v819_v6 }
 0x173   :  { %1129 = vst.msk [vmem:[#allocation3 + $0x60] sm:$0xff] %vm617_vm10, %v1110_v4 }
 0x175   :  { %v1048_v7 = vpop.permute.xlu0 %1047 }
 0x176   :  { %1066 = vst.msk [vmem:[#allocation3 + $0x68] sm:$0xff] %vm552_vm9, %v1048_v7  ;;  %v426_v10 = vpop.permute.xlu1 %425 }
 0x177   :  { %444 = vst.msk [vmem:[#allocation3 + $0x30] sm:$0xff] %vm437_vm7, %v426_v10 }
 0x179   :  { %v363_v9 = vpop.permute.xlu0 %362 }
 0x17a   :  { %380 = vst.msk [vmem:[#allocation3 + $0x38] sm:$0xff] %vm372_vm6, %v363_v9  ;;  %v659_v5 = vpop.permute.xlu1 %658 }
 0x17b   :  { %679 = vst.msk [vmem:[#allocation3 + $0x20] sm:$0xff] %vm674_vm11, %v659_v5 }
 0x17d   :  { %v604_v11 = vpop.permute.xlu0 %603 }
 0x17e   :  { %623 = vst.msk [vmem:[#allocation3 + $0x28] sm:$0xff] %vm617_vm10, %v604_v11  ;;  %v937_v8 = vpop.permute.xlu1 %936 }
 0x17f   :  { %954 = vst.msk [vmem:[#allocation3 + $0x70] sm:$0xff] %vm437_vm7, %v937_v8 }
 0x181   :  { %v875_v12 = vpop.permute.xlu0 %874 }
 0x182   :  { %891 = vst.msk [vmem:[#allocation3 + $0x78] sm:$0xff] %vm372_vm6, %v875_v12  ;;  %v1166_v35 = vpop.permute.xlu1 %1165  ;;  %v1194_v15 = vld [vmem:[#allocation3 + $0x20] sm:$0xff] }
 0x183   :  { %1185 = vst.msk [vmem:[#allocation3 + $0x60] sm:$0xff] %vm674_vm11, %v1166_v35  ;;  %1649 = vmatprep.mubr.msk.f32.mxu0 %vm1221_vm12, %v1194_v15 }
 0x185   :  { %v1112_v48 = vpop.permute.xlu0 %1111 }
 0x186   :  { %1130 = vst.msk [vmem:[#allocation3 + $0x68] sm:$0xff] %vm617_vm10, %v1112_v48  ;;  %v483_v17 = vpop.permute.xlu1 %482 }
 0x187   :  { %501 = vst.msk [vmem:[#allocation3 + $0x30] sm:$0xff] %vm494_vm8, %v483_v17 }
 0x189   :  { %v428_v16 = vpop.permute.xlu0 %427 }
 0x18a   :  { %445 = vst.msk [vmem:[#allocation3 + $0x38] sm:$0xff] %vm437_vm7, %v428_v16  ;;  %v939_v22 = vpop.permute.xlu1 %938  ;;  %v1202_v23 = vld [vmem:[#allocation3 + $0x60] sm:$0xff] }
 0x18b   :  { %955 = vst.msk [vmem:[#allocation3 + $0x78] sm:$0xff] %vm437_vm7, %v939_v22  ;;  %1661 = vmatprep.mubr.msk.f32.mxu1 %vm1221_vm12, %v1202_v23 }
 0x18d   :  { %v661_v18 = vpop.permute.xlu0 %660 }
 0x18e   :  { %680 = vst.msk [vmem:[#allocation3 + $0x28] sm:$0xff] %vm674_vm11, %v661_v18  ;;  %v1168_v24 = vpop.permute.xlu1 %1167 }
 0x18f   :  { %1186 = vst.msk [vmem:[#allocation3 + $0x68] sm:$0xff] %vm674_vm11, %v1168_v24 }
 0x191   :  { %v993_v20 = vpop.permute.xlu0 %992 }
 0x192   :  { %1010 = vst.msk [vmem:[#allocation3 + $0x70] sm:$0xff] %vm494_vm8, %v993_v20  ;;  %v541_v25 = vpop.permute.xlu1 %540 }
 0x193   :  { %559 = vst.msk [vmem:[#allocation3 + $0x30] sm:$0xff] %vm552_vm9, %v541_v25 }
 0x195   :  { %v485_v19 = vpop.permute.xlu0 %484  ;;  %v1195_v52 = vld [vmem:[#allocation3 + $0x28] sm:$0xff] }
 0x196   :  { %502 = vst.msk [vmem:[#allocation3 + $0x38] sm:$0xff] %vm494_vm8, %v485_v19  ;;  %1650 = vmatmul.mubr.msk.f32.gmra.mrb[4].mxu0 %vm1221_vm12, %v1195_v52  ;;  %v1050_v28 = vpop.permute.xlu1 %1049  ;;  %v1203_v14 = vld [vmem:[#allocation3 + $0x68] sm:$0xff] }
 0x197   :  { %1067 = vst.msk [vmem:[#allocation3 + $0x70] sm:$0xff] %vm552_vm9, %v1050_v28  ;;  %1662 = vmatmul.mubr.msk.f32.gmra.mrb[4].mxu1 %vm1221_vm12, %v1203_v14 }
 0x199   :  { %v995_v26 = vpop.permute.xlu0 %994 }
 0x19a   :  { %1011 = vst.msk [vmem:[#allocation3 + $0x78] sm:$0xff] %vm494_vm8, %v995_v26  ;;  %v606_v29 = vpop.permute.xlu1 %605 }
 0x19b   :  { %624 = vst.msk [vmem:[#allocation3 + $0x30] sm:$0xff] %vm617_vm10, %v606_v29 }
 0x19d   :  { %v543_v27 = vpop.permute.xlu0 %542 }
 0x19e   :  { %560 = vst.msk [vmem:[#allocation3 + $0x38] sm:$0xff] %vm552_vm9, %v543_v27  ;;  %v1114_v32 = vpop.permute.xlu1 %1113 }
 0x19f   :  { %1131 = vst.msk [vmem:[#allocation3 + $0x70] sm:$0xff] %vm617_vm10, %v1114_v32 }
 0x1a1   :  { %v1052_v30 = vpop.permute.xlu0 %1051 }
 0x1a2   :  { %1068 = vst.msk [vmem:[#allocation3 + $0x78] sm:$0xff] %vm552_vm9, %v1052_v30  ;;  %v663_v56 = vpop.permute.xlu1 %662 }
 0x1a3   :  { %681 = vst.msk [vmem:[#allocation3 + $0x30] sm:$0xff] %vm674_vm11, %v663_v56 }
 0x1a5   :  { %v608_v34 = vpop.permute.xlu0 %607 }
 0x1a6   :  { %625 = vst.msk [vmem:[#allocation3 + $0x38] sm:$0xff] %vm617_vm10, %v608_v34  ;;  %v1170_v41 = vpop.permute.xlu1 %1169 }
 0x1a7   :  { %1187 = vst.msk [vmem:[#allocation3 + $0x70] sm:$0xff] %vm674_vm11, %v1170_v41 }
 0x1a9   :  { %v1116_v37 = vpop.permute.xlu0 %1115 }
 0x1aa   :  { %1132 = vst.msk [vmem:[#allocation3 + $0x78] sm:$0xff] %vm617_vm10, %v1116_v37  ;;  %v1172_v33 = vpop.permute.xlu1 %1171  ;;  %v1196_v42 = vld [vmem:[#allocation3 + $0x30] sm:$0xff] }
 0x1ab   :  { %1188 = vst.msk [vmem:[#allocation3 + $0x78] sm:$0xff] %vm674_vm11, %v1172_v33  ;;  %1652 = vmatprep.mubr.msk.f32.mxu0 %vm1221_vm12, %v1196_v42 }
 0x1ad   :  { %v665_v31 = vpop.permute.xlu0 %664 }
 0x1ae   :  { %682 = vst.msk [vmem:[#allocation3 + $0x38] sm:$0xff] %vm674_vm11, %v665_v31  ;;  %v1204_v43 = vld [vmem:[#allocation3 + $0x70] sm:$0xff] }
 0x1af   :  { %1664 = vmatprep.mubr.msk.f32.mxu1 %vm1221_vm12, %v1204_v43 }
 0x1b2   :  { %v1205_v45 = vld [vmem:[#allocation3 + $0x78] sm:$0xff] }
 0x1b3   :  { %1665 = vmatmul.mubr.msk.f32.gmra.mrb[6].mxu1 %vm1221_vm12, %v1205_v45 }
 0x1b5   :  { %v1197_v44 = vld [vmem:[#allocation3 + $0x38] sm:$0xff] }
 0x1b6   :  { %1653 = vmatmul.mubr.msk.f32.gmra.mrb[6].mxu0 %vm1221_vm12, %v1197_v44 }
 0x1e6   :  { %v1645_v59 = vpop.f32.mrb[0].mxu0 }
 0x1e7   :  { %v1342_v50 = vadd.f32 %v1645_v59, %v2616_v49  ;;  %v1336_v38 = vpop.f32.mrb[1].mxu0 }
 0x1e8   :  { %v1337_v51 = vadd.f32 %v2616_v49, %v1336_v38 }
 0x1e9   :  { %v1416_v53 = vmax.f32 %v1342_v50, 0.0 }
 0x1ea   :  { %v1415_v39 = vmax.f32 %v1337_v51, 0.0 }
 0x1eb   :  { %1432 = vst.msk [vmem:[%s2781_s3 + $0x10] sm:$0xff] %vm41_vm0, %v1416_v53  ;;  %1449 = vrot.lane.b32.xlu1 %v1416_v53, %s1766_s21 }
 0x1ec   :  { %1431 = vst.msk [vmem:[%s2781_s3] sm:$0xff] %vm41_vm0, %v1415_v39  ;;  %1447 = vrot.lane.b32.xlu0 %v1415_v39, %s1766_s21 }
 0x1ee   :  { %v1657_v55 = vpop.f32.mrb[0].mxu1 }
 0x1ef   :  { %v1382_v36 = vadd.f32 %v1657_v55, %v2616_v49  ;;  %v1376_v57 = vpop.f32.mrb[1].mxu1 }
 0x1f0   :  { %v1377_v58 = vadd.f32 %v2616_v49, %v1376_v57 }
 0x1f1   :  { %v1424_v60 = vmax.f32 %v1382_v36, 0.0 }
 0x1f2   :  { %v1423_v61 = vmax.f32 %v1377_v58, 0.0 }
 0x1f3   :  { %1585 = vst.msk [vmem:[%s2781_s3 + $0x90] sm:$0xff] %vm41_vm0, %v1424_v60  ;;  %1499 = vrot.lane.b32.xlu1 %v1424_v60, %s1766_s21 }
 0x1f4   :  { %1584 = vst.msk [vmem:[%s2781_s3 + $0x80] sm:$0xff] %vm41_vm0, %v1423_v61  ;;  %1497 = vrot.lane.b32.xlu0 %v1423_v61, %s1766_s21 }
 0x226   :  { %v1648_v46 = vpop.f32.mrb[2].mxu0 }
 0x227   :  { %v1352_v62 = vadd.f32 %v1648_v46, %v2616_v49  ;;  %v1346_v63 = vpop.f32.mrb[3].mxu0 }
 0x228   :  { %v1347_v54 = vadd.f32 %v2616_v49, %v1346_v63 }
 0x229   :  { %v1418_v13 = vmax.f32 %v1352_v62, 0.0 }
 0x22a   :  { %v1417_v0 = vmax.f32 %v1347_v54, 0.0 }
 0x22b   :  { %1434 = vst.msk [vmem:[%s2781_s3 + $0x30] sm:$0xff] %vm41_vm0, %v1418_v13  ;;  %1453 = vrot.lane.b32.xlu1 %v1418_v13, %s1766_s21 }
 0x22c   :  { %1433 = vst.msk [vmem:[%s2781_s3 + $0x20] sm:$0xff] %vm41_vm0, %v1417_v0  ;;  %1451 = vrot.lane.b32.xlu0 %v1417_v0, %s1766_s21 }
 0x22e   :  { %v1660_v1 = vpop.f32.mrb[2].mxu1 }
 0x22f   :  { %v1392_v2 = vadd.f32 %v1660_v1, %v2616_v49  ;;  %v1386_v40 = vpop.f32.mrb[3].mxu1 }
 0x230   :  { %v1387_v21 = vadd.f32 %v2616_v49, %v1386_v40 }
 0x231   :  { %v1426_v3 = vmax.f32 %v1392_v2, 0.0 }
 0x232   :  { %v1425_v6 = vmax.f32 %v1387_v21, 0.0 }
 0x233   :  { %1587 = vst.msk [vmem:[%s2781_s3 + $0xb0] sm:$0xff] %vm41_vm0, %v1426_v3  ;;  %1503 = vrot.lane.b32.xlu1 %v1426_v3, %s1766_s21 }
 0x234   :  { %1586 = vst.msk [vmem:[%s2781_s3 + $0xa0] sm:$0xff] %vm41_vm0, %v1425_v6  ;;  %1501 = vrot.lane.b32.xlu0 %v1425_v6, %s1766_s21 }
 0x25d   :  { %v1450_v47 = vpop.permute.xlu1 %1449 }
 0x25e   :  { %1577 = vst.msk [vmem:[%s2781_s3 + $0x18] sm:$0xff] %vm41_vm0, %v1450_v47  ;;  %v1448_v7 = vpop.permute.xlu0 %1447 }
 0x25f   :  { %1576 = vst.msk [vmem:[%s2781_s3 + $0x8] sm:$0xff] %vm41_vm0, %v1448_v7 }
 0x265   :  { %v1500_v4 = vpop.permute.xlu1 %1499 }
 0x266   :  { %1593 = vst.msk [vmem:[%s2781_s3 + $0x98] sm:$0xff] %vm41_vm0, %v1500_v4  ;;  %v1498_v10 = vpop.permute.xlu0 %1497 }
 0x267   :  { %1592 = vst.msk [vmem:[%s2781_s3 + $0x88] sm:$0xff] %vm41_vm0, %v1498_v10 }
 0x269   :  { %v1651_v9 = vpop.f32.mrb[4].mxu0 }
 0x26a   :  { %v1362_v11 = vadd.f32 %v1651_v9, %v2616_v49  ;;  %v1356_v5 = vpop.f32.mrb[5].mxu0  ;;  %v1663_v35 = vpop.f32.mrb[4].mxu1 }
 0x26b   :  { %v1357_v12 = vadd.f32 %v2616_v49, %v1356_v5  ;;  %v1402_v15 = vadd.f32 %v1663_v35, %v2616_v49  ;;  %v1396_v16 = vpop.f32.mrb[5].mxu1 }
 0x26c   :  { %v1420_v8 = vmax.f32 %v1362_v11, 0.0  ;;  %v1397_v17 = vadd.f32 %v2616_v49, %v1396_v16 }
 0x26d   :  { %v1419_v48 = vmax.f32 %v1357_v12, 0.0  ;;  %v1428_v18 = vmax.f32 %v1402_v15, 0.0 }
 0x26e   :  { %1436 = vst.msk [vmem:[%s2781_s3 + $0x50] sm:$0xff] %vm41_vm0, %v1420_v8  ;;  %1457 = vrot.lane.b32.xlu1 %v1420_v8, %s1766_s21  ;;  %v1427_v22 = vmax.f32 %v1397_v17, 0.0 }
 0x26f   :  { %1435 = vst.msk [vmem:[%s2781_s3 + $0x40] sm:$0xff] %vm41_vm0, %v1419_v48  ;;  %1455 = vrot.lane.b32.xlu0 %v1419_v48, %s1766_s21  ;;  %1589 = vst.msk [vmem:[%s2781_s3 + $0xd0] sm:$0xff] %vm41_vm0, %v1428_v18 }
 0x270   :  { %1588 = vst.msk [vmem:[%s2781_s3 + $0xc0] sm:$0xff] %vm41_vm0, %v1427_v22 }
 0x272   :  { %1507 = vrot.lane.b32.xlu1 %v1428_v18, %s1766_s21 }
 0x273   :  { %1505 = vrot.lane.b32.xlu0 %v1427_v22, %s1766_s21 }
 0x286   :  { %v1666_v20 = vpop.f32.mrb[6].mxu1 }
 0x287   :  { %v1412_v52 = vadd.f32 %v1666_v20, %v2616_v49  ;;  %v1406_v25 = vpop.f32.mrb[7].mxu1 }
 0x288   :  { %v1407_v28 = vadd.f32 %v2616_v49, %v1406_v25 }
 0x289   :  { %v1654_v23 = vpop.f32.mrb[6].mxu0  ;;  %v1430_v27 = vmax.f32 %v1412_v52, 0.0 }
 0x28a   :  { %v1372_v24 = vadd.f32 %v1654_v23, %v2616_v49  ;;  %v1366_v19 = vpop.f32.mrb[7].mxu0  ;;  %v1429_v30 = vmax.f32 %v1407_v28, 0.0 }
 0x28b   :  { %v1367_v26 = vadd.f32 %v2616_v49, %v1366_v19  ;;  %1591 = vst.msk [vmem:[%s2781_s3 + $0xf0] sm:$0xff] %vm41_vm0, %v1430_v27 }
 0x28c   :  { %v1422_v14 = vmax.f32 %v1372_v24, 0.0  ;;  %1590 = vst.msk [vmem:[%s2781_s3 + $0xe0] sm:$0xff] %vm41_vm0, %v1429_v30 }
 0x28d   :  { %v1421_v29 = vmax.f32 %v1367_v26, 0.0 }
 0x28e   :  { %1438 = vst.msk [vmem:[%s2781_s3 + $0x70] sm:$0xff] %vm41_vm0, %v1422_v14  ;;  %1461 = vrot.lane.b32.xlu1 %v1422_v14, %s1766_s21 }
 0x28f   :  { %1437 = vst.msk [vmem:[%s2781_s3 + $0x60] sm:$0xff] %vm41_vm0, %v1421_v29  ;;  %1459 = vrot.lane.b32.xlu0 %v1421_v29, %s1766_s21 }
 0x292   :  { %1511 = vrot.lane.b32.xlu1 %v1430_v27, %s1766_s21 }
 0x293   :  { %1509 = vrot.lane.b32.xlu0 %v1429_v30, %s1766_s21 }
 0x29d   :  { %v1454_v32 = vpop.permute.xlu1 %1453 }
 0x29e   :  { %1579 = vst.msk [vmem:[%s2781_s3 + $0x38] sm:$0xff] %vm41_vm0, %v1454_v32  ;;  %v1452_v34 = vpop.permute.xlu0 %1451 }
 0x29f   :  { %1578 = vst.msk [vmem:[%s2781_s3 + $0x28] sm:$0xff] %vm41_vm0, %v1452_v34 }
 0x2a5   :  { %v1504_v56 = vpop.permute.xlu1 %1503 }
 0x2a6   :  { %1595 = vst.msk [vmem:[%s2781_s3 + $0xb8] sm:$0xff] %vm41_vm0, %v1504_v56  ;;  %v1502_v37 = vpop.permute.xlu0 %1501 }
 0x2a7   :  { %1594 = vst.msk [vmem:[%s2781_s3 + $0xa8] sm:$0xff] %vm41_vm0, %v1502_v37 }
 0x2e0   :  { %v1458_v41 = vpop.permute.xlu1 %1457 }
 0x2e1   :  { %1581 = vst.msk [vmem:[%s2781_s3 + $0x58] sm:$0xff] %vm41_vm0, %v1458_v41  ;;  %v1456_v31 = vpop.permute.xlu0 %1455 }
 0x2e2   :  { %1580 = vst.msk [vmem:[%s2781_s3 + $0x48] sm:$0xff] %vm41_vm0, %v1456_v31 }
 0x2e4   :  { %v1508_v33 = vpop.permute.xlu1 %1507 }
 0x2e5   :  { %1597 = vst.msk [vmem:[%s2781_s3 + $0xd8] sm:$0xff] %vm41_vm0, %v1508_v33  ;;  %v1506_v42 = vpop.permute.xlu0 %1505 }
 0x2e6   :  { %1596 = vst.msk [vmem:[%s2781_s3 + $0xc8] sm:$0xff] %vm41_vm0, %v1506_v42 }
 0x300   :  { %v1462_v43 = vpop.permute.xlu1 %1461 }
 0x301   :  { %1583 = vst.msk [vmem:[%s2781_s3 + $0x78] sm:$0xff] %vm41_vm0, %v1462_v43  ;;  %v1460_v44 = vpop.permute.xlu0 %1459 }
 0x302   :  { %1582 = vst.msk [vmem:[%s2781_s3 + $0x68] sm:$0xff] %vm41_vm0, %v1460_v44 }
 0x304   :  { %v1512_v45 = vpop.permute.xlu1 %1511 }
 0x305   :  { %1599 = vst.msk [vmem:[%s2781_s3 + $0xf8] sm:$0xff] %vm41_vm0, %v1512_v45  ;;  %v1510_v49 = vpop.permute.xlu0 %1509 }
 0x306   :  { %1598 = vst.msk [vmem:[%s2781_s3 + $0xe8] sm:$0xff] %vm41_vm0, %v1510_v49 }
 0x307   :  { %1534 = vsyncpa [#allocation5], 1 }
 0x308   :  { %1535 = vsyncpa [#allocation7], 1 }

// kernel: _lambda_.8
= control target key start
LH: loop header
LB: loop body
LE: loop exit
PB: predicated region body
PF: predicated region fallthrough
CT: control target
= control target key end

     0   :  { %8 = vsyncpa [#allocation5], 0  ;;  %s2874_s0 = inlined_call_operand.vmem [shape: f32[2,16,16,4], index: 0, kind: input, shape index: {}]   ;;  %s2875_s1 = inlined_call_operand.hbm [shape: f32[36,8], index: 1, kind: input, shape index: {}]   ;;  %s2876_s2 = inlined_call_operand.hbm [shape: f32[1,8], index: 2, kind: input, shape index: {}]   ;;  %s2877_s3 = inlined_call_operand.vmem [shape: f32[2,16,2,16,4], index: 3, kind: output, shape index: {}]  }
   0x1   :  { %9 = vsyncpa [#allocation7], 0  ;;  %s2039_s12 = smov 0   ;;  %s2041_s13 = smov 0  }
   0x2   :  { %s2043_s14 = smov 0   ;;  %s2045_s15 = smov 0  }
   0x3   :  { %s2047_s16 = smov 0  }
   0x4 LB: > { %s1699_s17 = sadd.s32 4294967295, %s2003_s16   ;;  %s24_s18 = sadd.s32 1, %s1995_s14  ;;  %s2003_s16 = sphi %s2047_s16, %s15_s16   ;;  %s1999_s15 = sphi %s2045_s15, %s2889_s15   ;;  %s1995_s14 = sphi %s2043_s14, %s2888_s14   ;;  %s1991_s13 = sphi %s2041_s13, %s2887_s13   ;;  %s1987_s12 = sphi %s2039_s12, %s2886_s12  }
   0x5   : > { %p25_p0 = scmp.ge.s32.totalorder %s24_s18, 2  ;;  %s27_s19 = sadd.s32 1, %s1999_s15 }
   0x6   : > { %p1701_p1 = scmp.ge.s32.totalorder %s2003_s16, 1  ;;  %p128_p2 = scmp.lt.s32.totalorder %s2003_s16, 5 }
   0x7   : > { %s2891_s18 = smov (%p25_p0, %s24_s18), 0  ;;  %s2893_s19 = smov (!%p25_p0, %s27_s19), %s1999_s15 }
   0x8   : > { %p2072_p3 = pnand %p1701_p1, %p128_p2  ;;  %p29_p4 = scmp.ge.s32.totalorder %s2893_s19, 2 }
   0x9   : > { %p2076_p5 = scmp.eq.s32.totalorder %s1699_s17, 0  ;;  %s2005_s22 = smov [#allocation4]  }
   0xa   : > { %s2881_s20 = scalar_select %p2072_p3, 1, 0 }
   0xb   : > { %s2882_s21 = scalar_select %p2076_p5, 1, 0 }
   0xc   : > { %p1836_p6 = pneg %p2072_p3  ;;  %s2895_s19 = smov (%p29_p4, %s2893_s19), 0 }
   0xd   : > { %s140_s23 = sshll.u32 %s2005_s22, 4  ;;  %s1901_s27 = scalar_lea.hbm %s2875_s1, 640  ;;  %s141_s23 = int_to_ptr.vmem [resolvable:$true] %s140_s23 }
   0xe   : > { %p2086_p7 = pnand %p2076_p5, %p1836_p6  ;;  %p1902_p8 = scmp.ne.s32.totalorder %s2875_s1, %s1901_s27 }
   0xf   : > { %p1908_p12 = scmp.lt.u32.totalorder %s1901_s27, %s2875_s1 }
  0x10   : > { %p1903_p9 = pneg %p2086_p7 }
  0x12   : > { %p1904_p10 = pnand %p1903_p9, %p1902_p8 }
  0x14   : > { %p1905_p11 = pneg %p1904_p10 }
  0x16   : > { %p1910_p13 = pnand %p1908_p12, %p1905_p11 }
  0x18   : > { %1913 = shalt.err (!%p1910_p13)
}
  0x19   : > { %s1914_s5 = scalar_lea.vmem %s141_s23, 640  ;;  %p1922_p4 = scmp.lt.s32.totalorder %s141_s23, %s141_s23 }
  0x1a   : > { %p1915_p0 = scmp.ne.s32.totalorder %s141_s23, %s1914_s5  ;;  %p1923_p6 = scmp.lt.s32.totalorder %s1914_s5, %s1914_s5 }
  0x1c   : > { %p1917_p1 = pnand %p1915_p0, %p1903_p9  ;;  %p1924_p5 = por %p1923_p6, %p1922_p4 }
  0x1e   : > { %p1918_p2 = pneg %p1917_p1 }
  0x20   : > { %p1925_p3 = pnand %p1924_p5, %p1918_p2 }
  0x22   : > { %1928 = shalt.err (!%p1925_p3)
}
  0x23   : > { %s2006_s6 = smov 128   ;;  %s2007_s7 = smov 8  }
  0x24   : > { %1839 = dma.hbm_to_vmem [thread:$0]  (!%p2086_p7), %s2875_s1, 640, %s141_s23, [#allocation5], %s2006_s6, %s2006_s6, %s2007_s7  }
  0x25   : > { %s2008_s10 = smov [#allocation6]   ;;  %s1929_s25 = scalar_lea.hbm %s2876_s2, 16 }
  0x26   : > { %s154_s11 = sshll.u32 %s2008_s10, 4  ;;  %p1930_p3 = scmp.ne.s32.totalorder %s2876_s2, %s1929_s25  ;;  %s155_s11 = int_to_ptr.vmem [resolvable:$true] %s154_s11 }
  0x27   : > { %p1936_p10 = scmp.lt.u32.totalorder %s1929_s25, %s2876_s2 }
  0x28   : > { %p1932_p5 = pnand %p1930_p3, %p1903_p9 }
  0x2a   : > { %p1933_p8 = pneg %p1932_p5 }
  0x2c   : > { %p1938_p11 = pnand %p1936_p10, %p1933_p8 }
  0x2e   : > { %1941 = shalt.err (!%p1938_p11)
}
  0x2f   : > { %s1942_s23 = scalar_lea.vmem %s155_s11, 16  ;;  %s1949_s30 = scalar_lea.vmem %s155_s11, 32 }
  0x30   : > { %p1943_p12 = scmp.ne.s32.totalorder %s155_s11, %s1942_s23  ;;  %p1950_p1 = scmp.lt.s32.totalorder %s155_s11, %s155_s11 }
  0x31   : > { %p1951_p2 = scmp.lt.s32.totalorder %s1949_s30, %s1942_s23 }
  0x32   : > { %p1945_p13 = pnand %p1943_p12, %p1903_p9 }
  0x33   : > { %p1952_p4 = por %p1951_p2, %p1950_p1 }
  0x34   : > { %p1946_p0 = pneg %p1945_p13 }
  0x36   : > { %p1953_p6 = pnand %p1952_p4, %p1946_p0 }
  0x38   : > { %1956 = shalt.err (!%p1953_p6)
}
  0x39   : > { %1842 = dma.hbm_to_vmem [thread:$0]  (!%p2086_p7), %s2876_s2, 16, %s155_s11, [#allocation7]  }
  0x3a   : > { %p2884_p3 = scmp.ne.s32.totalorder %s2881_s20, 0 }
  0x3b   : > { %p2885_p5 = scmp.ne.s32.totalorder (!%p2884_p3), %s2882_s21, 0 }
  0x3c   : > { %175 = sbr.rel (%p2884_p3) target bundleno = 829 (0x33d), region = 32 }
  0x43   : > { %1978 = dma.done.wait (%p2885_p5), [#allocation5], 640  }
  0x44   : > { %1980 = vsyncadd (%p2885_p5), [#allocation5], 4294966656 }
  0x45   : > { %1982 = dma.done.wait (%p2885_p5), [#allocation7], 16  }
  0x46   : > { %1984 = vsyncadd (%p2885_p5), [#allocation7], 4294967280  ;;  %vm225_vm0 = vcmask 31744   ;;  %vm228_vm1 = vcmask 25600   ;;  %p208_p9 = scmp.lt.s32.totalorder %s1991_s13, 1  ;;  %v2009_v0 = vmov 0.0  }
  0x47   : > { %230 = vst.msk [vmem:[#allocation2 + $0x18] sm:$0xff] %vm225_vm0, %v2009_v0  ;;  %226 = vst.msk [vmem:[#allocation2] sm:$0xff] %vm225_vm0, %v2009_v0  ;;  %s2174_s20 = sshll.u32 %s1987_s12, 3  ;;  %s1758_s24 = sshll.u32 %s1987_s12, 7 }
  0x48   : > { %227 = vst.msk [vmem:[#allocation2 + $0x8] sm:$0xff] %vm225_vm0, %v2009_v0  ;;  %231 = vst.msk [vmem:[#allocation2 + $0x20] sm:$0xff] %vm225_vm0, %v2009_v0  ;;  %s2897_s13 = smov (!%p208_p9, %s1991_s13), 1  ;;  %p216_p7 = scmp.lt.s32.totalorder %s2174_s20, 15 }
  0x49   : > { %233 = vst.msk [vmem:[#allocation2 + $0x30] sm:$0xff] %vm225_vm0, %v2009_v0  ;;  %234 = vst.msk [vmem:[#allocation2 + $0x38] sm:$0xff] %vm225_vm0, %v2009_v0  ;;  %s1757_s21 = sshll.u32 %s2897_s13, 8  ;;  %s1712_s9 = sshll.u32 %s2897_s13, 6 }
  0x4a   : > { %236 = vst.msk [vmem:[#allocation2 + $0x48] sm:$0xff] %vm225_vm0, %v2009_v0  ;;  %237 = vst.msk [vmem:[#allocation2 + $0x50] sm:$0xff] %vm225_vm0, %v2009_v0  ;;  %s2184_s8 = scalar_lea.vmem %s2874_s0, %s1757_s21  ;;  %p1716_p8 = scmp.le.s32.totalorder %s1987_s12, 0 }
  0x4b   : > { %239 = vst.msk [vmem:[#allocation2 + $0x60] sm:$0xff] %vm225_vm0, %v2009_v0  ;;  %240 = vst.msk [vmem:[#allocation2 + $0x68] sm:$0xff] %vm225_vm0, %v2009_v0  ;;  %s217_s10 = scalar_select %p216_p7, %s2174_s20, 15 }
  0x4c   : > { %242 = vst.msk [vmem:[#allocation2 + $0x78] sm:$0xff] %vm225_vm0, %v2009_v0  ;;  %243 = vst.msk [vmem:[#allocation2 + $0x80] sm:$0xff] %vm225_vm0, %v2009_v0  ;;  %s2188_s11 = scalar_lea.vmem %s2184_s8, %s1758_s24  ;;  %s1717_s28 = sadd.s32 (!%p1716_p8), 4294967295, %s2174_s20 }
  0x4d   : > { %245 = vst.msk [vmem:[#allocation2 + $0x90] sm:$0xff] %vm225_vm0, %v2009_v0  ;;  %246 = vst.msk [vmem:[#allocation2 + $0x98] sm:$0xff] %vm225_vm0, %v2009_v0  ;;  %s1711_s17 = sshll.u32 %s217_s10, 2  ;;  %v259_v1 = vld [vmem:[%s2188_s11] sm:$0xff]  ;;  %v260_v2 = vld [vmem:[%s2188_s11 + $0x8] sm:$0xff]  ;;  %p297_p10 = scmp.gt.s32.totalorder (!%p1716_p8), %s1717_s28, 0 }
  0x4e   : > { %248 = vst.msk [vmem:[#allocation2 + $0xa8] sm:$0xff] %vm225_vm0, %v2009_v0  ;;  %249 = vst.msk [vmem:[#allocation2 + $0xb0] sm:$0xff] %vm225_vm0, %v2009_v0  ;;  %v261_v3 = vld [vmem:[%s2188_s11 + $0x10] sm:$0xff]  ;;  %s220_s22 = sadd.s32 %s1712_s9, %s1711_s17  ;;  %v262_v4 = vld [vmem:[%s2188_s11 + $0x18] sm:$0xff] }
  0x4f   : > { %251 = vst.msk [vmem:[#allocation2 + $0xc0] sm:$0xff] %vm225_vm0, %v2009_v0  ;;  %252 = vst.msk [vmem:[#allocation2 + $0xc8] sm:$0xff] %vm225_vm0, %v2009_v0  ;;  %v263_v5 = vld [vmem:[%s2188_s11 + $0x20] sm:$0xff]  ;;  %v264_v6 = vld [vmem:[%s2188_s11 + $0x28] sm:$0xff]  ;;  %s1713_s13 = sshll.u32 %s220_s22, 3 }
  0x50   : > { %254 = vst.msk [vmem:[#allocation2 + $0xd8] sm:$0xff] %vm225_vm0, %v2009_v0  ;;  %255 = vst.msk [vmem:[#allocation2 + $0xe0] sm:$0xff] %vm225_vm0, %v2009_v0  ;;  %v265_v7 = vld [vmem:[%s2188_s11 + $0x30] sm:$0xff]  ;;  %v266_v8 = vld [vmem:[%s2188_s11 + $0x38] sm:$0xff]  ;;  %s2208_s27 = scalar_lea.vmem %s2877_s3, %s1713_s13 }
  0x51   : > { %232 = vst.msk [vmem:[#allocation2 + $0x28] sm:$0x3] %vm228_vm1, %v2009_v0  ;;  %229 = vst.msk [vmem:[#allocation2 + $0x10] sm:$0x3] %vm228_vm1, %v2009_v0  ;;  %v267_v9 = vld [vmem:[%s2188_s11 + $0x40] sm:$0xff]  ;;  %v268_v10 = vld [vmem:[%s2188_s11 + $0x48] sm:$0xff] }
  0x52   : > { %235 = vst.msk [vmem:[#allocation2 + $0x40] sm:$0x3] %vm228_vm1, %v2009_v0  ;;  %238 = vst.msk [vmem:[#allocation2 + $0x58] sm:$0x3] %vm228_vm1, %v2009_v0  ;;  %v269_v11 = vld [vmem:[%s2188_s11 + $0x50] sm:$0xff]  ;;  %v270_v12 = vld [vmem:[%s2188_s11 + $0x58] sm:$0xff] }
  0x53   : > { %241 = vst.msk [vmem:[#allocation2 + $0x70] sm:$0x3] %vm228_vm1, %v2009_v0  ;;  %244 = vst.msk [vmem:[#allocation2 + $0x88] sm:$0x3] %vm228_vm1, %v2009_v0  ;;  %v271_v13 = vld [vmem:[%s2188_s11 + $0x60] sm:$0xff]  ;;  %v272_v14 = vld [vmem:[%s2188_s11 + $0x68] sm:$0xff] }
  0x54   : > { %247 = vst.msk [vmem:[#allocation2 + $0xa0] sm:$0x3] %vm228_vm1, %v2009_v0  ;;  %250 = vst.msk [vmem:[#allocation2 + $0xb8] sm:$0x3] %vm228_vm1, %v2009_v0  ;;  %v273_v15 = vld [vmem:[%s2188_s11 + $0x70] sm:$0xff]  ;;  %v274_v16 = vld [vmem:[%s2188_s11 + $0x78] sm:$0xff] }
  0x55   : > { %253 = vst.msk [vmem:[#allocation2 + $0xd0] sm:$0x3] %vm228_vm1, %v2009_v0  ;;  %256 = vst.msk [vmem:[#allocation2 + $0xe8] sm:$0x3] %vm228_vm1, %v2009_v0 }
  0x56   : > { %276 = vst.msk [vmem:[#allocation2 + $0x19] sm:$0xff] %vm225_vm0, %v259_v1  ;;  %277 = vst.msk [vmem:[#allocation2 + $0x21] sm:$0xff] %vm225_vm0, %v260_v2 }
  0x57   : > { %278 = vst.msk [vmem:[#allocation2 + $0x31] sm:$0xff] %vm225_vm0, %v261_v3  ;;  %279 = vst.msk [vmem:[#allocation2 + $0x39] sm:$0xff] %vm225_vm0, %v262_v4  ;;  %295 = sbr.rel (%p1716_p8) target bundleno = 99 (0x63), region = 44 }
  0x58   : > { %280 = vst.msk [vmem:[#allocation2 + $0x49] sm:$0xff] %vm225_vm0, %v263_v5  ;;  %281 = vst.msk [vmem:[#allocation2 + $0x51] sm:$0xff] %vm225_vm0, %v264_v6 }
  0x59   : > { %282 = vst.msk [vmem:[#allocation2 + $0x61] sm:$0xff] %vm225_vm0, %v265_v7  ;;  %283 = vst.msk [vmem:[#allocation2 + $0x69] sm:$0xff] %vm225_vm0, %v266_v8 }
  0x5a   : > { %284 = vst.msk [vmem:[#allocation2 + $0x79] sm:$0xff] %vm225_vm0, %v267_v9  ;;  %285 = vst.msk [vmem:[#allocation2 + $0x81] sm:$0xff] %vm225_vm0, %v268_v10 }
  0x5b   : > { %286 = vst.msk [vmem:[#allocation2 + $0x91] sm:$0xff] %vm225_vm0, %v269_v11  ;;  %287 = vst.msk [vmem:[#allocation2 + $0x99] sm:$0xff] %vm225_vm0, %v270_v12 }
  0x5c   : > { %288 = vst.msk [vmem:[#allocation2 + $0xa9] sm:$0xff] %vm225_vm0, %v271_v13  ;;  %289 = vst.msk [vmem:[#allocation2 + $0xb1] sm:$0xff] %vm225_vm0, %v272_v14 }
  0x5d   : > { %290 = vst.msk [vmem:[#allocation2 + $0xc1] sm:$0xff] %vm225_vm0, %v273_v15  ;;  %291 = vst.msk [vmem:[#allocation2 + $0xc9] sm:$0xff] %vm225_vm0, %v274_v16 }
  0x5e   : > { %s2899_s28 = smov (!%p297_p10, %s1717_s28), 0 }
  0x5f   : > { %s1718_s29 = sshll.u32 %s2899_s28, 4 }
  0x60   : > { %s300_s23 = scalar_lea.vmem %s2184_s8, %s1718_s29 }
  0x61   : > { %v301_v17 = vld [vmem:[%s300_s23] sm:$0xff]  ;;  %v302_v18 = vld [vmem:[%s300_s23 + $0x8] sm:$0xff] }
  0x62   : > { %303 = vst.msk [vmem:[#allocation2 + $0x1] sm:$0xff] %vm225_vm0, %v301_v17  ;;  %304 = vst.msk [vmem:[#allocation2 + $0x9] sm:$0xff] %vm225_vm0, %v302_v18 }
  0x63 PF: > { %p1719_p11 = scmp.ge.s32.totalorder %s1987_s12, 1 }
  0x64   : > { %s309_s30 = sadd.s32 (!%p1719_p11), 8, %s2174_s20 }
  0x65   : > { %308 = sbr.rel (%p1719_p11) target bundleno = 113 (0x71), region = 48  ;;  %p310_p12 = scmp.lt.s32.totalorder (!%p1719_p11), %s309_s30, 15 }
  0x6c   : > { %s2901_s30 = smov (!%p310_p12, %s309_s30), 15 }
  0x6d   : > { %s1720_s4 = sshll.u32 %s2901_s30, 4 }
  0x6e   : > { %s313_s5 = scalar_lea.vmem %s2184_s8, %s1720_s4 }
  0x6f   : > { %v314_v19 = vld [vmem:[%s313_s5] sm:$0xff]  ;;  %v315_v20 = vld [vmem:[%s313_s5 + $0x8] sm:$0xff] }
  0x70   : > { %317 = vst.msk [vmem:[#allocation2 + $0xd9] sm:$0xff] %vm225_vm0, %v314_v19  ;;  %318 = vst.msk [vmem:[#allocation2 + $0xe1] sm:$0xff] %vm225_vm0, %v315_v20 }
  0x71 PF: > { %v319_v21 = vld [vmem:[#allocation2] sm:$0xff]  ;;  %v320_v22 = vld [vmem:[#allocation2 + $0x8] sm:$0xff]  ;;  %vm383_vm2 = vcmask 1046528   ;;  %v321_v23 = vld [vmem:[#allocation2 + $0x10] sm:$0x3]  ;;  %s2010_s12 = smov 4  }
  0x72   : > { %v384_v24 = vrot.slane %v319_v21, 1  ;;  %v385_v25 = vrot.slane %v320_v22, 1  ;;  %343 = vst.msk [vmem:[#allocation3] sm:$0xff] %vm225_vm0, %v319_v21  ;;  %344 = vst.msk [vmem:[#allocation3 + $0x8] sm:$0xff] %vm225_vm0, %v320_v22  ;;  %v387_v26 = vrot.slane %v321_v23, 1  ;;  %v2239_v27 = vld [vmem:[#allocation2 + $0x60] sm:$0xff] }
  0x73   : > { %v2241_v28 = vld [vmem:[#allocation2 + $0x68] sm:$0xff]  ;;  %v404_v29 = vrot.slane %v2239_v27, 1  ;;  %351 = vst.msk [vmem:[#allocation3 + $0x40] sm:$0xff] %vm225_vm0, %v2239_v27  ;;  %v333_v31 = vld [vmem:[#allocation2 + $0x70] sm:$0x3]  ;;  %v2253_v35 = vld [vmem:[#allocation2 + $0x18] sm:$0xff] }
  0x74   : > { %v2245_v30 = vrot.slane %v2241_v28, 1  ;;  %352 = vst.msk [vmem:[#allocation3 + $0x48] sm:$0xff] %vm225_vm0, %v2241_v28  ;;  %v386_v32 = vsel %vm383_vm2, %v384_v24, %v385_v25  ;;  %v388_v33 = vsel %vm383_vm2, %v385_v25, %v387_v26  ;;  %v407_v34 = vrot.slane %v333_v31, 1  ;;  %v2255_v36 = vld [vmem:[#allocation2 + $0x78] sm:$0xff]  ;;  %v596_v39 = vld [vmem:[#allocation2 + $0x20] sm:$0xff]  ;;  %345 = vst.msk [vmem:[#allocation3 + $0x10] sm:$0xff] %vm225_vm0, %v2253_v35 }
  0x75   : > { %424 = vrot.lane.b32.xlu0 %v386_v32, %s2010_s12  ;;  %426 = vrot.lane.b32.xlu1 %v388_v33, %s2010_s12  ;;  %v490_v37 = vrot.slane %v319_v21, 2  ;;  %v491_v38 = vrot.slane %v320_v22, 2  ;;  %v608_v40 = vld [vmem:[#allocation2 + $0x80] sm:$0xff]  ;;  %353 = vst.msk [vmem:[#allocation3 + $0x50] sm:$0xff] %vm225_vm0, %v2255_v36  ;;  %v510_v43 = vrot.slane %v2239_v27, 2  ;;  %v2271_v44 = vrot.slane %v2241_v28, 2 }
  0x76   : > { %v2265_v41 = vsel %vm383_vm2, %v404_v29, %v2245_v30  ;;  %v408_v42 = vsel %vm383_vm2, %v2245_v30, %v407_v34  ;;  %346 = vst.msk [vmem:[#allocation3 + $0x18] sm:$0xff] %vm225_vm0, %v596_v39  ;;  %354 = vst.msk [vmem:[#allocation3 + $0x58] sm:$0xff] %vm225_vm0, %v608_v40  ;;  %v2275_v45 = vld [vmem:[#allocation2 + $0x30] sm:$0xff]  ;;  %vm489_vm3 = vcmask 1045504   ;;  %v2284_v47 = vld [vmem:[#allocation2 + $0x38] sm:$0xff]  ;;  %v493_v50 = vrot.slane %v321_v23, 2 }
  0x77   : > { %347 = vst.msk [vmem:[#allocation3 + $0x20] sm:$0xff] %vm225_vm0, %v2275_v45  ;;  %v2282_v46 = vld [vmem:[#allocation2 + $0x90] sm:$0xff]  ;;  %v492_v48 = vsel %vm489_vm3, %v490_v37, %v491_v38  ;;  %v2289_v49 = vsel %vm489_vm3, %v510_v43, %v2271_v44  ;;  %v513_v51 = vrot.slane %v333_v31, 2  ;;  %v2291_v52 = vld [vmem:[#allocation2 + $0x98] sm:$0xff]  ;;  %348 = vst.msk [vmem:[#allocation3 + $0x28] sm:$0xff] %vm225_vm0, %v2284_v47  ;;  %s2011_s20 = smov 8  }
  0x78   : > { %355 = vst.msk [vmem:[#allocation3 + $0x60] sm:$0xff] %vm225_vm0, %v2282_v46  ;;  %356 = vst.msk [vmem:[#allocation3 + $0x68] sm:$0xff] %vm225_vm0, %v2291_v52  ;;  %v2299_v53 = vld [vmem:[#allocation2 + $0x48] sm:$0xff]  ;;  %v494_v54 = vsel %vm489_vm3, %v491_v38, %v493_v50  ;;  %v2311_v57 = vld [vmem:[#allocation2 + $0x50] sm:$0xff]  ;;  %s2012_s21 = smov 12   ;;  %v708_v59 = vrot.slane %v2253_v35, 1 }
  0x79   : > { %440 = vrot.lane.b32.xlu0 %v2265_v41, %s2010_s12  ;;  %442 = vrot.lane.b32.xlu1 %v408_v42, %s2010_s12  ;;  %349 = vst.msk [vmem:[#allocation3 + $0x30] sm:$0xff] %vm225_vm0, %v2299_v53  ;;  %v514_v55 = vsel %vm489_vm3, %v2271_v44, %v513_v51  ;;  %v2309_v56 = vld [vmem:[#allocation2 + $0xa8] sm:$0xff]  ;;  %v2313_v58 = vld [vmem:[#allocation2 + $0xb0] sm:$0xff]  ;;  %350 = vst.msk [vmem:[#allocation3 + $0x38] sm:$0xff] %vm225_vm0, %v2311_v57  ;;  %v728_v60 = vrot.slane %v2255_v36, 1  ;;  %v709_v61 = vrot.slane %v596_v39, 1 }
  0x7a   : > { %357 = vst.msk [vmem:[#allocation3 + $0x70] sm:$0xff] %vm225_vm0, %v2309_v56  ;;  %358 = vst.msk [vmem:[#allocation3 + $0x78] sm:$0xff] %vm225_vm0, %v2313_v58  ;;  %v729_v62 = vrot.slane %v608_v40, 1  ;;  %v597_v1 = vld [vmem:[#allocation2 + $0x28] sm:$0x3]  ;;  %s2013_s24 = smov 16  }
  0x7b   : > { %v710_v63 = vsel %vm383_vm2, %v708_v59, %v709_v61  ;;  %v609_v2 = vld [vmem:[#allocation2 + $0x88] sm:$0x3]  ;;  %v711_v3 = vrot.slane %v597_v1, 1  ;;  %v813_v5 = vrot.slane %v2253_v35, 2  ;;  %v833_v6 = vrot.slane %v2255_v36, 2  ;;  %s2014_s6 = smov 20  }
  0x7c   : > { %v730_v0 = vsel %vm383_vm2, %v728_v60, %v729_v62  ;;  %v731_v4 = vrot.slane %v609_v2, 1  ;;  %v814_v7 = vrot.slane %v596_v39, 2  ;;  %v834_v8 = vrot.slane %v608_v40, 2  ;;  %v324_v11 = vld [vmem:[#allocation2 + $0x28] sm:$0x3]  ;;  %s2015_s7 = smov 24  }
  0x7d   : > { %530 = vrot.lane.b32.xlu0 %v492_v48, %s2011_s20  ;;  %546 = vrot.lane.b32.xlu1 %v2289_v49, %s2011_s20  ;;  %v712_v9 = vsel %vm383_vm2, %v709_v61, %v711_v3  ;;  %v336_v12 = vld [vmem:[#allocation2 + $0x88] sm:$0x3]  ;;  %v392_v15 = vrot.slane %v324_v11, 1  ;;  %v816_v19 = vrot.slane %v597_v1, 2  ;;  %v836_v20 = vrot.slane %v609_v2, 2  ;;  %s2016_s8 = smov 28  }
  0x7e   : > { %v732_v10 = vsel %vm383_vm2, %v729_v62, %v731_v4  ;;  %v815_v13 = vsel %vm489_vm3, %v813_v5, %v814_v7  ;;  %v835_v14 = vsel %vm489_vm3, %v833_v6, %v834_v8  ;;  %v412_v16 = vrot.slane %v336_v12, 1  ;;  %v933_v37 = vld [vmem:[#allocation2 + $0xa0] sm:$0x3]  ;;  %s2017_s9 = smov 32   ;;  %v1263_v3 = vld [vmem:[#allocation4 + $0x20] sm:$0xf] }
  0x7f   : > { %v393_v17 = vsel %vm383_vm2, %v709_v61, %v392_v15  ;;  %v817_v21 = vsel %vm489_vm3, %v814_v7, %v816_v19  ;;  %v837_v22 = vsel %vm489_vm3, %v834_v8, %v836_v20  ;;  %v498_v23 = vrot.slane %v324_v11, 2  ;;  %v327_v6 = vld [vmem:[#allocation2 + $0x40] sm:$0x3]  ;;  %s2018_s10 = smov 124  }
  0x80   : > { %v413_v18 = vsel %vm383_vm2, %v729_v62, %v412_v16  ;;  %v518_v24 = vrot.slane %v336_v12, 2  ;;  %v1032_v29 = vrot.slane %v2275_v45, 1  ;;  %v1052_v31 = vrot.slane %v2282_v46, 1  ;;  %v1261_v62 = vld [vmem:[#allocation4 + $0x10] sm:$0xff] }
  0x81   : > { %532 = vrot.lane.b32.xlu0 %v494_v54, %s2011_s20  ;;  %548 = vrot.lane.b32.xlu1 %v514_v55, %s2011_s20  ;;  %v499_v25 = vsel %vm489_vm3, %v814_v7, %v498_v23  ;;  %v2372_v32 = vrot.slane %v2284_v47, 1  ;;  %v2375_v33 = vrot.slane %v2291_v52, 1  ;;  %v1157_v42 = vrot.slane %v2282_v46, 2  ;;  %v612_v54 = vld [vmem:[#allocation2 + $0xa0] sm:$0x3]  ;;  %v1260_v55 = vld [vmem:[#allocation4 + $0x8] sm:$0xff] }
  0x82   : > { %v519_v26 = vsel %vm489_vm3, %v834_v8, %v518_v24  ;;  %v2396_v43 = vrot.slane %v2284_v47, 2  ;;  %v2399_v48 = vrot.slane %v2291_v52, 2  ;;  %v736_v61 = vrot.slane %v612_v54, 1  ;;  %v339_v7 = vld [vmem:[#allocation2 + $0xa0] sm:$0x3] }
  0x83   : > { %v1034_v34 = vsel %vm383_vm2, %v1032_v29, %v2372_v32  ;;  %vm1319_vm4 = vcmask 1043456   ;;  %v1160_v5 = vrot.slane %v933_v37, 2  ;;  %v417_v11 = vrot.slane %v339_v7, 1 }
  0x84   : > { %v737_v2 = vsel %vm383_vm2, %v2375_v33, %v736_v61  ;;  %v841_v15 = vrot.slane %v612_v54, 2  ;;  %vm472_vm5 = vcmask 64544   ;;  %v523_v19 = vrot.slane %v339_v7, 2 }
  0x85   : > { %635 = vrot.lane.b32.xlu0 %v2253_v35, %s2012_s21  ;;  %651 = vrot.lane.b32.xlu1 %v2255_v36, %s2012_s21  ;;  %v1054_v35 = vsel %vm383_vm2, %v1052_v31, %v2375_v33  ;;  %v921_v36 = vld [vmem:[#allocation2 + $0x40] sm:$0x3]  ;;  %vm578_vm6 = vcmask 97344   ;;  %v1037_v31 = vrot.slane %v2299_v53, 1  ;;  %vm683_vm7 = vcmask 130144  }
  0x86   : > { %v1035_v38 = vrot.slane %v921_v36, 1  ;;  %v1140_v4 = vrot.slane %v921_v36, 2  ;;  %v524_v23 = vsel %vm489_vm3, %v2399_v48, %v523_v19  ;;  %vm796_vm8 = vcmask 162944  }
  0x87   : > { %v1142_v54 = vrot.slane %v2299_v53, 2  ;;  %vm901_vm9 = vcmask 195744   ;;  %vm1007_vm10 = vcmask 228544   ;;  %vm1120_vm11 = vcmask 261344  }
  0x88   : > { %v1036_v50 = vsel %vm383_vm2, %v2372_v32, %v1035_v38  ;;  %v1141_v8 = vsel %vm489_vm3, %v2396_v43, %v1140_v4  ;;  %vm1225_vm12 = vcmask 294144   ;;  %vm1270_vm13 = vcmask 293888  }
  0x89   : > { %637 = vrot.lane.b32.xlu0 %v596_v39, %s2012_s21  ;;  %653 = vrot.lane.b32.xlu1 %v608_v40, %s2012_s21  ;;  %v1055_v39 = vrot.slane %v933_v37, 1  ;;  %v1137_v40 = vrot.slane %v2275_v45, 2 }
  0x8b   : > { %v1056_v51 = vsel %vm383_vm2, %v2375_v33, %v1055_v39 }
  0x8d   : > { %748 = vrot.lane.b32.xlu0 %v710_v63, %s2013_s24  ;;  %764 = vrot.lane.b32.xlu1 %v730_v0, %s2013_s24 }
  0x91   : > { %428 = vrot.lane.b32.xlu0 %v710_v63, %s2010_s12  ;;  %444 = vrot.lane.b32.xlu1 %v730_v0, %s2010_s12  ;;  %v1262_v63 = vld [vmem:[#allocation4 + $0x18] sm:$0xff] }
  0x92   : > { %v1818_v0 = vpack.c.bf16 %v1262_v63, %v1261_v62 }
  0x95   : > { %750 = vrot.lane.b32.xlu0 %v712_v9, %s2013_s24  ;;  %766 = vrot.lane.b32.xlu1 %v732_v10, %s2013_s24  ;;  %v1161_v9 = vsel %vm489_vm3, %v2399_v48, %v1160_v5  ;;  %v397_v10 = vrot.slane %v327_v6, 1 }
  0x97   : > { %v398_v12 = vsel %vm383_vm2, %v2372_v32, %v397_v10 }
  0x99   : > { %853 = vrot.lane.b32.xlu0 %v815_v13, %s2014_s6  ;;  %869 = vrot.lane.b32.xlu1 %v835_v14, %s2014_s6 }
  0x9d   : > { %430 = vrot.lane.b32.xlu0 %v393_v17, %s2010_s12  ;;  %446 = vrot.lane.b32.xlu1 %v413_v18, %s2010_s12  ;;  %v842_v17 = vsel %vm489_vm3, %v2399_v48, %v841_v15  ;;  %v503_v18 = vrot.slane %v327_v6, 2  ;;  %v342_v15 = vld [vmem:[#allocation2 + $0xb8] sm:$0x3] }
  0x9e   : > { %v422_v19 = vrot.slane %v342_v15, 1 }
  0xa1   : > { %534 = vrot.lane.b32.xlu0 %v815_v13, %s2011_s20  ;;  %550 = vrot.lane.b32.xlu1 %v835_v14, %s2011_s20  ;;  %v418_v13 = vsel %vm383_vm2, %v2375_v33, %v417_v11  ;;  %v2466_v33 = vrot.slane %v2311_v57, 1 }
  0xa3   : > { %v1039_v37 = vsel %vm383_vm2, %v1037_v31, %v2466_v33 }
  0xa5   : > { %855 = vrot.lane.b32.xlu0 %v817_v21, %s2014_s6  ;;  %871 = vrot.lane.b32.xlu1 %v837_v22, %s2014_s6  ;;  %v504_v22 = vsel %vm489_vm3, %v2396_v43, %v503_v18 }
  0xa9   : > { %959 = vrot.lane.b32.xlu0 %v2275_v45, %s2015_s7  ;;  %975 = vrot.lane.b32.xlu1 %v2282_v46, %s2015_s7 }
  0xad   : > { %536 = vrot.lane.b32.xlu0 %v499_v25, %s2011_s20  ;;  %552 = vrot.lane.b32.xlu1 %v519_v26, %s2011_s20 }
  0xb1   : > { %639 = vrot.lane.b32.xlu0 %v2275_v45, %s2012_s21  ;;  %655 = vrot.lane.b32.xlu1 %v2282_v46, %s2012_s21  ;;  %v1139_v45 = vsel %vm489_vm3, %v1137_v40, %v2396_v43  ;;  %v1159_v46 = vsel %vm489_vm3, %v1157_v42, %v2399_v48  ;;  %v2485_v48 = vld [vmem:[#allocation2 + $0x58] sm:$0x3] }
  0xb2   : > { %v1145_v10 = vrot.slane %v2485_v48, 2 }
  0xb5   : > { %961 = vrot.lane.b32.xlu0 %v2284_v47, %s2015_s7  ;;  %977 = vrot.lane.b32.xlu1 %v2291_v52, %s2015_s7 }
  0xb9   : > { %1072 = vrot.lane.b32.xlu0 %v1034_v34, %s2016_s8  ;;  %1088 = vrot.lane.b32.xlu1 %v1054_v35, %s2016_s8 }
  0xbd   : > { %641 = vrot.lane.b32.xlu0 %v2284_v47, %s2012_s21  ;;  %657 = vrot.lane.b32.xlu1 %v2291_v52, %s2012_s21  ;;  %v600_v47 = vld [vmem:[#allocation2 + $0x40] sm:$0x3]  ;;  %v1259_v52 = vld [vmem:[#allocation4] sm:$0xff] }
  0xbe   : > { %v1814_v59 = vpack.c.bf16 %v1260_v55, %v1259_v52  ;;  %v716_v60 = vrot.slane %v600_v47, 1  ;;  %v821_v14 = vrot.slane %v600_v47, 2  ;;  %v1162_v52 = vrot.slane %v2309_v56, 2 }
  0xbf   : > { %v2504_v55 = vrot.slane %v2311_v57, 2 }
  0xc0   : > { %1815 = vmatprep.subr.bf16.mxu0 %v1814_v59  ;;  %1822 = vmatprep.subr.bf16.mxu1 %v1814_v59  ;;  %v717_v1 = vsel %vm383_vm2, %v2372_v32, %v716_v60  ;;  %v822_v16 = vsel %vm489_vm3, %v2396_v43, %v821_v14  ;;  %v1057_v32 = vrot.slane %v2309_v56, 1  ;;  %v330_v14 = vld [vmem:[#allocation2 + $0x58] sm:$0x3] }
  0xc1   : > { %752 = vrot.lane.b32.xlu0 %v1034_v34, %s2013_s24  ;;  %768 = vrot.lane.b32.xlu1 %v1054_v35, %s2013_s24  ;;  %v402_v18 = vrot.slane %v330_v14, 1 }
  0xc2   : > { %1817 = vmatpush3.bf16.msra.mxu0 %v1814_v59  ;;  %1825 = vmatpush3.bf16.msra.mxu1 %v1814_v59  ;;  %v2507_v59 = vrot.slane %v2313_v58, 2 }
  0xc3   : > { %1819 = vmatprep.subr.bf16.mxu0 %v1818_v0  ;;  %1823 = vmatprep.subr.bf16.mxu1 %v1818_v0 }
  0xc5   : > { %1074 = vrot.lane.b32.xlu0 %v1036_v50, %s2016_s8  ;;  %1090 = vrot.lane.b32.xlu1 %v1056_v51, %s2016_s8  ;;  %v2487_v50 = vld [vmem:[#allocation2 + $0xb8] sm:$0x3]  ;;  %v1040_v51 = vrot.slane %v2485_v48, 1 }
  0xc6   : > { %1821 = vmatpush3.bf16.msra.mxu0 %v1818_v0  ;;  %1826 = vmatpush3.bf16.msra.mxu1 %v1818_v0  ;;  %v603_v0 = vld [vmem:[#allocation2 + $0x58] sm:$0x3]  ;;  %v1165_v11 = vrot.slane %v2487_v50, 2 }
  0xc7   : > { %1788 = vmatprep.subr.msk.mxu0 %vm1319_vm4, %v1263_v3  ;;  %1824 = vmatprep.subr.msk.mxu1 %vm1319_vm4, %v1263_v3  ;;  %v1041_v60 = vsel %vm383_vm2, %v2466_v33, %v1040_v51 }
  0xc9   : > { %1177 = vrot.lane.b32.xlu0 %v1139_v45, %s2017_s9  ;;  %1193 = vrot.lane.b32.xlu1 %v1159_v46, %s2017_s9 }
  0xca   : > { %1789 = vmatpush3.msk.msra.mxu0 %vm1319_vm4, %v1263_v3  ;;  %1827 = vmatpush3.msk.msra.mxu1 %vm1319_vm4, %v1263_v3 }
  0xcd   : > { %432 = vrot.lane.b32.xlu0 %v1034_v34, %s2010_s12  ;;  %448 = vrot.lane.b32.xlu1 %v1054_v35, %s2010_s12  ;;  %v2469_v34 = vrot.slane %v2313_v58, 1 }
  0xcf   : > { %v1059_v38 = vsel %vm383_vm2, %v1057_v32, %v2469_v34 }
  0xd1   : > { %754 = vrot.lane.b32.xlu0 %v717_v1, %s2013_s24  ;;  %770 = vrot.lane.b32.xlu1 %v737_v2, %s2013_s24  ;;  %v615_v1 = vld [vmem:[#allocation2 + $0xb8] sm:$0x3]  ;;  %v721_v2 = vrot.slane %v603_v0, 1 }
  0xd2   : > { %v741_v3 = vrot.slane %v615_v1, 1 }
  0xd3   : > { %v722_v6 = vsel %vm383_vm2, %v2466_v33, %v721_v2 }
  0xd4   : > { %v742_v7 = vsel %vm383_vm2, %v2469_v34, %v741_v3 }
  0xd5   : > { %857 = vrot.lane.b32.xlu0 %v1139_v45, %s2014_s6  ;;  %873 = vrot.lane.b32.xlu1 %v1159_v46, %s2014_s6 }
  0xd9   : > { %1179 = vrot.lane.b32.xlu0 %v1141_v8, %s2017_s9  ;;  %1195 = vrot.lane.b32.xlu1 %v1161_v9, %s2017_s9 }
  0xdd   : > { %434 = vrot.lane.b32.xlu0 %v398_v12, %s2010_s12  ;;  %450 = vrot.lane.b32.xlu1 %v418_v13, %s2010_s12 }
  0xe1   : > { %538 = vrot.lane.b32.xlu0 %v1139_v45, %s2011_s20  ;;  %554 = vrot.lane.b32.xlu1 %v1159_v46, %s2011_s20  ;;  %v1060_v45 = vrot.slane %v2487_v50, 1 }
  0xe3   : > { %v1061_v61 = vsel %vm383_vm2, %v2469_v34, %v1060_v45 }
  0xe5   : > { %859 = vrot.lane.b32.xlu0 %v822_v16, %s2014_s6  ;;  %875 = vrot.lane.b32.xlu1 %v842_v17, %s2014_s6  ;;  %v1146_v16 = vsel %vm489_vm3, %v2504_v55, %v1145_v10  ;;  %v1166_v17 = vsel %vm489_vm3, %v2507_v59, %v1165_v11  ;;  %v618_v10 = vld [vmem:[#allocation2 + $0xd0] sm:$0x3] }
  0xe7   : > { %v425_v20 = vpop.permute.xlu0 %424  ;;  %v427_v21 = vpop.permute.xlu1 %426 }
  0xe8   : > { %473 = vst.msk [vmem:[#allocation3] sm:$0xff] %vm472_vm5, %v425_v20  ;;  %474 = vst.msk [vmem:[#allocation3 + $0x8] sm:$0xff] %vm472_vm5, %v427_v21 }
  0xe9   : > { %963 = vrot.lane.b32.xlu0 %v2299_v53, %s2015_s7  ;;  %979 = vrot.lane.b32.xlu1 %v2309_v56, %s2015_s7 }
  0xeb   : > { %v441_v24 = vpop.permute.xlu0 %440  ;;  %v443_v25 = vpop.permute.xlu1 %442 }
  0xec   : > { %481 = vst.msk [vmem:[#allocation3 + $0x40] sm:$0xff] %vm472_vm5, %v441_v24  ;;  %482 = vst.msk [vmem:[#allocation3 + $0x48] sm:$0xff] %vm472_vm5, %v443_v25 }
  0xed   : > { %540 = vrot.lane.b32.xlu0 %v504_v22, %s2011_s20  ;;  %556 = vrot.lane.b32.xlu1 %v524_v23, %s2011_s20  ;;  %v403_v22 = vsel %vm383_vm2, %v2466_v33, %v402_v18  ;;  %v423_v23 = vsel %vm383_vm2, %v2469_v34, %v422_v19 }
  0xef   : > { %v531_v26 = vpop.permute.xlu0 %530  ;;  %v547_v29 = vpop.permute.xlu1 %546 }
  0xf0   : > { %579 = vst.msk [vmem:[#allocation3] sm:$0xff] %vm578_vm6, %v531_v26  ;;  %587 = vst.msk [vmem:[#allocation3 + $0x40] sm:$0xff] %vm578_vm6, %v547_v29  ;;  %v826_v26 = vrot.slane %v603_v0, 2  ;;  %v846_v29 = vrot.slane %v615_v1, 2 }
  0xf1   : > { %643 = vrot.lane.b32.xlu0 %v2299_v53, %s2012_s21  ;;  %659 = vrot.lane.b32.xlu1 %v2309_v56, %s2012_s21  ;;  %v1144_v56 = vsel %vm489_vm3, %v1142_v54, %v2504_v55 }
  0xf2   : > { %v827_v33 = vsel %vm489_vm3, %v2504_v55, %v826_v26  ;;  %v847_v34 = vsel %vm489_vm3, %v2507_v59, %v846_v29 }
  0xf3   : > { %v533_v35 = vpop.permute.xlu0 %532  ;;  %v549_v36 = vpop.permute.xlu1 %548 }
  0xf4   : > { %580 = vst.msk [vmem:[#allocation3 + $0x8] sm:$0xff] %vm578_vm6, %v533_v35  ;;  %588 = vst.msk [vmem:[#allocation3 + $0x48] sm:$0xff] %vm578_vm6, %v549_v36 }
  0xf5   : > { %965 = vrot.lane.b32.xlu0 %v2311_v57, %s2015_s7  ;;  %981 = vrot.lane.b32.xlu1 %v2313_v58, %s2015_s7 }
  0xf7   : > { %v636_v39 = vpop.permute.xlu0 %635  ;;  %v652_v40 = vpop.permute.xlu1 %651 }
  0xf8   : > { %684 = vst.msk [vmem:[#allocation3] sm:$0xff] %vm683_vm7, %v636_v39  ;;  %692 = vst.msk [vmem:[#allocation3 + $0x40] sm:$0xff] %vm683_vm7, %v652_v40  ;;  %v528_v39 = vrot.slane %v342_v15, 2 }
  0xf9   : > { %1076 = vrot.lane.b32.xlu0 %v1039_v37, %s2016_s8  ;;  %1092 = vrot.lane.b32.xlu1 %v1059_v38, %s2016_s8 }
  0xfa   : > { %v529_v48 = vsel %vm489_vm3, %v2507_v59, %v528_v39 }
  0xfb   : > { %v638_v42 = vpop.permute.xlu0 %637  ;;  %v654_v43 = vpop.permute.xlu1 %653 }
  0xfc   : > { %685 = vst.msk [vmem:[#allocation3 + $0x8] sm:$0xff] %vm683_vm7, %v638_v42  ;;  %693 = vst.msk [vmem:[#allocation3 + $0x48] sm:$0xff] %vm683_vm7, %v654_v43 }
  0xfd   : > { %645 = vrot.lane.b32.xlu0 %v2311_v57, %s2012_s21  ;;  %661 = vrot.lane.b32.xlu1 %v2313_v58, %s2012_s21  ;;  %v1164_v57 = vsel %vm489_vm3, %v1162_v52, %v2507_v59 }
  0xff   : > { %v749_v46 = vpop.permute.xlu0 %748  ;;  %v765_v47 = vpop.permute.xlu1 %764 }
 0x100   : > { %797 = vst.msk [vmem:[#allocation3] sm:$0xff] %vm796_vm8, %v749_v46  ;;  %805 = vst.msk [vmem:[#allocation3 + $0x40] sm:$0xff] %vm796_vm8, %v765_v47  ;;  %v938_v47 = vld [vmem:[#allocation2 + $0xc8] sm:$0xff] }
 0x101   : > { %756 = vrot.lane.b32.xlu0 %v1039_v37, %s2013_s24  ;;  %772 = vrot.lane.b32.xlu1 %v1059_v38, %s2013_s24  ;;  %v1063_v52 = vrot.slane %v938_v47, 1  ;;  %v1168_v3 = vrot.slane %v938_v47, 2 }
 0x103   : > { %v429_v62 = vpop.permute.xlu0 %428  ;;  %v445_v53 = vpop.permute.xlu1 %444 }
 0x104   : > { %475 = vst.msk [vmem:[#allocation3 + $0x10] sm:$0xff] %vm472_vm5, %v429_v62  ;;  %483 = vst.msk [vmem:[#allocation3 + $0x50] sm:$0xff] %vm472_vm5, %v445_v53 }
 0x105   : > { %1078 = vrot.lane.b32.xlu0 %v1041_v60, %s2016_s8  ;;  %1094 = vrot.lane.b32.xlu1 %v1061_v61, %s2016_s8 }
 0x107   : > { %v751_v58 = vpop.permute.xlu0 %750  ;;  %v767_v63 = vpop.permute.xlu1 %766 }
 0x108   : > { %798 = vst.msk [vmem:[#allocation3 + $0x8] sm:$0xff] %vm796_vm8, %v751_v58  ;;  %806 = vst.msk [vmem:[#allocation3 + $0x48] sm:$0xff] %vm796_vm8, %v767_v63 }
 0x109   : > { %1181 = vrot.lane.b32.xlu0 %v1144_v56, %s2017_s9  ;;  %1197 = vrot.lane.b32.xlu1 %v1164_v57, %s2017_s9 }
 0x10b   : > { %v854_v4 = vpop.permute.xlu0 %853  ;;  %v870_v5 = vpop.permute.xlu1 %869 }
 0x10c   : > { %902 = vst.msk [vmem:[#allocation3] sm:$0xff] %vm901_vm9, %v854_v4  ;;  %910 = vst.msk [vmem:[#allocation3 + $0x40] sm:$0xff] %vm901_vm9, %v870_v5  ;;  %v606_v5 = vld [vmem:[#allocation2 + $0x70] sm:$0x3] }
 0x10d   : > { %436 = vrot.lane.b32.xlu0 %v1039_v37, %s2010_s12  ;;  %452 = vrot.lane.b32.xlu1 %v1059_v38, %s2010_s12  ;;  %v2571_v37 = vld [vmem:[#allocation2 + $0xc0] sm:$0xff]  ;;  %v508_v38 = vrot.slane %v330_v14, 2  ;;  %v726_v11 = vrot.slane %v606_v5, 1 }
 0x10e   : > { %v1062_v54 = vrot.slane %v2571_v37, 1  ;;  %v1167_v2 = vrot.slane %v2571_v37, 2 }
 0x10f   : > { %v431_v8 = vpop.permute.xlu0 %430  ;;  %v447_v9 = vpop.permute.xlu1 %446  ;;  %v509_v43 = vsel %vm489_vm3, %v2504_v55, %v508_v38  ;;  %v727_v15 = vsel %vm383_vm2, %v2245_v30, %v726_v11 }
 0x110   : > { %476 = vst.msk [vmem:[#allocation3 + $0x18] sm:$0xff] %vm472_vm5, %v431_v8  ;;  %484 = vst.msk [vmem:[#allocation3 + $0x58] sm:$0xff] %vm472_vm5, %v447_v9  ;;  %v1064_v60 = vsel %vm383_vm2, %v1062_v54, %v1063_v52 }
 0x111   : > { %758 = vrot.lane.b32.xlu0 %v722_v6, %s2013_s24  ;;  %774 = vrot.lane.b32.xlu1 %v742_v7, %s2013_s24 }
 0x113   : > { %v535_v12 = vpop.permute.xlu0 %534  ;;  %v551_v13 = vpop.permute.xlu1 %550 }
 0x114   : > { %581 = vst.msk [vmem:[#allocation3 + $0x10] sm:$0xff] %vm578_vm6, %v535_v12  ;;  %589 = vst.msk [vmem:[#allocation3 + $0x50] sm:$0xff] %vm578_vm6, %v551_v13  ;;  %v746_v12 = vrot.slane %v618_v10, 1 }
 0x115   : > { %861 = vrot.lane.b32.xlu0 %v1144_v56, %s2014_s6  ;;  %877 = vrot.lane.b32.xlu1 %v1164_v57, %s2014_s6 }
 0x117   : > { %v856_v20 = vpop.permute.xlu0 %855  ;;  %v872_v21 = vpop.permute.xlu1 %871 }
 0x118   : > { %903 = vst.msk [vmem:[#allocation3 + $0x8] sm:$0xff] %vm901_vm9, %v856_v20  ;;  %911 = vst.msk [vmem:[#allocation3 + $0x48] sm:$0xff] %vm901_vm9, %v872_v21 }
 0x119   : > { %1183 = vrot.lane.b32.xlu0 %v1146_v16, %s2017_s9  ;;  %1199 = vrot.lane.b32.xlu1 %v1166_v17, %s2017_s9  ;;  %v747_v16 = vsel %vm383_vm2, %v1063_v52, %v746_v12 }
 0x11b   : > { %v960_v24 = vpop.permute.xlu0 %959  ;;  %v976_v25 = vpop.permute.xlu1 %975 }
 0x11c   : > { %1008 = vst.msk [vmem:[#allocation3] sm:$0xff] %vm1007_vm10, %v960_v24  ;;  %1016 = vst.msk [vmem:[#allocation3 + $0x40] sm:$0xff] %vm1007_vm10, %v976_v25  ;;  %v831_v24 = vrot.slane %v606_v5, 2  ;;  %v851_v25 = vrot.slane %v618_v10, 2 }
 0x11d   : > { %438 = vrot.lane.b32.xlu0 %v403_v22, %s2010_s12  ;;  %454 = vrot.lane.b32.xlu1 %v423_v23, %s2010_s12 }
 0x11f   : > { %v537_v31 = vpop.permute.xlu0 %536  ;;  %v553_v32 = vpop.permute.xlu1 %552 }
 0x120   : > { %582 = vst.msk [vmem:[#allocation3 + $0x18] sm:$0xff] %vm578_vm6, %v537_v31  ;;  %590 = vst.msk [vmem:[#allocation3 + $0x58] sm:$0xff] %vm578_vm6, %v553_v32 }
 0x121   : > { %542 = vrot.lane.b32.xlu0 %v1144_v56, %s2011_s20  ;;  %558 = vrot.lane.b32.xlu1 %v1164_v57, %s2011_s20  ;;  %v927_v56 = vld [vmem:[#allocation2 + $0x70] sm:$0x3] }
 0x122   : > { %v939_v57 = vld [vmem:[#allocation2 + $0xd0] sm:$0x3]  ;;  %v1045_v58 = vrot.slane %v927_v56, 1  ;;  %v1150_v19 = vrot.slane %v927_v56, 2 }
 0x123   : > { %v640_v35 = vpop.permute.xlu0 %639  ;;  %v656_v36 = vpop.permute.xlu1 %655  ;;  %v1065_v63 = vrot.slane %v939_v57, 1  ;;  %v1170_v20 = vrot.slane %v939_v57, 2 }
 0x124   : > { %686 = vst.msk [vmem:[#allocation3 + $0x10] sm:$0xff] %vm683_vm7, %v640_v35  ;;  %694 = vst.msk [vmem:[#allocation3 + $0x50] sm:$0xff] %vm683_vm7, %v656_v36  ;;  %v928_v36 = vld [vmem:[#allocation2 + $0x78] sm:$0xff] }
 0x125   : > { %863 = vrot.lane.b32.xlu0 %v827_v33, %s2014_s6  ;;  %879 = vrot.lane.b32.xlu1 %v847_v34, %s2014_s6  ;;  %v1066_v4 = vsel %vm383_vm2, %v1063_v52, %v1065_v63  ;;  %v1171_v23 = vsel %vm489_vm3, %v1168_v3, %v1170_v20  ;;  %v852_v33 = vsel %vm489_vm3, %v1168_v3, %v851_v25 }
 0x127   : > { %v962_v40 = vpop.permute.xlu0 %961  ;;  %v978_v42 = vpop.permute.xlu1 %977 }
 0x128   : > { %1009 = vst.msk [vmem:[#allocation3 + $0x8] sm:$0xff] %vm1007_vm10, %v962_v40  ;;  %1017 = vst.msk [vmem:[#allocation3 + $0x48] sm:$0xff] %vm1007_vm10, %v978_v42  ;;  %v929_v40 = vld [vmem:[#allocation2 + $0x80] sm:$0xff] }
 0x129   : > { %967 = vrot.lane.b32.xlu0 %v2239_v27, %s2015_s7  ;;  %983 = vrot.lane.b32.xlu1 %v2571_v37, %s2015_s7  ;;  %v941_v42 = vld [vmem:[#allocation2 + $0xe0] sm:$0xff] }
 0x12a   : > { %v1173_v56 = vrot.slane %v941_v42, 2 }
 0x12b   : > { %v1073_v50 = vpop.permute.xlu0 %1072  ;;  %v1089_v51 = vpop.permute.xlu1 %1088 }
 0x12c   : > { %1121 = vst.msk [vmem:[#allocation3] sm:$0xff] %vm1120_vm11, %v1073_v50  ;;  %1129 = vst.msk [vmem:[#allocation3 + $0x40] sm:$0xff] %vm1120_vm11, %v1089_v51  ;;  %v1068_v50 = vrot.slane %v941_v42, 1 }
 0x12d   : > { %544 = vrot.lane.b32.xlu0 %v509_v43, %s2011_s20  ;;  %560 = vrot.lane.b32.xlu1 %v529_v48, %s2011_s20  ;;  %v1048_v48 = vrot.slane %v929_v40, 1 }
 0x12f   : > { %v642_v45 = vpop.permute.xlu0 %641  ;;  %v658_v46 = vpop.permute.xlu1 %657 }
 0x130   : > { %687 = vst.msk [vmem:[#allocation3 + $0x18] sm:$0xff] %vm683_vm7, %v642_v45  ;;  %695 = vst.msk [vmem:[#allocation3 + $0x58] sm:$0xff] %vm683_vm7, %v658_v46  ;;  %v930_v46 = vld [vmem:[#allocation2 + $0x88] sm:$0x3] }
 0x131   : > { %647 = vrot.lane.b32.xlu0 %v2239_v27, %s2012_s21  ;;  %663 = vrot.lane.b32.xlu1 %v2571_v37, %s2012_s21  ;;  %v940_v37 = vld [vmem:[#allocation2 + $0xd8] sm:$0xff] }
 0x132   : > { %v1067_v43 = vrot.slane %v940_v37, 1 }
 0x133   : > { %v753_v55 = vpop.permute.xlu0 %752  ;;  %v769_v59 = vpop.permute.xlu1 %768 }
 0x134   : > { %799 = vst.msk [vmem:[#allocation3 + $0x10] sm:$0xff] %vm796_vm8, %v753_v55  ;;  %807 = vst.msk [vmem:[#allocation3 + $0x50] sm:$0xff] %vm796_vm8, %v769_v59  ;;  %v1069_v52 = vsel %vm383_vm2, %v1067_v43, %v1068_v50  ;;  %v1050_v55 = vrot.slane %v930_v46, 1 }
 0x135   : > { %969 = vrot.lane.b32.xlu0 %v2241_v28, %s2015_s7  ;;  %985 = vrot.lane.b32.xlu1 %v938_v47, %s2015_s7 }
 0x136   : > { %v1051_v57 = vsel %vm383_vm2, %v1048_v48, %v1050_v55 }
 0x137   : > { %v1075_v27 = vpop.permute.xlu0 %1074  ;;  %v1091_v61 = vpop.permute.xlu1 %1090 }
 0x138   : > { %1122 = vst.msk [vmem:[#allocation3 + $0x8] sm:$0xff] %vm1120_vm11, %v1075_v27  ;;  %1130 = vst.msk [vmem:[#allocation3 + $0x48] sm:$0xff] %vm1120_vm11, %v1091_v61  ;;  %v1152_v61 = vrot.slane %v928_v36, 2 }
 0x139   : > { %1080 = vrot.lane.b32.xlu0 %v2265_v41, %s2016_s8  ;;  %1096 = vrot.lane.b32.xlu1 %v1064_v60, %s2016_s8 }
 0x13b   : > { %v1178_v62 = vpop.permute.xlu0 %1177  ;;  %v1194_v53 = vpop.permute.xlu1 %1193 }
 0x13c   : > { %1226 = vst.msk [vmem:[#allocation3] sm:$0xff] %vm1225_vm12, %v1178_v62  ;;  %1234 = vst.msk [vmem:[#allocation3 + $0x40] sm:$0xff] %vm1225_vm12, %v1194_v53  ;;  %v1172_v62 = vrot.slane %v940_v37, 2  ;;  %v1153_v53 = vrot.slane %v929_v40, 2 }
 0x13d   : > { %649 = vrot.lane.b32.xlu0 %v2241_v28, %s2012_s21  ;;  %665 = vrot.lane.b32.xlu1 %v938_v47, %s2012_s21  ;;  %v1046_v28 = vsel %vm383_vm2, %v2245_v30, %v1045_v58  ;;  %v1151_v30 = vsel %vm489_vm3, %v2271_v44, %v1150_v19  ;;  %v942_v47 = vld [vmem:[#allocation2 + $0xe8] sm:$0x3] }
 0x13e   : > { %v1070_v59 = vrot.slane %v942_v47, 1 }
 0x13f   : > { %v433_v0 = vpop.permute.xlu0 %432  ;;  %v449_v1 = vpop.permute.xlu1 %448 }
 0x140   : > { %477 = vst.msk [vmem:[#allocation3 + $0x20] sm:$0xff] %vm472_vm5, %v433_v0  ;;  %485 = vst.msk [vmem:[#allocation3 + $0x60] sm:$0xff] %vm472_vm5, %v449_v1  ;;  %v1071_v58 = vsel %vm383_vm2, %v1068_v50, %v1070_v59  ;;  %v1154_v1 = vsel %vm489_vm3, %v1152_v61, %v1153_v53 }
 0x141   : > { %760 = vrot.lane.b32.xlu0 %v2265_v41, %s2013_s24  ;;  %776 = vrot.lane.b32.xlu1 %v1064_v60, %s2013_s24  ;;  %v1169_v41 = vsel %vm489_vm3, %v1167_v2, %v1168_v3  ;;  %v1174_v2 = vsel %vm489_vm3, %v1172_v62, %v1173_v56  ;;  %v1155_v3 = vrot.slane %v930_v46, 2 }
 0x143   : > { %v755_v6 = vpop.permute.xlu0 %754  ;;  %v1243_v7 = vld [vmem:[#allocation3] sm:$0xff]  ;;  %v771_v8 = vpop.permute.xlu1 %770 }
 0x144   : > { %v1251_v9 = vld [vmem:[#allocation3 + $0x40] sm:$0xff]  ;;  %800 = vst.msk [vmem:[#allocation3 + $0x18] sm:$0xff] %vm796_vm8, %v755_v6  ;;  %1790 = vmatprep.mubr.msk.f32.mxu0 %vm1270_vm13, %v1243_v7  ;;  %808 = vst.msk [vmem:[#allocation3 + $0x58] sm:$0xff] %vm796_vm8, %v771_v8  ;;  %v1156_v6 = vsel %vm489_vm3, %v1153_v53, %v1155_v3 }
 0x145   : > { %1802 = vmatprep.mubr.msk.f32.mxu1 %vm1270_vm13, %v1251_v9  ;;  %1082 = vrot.lane.b32.xlu0 %v1046_v28, %s2016_s8  ;;  %v1175_v28 = vrot.slane %v942_v47, 2 }
 0x146   : > { %1098 = vrot.lane.b32.xlu1 %v1066_v4, %s2016_s8 }
 0x147   : > { %v858_v13 = vpop.permute.xlu0 %857  ;;  %v874_v14 = vpop.permute.xlu1 %873  ;;  %v1176_v7 = vsel %vm489_vm3, %v1173_v56, %v1175_v28 }
 0x148   : > { %904 = vst.msk [vmem:[#allocation3 + $0x10] sm:$0xff] %vm901_vm9, %v858_v13  ;;  %912 = vst.msk [vmem:[#allocation3 + $0x50] sm:$0xff] %vm901_vm9, %v874_v14 }
 0x149   : > { %1185 = vrot.lane.b32.xlu0 %v2289_v49, %s2017_s9 }
 0x14a   : > { %1201 = vrot.lane.b32.xlu1 %v1169_v41, %s2017_s9 }
 0x14b   : > { %v1180_v17 = vpop.permute.xlu0 %1179  ;;  %v1196_v18 = vpop.permute.xlu1 %1195 }
 0x14c   : > { %1227 = vst.msk [vmem:[#allocation3 + $0x8] sm:$0xff] %vm1225_vm12, %v1180_v17  ;;  %1235 = vst.msk [vmem:[#allocation3 + $0x48] sm:$0xff] %vm1225_vm12, %v1196_v18 }
 0x14d   : > { %762 = vrot.lane.b32.xlu0 %v727_v15, %s2013_s24 }
 0x14e   : > { %778 = vrot.lane.b32.xlu1 %v747_v16, %s2013_s24 }
 0x14f   : > { %v435_v21 = vpop.permute.xlu0 %434  ;;  %v451_v22 = vpop.permute.xlu1 %450 }
 0x150   : > { %478 = vst.msk [vmem:[#allocation3 + $0x28] sm:$0xff] %vm472_vm5, %v435_v21  ;;  %486 = vst.msk [vmem:[#allocation3 + $0x68] sm:$0xff] %vm472_vm5, %v451_v22 }
 0x151   : > { %865 = vrot.lane.b32.xlu0 %v2289_v49, %s2014_s6  ;;  %v832_v49 = vsel %vm489_vm3, %v2271_v44, %v831_v24  ;;  %v1047_v44 = vrot.slane %v928_v36, 1 }
 0x152   : > { %881 = vrot.lane.b32.xlu1 %v1169_v41, %s2014_s6 }
 0x153   : > { %v539_v26 = vpop.permute.xlu0 %538  ;;  %v1244_v29 = vld [vmem:[#allocation3 + $0x8] sm:$0xff]  ;;  %v555_v31 = vpop.permute.xlu1 %554  ;;  %v1049_v54 = vsel %vm383_vm2, %v1047_v44, %v1048_v48 }
 0x154   : > { %v1252_v32 = vld [vmem:[#allocation3 + $0x48] sm:$0xff]  ;;  %583 = vst.msk [vmem:[#allocation3 + $0x20] sm:$0xff] %vm578_vm6, %v539_v26  ;;  %1791 = vmatmul.mubr.msk.f32.vlgmr.msra.gmra.mrb[0].mxu0 %vm1270_vm13, %v1244_v29  ;;  %591 = vst.msk [vmem:[#allocation3 + $0x60] sm:$0xff] %vm578_vm6, %v555_v31 }
 0x155   : > { %1803 = vmatmul.mubr.msk.f32.vlgmr.msra.gmra.mrb[0].mxu1 %vm1270_vm13, %v1252_v32  ;;  %1187 = vrot.lane.b32.xlu0 %v1151_v30, %s2017_s9 }
 0x156   : > { %1203 = vrot.lane.b32.xlu1 %v1171_v23, %s2017_s9 }
 0x157   : > { %v860_v34 = vpop.permute.xlu0 %859  ;;  %v876_v35 = vpop.permute.xlu1 %875 }
 0x158   : > { %905 = vst.msk [vmem:[#allocation3 + $0x18] sm:$0xff] %vm901_vm9, %v860_v34  ;;  %913 = vst.msk [vmem:[#allocation3 + $0x58] sm:$0xff] %vm901_vm9, %v876_v35 }
 0x159   : > { %867 = vrot.lane.b32.xlu0 %v832_v49, %s2014_s6 }
 0x15a   : > { %883 = vrot.lane.b32.xlu1 %v852_v33, %s2014_s6 }
 0x15b   : > { %v964_v38 = vpop.permute.xlu0 %963  ;;  %v980_v39 = vpop.permute.xlu1 %979 }
 0x15c   : > { %1010 = vst.msk [vmem:[#allocation3 + $0x10] sm:$0xff] %vm1007_vm10, %v964_v38  ;;  %1018 = vst.msk [vmem:[#allocation3 + $0x50] sm:$0xff] %vm1007_vm10, %v980_v39 }
 0x15d   : > { %971 = vrot.lane.b32.xlu0 %v928_v36, %s2015_s7 }
 0x15e   : > { %987 = vrot.lane.b32.xlu1 %v940_v37, %s2015_s7 }
 0x15f   : > { %v541_v51 = vpop.permute.xlu0 %540  ;;  %v557_v45 = vpop.permute.xlu1 %556 }
 0x160   : > { %584 = vst.msk [vmem:[#allocation3 + $0x28] sm:$0xff] %vm578_vm6, %v541_v51  ;;  %592 = vst.msk [vmem:[#allocation3 + $0x68] sm:$0xff] %vm578_vm6, %v557_v45 }
 0x161   : > { %973 = vrot.lane.b32.xlu0 %v929_v40, %s2015_s7 }
 0x162   : > { %989 = vrot.lane.b32.xlu1 %v941_v42, %s2015_s7 }
 0x163   : > { %v644_v60 = vpop.permute.xlu0 %643  ;;  %v660_v27 = vpop.permute.xlu1 %659 }
 0x164   : > { %688 = vst.msk [vmem:[#allocation3 + $0x20] sm:$0xff] %vm683_vm7, %v644_v60  ;;  %696 = vst.msk [vmem:[#allocation3 + $0x60] sm:$0xff] %vm683_vm7, %v660_v27 }
 0x165   : > { %1084 = vrot.lane.b32.xlu0 %v1049_v54, %s2016_s8 }
 0x166   : > { %1100 = vrot.lane.b32.xlu1 %v1069_v52, %s2016_s8 }
 0x167   : > { %v966_v63 = vpop.permute.xlu0 %965  ;;  %v982_v0 = vpop.permute.xlu1 %981 }
 0x168   : > { %1011 = vst.msk [vmem:[#allocation3 + $0x18] sm:$0xff] %vm1007_vm10, %v966_v63  ;;  %1019 = vst.msk [vmem:[#allocation3 + $0x58] sm:$0xff] %vm1007_vm10, %v982_v0 }
 0x169   : > { %1086 = vrot.lane.b32.xlu0 %v1051_v57, %s2016_s8 }
 0x16a   : > { %1102 = vrot.lane.b32.xlu1 %v1071_v58, %s2016_s8 }
 0x16b   : > { %v1077_v4 = vpop.permute.xlu0 %1076  ;;  %v1093_v5 = vpop.permute.xlu1 %1092 }
 0x16c   : > { %1123 = vst.msk [vmem:[#allocation3 + $0x10] sm:$0xff] %vm1120_vm11, %v1077_v4  ;;  %1131 = vst.msk [vmem:[#allocation3 + $0x50] sm:$0xff] %vm1120_vm11, %v1093_v5 }
 0x16d   : > { %1189 = vrot.lane.b32.xlu0 %v1154_v1, %s2017_s9 }
 0x16e   : > { %1205 = vrot.lane.b32.xlu1 %v1174_v2, %s2017_s9 }
 0x16f   : > { %v646_v8 = vpop.permute.xlu0 %645  ;;  %v662_v9 = vpop.permute.xlu1 %661 }
 0x170   : > { %689 = vst.msk [vmem:[#allocation3 + $0x28] sm:$0xff] %vm683_vm7, %v646_v8  ;;  %697 = vst.msk [vmem:[#allocation3 + $0x68] sm:$0xff] %vm683_vm7, %v662_v9 }
 0x171   : > { %1191 = vrot.lane.b32.xlu0 %v1156_v6, %s2017_s9 }
 0x172   : > { %1207 = vrot.lane.b32.xlu1 %v1176_v7, %s2017_s9 }
 0x173   : > { %v757_v10 = vpop.permute.xlu0 %756  ;;  %v773_v41 = vpop.permute.xlu1 %772 }
 0x174   : > { %801 = vst.msk [vmem:[#allocation3 + $0x20] sm:$0xff] %vm796_vm8, %v757_v10  ;;  %809 = vst.msk [vmem:[#allocation3 + $0x60] sm:$0xff] %vm796_vm8, %v773_v41 }
 0x177   : > { %v1079_v11 = vpop.permute.xlu0 %1078  ;;  %v1095_v12 = vpop.permute.xlu1 %1094 }
 0x178   : > { %1124 = vst.msk [vmem:[#allocation3 + $0x18] sm:$0xff] %vm1120_vm11, %v1079_v11  ;;  %1132 = vst.msk [vmem:[#allocation3 + $0x58] sm:$0xff] %vm1120_vm11, %v1095_v12 }
 0x17b   : > { %v1182_v13 = vpop.permute.xlu0 %1181  ;;  %v1198_v14 = vpop.permute.xlu1 %1197 }
 0x17c   : > { %1228 = vst.msk [vmem:[#allocation3 + $0x10] sm:$0xff] %vm1225_vm12, %v1182_v13  ;;  %1236 = vst.msk [vmem:[#allocation3 + $0x50] sm:$0xff] %vm1225_vm12, %v1198_v14 }
 0x17f   : > { %v437_v15 = vpop.permute.xlu0 %436  ;;  %v453_v16 = vpop.permute.xlu1 %452 }
 0x180   : > { %479 = vst.msk [vmem:[#allocation3 + $0x30] sm:$0xff] %vm472_vm5, %v437_v15  ;;  %487 = vst.msk [vmem:[#allocation3 + $0x70] sm:$0xff] %vm472_vm5, %v453_v16  ;;  %v2761_v15 = vld [vmem:[#allocation6] ss:$0 sm:$0xff] }
 0x183   : > { %v759_v17 = vpop.permute.xlu0 %758  ;;  %v1245_v18 = vld [vmem:[#allocation3 + $0x10] sm:$0xff]  ;;  %v775_v19 = vpop.permute.xlu1 %774 }
 0x184   : > { %v1253_v20 = vld [vmem:[#allocation3 + $0x50] sm:$0xff]  ;;  %802 = vst.msk [vmem:[#allocation3 + $0x28] sm:$0xff] %vm796_vm8, %v759_v17  ;;  %1793 = vmatprep.mubr.msk.f32.mxu0 %vm1270_vm13, %v1245_v18  ;;  %810 = vst.msk [vmem:[#allocation3 + $0x68] sm:$0xff] %vm796_vm8, %v775_v19 }
 0x185   : > { %1805 = vmatprep.mubr.msk.f32.mxu1 %vm1270_vm13, %v1253_v20 }
 0x187   : > { %v862_v21 = vpop.permute.xlu0 %861  ;;  %v878_v22 = vpop.permute.xlu1 %877 }
 0x188   : > { %906 = vst.msk [vmem:[#allocation3 + $0x20] sm:$0xff] %vm901_vm9, %v862_v21  ;;  %914 = vst.msk [vmem:[#allocation3 + $0x60] sm:$0xff] %vm901_vm9, %v878_v22 }
 0x18b   : > { %v1184_v30 = vpop.permute.xlu0 %1183  ;;  %v1200_v23 = vpop.permute.xlu1 %1199 }
 0x18c   : > { %1229 = vst.msk [vmem:[#allocation3 + $0x18] sm:$0xff] %vm1225_vm12, %v1184_v30  ;;  %1237 = vst.msk [vmem:[#allocation3 + $0x58] sm:$0xff] %vm1225_vm12, %v1200_v23 }
 0x18f   : > { %v439_v24 = vpop.permute.xlu0 %438  ;;  %v455_v25 = vpop.permute.xlu1 %454 }
 0x190   : > { %480 = vst.msk [vmem:[#allocation3 + $0x38] sm:$0xff] %vm472_vm5, %v439_v24  ;;  %488 = vst.msk [vmem:[#allocation3 + $0x78] sm:$0xff] %vm472_vm5, %v455_v25 }
 0x193   : > { %v543_v26 = vpop.permute.xlu0 %542  ;;  %v1246_v29 = vld [vmem:[#allocation3 + $0x18] sm:$0xff]  ;;  %v559_v31 = vpop.permute.xlu1 %558 }
 0x194   : > { %v1254_v32 = vld [vmem:[#allocation3 + $0x58] sm:$0xff]  ;;  %585 = vst.msk [vmem:[#allocation3 + $0x30] sm:$0xff] %vm578_vm6, %v543_v26  ;;  %1794 = vmatmul.mubr.msk.f32.gmra.mrb[2].mxu0 %vm1270_vm13, %v1246_v29  ;;  %593 = vst.msk [vmem:[#allocation3 + $0x70] sm:$0xff] %vm578_vm6, %v559_v31 }
 0x195   : > { %1806 = vmatmul.mubr.msk.f32.gmra.mrb[2].mxu1 %vm1270_vm13, %v1254_v32 }
 0x197   : > { %v864_v49 = vpop.permute.xlu0 %863  ;;  %v880_v33 = vpop.permute.xlu1 %879 }
 0x198   : > { %907 = vst.msk [vmem:[#allocation3 + $0x28] sm:$0xff] %vm901_vm9, %v864_v49  ;;  %915 = vst.msk [vmem:[#allocation3 + $0x68] sm:$0xff] %vm901_vm9, %v880_v33 }
 0x19b   : > { %v968_v34 = vpop.permute.xlu0 %967  ;;  %v984_v35 = vpop.permute.xlu1 %983 }
 0x19c   : > { %1012 = vst.msk [vmem:[#allocation3 + $0x20] sm:$0xff] %vm1007_vm10, %v968_v34  ;;  %1020 = vst.msk [vmem:[#allocation3 + $0x60] sm:$0xff] %vm1007_vm10, %v984_v35 }
 0x19f   : > { %v545_v36 = vpop.permute.xlu0 %544  ;;  %v561_v37 = vpop.permute.xlu1 %560 }
 0x1a0   : > { %586 = vst.msk [vmem:[#allocation3 + $0x38] sm:$0xff] %vm578_vm6, %v545_v36  ;;  %594 = vst.msk [vmem:[#allocation3 + $0x78] sm:$0xff] %vm578_vm6, %v561_v37 }
 0x1a3   : > { %v648_v38 = vpop.permute.xlu0 %647  ;;  %v664_v39 = vpop.permute.xlu1 %663 }
 0x1a4   : > { %690 = vst.msk [vmem:[#allocation3 + $0x30] sm:$0xff] %vm683_vm7, %v648_v38  ;;  %698 = vst.msk [vmem:[#allocation3 + $0x70] sm:$0xff] %vm683_vm7, %v664_v39 }
 0x1a7   : > { %v970_v40 = vpop.permute.xlu0 %969  ;;  %v986_v42 = vpop.permute.xlu1 %985 }
 0x1a8   : > { %1013 = vst.msk [vmem:[#allocation3 + $0x28] sm:$0xff] %vm1007_vm10, %v970_v40  ;;  %1021 = vst.msk [vmem:[#allocation3 + $0x68] sm:$0xff] %vm1007_vm10, %v986_v42 }
 0x1ab   : > { %v1081_v44 = vpop.permute.xlu0 %1080  ;;  %v1097_v43 = vpop.permute.xlu1 %1096 }
 0x1ac   : > { %1125 = vst.msk [vmem:[#allocation3 + $0x20] sm:$0xff] %vm1120_vm11, %v1081_v44  ;;  %1133 = vst.msk [vmem:[#allocation3 + $0x60] sm:$0xff] %vm1120_vm11, %v1097_v43 }
 0x1af   : > { %v650_v48 = vpop.permute.xlu0 %649  ;;  %v666_v50 = vpop.permute.xlu1 %665 }
 0x1b0   : > { %691 = vst.msk [vmem:[#allocation3 + $0x38] sm:$0xff] %vm683_vm7, %v650_v48  ;;  %699 = vst.msk [vmem:[#allocation3 + $0x78] sm:$0xff] %vm683_vm7, %v666_v50 }
 0x1b3   : > { %v761_v51 = vpop.permute.xlu0 %760  ;;  %v777_v45 = vpop.permute.xlu1 %776 }
 0x1b4   : > { %803 = vst.msk [vmem:[#allocation3 + $0x30] sm:$0xff] %vm796_vm8, %v761_v51  ;;  %811 = vst.msk [vmem:[#allocation3 + $0x70] sm:$0xff] %vm796_vm8, %v777_v45 }
 0x1b7   : > { %v1083_v46 = vpop.permute.xlu0 %1082 }
 0x1b8   : > { %v1099_v47 = vpop.permute.xlu1 %1098  ;;  %1126 = vst.msk [vmem:[#allocation3 + $0x28] sm:$0xff] %vm1120_vm11, %v1083_v46 }
 0x1b9   : > { %1134 = vst.msk [vmem:[#allocation3 + $0x68] sm:$0xff] %vm1120_vm11, %v1099_v47 }
 0x1bb   : > { %v1186_v54 = vpop.permute.xlu0 %1185 }
 0x1bc   : > { %v1202_v52 = vpop.permute.xlu1 %1201  ;;  %1230 = vst.msk [vmem:[#allocation3 + $0x20] sm:$0xff] %vm1225_vm12, %v1186_v54 }
 0x1bd   : > { %1238 = vst.msk [vmem:[#allocation3 + $0x60] sm:$0xff] %vm1225_vm12, %v1202_v52 }
 0x1bf   : > { %v763_v55 = vpop.permute.xlu0 %762 }
 0x1c0   : > { %v779_v59 = vpop.permute.xlu1 %778  ;;  %804 = vst.msk [vmem:[#allocation3 + $0x38] sm:$0xff] %vm796_vm8, %v763_v55 }
 0x1c1   : > { %812 = vst.msk [vmem:[#allocation3 + $0x78] sm:$0xff] %vm796_vm8, %v779_v59 }
 0x1c3   : > { %v866_v60 = vpop.permute.xlu0 %865  ;;  %v1247_v27 = vld [vmem:[#allocation3 + $0x20] sm:$0xff] }
 0x1c4   : > { %v882_v61 = vpop.permute.xlu1 %881  ;;  %v1255_v62 = vld [vmem:[#allocation3 + $0x60] sm:$0xff]  ;;  %908 = vst.msk [vmem:[#allocation3 + $0x30] sm:$0xff] %vm901_vm9, %v866_v60  ;;  %1796 = vmatprep.mubr.msk.f32.mxu0 %vm1270_vm13, %v1247_v27 }
 0x1c5   : > { %916 = vst.msk [vmem:[#allocation3 + $0x70] sm:$0xff] %vm901_vm9, %v882_v61  ;;  %1808 = vmatprep.mubr.msk.f32.mxu1 %vm1270_vm13, %v1255_v62 }
 0x1c7   : > { %v1188_v53 = vpop.permute.xlu0 %1187 }
 0x1c8   : > { %v1204_v56 = vpop.permute.xlu1 %1203  ;;  %1231 = vst.msk [vmem:[#allocation3 + $0x28] sm:$0xff] %vm1225_vm12, %v1188_v53 }
 0x1c9   : > { %1239 = vst.msk [vmem:[#allocation3 + $0x68] sm:$0xff] %vm1225_vm12, %v1204_v56 }
 0x1cb   : > { %v868_v57 = vpop.permute.xlu0 %867 }
 0x1cc   : > { %v884_v58 = vpop.permute.xlu1 %883  ;;  %909 = vst.msk [vmem:[#allocation3 + $0x38] sm:$0xff] %vm901_vm9, %v868_v57 }
 0x1cd   : > { %917 = vst.msk [vmem:[#allocation3 + $0x78] sm:$0xff] %vm901_vm9, %v884_v58 }
 0x1cf   : > { %v972_v63 = vpop.permute.xlu0 %971  ;;  %v1248_v0 = vld [vmem:[#allocation3 + $0x28] sm:$0xff] }
 0x1d0   : > { %v988_v1 = vpop.permute.xlu1 %987  ;;  %v1256_v2 = vld [vmem:[#allocation3 + $0x68] sm:$0xff]  ;;  %1014 = vst.msk [vmem:[#allocation3 + $0x30] sm:$0xff] %vm1007_vm10, %v972_v63  ;;  %1797 = vmatmul.mubr.msk.f32.gmra.mrb[4].mxu0 %vm1270_vm13, %v1248_v0 }
 0x1d1   : > { %1022 = vst.msk [vmem:[#allocation3 + $0x70] sm:$0xff] %vm1007_vm10, %v988_v1  ;;  %1809 = vmatmul.mubr.msk.f32.gmra.mrb[4].mxu1 %vm1270_vm13, %v1256_v2 }
 0x1d3   : > { %v974_v3 = vpop.permute.xlu0 %973 }
 0x1d4   : > { %v990_v28 = vpop.permute.xlu1 %989  ;;  %1015 = vst.msk [vmem:[#allocation3 + $0x38] sm:$0xff] %vm1007_vm10, %v974_v3 }
 0x1d5   : > { %1023 = vst.msk [vmem:[#allocation3 + $0x78] sm:$0xff] %vm1007_vm10, %v990_v28 }
 0x1d7   : > { %v1085_v4 = vpop.permute.xlu0 %1084 }
 0x1d8   : > { %v1101_v5 = vpop.permute.xlu1 %1100  ;;  %1127 = vst.msk [vmem:[#allocation3 + $0x30] sm:$0xff] %vm1120_vm11, %v1085_v4 }
 0x1d9   : > { %1135 = vst.msk [vmem:[#allocation3 + $0x70] sm:$0xff] %vm1120_vm11, %v1101_v5 }
 0x1db   : > { %v1087_v6 = vpop.permute.xlu0 %1086 }
 0x1dc   : > { %v1103_v7 = vpop.permute.xlu1 %1102  ;;  %1128 = vst.msk [vmem:[#allocation3 + $0x38] sm:$0xff] %vm1120_vm11, %v1087_v6 }
 0x1dd   : > { %1136 = vst.msk [vmem:[#allocation3 + $0x78] sm:$0xff] %vm1120_vm11, %v1103_v7 }
 0x1df   : > { %v1190_v8 = vpop.permute.xlu0 %1189 }
 0x1e0   : > { %v1206_v9 = vpop.permute.xlu1 %1205  ;;  %1232 = vst.msk [vmem:[#allocation3 + $0x30] sm:$0xff] %vm1225_vm12, %v1190_v8 }
 0x1e1   : > { %1240 = vst.msk [vmem:[#allocation3 + $0x70] sm:$0xff] %vm1225_vm12, %v1206_v9 }
 0x1e3   : > { %v1192_v10 = vpop.permute.xlu0 %1191 }
 0x1e4   : > { %v1208_v41 = vpop.permute.xlu1 %1207  ;;  %1233 = vst.msk [vmem:[#allocation3 + $0x38] sm:$0xff] %vm1225_vm12, %v1192_v10 }
 0x1e5   : > { %1241 = vst.msk [vmem:[#allocation3 + $0x78] sm:$0xff] %vm1225_vm12, %v1208_v41 }
 0x1e7   : > { %v1249_v11 = vld [vmem:[#allocation3 + $0x30] sm:$0xff] }
 0x1e8   : > { %v1257_v12 = vld [vmem:[#allocation3 + $0x70] sm:$0xff]  ;;  %1799 = vmatprep.mubr.msk.f32.mxu0 %vm1270_vm13, %v1249_v11 }
 0x1e9   : > { %1811 = vmatprep.mubr.msk.f32.mxu1 %vm1270_vm13, %v1257_v12 }
 0x1eb   : > { %v1250_v13 = vld [vmem:[#allocation3 + $0x38] sm:$0xff] }
 0x1ec   : > { %v1258_v14 = vld [vmem:[#allocation3 + $0x78] sm:$0xff]  ;;  %1800 = vmatmul.mubr.msk.f32.gmra.mrb[6].mxu0 %vm1270_vm13, %v1250_v13 }
 0x1ed   : > { %1812 = vmatmul.mubr.msk.f32.gmra.mrb[6].mxu1 %vm1270_vm13, %v1258_v14 }
 0x227   : > { %v1792_v16 = vpop.f32.mrb[0].mxu0 }
 0x228   : > { %v1804_v17 = vpop.f32.mrb[0].mxu1  ;;  %v1395_v18 = vadd.f32 %v1792_v16, %v2761_v15  ;;  %v1389_v19 = vpop.f32.mrb[1].mxu0 }
 0x229   : > { %v1435_v20 = vadd.f32 %v1804_v17, %v2761_v15  ;;  %v1429_v21 = vpop.f32.mrb[1].mxu1  ;;  %v1390_v22 = vadd.f32 %v2761_v15, %v1389_v19 }
 0x22a   : > { %v1430_v30 = vadd.f32 %v2761_v15, %v1429_v21  ;;  %v1469_v23 = vmax.f32 %v1395_v18, 0.0 }
 0x22b   : > { %v1477_v24 = vmax.f32 %v1435_v20, 0.0  ;;  %v1468_v25 = vmax.f32 %v1390_v22, 0.0 }
 0x22c   : > { %v1476_v26 = vmax.f32 %v1430_v30, 0.0  ;;  %1485 = vst.msk [vmem:[%s2208_s27 + $0x8] sm:$0xff] %vm225_vm0, %v1469_v23  ;;  %1518 = vrot.lane.b32.xlu1 %v1469_v23, %s2018_s10 }
 0x22d   : > { %1493 = vst.msk [vmem:[%s2208_s27 + $0x88] sm:$0xff] %vm225_vm0, %v1477_v24  ;;  %1484 = vst.msk [vmem:[%s2208_s27] sm:$0xff] %vm225_vm0, %v1468_v25  ;;  %1516 = vrot.lane.b32.xlu0 %v1468_v25, %s2018_s10 }
 0x22e   : > { %1492 = vst.msk [vmem:[%s2208_s27 + $0x80] sm:$0xff] %vm225_vm0, %v1476_v26 }
 0x230   : > { %1534 = vrot.lane.b32.xlu1 %v1477_v24, %s2018_s10 }
 0x231   : > { %1532 = vrot.lane.b32.xlu0 %v1476_v26, %s2018_s10 }
 0x267   : > { %v1795_v29 = vpop.f32.mrb[2].mxu0 }
 0x268   : > { %v1807_v31 = vpop.f32.mrb[2].mxu1  ;;  %v1405_v32 = vadd.f32 %v1795_v29, %v2761_v15  ;;  %v1399_v49 = vpop.f32.mrb[3].mxu0 }
 0x269   : > { %v1445_v33 = vadd.f32 %v1807_v31, %v2761_v15  ;;  %v1439_v34 = vpop.f32.mrb[3].mxu1  ;;  %v1400_v35 = vadd.f32 %v2761_v15, %v1399_v49 }
 0x26a   : > { %v1440_v36 = vadd.f32 %v2761_v15, %v1439_v34  ;;  %v1471_v37 = vmax.f32 %v1405_v32, 0.0 }
 0x26b   : > { %v1479_v38 = vmax.f32 %v1445_v33, 0.0  ;;  %v1470_v39 = vmax.f32 %v1400_v35, 0.0 }
 0x26c   : > { %v1478_v40 = vmax.f32 %v1440_v36, 0.0  ;;  %1487 = vst.msk [vmem:[%s2208_s27 + $0x28] sm:$0xff] %vm225_vm0, %v1471_v37  ;;  %1522 = vrot.lane.b32.xlu1 %v1471_v37, %s2018_s10 }
 0x26d   : > { %1495 = vst.msk [vmem:[%s2208_s27 + $0xa8] sm:$0xff] %vm225_vm0, %v1479_v38  ;;  %1486 = vst.msk [vmem:[%s2208_s27 + $0x20] sm:$0xff] %vm225_vm0, %v1470_v39  ;;  %1520 = vrot.lane.b32.xlu0 %v1470_v39, %s2018_s10 }
 0x26e   : > { %1494 = vst.msk [vmem:[%s2208_s27 + $0xa0] sm:$0xff] %vm225_vm0, %v1478_v40 }
 0x270   : > { %1538 = vrot.lane.b32.xlu1 %v1479_v38, %s2018_s10 }
 0x271   : > { %1536 = vrot.lane.b32.xlu0 %v1478_v40, %s2018_s10 }
 0x29e   : > { %v1519_v42 = vpop.permute.xlu1 %1518 }
 0x29f   : > { %1740 = vst.msk [vmem:[%s2208_s27 + $0x18] sm:$0xff] %vm225_vm0, %v1519_v42  ;;  %v1517_v44 = vpop.permute.xlu0 %1516 }
 0x2a0   : > { %1739 = vst.msk [vmem:[%s2208_s27 + $0x10] sm:$0xff] %vm225_vm0, %v1517_v44 }
 0x2a2   : > { %v1535_v43 = vpop.permute.xlu1 %1534 }
 0x2a3   : > { %1748 = vst.msk [vmem:[%s2208_s27 + $0x98] sm:$0xff] %vm225_vm0, %v1535_v43  ;;  %v1798_v48 = vpop.f32.mrb[4].mxu0  ;;  %v1533_v50 = vpop.permute.xlu0 %1532 }
 0x2a4   : > { %v1415_v51 = vadd.f32 %v1798_v48, %v2761_v15  ;;  %1747 = vst.msk [vmem:[%s2208_s27 + $0x90] sm:$0xff] %vm225_vm0, %v1533_v50  ;;  %v1409_v45 = vpop.f32.mrb[5].mxu0  ;;  %v1810_v46 = vpop.f32.mrb[4].mxu1 }
 0x2a5   : > { %v1410_v47 = vadd.f32 %v2761_v15, %v1409_v45  ;;  %v1455_v54 = vadd.f32 %v1810_v46, %v2761_v15  ;;  %v1449_v52 = vpop.f32.mrb[5].mxu1 }
 0x2a6   : > { %v1473_v55 = vmax.f32 %v1415_v51, 0.0  ;;  %v1450_v59 = vadd.f32 %v2761_v15, %v1449_v52 }
 0x2a7   : > { %v1472_v60 = vmax.f32 %v1410_v47, 0.0  ;;  %v1481_v27 = vmax.f32 %v1455_v54, 0.0 }
 0x2a8   : > { %1489 = vst.msk [vmem:[%s2208_s27 + $0x48] sm:$0xff] %vm225_vm0, %v1473_v55  ;;  %v1480_v61 = vmax.f32 %v1450_v59, 0.0  ;;  %1526 = vrot.lane.b32.xlu1 %v1473_v55, %s2018_s10 }
 0x2a9   : > { %1488 = vst.msk [vmem:[%s2208_s27 + $0x40] sm:$0xff] %vm225_vm0, %v1472_v60  ;;  %1497 = vst.msk [vmem:[%s2208_s27 + $0xc8] sm:$0xff] %vm225_vm0, %v1481_v27  ;;  %1524 = vrot.lane.b32.xlu0 %v1472_v60, %s2018_s10 }
 0x2aa   : > { %1496 = vst.msk [vmem:[%s2208_s27 + $0xc0] sm:$0xff] %vm225_vm0, %v1480_v61 }
 0x2ac   : > { %1542 = vrot.lane.b32.xlu1 %v1481_v27, %s2018_s10 }
 0x2ad   : > { %1540 = vrot.lane.b32.xlu0 %v1480_v61, %s2018_s10 }
 0x2bf   : > { %v1801_v62 = vpop.f32.mrb[6].mxu0 }
 0x2c0   : > { %v1813_v53 = vpop.f32.mrb[6].mxu1  ;;  %v1425_v56 = vadd.f32 %v1801_v62, %v2761_v15  ;;  %v1419_v57 = vpop.f32.mrb[7].mxu0 }
 0x2c1   : > { %v1465_v58 = vadd.f32 %v1813_v53, %v2761_v15  ;;  %v1459_v63 = vpop.f32.mrb[7].mxu1  ;;  %v1420_v0 = vadd.f32 %v2761_v15, %v1419_v57 }
 0x2c2   : > { %v1460_v1 = vadd.f32 %v2761_v15, %v1459_v63  ;;  %v1475_v2 = vmax.f32 %v1425_v56, 0.0 }
 0x2c3   : > { %v1483_v3 = vmax.f32 %v1465_v58, 0.0  ;;  %v1474_v28 = vmax.f32 %v1420_v0, 0.0 }
 0x2c4   : > { %v1482_v4 = vmax.f32 %v1460_v1, 0.0  ;;  %1491 = vst.msk [vmem:[%s2208_s27 + $0x68] sm:$0xff] %vm225_vm0, %v1475_v2  ;;  %1530 = vrot.lane.b32.xlu1 %v1475_v2, %s2018_s10 }
 0x2c5   : > { %1499 = vst.msk [vmem:[%s2208_s27 + $0xe8] sm:$0xff] %vm225_vm0, %v1483_v3  ;;  %1490 = vst.msk [vmem:[%s2208_s27 + $0x60] sm:$0xff] %vm225_vm0, %v1474_v28  ;;  %1528 = vrot.lane.b32.xlu0 %v1474_v28, %s2018_s10 }
 0x2c6   : > { %1498 = vst.msk [vmem:[%s2208_s27 + $0xe0] sm:$0xff] %vm225_vm0, %v1482_v4 }
 0x2c8   : > { %1546 = vrot.lane.b32.xlu1 %v1483_v3, %s2018_s10 }
 0x2c9   : > { %1544 = vrot.lane.b32.xlu0 %v1482_v4, %s2018_s10 }
 0x2de   : > { %v1523_v5 = vpop.permute.xlu1 %1522 }
 0x2df   : > { %1742 = vst.msk [vmem:[%s2208_s27 + $0x38] sm:$0xff] %vm225_vm0, %v1523_v5  ;;  %v1521_v6 = vpop.permute.xlu0 %1520 }
 0x2e0   : > { %1741 = vst.msk [vmem:[%s2208_s27 + $0x30] sm:$0xff] %vm225_vm0, %v1521_v6 }
 0x2e2   : > { %v1539_v7 = vpop.permute.xlu1 %1538 }
 0x2e3   : > { %1750 = vst.msk [vmem:[%s2208_s27 + $0xb8] sm:$0xff] %vm225_vm0, %v1539_v7  ;;  %v1537_v8 = vpop.permute.xlu0 %1536 }
 0x2e4   : > { %1749 = vst.msk [vmem:[%s2208_s27 + $0xb0] sm:$0xff] %vm225_vm0, %v1537_v8 }
 0x31a   : > { %v1527_v9 = vpop.permute.xlu1 %1526 }
 0x31b   : > { %1744 = vst.msk [vmem:[%s2208_s27 + $0x58] sm:$0xff] %vm225_vm0, %v1527_v9  ;;  %v1525_v10 = vpop.permute.xlu0 %1524 }
 0x31c   : > { %1743 = vst.msk [vmem:[%s2208_s27 + $0x50] sm:$0xff] %vm225_vm0, %v1525_v10 }
 0x31e   : > { %v1543_v41 = vpop.permute.xlu1 %1542 }
 0x31f   : > { %1752 = vst.msk [vmem:[%s2208_s27 + $0xd8] sm:$0xff] %vm225_vm0, %v1543_v41  ;;  %v1541_v11 = vpop.permute.xlu0 %1540 }
 0x320   : > { %1751 = vst.msk [vmem:[%s2208_s27 + $0xd0] sm:$0xff] %vm225_vm0, %v1541_v11 }
 0x336   : > { %v1531_v12 = vpop.permute.xlu1 %1530 }
 0x337   : > { %1746 = vst.msk [vmem:[%s2208_s27 + $0x78] sm:$0xff] %vm225_vm0, %v1531_v12  ;;  %v1529_v13 = vpop.permute.xlu0 %1528 }
 0x338   : > { %1745 = vst.msk [vmem:[%s2208_s27 + $0x70] sm:$0xff] %vm225_vm0, %v1529_v13 }
 0x33a   : > { %v1547_v14 = vpop.permute.xlu1 %1546 }
 0x33b   : > { %1754 = vst.msk [vmem:[%s2208_s27 + $0xf8] sm:$0xff] %vm225_vm0, %v1547_v14  ;;  %v1545_v15 = vpop.permute.xlu0 %1544 }
 0x33c   : > { %1753 = vst.msk [vmem:[%s2208_s27 + $0xf0] sm:$0xff] %vm225_vm0, %v1545_v15 }
 0x33d PF: > { %s15_s16 = sadd.s32 1, %s2003_s16   ;;  %s2886_s12 = smov %s1995_s14 }
 0x33e   : > { %p12_p13 = scmp.ge.s32.totalorder %s15_s16, 6   ;;  %s2887_s13 = smov %s1999_s15 }
 0x33f   : > { %s2888_s14 = smov %s2891_s18  ;;  %s2889_s15 = smov %s2895_s19 }
 0x340   :  { %14 = sbr.rel (!%p12_p13) target bundleno = 4 (0x4), region = 86 }
 0x347   :  { %1613 = vsyncpa [#allocation5], 1 }
 0x348   :  { %1615 = vsyncpa [#allocation5 + $0x1], 1 }
 0x349   :  { %1616 = vsyncpa [#allocation7], 1 }

// kernel: _lambda_.9
= control target key start
LH: loop header
LB: loop body
LE: loop exit
PB: predicated region body
PF: predicated region fallthrough
CT: control target
= control target key end

     0   :  { %8 = vsyncpa [#allocation5], 0  ;;  %s5153_s0 = inlined_call_operand.vmem [shape: f32[2,32,32,2], index: 0, kind: input, shape index: {}]   ;;  %s5154_s1 = inlined_call_operand.hbm [shape: f32[18,12], index: 1, kind: input, shape index: {}]   ;;  %s5155_s2 = inlined_call_operand.hbm [shape: f32[1,12], index: 2, kind: input, shape index: {}]   ;;  %s5156_s3 = inlined_call_operand.vmem [shape: f32[2,32,2,32,6], index: 3, kind: output, shape index: {}]  }
   0x1   :  { %9 = vsyncpa [#allocation7], 0  ;;  %s3233_s12 = smov 0   ;;  %s3235_s13 = smov 0  }
   0x2   :  { %s3237_s14 = smov 0   ;;  %s3239_s15 = smov 0  }
   0x3   :  { %s3241_s16 = smov 0  }
   0x4 LB: > { %s2830_s17 = sadd.s32 4294967295, %s3197_s16   ;;  %s24_s18 = sadd.s32 1, %s3189_s14  ;;  %s3197_s16 = sphi %s3241_s16, %s15_s16   ;;  %s3193_s15 = sphi %s3239_s15, %s5253_s15   ;;  %s3189_s14 = sphi %s3237_s14, %s5252_s14   ;;  %s3185_s13 = sphi %s3235_s13, %s5251_s13   ;;  %s3181_s12 = sphi %s3233_s12, %s5250_s12  }
   0x5   : > { %p25_p0 = scmp.ge.s32.totalorder %s24_s18, 4  ;;  %s27_s19 = sadd.s32 1, %s3193_s15 }
   0x6   : > { %p2832_p1 = scmp.ge.s32.totalorder %s3197_s16, 1  ;;  %p128_p2 = scmp.lt.s32.totalorder %s3197_s16, 9 }
   0x7   : > { %s5255_s18 = smov (%p25_p0, %s24_s18), 0  ;;  %s5257_s19 = smov (!%p25_p0, %s27_s19), %s3193_s15 }
   0x8   : > { %p3266_p3 = pnand %p2832_p1, %p128_p2  ;;  %p29_p4 = scmp.ge.s32.totalorder %s5257_s19, 2 }
   0x9   : > { %p3270_p5 = scmp.eq.s32.totalorder %s2830_s17, 0  ;;  %s3199_s22 = smov [#allocation4]  }
   0xa   : > { %s5189_s20 = scalar_select %p3266_p3, 1, 0 }
   0xb   : > { %s5190_s21 = scalar_select %p3270_p5, 1, 0 }
   0xc   : > { %p3027_p6 = pneg %p3266_p3  ;;  %s5259_s19 = smov (%p29_p4, %s5257_s19), 0 }
   0xd   : > { %s140_s23 = sshll.u32 %s3199_s22, 4  ;;  %s3095_s27 = scalar_lea.hbm %s5154_s1, 384  ;;  %s141_s23 = int_to_ptr.vmem [resolvable:$true] %s140_s23 }
   0xe   : > { %p3280_p7 = pnand %p3270_p5, %p3027_p6  ;;  %p3096_p8 = scmp.ne.s32.totalorder %s5154_s1, %s3095_s27 }
   0xf   : > { %p3102_p12 = scmp.lt.u32.totalorder %s3095_s27, %s5154_s1 }
  0x10   : > { %p3097_p9 = pneg %p3280_p7 }
  0x12   : > { %p3098_p10 = pnand %p3097_p9, %p3096_p8 }
  0x14   : > { %p3099_p11 = pneg %p3098_p10 }
  0x16   : > { %p3104_p13 = pnand %p3102_p12, %p3099_p11 }
  0x18   : > { %3107 = shalt.err (!%p3104_p13)
}
  0x19   : > { %s3108_s5 = scalar_lea.vmem %s141_s23, 384  ;;  %p3116_p4 = scmp.lt.s32.totalorder %s141_s23, %s141_s23 }
  0x1a   : > { %p3109_p0 = scmp.ne.s32.totalorder %s141_s23, %s3108_s5  ;;  %p3117_p6 = scmp.lt.s32.totalorder %s3108_s5, %s3108_s5 }
  0x1c   : > { %p3111_p1 = pnand %p3109_p0, %p3097_p9  ;;  %p3118_p5 = por %p3117_p6, %p3116_p4 }
  0x1e   : > { %p3112_p2 = pneg %p3111_p1 }
  0x20   : > { %p3119_p3 = pnand %p3118_p5, %p3112_p2 }
  0x22   : > { %3122 = shalt.err (!%p3119_p3)
}
  0x23   : > { %s3200_s6 = smov 128   ;;  %s3201_s7 = smov 8  }
  0x24   : > { %3030 = dma.hbm_to_vmem [thread:$0]  (!%p3280_p7), %s5154_s1, 384, %s141_s23, [#allocation5], %s3200_s6, %s3200_s6, %s3201_s7  }
  0x25   : > { %s3202_s10 = smov [#allocation6]   ;;  %s3123_s25 = scalar_lea.hbm %s5155_s2, 16 }
  0x26   : > { %s154_s11 = sshll.u32 %s3202_s10, 4  ;;  %p3124_p3 = scmp.ne.s32.totalorder %s5155_s2, %s3123_s25  ;;  %s155_s11 = int_to_ptr.vmem [resolvable:$true] %s154_s11 }
  0x27   : > { %p3130_p10 = scmp.lt.u32.totalorder %s3123_s25, %s5155_s2 }
  0x28   : > { %p3126_p5 = pnand %p3124_p3, %p3097_p9 }
  0x2a   : > { %p3127_p8 = pneg %p3126_p5 }
  0x2c   : > { %p3132_p11 = pnand %p3130_p10, %p3127_p8 }
  0x2e   : > { %3135 = shalt.err (!%p3132_p11)
}
  0x2f   : > { %s3136_s23 = scalar_lea.vmem %s155_s11, 16  ;;  %s3143_s30 = scalar_lea.vmem %s155_s11, 32 }
  0x30   : > { %p3137_p12 = scmp.ne.s32.totalorder %s155_s11, %s3136_s23  ;;  %p3144_p1 = scmp.lt.s32.totalorder %s155_s11, %s155_s11 }
  0x31   : > { %p3145_p2 = scmp.lt.s32.totalorder %s3143_s30, %s3136_s23 }
  0x32   : > { %p3139_p13 = pnand %p3137_p12, %p3097_p9 }
  0x33   : > { %p3146_p4 = por %p3145_p2, %p3144_p1 }
  0x34   : > { %p3140_p0 = pneg %p3139_p13 }
  0x36   : > { %p3147_p6 = pnand %p3146_p4, %p3140_p0 }
  0x38   : > { %3150 = shalt.err (!%p3147_p6)
}
  0x39   : > { %3033 = dma.hbm_to_vmem [thread:$0]  (!%p3280_p7), %s5155_s2, 16, %s155_s11, [#allocation7]  }
  0x3a   : > { %p5192_p3 = scmp.ne.s32.totalorder %s5189_s20, 0 }
  0x3c   : > { %175 = sbr.rel (%p5192_p3) target bundleno = 1135 (0x46f), region = 32 }
  0x43   : > { %p5193_p5 = scmp.ne.s32.totalorder %s5190_s21, 0 }
  0x45   : > { %3172 = dma.done.wait (%p5193_p5), [#allocation5], 384  }
  0x46   : > { %3174 = vsyncadd (%p5193_p5), [#allocation5], 4294966912 }
  0x47   : > { %3176 = dma.done.wait (%p5193_p5), [#allocation7], 16  }
  0x48   : > { %3178 = vsyncadd (%p5193_p5), [#allocation7], 4294967280  ;;  %vm225_vm0 = vcmask 15360   ;;  %vm230_vm1 = vcmask 9216   ;;  %p208_p9 = scmp.lt.s32.totalorder %s3185_s13, 1  ;;  %v3203_v0 = vmov 0.0  }
  0x49   : > { %232 = vst.msk [vmem:[#allocation2 + $0x28] sm:$0xff] %vm225_vm0, %v3203_v0  ;;  %226 = vst.msk [vmem:[#allocation2] sm:$0xff] %vm225_vm0, %v3203_v0  ;;  %s3388_s20 = sshll.u32 %s3181_s12, 3  ;;  %s2921_s24 = sshll.u32 %s3181_s12, 8 }
  0x4a   : > { %227 = vst.msk [vmem:[#allocation2 + $0x8] sm:$0xff] %vm225_vm0, %v3203_v0  ;;  %228 = vst.msk [vmem:[#allocation2 + $0x10] sm:$0xff] %vm225_vm0, %v3203_v0  ;;  %s5261_s13 = smov (!%p208_p9, %s3185_s13), 1  ;;  %p216_p7 = scmp.lt.s32.totalorder %s3388_s20, 31 }
  0x4b   : > { %229 = vst.msk [vmem:[#allocation2 + $0x18] sm:$0xff] %vm225_vm0, %v3203_v0  ;;  %233 = vst.msk [vmem:[#allocation2 + $0x30] sm:$0xff] %vm225_vm0, %v3203_v0  ;;  %s2920_s21 = sshll.u32 %s5261_s13, 10  ;;  %s2843_s9 = sshll.u32 %s5261_s13, 8 }
  0x4c   : > { %234 = vst.msk [vmem:[#allocation2 + $0x38] sm:$0xff] %vm225_vm0, %v3203_v0  ;;  %235 = vst.msk [vmem:[#allocation2 + $0x40] sm:$0xff] %vm225_vm0, %v3203_v0  ;;  %s3398_s8 = scalar_lea.vmem %s5153_s0, %s2920_s21  ;;  %p2847_p8 = scmp.le.s32.totalorder %s3181_s12, 0 }
  0x4d   : > { %237 = vst.msk [vmem:[#allocation2 + $0x50] sm:$0xff] %vm225_vm0, %v3203_v0  ;;  %238 = vst.msk [vmem:[#allocation2 + $0x58] sm:$0xff] %vm225_vm0, %v3203_v0  ;;  %s217_s10 = scalar_select %p216_p7, %s3388_s20, 31 }
  0x4e   : > { %239 = vst.msk [vmem:[#allocation2 + $0x60] sm:$0xff] %vm225_vm0, %v3203_v0  ;;  %240 = vst.msk [vmem:[#allocation2 + $0x68] sm:$0xff] %vm225_vm0, %v3203_v0  ;;  %s3402_s11 = scalar_lea.vmem %s3398_s8, %s2921_s24  ;;  %s2848_s28 = sadd.s32 (!%p2847_p8), 4294967295, %s3388_s20 }
  0x4f   : > { %242 = vst.msk [vmem:[#allocation2 + $0x78] sm:$0xff] %vm225_vm0, %v3203_v0  ;;  %243 = vst.msk [vmem:[#allocation2 + $0x80] sm:$0xff] %vm225_vm0, %v3203_v0  ;;  %s2842_s17 = sshll.u32 %s217_s10, 3  ;;  %v279_v1 = vld [vmem:[%s3402_s11] sm:$0xff]  ;;  %v280_v2 = vld [vmem:[%s3402_s11 + $0x8] sm:$0xff]  ;;  %p349_p10 = scmp.gt.s32.totalorder (!%p2847_p8), %s2848_s28, 0 }
  0x50   : > { %244 = vst.msk [vmem:[#allocation2 + $0x88] sm:$0xff] %vm225_vm0, %v3203_v0  ;;  %245 = vst.msk [vmem:[#allocation2 + $0x90] sm:$0xff] %vm225_vm0, %v3203_v0  ;;  %v281_v3 = vld [vmem:[%s3402_s11 + $0x10] sm:$0xff]  ;;  %s220_s22 = sadd.s32 %s2843_s9, %s2842_s17  ;;  %v282_v4 = vld [vmem:[%s3402_s11 + $0x18] sm:$0xff] }
  0x51   : > { %247 = vst.msk [vmem:[#allocation2 + $0xa0] sm:$0xff] %vm225_vm0, %v3203_v0  ;;  %248 = vst.msk [vmem:[#allocation2 + $0xa8] sm:$0xff] %vm225_vm0, %v3203_v0  ;;  %v283_v5 = vld [vmem:[%s3402_s11 + $0x20] sm:$0xff]  ;;  %v284_v6 = vld [vmem:[%s3402_s11 + $0x28] sm:$0xff]  ;;  %s2844_s13 = sshll.u32 %s220_s22, 3 }
  0x52   : > { %249 = vst.msk [vmem:[#allocation2 + $0xb0] sm:$0xff] %vm225_vm0, %v3203_v0  ;;  %250 = vst.msk [vmem:[#allocation2 + $0xb8] sm:$0xff] %vm225_vm0, %v3203_v0  ;;  %v285_v7 = vld [vmem:[%s3402_s11 + $0x30] sm:$0xff]  ;;  %v286_v8 = vld [vmem:[%s3402_s11 + $0x38] sm:$0xff]  ;;  %s3422_s27 = scalar_lea.vmem %s5156_s3, %s2844_s13 }
  0x53   : > { %252 = vst.msk [vmem:[#allocation2 + $0xc8] sm:$0xff] %vm225_vm0, %v3203_v0  ;;  %253 = vst.msk [vmem:[#allocation2 + $0xd0] sm:$0xff] %vm225_vm0, %v3203_v0  ;;  %v287_v9 = vld [vmem:[%s3402_s11 + $0x40] sm:$0xff]  ;;  %v288_v10 = vld [vmem:[%s3402_s11 + $0x48] sm:$0xff] }
  0x54   : > { %254 = vst.msk [vmem:[#allocation2 + $0xd8] sm:$0xff] %vm225_vm0, %v3203_v0  ;;  %255 = vst.msk [vmem:[#allocation2 + $0xe0] sm:$0xff] %vm225_vm0, %v3203_v0  ;;  %v289_v11 = vld [vmem:[%s3402_s11 + $0x50] sm:$0xff]  ;;  %v290_v12 = vld [vmem:[%s3402_s11 + $0x58] sm:$0xff] }
  0x55   : > { %257 = vst.msk [vmem:[#allocation2 + $0xf0] sm:$0xff] %vm225_vm0, %v3203_v0  ;;  %258 = vst.msk [vmem:[#allocation2 + $0xf8] sm:$0xff] %vm225_vm0, %v3203_v0  ;;  %v291_v13 = vld [vmem:[%s3402_s11 + $0x60] sm:$0xff]  ;;  %v292_v14 = vld [vmem:[%s3402_s11 + $0x68] sm:$0xff] }
  0x56   : > { %259 = vst.msk [vmem:[#allocation2 + $0x100] sm:$0xff] %vm225_vm0, %v3203_v0  ;;  %260 = vst.msk [vmem:[#allocation2 + $0x108] sm:$0xff] %vm225_vm0, %v3203_v0  ;;  %v293_v15 = vld [vmem:[%s3402_s11 + $0x70] sm:$0xff]  ;;  %v294_v16 = vld [vmem:[%s3402_s11 + $0x78] sm:$0xff] }
  0x57   : > { %262 = vst.msk [vmem:[#allocation2 + $0x118] sm:$0xff] %vm225_vm0, %v3203_v0  ;;  %263 = vst.msk [vmem:[#allocation2 + $0x120] sm:$0xff] %vm225_vm0, %v3203_v0  ;;  %v295_v17 = vld [vmem:[%s3402_s11 + $0x80] sm:$0xff]  ;;  %v296_v18 = vld [vmem:[%s3402_s11 + $0x88] sm:$0xff] }
  0x58   : > { %264 = vst.msk [vmem:[#allocation2 + $0x128] sm:$0xff] %vm225_vm0, %v3203_v0  ;;  %265 = vst.msk [vmem:[#allocation2 + $0x130] sm:$0xff] %vm225_vm0, %v3203_v0  ;;  %v297_v19 = vld [vmem:[%s3402_s11 + $0x90] sm:$0xff]  ;;  %v298_v20 = vld [vmem:[%s3402_s11 + $0x98] sm:$0xff] }
  0x59   : > { %267 = vst.msk [vmem:[#allocation2 + $0x140] sm:$0xff] %vm225_vm0, %v3203_v0  ;;  %268 = vst.msk [vmem:[#allocation2 + $0x148] sm:$0xff] %vm225_vm0, %v3203_v0  ;;  %v299_v21 = vld [vmem:[%s3402_s11 + $0xa0] sm:$0xff]  ;;  %v300_v22 = vld [vmem:[%s3402_s11 + $0xa8] sm:$0xff] }
  0x5a   : > { %269 = vst.msk [vmem:[#allocation2 + $0x150] sm:$0xff] %vm225_vm0, %v3203_v0  ;;  %270 = vst.msk [vmem:[#allocation2 + $0x158] sm:$0xff] %vm225_vm0, %v3203_v0  ;;  %v301_v23 = vld [vmem:[%s3402_s11 + $0xb0] sm:$0xff]  ;;  %v302_v24 = vld [vmem:[%s3402_s11 + $0xb8] sm:$0xff] }
  0x5b   : > { %272 = vst.msk [vmem:[#allocation2 + $0x168] sm:$0xff] %vm225_vm0, %v3203_v0  ;;  %273 = vst.msk [vmem:[#allocation2 + $0x170] sm:$0xff] %vm225_vm0, %v3203_v0  ;;  %v303_v25 = vld [vmem:[%s3402_s11 + $0xc0] sm:$0xff]  ;;  %v304_v26 = vld [vmem:[%s3402_s11 + $0xc8] sm:$0xff] }
  0x5c   : > { %274 = vst.msk [vmem:[#allocation2 + $0x178] sm:$0xff] %vm225_vm0, %v3203_v0  ;;  %275 = vst.msk [vmem:[#allocation2 + $0x180] sm:$0xff] %vm225_vm0, %v3203_v0  ;;  %v305_v27 = vld [vmem:[%s3402_s11 + $0xd0] sm:$0xff]  ;;  %v306_v28 = vld [vmem:[%s3402_s11 + $0xd8] sm:$0xff] }
  0x5d   : > { %236 = vst.msk [vmem:[#allocation2 + $0x48] sm:$0x3] %vm230_vm1, %v3203_v0  ;;  %231 = vst.msk [vmem:[#allocation2 + $0x20] sm:$0x3] %vm230_vm1, %v3203_v0  ;;  %v307_v29 = vld [vmem:[%s3402_s11 + $0xe0] sm:$0xff]  ;;  %v308_v30 = vld [vmem:[%s3402_s11 + $0xe8] sm:$0xff] }
  0x5e   : > { %241 = vst.msk [vmem:[#allocation2 + $0x70] sm:$0x3] %vm230_vm1, %v3203_v0  ;;  %246 = vst.msk [vmem:[#allocation2 + $0x98] sm:$0x3] %vm230_vm1, %v3203_v0  ;;  %v309_v31 = vld [vmem:[%s3402_s11 + $0xf0] sm:$0xff]  ;;  %v310_v32 = vld [vmem:[%s3402_s11 + $0xf8] sm:$0xff] }
  0x5f   : > { %251 = vst.msk [vmem:[#allocation2 + $0xc0] sm:$0x3] %vm230_vm1, %v3203_v0  ;;  %256 = vst.msk [vmem:[#allocation2 + $0xe8] sm:$0x3] %vm230_vm1, %v3203_v0 }
  0x60   : > { %261 = vst.msk [vmem:[#allocation2 + $0x110] sm:$0x3] %vm230_vm1, %v3203_v0  ;;  %266 = vst.msk [vmem:[#allocation2 + $0x138] sm:$0x3] %vm230_vm1, %v3203_v0 }
  0x61   : > { %271 = vst.msk [vmem:[#allocation2 + $0x160] sm:$0x3] %vm230_vm1, %v3203_v0  ;;  %276 = vst.msk [vmem:[#allocation2 + $0x188] sm:$0x3] %vm230_vm1, %v3203_v0 }
  0x62   : > { %312 = vst.msk [vmem:[#allocation2 + $0x29] sm:$0xff] %vm225_vm0, %v279_v1  ;;  %313 = vst.msk [vmem:[#allocation2 + $0x31] sm:$0xff] %vm225_vm0, %v280_v2 }
  0x63   : > { %314 = vst.msk [vmem:[#allocation2 + $0x39] sm:$0xff] %vm225_vm0, %v281_v3  ;;  %315 = vst.msk [vmem:[#allocation2 + $0x41] sm:$0xff] %vm225_vm0, %v282_v4 }
  0x64   : > { %316 = vst.msk [vmem:[#allocation2 + $0x51] sm:$0xff] %vm225_vm0, %v283_v5  ;;  %317 = vst.msk [vmem:[#allocation2 + $0x59] sm:$0xff] %vm225_vm0, %v284_v6 }
  0x65   : > { %318 = vst.msk [vmem:[#allocation2 + $0x61] sm:$0xff] %vm225_vm0, %v285_v7  ;;  %319 = vst.msk [vmem:[#allocation2 + $0x69] sm:$0xff] %vm225_vm0, %v286_v8 }
  0x66   : > { %320 = vst.msk [vmem:[#allocation2 + $0x79] sm:$0xff] %vm225_vm0, %v287_v9  ;;  %321 = vst.msk [vmem:[#allocation2 + $0x81] sm:$0xff] %vm225_vm0, %v288_v10 }
  0x67   : > { %322 = vst.msk [vmem:[#allocation2 + $0x89] sm:$0xff] %vm225_vm0, %v289_v11  ;;  %323 = vst.msk [vmem:[#allocation2 + $0x91] sm:$0xff] %vm225_vm0, %v290_v12 }
  0x68   : > { %324 = vst.msk [vmem:[#allocation2 + $0xa1] sm:$0xff] %vm225_vm0, %v291_v13  ;;  %325 = vst.msk [vmem:[#allocation2 + $0xa9] sm:$0xff] %vm225_vm0, %v292_v14 }
  0x69   : > { %326 = vst.msk [vmem:[#allocation2 + $0xb1] sm:$0xff] %vm225_vm0, %v293_v15  ;;  %327 = vst.msk [vmem:[#allocation2 + $0xb9] sm:$0xff] %vm225_vm0, %v294_v16 }
  0x6a   : > { %328 = vst.msk [vmem:[#allocation2 + $0xc9] sm:$0xff] %vm225_vm0, %v295_v17  ;;  %329 = vst.msk [vmem:[#allocation2 + $0xd1] sm:$0xff] %vm225_vm0, %v296_v18 }
  0x6b   : > { %330 = vst.msk [vmem:[#allocation2 + $0xd9] sm:$0xff] %vm225_vm0, %v297_v19  ;;  %331 = vst.msk [vmem:[#allocation2 + $0xe1] sm:$0xff] %vm225_vm0, %v298_v20  ;;  %347 = sbr.rel (%p2847_p8) target bundleno = 120 (0x78), region = 44 }
  0x6c   : > { %332 = vst.msk [vmem:[#allocation2 + $0xf1] sm:$0xff] %vm225_vm0, %v299_v21  ;;  %333 = vst.msk [vmem:[#allocation2 + $0xf9] sm:$0xff] %vm225_vm0, %v300_v22 }
  0x6d   : > { %334 = vst.msk [vmem:[#allocation2 + $0x101] sm:$0xff] %vm225_vm0, %v301_v23  ;;  %335 = vst.msk [vmem:[#allocation2 + $0x109] sm:$0xff] %vm225_vm0, %v302_v24 }
  0x6e   : > { %336 = vst.msk [vmem:[#allocation2 + $0x119] sm:$0xff] %vm225_vm0, %v303_v25  ;;  %337 = vst.msk [vmem:[#allocation2 + $0x121] sm:$0xff] %vm225_vm0, %v304_v26 }
  0x6f   : > { %338 = vst.msk [vmem:[#allocation2 + $0x129] sm:$0xff] %vm225_vm0, %v305_v27  ;;  %339 = vst.msk [vmem:[#allocation2 + $0x131] sm:$0xff] %vm225_vm0, %v306_v28 }
  0x70   : > { %340 = vst.msk [vmem:[#allocation2 + $0x141] sm:$0xff] %vm225_vm0, %v307_v29  ;;  %341 = vst.msk [vmem:[#allocation2 + $0x149] sm:$0xff] %vm225_vm0, %v308_v30 }
  0x71   : > { %342 = vst.msk [vmem:[#allocation2 + $0x151] sm:$0xff] %vm225_vm0, %v309_v31  ;;  %343 = vst.msk [vmem:[#allocation2 + $0x159] sm:$0xff] %vm225_vm0, %v310_v32 }
  0x72   : > { %s5263_s28 = smov (!%p349_p10, %s2848_s28), 0 }
  0x73   : > { %s2849_s29 = sshll.u32 %s5263_s28, 5 }
  0x74   : > { %s352_s23 = scalar_lea.vmem %s3398_s8, %s2849_s29 }
  0x75   : > { %v353_v33 = vld [vmem:[%s352_s23] sm:$0xff]  ;;  %v354_v34 = vld [vmem:[%s352_s23 + $0x8] sm:$0xff]  ;;  %v355_v35 = vld [vmem:[%s352_s23 + $0x10] sm:$0xff] }
  0x76   : > { %357 = vst.msk [vmem:[#allocation2 + $0x1] sm:$0xff] %vm225_vm0, %v353_v33  ;;  %358 = vst.msk [vmem:[#allocation2 + $0x9] sm:$0xff] %vm225_vm0, %v354_v34  ;;  %v356_v36 = vld [vmem:[%s352_s23 + $0x18] sm:$0xff] }
  0x77   : > { %359 = vst.msk [vmem:[#allocation2 + $0x11] sm:$0xff] %vm225_vm0, %v355_v35  ;;  %360 = vst.msk [vmem:[#allocation2 + $0x19] sm:$0xff] %vm225_vm0, %v356_v36 }
  0x78 PF: > { %p2850_p11 = scmp.ge.s32.totalorder %s3181_s12, 3 }
  0x79   : > { %s365_s30 = sadd.s32 (!%p2850_p11), 8, %s3388_s20 }
  0x7a   : > { %364 = sbr.rel (%p2850_p11) target bundleno = 135 (0x87), region = 48  ;;  %p366_p12 = scmp.lt.s32.totalorder (!%p2850_p11), %s365_s30, 31 }
  0x81   : > { %s5265_s30 = smov (!%p366_p12, %s365_s30), 31 }
  0x82   : > { %s2851_s4 = sshll.u32 %s5265_s30, 5 }
  0x83   : > { %s369_s5 = scalar_lea.vmem %s3398_s8, %s2851_s4 }
  0x84   : > { %v370_v37 = vld [vmem:[%s369_s5] sm:$0xff]  ;;  %v371_v38 = vld [vmem:[%s369_s5 + $0x8] sm:$0xff]  ;;  %v372_v39 = vld [vmem:[%s369_s5 + $0x10] sm:$0xff] }
  0x85   : > { %375 = vst.msk [vmem:[#allocation2 + $0x169] sm:$0xff] %vm225_vm0, %v370_v37  ;;  %376 = vst.msk [vmem:[#allocation2 + $0x171] sm:$0xff] %vm225_vm0, %v371_v38  ;;  %v373_v40 = vld [vmem:[%s369_s5 + $0x18] sm:$0xff] }
  0x86   : > { %377 = vst.msk [vmem:[#allocation2 + $0x179] sm:$0xff] %vm225_vm0, %v372_v39  ;;  %378 = vst.msk [vmem:[#allocation2 + $0x181] sm:$0xff] %vm225_vm0, %v373_v40 }
  0x87 PF: > { %v3487_v41 = vld [vmem:[#allocation2] sm:$0xff]  ;;  %v3489_v42 = vld [vmem:[#allocation2 + $0x8] sm:$0xff]  ;;  %vm491_vm2 = vcmask 1046528   ;;  %v3491_v43 = vld [vmem:[#allocation2 + $0x10] sm:$0xff]  ;;  %s3204_s12 = smov 2   ;;  %vm693_vm3 = vcmask 1045504  }
  0x88   : > { %v492_v44 = vrot.slane %v3487_v41, 1  ;;  %v493_v45 = vrot.slane %v3489_v42, 1  ;;  %419 = vst.msk [vmem:[#allocation3] sm:$0xff] %vm225_vm0, %v3487_v41  ;;  %420 = vst.msk [vmem:[#allocation3 + $0x8] sm:$0xff] %vm225_vm0, %v3489_v42  ;;  %v495_v46 = vrot.slane %v3491_v43, 1  ;;  %v3502_v47 = vld [vmem:[#allocation2 + $0x18] sm:$0xff] }
  0x89   : > { %421 = vst.msk [vmem:[#allocation3 + $0x10] sm:$0xff] %vm225_vm0, %v3491_v43  ;;  %v3504_v48 = vld [vmem:[#allocation2 + $0x28] sm:$0xff]  ;;  %v3506_v49 = vld [vmem:[#allocation2 + $0x30] sm:$0xff]  ;;  %v497_v50 = vrot.slane %v3502_v47, 1  ;;  %422 = vst.msk [vmem:[#allocation3 + $0x18] sm:$0xff] %vm225_vm0, %v3502_v47  ;;  %v694_v37 = vrot.slane %v3487_v41, 2 }
  0x8a   : > { %423 = vst.msk [vmem:[#allocation3 + $0x20] sm:$0xff] %vm225_vm0, %v3504_v48  ;;  %424 = vst.msk [vmem:[#allocation3 + $0x28] sm:$0xff] %vm225_vm0, %v3506_v49  ;;  %v3515_v51 = vld [vmem:[#allocation2 + $0x20] sm:$0x3]  ;;  %v3517_v52 = vld [vmem:[#allocation2 + $0x38] sm:$0xff]  ;;  %v494_v53 = vsel %vm491_vm2, %v492_v44, %v493_v45  ;;  %v496_v61 = vsel %vm491_vm2, %v493_v45, %v495_v46  ;;  %v501_v62 = vrot.slane %v3504_v48, 1 }
  0x8b   : > { %v499_v54 = vrot.slane %v3515_v51, 1  ;;  %v3521_v55 = vld [vmem:[#allocation2 + $0x40] sm:$0xff]  ;;  %425 = vst.msk [vmem:[#allocation3 + $0x30] sm:$0xff] %vm225_vm0, %v3517_v52  ;;  %v3525_v56 = vld [vmem:[#allocation2 + $0x50] sm:$0xff]  ;;  %v3527_v57 = vld [vmem:[#allocation2 + $0x58] sm:$0xff]  ;;  %564 = vrot.lane.b32.xlu0 %v494_v53, %s3204_s12  ;;  %v498_v58 = vsel %vm491_vm2, %v495_v46, %v497_v50  ;;  %v502_v63 = vrot.slane %v3506_v49, 1 }
  0x8c   : > { %426 = vst.msk [vmem:[#allocation3 + $0x38] sm:$0xff] %vm225_vm0, %v3521_v55  ;;  %427 = vst.msk [vmem:[#allocation3 + $0x40] sm:$0xff] %vm225_vm0, %v3525_v56  ;;  %v3537_v59 = vld [vmem:[#allocation2 + $0x60] sm:$0xff]  ;;  %v3539_v60 = vld [vmem:[#allocation2 + $0x68] sm:$0xff]  ;;  %568 = vrot.lane.b32.xlu1 %v498_v58, %s3204_s12  ;;  %v504_v9 = vrot.slane %v3517_v52, 1  ;;  %v3593_v14 = vrot.slane %v3521_v55, 1 }
  0x8d   : > { %428 = vst.msk [vmem:[#allocation3 + $0x48] sm:$0xff] %vm225_vm0, %v3527_v57  ;;  %429 = vst.msk [vmem:[#allocation3 + $0x50] sm:$0xff] %vm225_vm0, %v3537_v59  ;;  %v3549_v0 = vld [vmem:[#allocation2 + $0x78] sm:$0xff]  ;;  %v3551_v1 = vld [vmem:[#allocation2 + $0x80] sm:$0xff]  ;;  %v500_v2 = vsel %vm491_vm2, %v497_v50, %v499_v54  ;;  %v3589_v13 = vsel %vm491_vm2, %v501_v62, %v502_v63  ;;  %v510_v27 = vrot.slane %v3525_v56, 1  ;;  %v511_v28 = vrot.slane %v3527_v57, 1 }
  0x8e   : > { %430 = vst.msk [vmem:[#allocation3 + $0x58] sm:$0xff] %vm225_vm0, %v3539_v60  ;;  %431 = vst.msk [vmem:[#allocation3 + $0x60] sm:$0xff] %vm225_vm0, %v3549_v0  ;;  %v3558_v3 = vld [vmem:[#allocation2 + $0x88] sm:$0xff]  ;;  %v3560_v4 = vld [vmem:[#allocation2 + $0x90] sm:$0xff]  ;;  %v3606_v17 = vsel %vm491_vm2, %v502_v63, %v504_v9  ;;  %v3641_v26 = vsel %vm491_vm2, %v504_v9, %v3593_v14  ;;  %v513_v32 = vrot.slane %v3537_v59, 1  ;;  %v3667_v34 = vrot.slane %v3539_v60, 1 }
  0x8f   : > { %432 = vst.msk [vmem:[#allocation3 + $0x68] sm:$0xff] %vm225_vm0, %v3551_v1  ;;  %v3562_v5 = vld [vmem:[#allocation2 + $0xa0] sm:$0xff]  ;;  %v3564_v6 = vld [vmem:[#allocation2 + $0x48] sm:$0x3]  ;;  %433 = vst.msk [vmem:[#allocation3 + $0x70] sm:$0xff] %vm225_vm0, %v3558_v3  ;;  %566 = vrot.lane.b32.xlu0 %v496_v61, %s3204_s12  ;;  %v3663_v33 = vsel %vm491_vm2, %v510_v27, %v511_v28  ;;  %v695_v38 = vrot.slane %v3489_v42, 2 }
  0x90   : > { %434 = vst.msk [vmem:[#allocation3 + $0x78] sm:$0xff] %vm225_vm0, %v3560_v4  ;;  %v3570_v7 = vld [vmem:[#allocation2 + $0xa8] sm:$0xff]  ;;  %435 = vst.msk [vmem:[#allocation3 + $0x80] sm:$0xff] %vm225_vm0, %v3562_v5  ;;  %v3574_v8 = vld [vmem:[#allocation2 + $0xb0] sm:$0xff]  ;;  %570 = vrot.lane.b32.xlu1 %v500_v2, %s3204_s12  ;;  %v508_v18 = vrot.slane %v3564_v6, 1  ;;  %v3670_v35 = vsel %vm491_vm2, %v511_v28, %v513_v32  ;;  %v697_v39 = vrot.slane %v3491_v43, 2  ;;  %v3685_v46 = vsel %vm491_vm2, %v513_v32, %v3667_v34 }
  0x91   : > { %436 = vst.msk [vmem:[#allocation3 + $0x88] sm:$0xff] %vm225_vm0, %v3570_v7  ;;  %v3580_v10 = vld [vmem:[#allocation2 + $0xb8] sm:$0xff]  ;;  %437 = vst.msk [vmem:[#allocation3 + $0x90] sm:$0xff] %vm225_vm0, %v3574_v8  ;;  %v3584_v11 = vld [vmem:[#allocation2 + $0xc8] sm:$0xff]  ;;  %v519_v40 = vrot.slane %v3549_v0, 1  ;;  %v3680_v44 = vsel %vm693_vm3, %v694_v37, %v695_v38  ;;  %v699_v45 = vrot.slane %v3502_v47, 2 }
  0x92   : > { %v3586_v12 = vld [vmem:[#allocation2 + $0xd0] sm:$0xff]  ;;  %438 = vst.msk [vmem:[#allocation3 + $0x98] sm:$0xff] %vm225_vm0, %v3580_v10  ;;  %439 = vst.msk [vmem:[#allocation3 + $0xa0] sm:$0xff] %vm225_vm0, %v3584_v11  ;;  %v3601_v15 = vld [vmem:[#allocation2 + $0xd8] sm:$0xff]  ;;  %v509_v30 = vsel %vm491_vm2, %v3593_v14, %v508_v18  ;;  %v520_v41 = vrot.slane %v3551_v1, 1  ;;  %v3691_v42 = vsel %vm693_vm3, %v695_v38, %v697_v39  ;;  %v701_v43 = vrot.slane %v3515_v51, 2 }
  0x93   : > { %440 = vst.msk [vmem:[#allocation3 + $0xa8] sm:$0xff] %vm225_vm0, %v3586_v12  ;;  %v3603_v16 = vld [vmem:[#allocation2 + $0xe0] sm:$0xff]  ;;  %441 = vst.msk [vmem:[#allocation3 + $0xb0] sm:$0xff] %vm225_vm0, %v3601_v15  ;;  %v3613_v19 = vld [vmem:[#allocation2 + $0xf0] sm:$0xff]  ;;  %572 = vrot.lane.b32.xlu0 %v3589_v13, %s3204_s12  ;;  %v3697_v53 = vsel %vm693_vm3, %v697_v39, %v699_v45  ;;  %v522_v58 = vrot.slane %v3558_v3, 1  ;;  %v3712_v51 = vrot.slane %v3560_v4, 1 }
  0x94   : > { %442 = vst.msk [vmem:[#allocation3 + $0xb8] sm:$0xff] %vm225_vm0, %v3603_v16  ;;  %v3615_v20 = vld [vmem:[#allocation2 + $0xf8] sm:$0xff]  ;;  %443 = vst.msk [vmem:[#allocation3 + $0xc0] sm:$0xff] %vm225_vm0, %v3613_v19  ;;  %v3621_v21 = vld [vmem:[#allocation2 + $0x100] sm:$0xff]  ;;  %574 = vrot.lane.b32.xlu1 %v3606_v17, %s3204_s12  ;;  %v3702_v54 = vsel %vm693_vm3, %v699_v45, %v701_v43  ;;  %v3708_v61 = vsel %vm491_vm2, %v519_v40, %v520_v41  ;;  %v528_v9 = vrot.slane %v3562_v5, 1  ;;  %v529_v18 = vrot.slane %v3570_v7, 1 }
  0x95   : > { %444 = vst.msk [vmem:[#allocation3 + $0xc8] sm:$0xff] %vm225_vm0, %v3615_v20  ;;  %v3623_v22 = vld [vmem:[#allocation2 + $0x108] sm:$0xff]  ;;  %v3625_v23 = vld [vmem:[#allocation2 + $0x118] sm:$0xff]  ;;  %445 = vst.msk [vmem:[#allocation3 + $0xd0] sm:$0xff] %vm225_vm0, %v3621_v21  ;;  %v3715_v62 = vsel %vm491_vm2, %v520_v41, %v522_v58  ;;  %v3722_v2 = vsel %vm491_vm2, %v522_v58, %v3712_v51  ;;  %v537_v40 = vrot.slane %v3584_v11, 1  ;;  %v538_v45 = vrot.slane %v3586_v12, 1 }
  0x96   : > { %446 = vst.msk [vmem:[#allocation3 + $0xd8] sm:$0xff] %vm225_vm0, %v3623_v22  ;;  %v3633_v24 = vld [vmem:[#allocation2 + $0x120] sm:$0xff]  ;;  %447 = vst.msk [vmem:[#allocation3 + $0xe0] sm:$0xff] %vm225_vm0, %v3625_v23  ;;  %v3637_v25 = vld [vmem:[#allocation2 + $0x128] sm:$0xff]  ;;  %v3736_v32 = vsel %vm491_vm2, %v528_v9, %v529_v18  ;;  %s3205_s20 = smov 4   ;;  %vm660_vm4 = vcmask 31760  }
  0x97   : > { %448 = vst.msk [vmem:[#allocation3 + $0xe8] sm:$0xff] %vm225_vm0, %v3633_v24  ;;  %v3649_v29 = vld [vmem:[#allocation2 + $0x130] sm:$0xff]  ;;  %449 = vst.msk [vmem:[#allocation3 + $0xf0] sm:$0xff] %vm225_vm0, %v3637_v25  ;;  %576 = vrot.lane.b32.xlu0 %v3641_v26, %s3204_s12  ;;  %v3699_v47 = vld [vmem:[#allocation2 + $0x98] sm:$0x3]  ;;  %v3764_v58 = vsel %vm491_vm2, %v537_v40, %v538_v45  ;;  %s3206_s21 = smov 6  }
  0x98   : > { %450 = vst.msk [vmem:[#allocation3 + $0xf8] sm:$0xff] %vm225_vm0, %v3649_v29  ;;  %v3657_v31 = vld [vmem:[#allocation2 + $0x70] sm:$0x3]  ;;  %578 = vrot.lane.b32.xlu1 %v509_v30, %s3204_s12  ;;  %5194 = vst [vmem:[#allocation10_spill] sm:$0xff] %v3667_v34  ;;  %v526_v63 = vrot.slane %v3699_v47, 1  ;;  %v531_v30 = vrot.slane %v3574_v8, 1 }
  0x99   : > { %5195 = vst [vmem:[#allocation11_spill] sm:$0xff] %v3670_v35  ;;  %v517_v36 = vrot.slane %v3657_v31, 1  ;;  %5196 = vst [vmem:[#allocation12_spill] sm:$0xff] %v3685_v46  ;;  %v3730_v28 = vld [vmem:[#allocation2 + $0xc0] sm:$0x3]  ;;  %vm862_vm5 = vcmask 48160  }
  0x9a   : > { %5197 = vst [vmem:[#allocation13_spill] sm:$0xff] %v3708_v61  ;;  %5198 = vst [vmem:[#allocation14_spill] sm:$0xff] %v3712_v51  ;;  %v527_v27 = vsel %vm491_vm2, %v3712_v51, %v526_v63  ;;  %v3743_v37 = vsel %vm491_vm2, %v529_v18, %v531_v30  ;;  %v535_v38 = vrot.slane %v3730_v28, 1  ;;  %v3758_v43 = vld [vmem:[#allocation2 + $0xe8] sm:$0x3]  ;;  %v3768_v63 = vrot.slane %v3603_v16, 1 }
  0x9b   : > { %580 = vrot.lane.b32.xlu0 %v3663_v33, %s3204_s12  ;;  %v518_v50 = vsel %vm491_vm2, %v3667_v34, %v517_v36  ;;  %5199 = vst [vmem:[#allocation15_spill] sm:$0xff] %v3715_v62  ;;  %5200 = vst [vmem:[#allocation16_spill] sm:$0xff] %v3722_v2  ;;  %v3740_v36 = vrot.slane %v3580_v10, 1  ;;  %v544_v18 = vrot.slane %v3758_v43, 1  ;;  %v558_v51 = vrot.slane %v3637_v25, 1  ;;  %s3207_s24 = smov 8  }
  0x9c   : > { %582 = vrot.lane.b32.xlu1 %v3670_v35, %s3204_s12  ;;  %5201 = vst [vmem:[#allocation17_spill] sm:$0xff] %v3736_v32  ;;  %5203 = vst [vmem:[#allocation19_spill] sm:$0xff] %v3743_v37  ;;  %s3208_s6 = smov 10   ;;  %s3209_s7 = smov 12   ;;  %vm2257_vm6 = vcmask 1041408   ;;  %vm1063_vm7 = vcmask 64560  }
  0x9d   : > { %5202 = vst [vmem:[#allocation18_spill] sm:$0xff] %v3740_v36  ;;  %v3750_v39 = vsel %vm491_vm2, %v531_v30, %v3740_v36  ;;  %v536_v41 = vsel %vm491_vm2, %v3740_v36, %v535_v38  ;;  %v546_v30 = vrot.slane %v3613_v19, 1  ;;  %v547_v38 = vrot.slane %v3615_v20, 1  ;;  %s3210_s8 = smov 14   ;;  %s3211_s9 = smov 16  }
  0x9e   : > { %5204 = vst [vmem:[#allocation20_spill] sm:$0xff] %v3750_v39  ;;  %v545_v40 = vsel %vm491_vm2, %v3768_v63, %v544_v18  ;;  %v3796_v36 = vrot.slane %v3623_v22, 1  ;;  %vm1272_vm8 = vcmask 80960   ;;  %vm1473_vm9 = vcmask 97360   ;;  %s3212_s10 = smov 122  }
  0x9f   : > { %584 = vrot.lane.b32.xlu0 %v3685_v46, %s3204_s12  ;;  %v728_v46 = vrot.slane %v3699_v47, 2  ;;  %v733_v47 = vrot.slane %v3574_v8, 2  ;;  %vm1675_vm10 = vcmask 113760   ;;  %vm1884_vm11 = vcmask 130160  }
  0xa0   : > { %586 = vrot.lane.b32.xlu1 %v518_v50, %s3204_s12  ;;  %v540_v50 = vrot.slane %v3601_v15, 1  ;;  %vm2085_vm12 = vcmask 146560   ;;  %vm2160_vm13 = vcmask 146432   ;;  %vm2518_vm14 = vcmask 48128  }
  0xa2   : > { %v3771_v9 = vsel %vm491_vm2, %v538_v45, %v540_v50  ;;  %v3786_v45 = vld [vmem:[#allocation2 + $0x110] sm:$0x3] }
  0xa3   : > { %588 = vrot.lane.b32.xlu0 %v3708_v61, %s3204_s12  ;;  %v553_v18 = vrot.slane %v3786_v45, 1 }
  0xa4   : > { %590 = vrot.lane.b32.xlu1 %v3715_v62, %s3204_s12 }
  0xa7   : > { %592 = vrot.lane.b32.xlu0 %v3722_v2, %s3204_s12  ;;  %v3824_v2 = vrot.slane %v3649_v29, 1 }
  0xa8   : > { %594 = vrot.lane.b32.xlu1 %v527_v27, %s3204_s12  ;;  %v3778_v27 = vsel %vm491_vm2, %v540_v50, %v3768_v63  ;;  %v3792_v50 = vsel %vm491_vm2, %v546_v30, %v547_v38  ;;  %v555_v30 = vrot.slane %v3625_v23, 1 }
  0xa9   : > { %5206 = vst [vmem:[#allocation22_spill] sm:$0xff] %v3824_v2  ;;  %v3834_v61 = vsel %vm491_vm2, %v558_v51, %v3824_v2 }
  0xaa   : > { %5208 = vst [vmem:[#allocation24_spill] sm:$0xff] %v3834_v61 }
  0xab   : > { %596 = vrot.lane.b32.xlu0 %v3736_v32, %s3204_s12  ;;  %v3814_v32 = vld [vmem:[#allocation2 + $0x138] sm:$0x3] }
  0xac   : > { %598 = vrot.lane.b32.xlu1 %v3743_v37, %s3204_s12 }
  0xaf   : > { %600 = vrot.lane.b32.xlu0 %v3750_v39, %s3204_s12 }
  0xb0   : > { %602 = vrot.lane.b32.xlu1 %v536_v41, %s3204_s12  ;;  %v549_v41 = vrot.slane %v3621_v21, 1 }
  0xb2   : > { %v3799_v39 = vsel %vm491_vm2, %v547_v38, %v549_v41  ;;  %v3806_v37 = vsel %vm491_vm2, %v549_v41, %v3796_v36  ;;  %v554_v38 = vsel %vm491_vm2, %v3796_v36, %v553_v18  ;;  %v562_v18 = vrot.slane %v3814_v32, 1 }
  0xb3   : > { %604 = vrot.lane.b32.xlu0 %v3764_v58, %s3204_s12 }
  0xb4   : > { %606 = vrot.lane.b32.xlu1 %v3771_v9, %s3204_s12 }
  0xb7   : > { %608 = vrot.lane.b32.xlu0 %v3778_v27, %s3204_s12 }
  0xb8   : > { %610 = vrot.lane.b32.xlu1 %v545_v40, %s3204_s12  ;;  %v556_v40 = vrot.slane %v3633_v24, 1 }
  0xba   : > { %v3820_v41 = vsel %vm491_vm2, %v555_v30, %v556_v40  ;;  %v3827_v62 = vsel %vm491_vm2, %v556_v40, %v558_v51  ;;  %v563_v30 = vsel %vm491_vm2, %v3824_v2, %v562_v18  ;;  %v703_v51 = vrot.slane %v3504_v48, 2 }
  0xbb   : > { %612 = vrot.lane.b32.xlu0 %v3792_v50, %s3204_s12  ;;  %5205 = vst [vmem:[#allocation21_spill] sm:$0xff] %v3820_v41  ;;  %5207 = vst [vmem:[#allocation23_spill] sm:$0xff] %v3827_v62  ;;  %v704_v40 = vrot.slane %v3506_v49, 2 }
  0xbc   : > { %614 = vrot.lane.b32.xlu1 %v3799_v39, %s3204_s12 }
  0xbd   : > { %v3853_v18 = vsel %vm693_vm3, %v703_v51, %v704_v40  ;;  %v713_v51 = vrot.slane %v3527_v57, 2 }
  0xbf   : > { %616 = vrot.lane.b32.xlu0 %v3806_v37, %s3204_s12 }
  0xc0   : > { %618 = vrot.lane.b32.xlu1 %v554_v38, %s3204_s12  ;;  %v706_v38 = vrot.slane %v3517_v52, 2 }
  0xc3   : > { %620 = vrot.lane.b32.xlu0 %v3820_v41, %s3204_s12 }
  0xc4   : > { %622 = vrot.lane.b32.xlu1 %v3827_v62, %s3204_s12  ;;  %v719_v62 = vrot.slane %v3657_v31, 2  ;;  %v724_v31 = vrot.slane %v3558_v3, 2 }
  0xc7   : > { %624 = vrot.lane.b32.xlu0 %v3834_v61, %s3204_s12 }
  0xc8   : > { %626 = vrot.lane.b32.xlu1 %v563_v30, %s3204_s12  ;;  %v710_v30 = vrot.slane %v3564_v6, 2  ;;  %v715_v6 = vrot.slane %v3537_v59, 2 }
  0xca   : > { %v3887_v61 = vsel %vm693_vm3, %v713_v51, %v715_v6 }
  0xcb   : > { %766 = vrot.lane.b32.xlu0 %v3680_v44, %s3205_s20  ;;  %v3858_v44 = vrot.slane %v3521_v55, 2  ;;  %5211 = vst [vmem:[#allocation27_spill] sm:$0xff] %v3887_v61 }
  0xcc   : > { %768 = vrot.lane.b32.xlu1 %v3691_v42, %s3205_s20  ;;  %v3861_v42 = vsel %vm693_vm3, %v704_v40, %v706_v38 }
  0xcd   : > { %v711_v40 = vsel %vm693_vm3, %v3858_v44, %v710_v30 }
  0xcf   : > { %770 = vrot.lane.b32.xlu0 %v3697_v53, %s3205_s20  ;;  %v3868_v53 = vsel %vm693_vm3, %v706_v38, %v3858_v44  ;;  %v3884_v38 = vrot.slane %v3539_v60, 2 }
  0xd0   : > { %772 = vrot.lane.b32.xlu1 %v3702_v54, %s3205_s20  ;;  %v712_v54 = vrot.slane %v3525_v56, 2 }
  0xd1   : > { %5210 = vst [vmem:[#allocation26_spill] sm:$0xff] %v3884_v38  ;;  %v3894_v30 = vsel %vm693_vm3, %v715_v6, %v3884_v38  ;;  %v3910_v6 = vrot.slane %v3560_v4, 2 }
  0xd2   : > { %v3880_v2 = vsel %vm693_vm3, %v712_v54, %v713_v51  ;;  %5212 = vst [vmem:[#allocation28_spill] sm:$0xff] %v3894_v30  ;;  %v721_v54 = vrot.slane %v3549_v0, 2  ;;  %v720_v51 = vsel %vm693_vm3, %v3884_v38, %v719_v62  ;;  %v737_v38 = vrot.slane %v3730_v28, 2 }
  0xd3   : > { %774 = vrot.lane.b32.xlu0 %v3853_v18, %s3205_s20  ;;  %5209 = vst [vmem:[#allocation25_spill] sm:$0xff] %v3880_v2  ;;  %5214 = vst [vmem:[#allocation30_spill] sm:$0xff] %v3910_v6  ;;  %v3920_v62 = vsel %vm693_vm3, %v724_v31, %v3910_v6  ;;  %v742_v28 = vrot.slane %v3601_v15, 2 }
  0xd4   : > { %776 = vrot.lane.b32.xlu1 %v3861_v42, %s3205_s20  ;;  %5216 = vst [vmem:[#allocation32_spill] sm:$0xff] %v3920_v62 }
  0xd7   : > { %778 = vrot.lane.b32.xlu0 %v3868_v53, %s3205_s20 }
  0xd8   : > { %780 = vrot.lane.b32.xlu1 %v711_v40, %s3205_s20  ;;  %v722_v40 = vrot.slane %v3551_v1, 2 }
  0xda   : > { %v3906_v41 = vsel %vm693_vm3, %v721_v54, %v722_v40  ;;  %v3913_v34 = vsel %vm693_vm3, %v722_v40, %v724_v31  ;;  %v730_v54 = vrot.slane %v3562_v5, 2  ;;  %v729_v40 = vsel %vm693_vm3, %v3910_v6, %v728_v46 }
  0xdb   : > { %782 = vrot.lane.b32.xlu0 %v3880_v2, %s3205_s20  ;;  %5213 = vst [vmem:[#allocation29_spill] sm:$0xff] %v3906_v41  ;;  %5215 = vst [vmem:[#allocation31_spill] sm:$0xff] %v3913_v34  ;;  %v3936_v31 = vrot.slane %v3580_v10, 2  ;;  %v746_v6 = vrot.slane %v3758_v43, 2  ;;  %v751_v43 = vrot.slane %v3621_v21, 2  ;;  %v4016_v2 = vrot.slane %v3649_v29, 2 }
  0xdc   : > { %784 = vrot.lane.b32.xlu1 %v3887_v61, %s3205_s20 }
  0xdd   : > { %5218 = vst [vmem:[#allocation34_spill] sm:$0xff] %v3936_v31  ;;  %v3946_v46 = vsel %vm693_vm3, %v733_v47, %v3936_v31 }
  0xde   : > { %5220 = vst [vmem:[#allocation36_spill] sm:$0xff] %v3946_v46 }
  0xdf   : > { %786 = vrot.lane.b32.xlu0 %v3894_v30, %s3205_s20 }
  0xe0   : > { %788 = vrot.lane.b32.xlu1 %v720_v51, %s3205_s20  ;;  %v731_v51 = vrot.slane %v3570_v7, 2 }
  0xe3   : > { %790 = vrot.lane.b32.xlu0 %v3906_v41, %s3205_s20  ;;  %v3932_v41 = vsel %vm693_vm3, %v730_v54, %v731_v51  ;;  %v739_v54 = vrot.slane %v3584_v11, 2 }
  0xe4   : > { %792 = vrot.lane.b32.xlu1 %v3913_v34, %s3205_s20  ;;  %5217 = vst [vmem:[#allocation33_spill] sm:$0xff] %v3932_v41  ;;  %v3939_v34 = vsel %vm693_vm3, %v731_v51, %v733_v47  ;;  %v738_v51 = vsel %vm693_vm3, %v3936_v31, %v737_v38  ;;  %v3962_v47 = vrot.slane %v3603_v16, 2 }
  0xe5   : > { %5219 = vst [vmem:[#allocation35_spill] sm:$0xff] %v3939_v34 }
  0xe6   : > { %v3972_v38 = vsel %vm693_vm3, %v742_v28, %v3962_v47 }
  0xe7   : > { %794 = vrot.lane.b32.xlu0 %v3920_v62, %s3205_s20  ;;  %v755_v62 = vrot.slane %v3786_v45, 2 }
  0xe8   : > { %796 = vrot.lane.b32.xlu1 %v729_v40, %s3205_s20  ;;  %v740_v40 = vrot.slane %v3586_v12, 2 }
  0xeb   : > { %798 = vrot.lane.b32.xlu0 %v3932_v41, %s3205_s20  ;;  %v3958_v41 = vsel %vm693_vm3, %v739_v54, %v740_v40  ;;  %v748_v54 = vrot.slane %v3613_v19, 2 }
  0xec   : > { %800 = vrot.lane.b32.xlu1 %v3939_v34, %s3205_s20  ;;  %v3965_v34 = vsel %vm693_vm3, %v740_v40, %v742_v28  ;;  %v747_v40 = vsel %vm693_vm3, %v3962_v47, %v746_v6  ;;  %v3988_v28 = vrot.slane %v3623_v22, 2 }
  0xee   : > { %5221 = vst [vmem:[#allocation37_spill] sm:$0xff] %v3988_v28  ;;  %v3998_v6 = vsel %vm693_vm3, %v751_v43, %v3988_v28 }
  0xef   : > { %802 = vrot.lane.b32.xlu0 %v3946_v46, %s3205_s20 }
  0xf0   : > { %804 = vrot.lane.b32.xlu1 %v738_v51, %s3205_s20  ;;  %v749_v51 = vrot.slane %v3615_v20, 2 }
  0xf2   : > { %v3984_v31 = vsel %vm693_vm3, %v748_v54, %v749_v51  ;;  %v3991_v46 = vsel %vm693_vm3, %v749_v51, %v751_v43  ;;  %v757_v54 = vrot.slane %v3625_v23, 2  ;;  %v756_v51 = vsel %vm693_vm3, %v3988_v28, %v755_v62 }
  0xf3   : > { %806 = vrot.lane.b32.xlu0 %v3958_v41, %s3205_s20  ;;  %v760_v43 = vrot.slane %v3637_v25, 2 }
  0xf4   : > { %808 = vrot.lane.b32.xlu1 %v3965_v34, %s3205_s20 }
  0xf7   : > { %810 = vrot.lane.b32.xlu0 %v3972_v38, %s3205_s20 }
  0xf8   : > { %812 = vrot.lane.b32.xlu1 %v747_v40, %s3205_s20  ;;  %v758_v40 = vrot.slane %v3633_v24, 2 }
  0xfa   : > { %v4012_v61 = vsel %vm693_vm3, %v757_v54, %v758_v40  ;;  %v4019_v62 = vsel %vm693_vm3, %v758_v40, %v760_v43  ;;  %v4028_v54 = vsel %vm693_vm3, %v760_v43, %v4016_v2 }
  0xfb   : > { %814 = vrot.lane.b32.xlu0 %v3984_v31, %s3205_s20 }
  0xfc   : > { %816 = vrot.lane.b32.xlu1 %v3991_v46, %s3205_s20 }
  0xfd   : > { %v565_v30 = vpop.permute.xlu0 %564 }
  0xfe   : > { %661 = vst.msk [vmem:[#allocation3] sm:$0xff] %vm660_vm4, %v565_v30  ;;  %v569_v45 = vpop.permute.xlu1 %568  ;;  %v764_v30 = vrot.slane %v3814_v32, 2 }
  0xff   : > { %818 = vrot.lane.b32.xlu0 %v3998_v6, %s3205_s20  ;;  %663 = vst.msk [vmem:[#allocation3 + $0x10] sm:$0xff] %vm660_vm4, %v569_v45 }
 0x100   : > { %820 = vrot.lane.b32.xlu1 %v756_v51, %s3205_s20  ;;  %v765_v40 = vsel %vm693_vm3, %v4016_v2, %v764_v30 }
 0x101   : > { %v567_v35 = vpop.permute.xlu0 %566 }
 0x102   : > { %662 = vst.msk [vmem:[#allocation3 + $0x8] sm:$0xff] %vm660_vm4, %v567_v35  ;;  %v571_v28 = vpop.permute.xlu1 %570 }
 0x103   : > { %822 = vrot.lane.b32.xlu0 %v4012_v61, %s3205_s20  ;;  %664 = vst.msk [vmem:[#allocation3 + $0x18] sm:$0xff] %vm660_vm4, %v571_v28 }
 0x104   : > { %824 = vrot.lane.b32.xlu1 %v4019_v62, %s3205_s20 }
 0x105   : > { %v573_v51 = vpop.permute.xlu0 %572 }
 0x106   : > { %665 = vst.msk [vmem:[#allocation3 + $0x20] sm:$0xff] %vm660_vm4, %v573_v51  ;;  %v575_v35 = vpop.permute.xlu1 %574 }
 0x107   : > { %826 = vrot.lane.b32.xlu0 %v4028_v54, %s3205_s20  ;;  %666 = vst.msk [vmem:[#allocation3 + $0x28] sm:$0xff] %vm660_vm4, %v575_v35 }
 0x108   : > { %828 = vrot.lane.b32.xlu1 %v765_v40, %s3205_s20 }
 0x109   : > { %v577_v32 = vpop.permute.xlu0 %576 }
 0x10a   : > { %667 = vst.msk [vmem:[#allocation3 + $0x30] sm:$0xff] %vm660_vm4, %v577_v32  ;;  %v579_v28 = vpop.permute.xlu1 %578  ;;  %v930_v32 = vld [vmem:[#allocation2 + $0x140] sm:$0xff] }
 0x10b   : > { %967 = vrot.lane.b32.xlu0 %v3504_v48, %s3206_s21  ;;  %668 = vst.msk [vmem:[#allocation3 + $0x38] sm:$0xff] %vm660_vm4, %v579_v28  ;;  %v4123_v28 = vld [vmem:[#allocation2 + $0x148] sm:$0xff] }
 0x10c   : > { %969 = vrot.lane.b32.xlu1 %v3506_v49, %s3206_s21 }
 0x10d   : > { %v581_v45 = vpop.permute.xlu0 %580 }
 0x10e   : > { %669 = vst.msk [vmem:[#allocation3 + $0x40] sm:$0xff] %vm660_vm4, %v581_v45  ;;  %v583_v43 = vpop.permute.xlu1 %582 }
 0x10f   : > { %971 = vrot.lane.b32.xlu0 %v3517_v52, %s3206_s21  ;;  %670 = vst.msk [vmem:[#allocation3 + $0x48] sm:$0xff] %vm660_vm4, %v583_v43  ;;  %v933_v43 = vld [vmem:[#allocation2 + $0x158] sm:$0xff] }
 0x110   : > { %973 = vrot.lane.b32.xlu1 %v3521_v55, %s3206_s21 }
 0x111   : > { %v585_v30 = vpop.permute.xlu0 %584 }
 0x112   : > { %671 = vst.msk [vmem:[#allocation3 + $0x50] sm:$0xff] %vm660_vm4, %v585_v30  ;;  %v587_v48 = vpop.permute.xlu1 %586 }
 0x113   : > { %975 = vrot.lane.b32.xlu0 %v3525_v56, %s3206_s21  ;;  %672 = vst.msk [vmem:[#allocation3 + $0x58] sm:$0xff] %vm660_vm4, %v587_v48 }
 0x114   : > { %977 = vrot.lane.b32.xlu1 %v3527_v57, %s3206_s21 }
 0x115   : > { %v589_v49 = vpop.permute.xlu0 %588 }
 0x116   : > { %673 = vst.msk [vmem:[#allocation3 + $0x60] sm:$0xff] %vm660_vm4, %v589_v49  ;;  %v591_v52 = vpop.permute.xlu1 %590 }
 0x117   : > { %979 = vrot.lane.b32.xlu0 %v3537_v59, %s3206_s21  ;;  %674 = vst.msk [vmem:[#allocation3 + $0x68] sm:$0xff] %vm660_vm4, %v591_v52 }
 0x118   : > { %981 = vrot.lane.b32.xlu1 %v3539_v60, %s3206_s21 }
 0x119   : > { %v593_v55 = vpop.permute.xlu0 %592 }
 0x11a   : > { %675 = vst.msk [vmem:[#allocation3 + $0x70] sm:$0xff] %vm660_vm4, %v593_v55  ;;  %v595_v56 = vpop.permute.xlu1 %594 }
 0x11b   : > { %983 = vrot.lane.b32.xlu0 %v3549_v0, %s3206_s21  ;;  %676 = vst.msk [vmem:[#allocation3 + $0x78] sm:$0xff] %vm660_vm4, %v595_v56 }
 0x11c   : > { %985 = vrot.lane.b32.xlu1 %v3551_v1, %s3206_s21 }
 0x11d   : > { %v597_v57 = vpop.permute.xlu0 %596 }
 0x11e   : > { %677 = vst.msk [vmem:[#allocation3 + $0x80] sm:$0xff] %vm660_vm4, %v597_v57  ;;  %v599_v59 = vpop.permute.xlu1 %598 }
 0x11f   : > { %987 = vrot.lane.b32.xlu0 %v3558_v3, %s3206_s21  ;;  %678 = vst.msk [vmem:[#allocation3 + $0x88] sm:$0xff] %vm660_vm4, %v599_v59 }
 0x120   : > { %989 = vrot.lane.b32.xlu1 %v3560_v4, %s3206_s21 }
 0x121   : > { %v601_v60 = vpop.permute.xlu0 %600 }
 0x122   : > { %679 = vst.msk [vmem:[#allocation3 + $0x90] sm:$0xff] %vm660_vm4, %v601_v60  ;;  %v603_v0 = vpop.permute.xlu1 %602 }
 0x123   : > { %991 = vrot.lane.b32.xlu0 %v3562_v5, %s3206_s21  ;;  %680 = vst.msk [vmem:[#allocation3 + $0x98] sm:$0xff] %vm660_vm4, %v603_v0 }
 0x124   : > { %993 = vrot.lane.b32.xlu1 %v3570_v7, %s3206_s21 }
 0x125   : > { %v605_v1 = vpop.permute.xlu0 %604 }
 0x126   : > { %681 = vst.msk [vmem:[#allocation3 + $0xa0] sm:$0xff] %vm660_vm4, %v605_v1  ;;  %v607_v3 = vpop.permute.xlu1 %606 }
 0x127   : > { %995 = vrot.lane.b32.xlu0 %v3574_v8, %s3206_s21  ;;  %682 = vst.msk [vmem:[#allocation3 + $0xa8] sm:$0xff] %vm660_vm4, %v607_v3  ;;  %v4182_v3 = vld [vmem:[#allocation2 + $0x60] sm:$0xff] }
 0x128   : > { %997 = vrot.lane.b32.xlu1 %v3580_v10, %s3206_s21 }
 0x129   : > { %v609_v4 = vpop.permute.xlu0 %608 }
 0x12a   : > { %683 = vst.msk [vmem:[#allocation3 + $0xb0] sm:$0xff] %vm660_vm4, %v609_v4  ;;  %v611_v5 = vpop.permute.xlu1 %610 }
 0x12b   : > { %999 = vrot.lane.b32.xlu0 %v3584_v11, %s3206_s21  ;;  %684 = vst.msk [vmem:[#allocation3 + $0xb8] sm:$0xff] %vm660_vm4, %v611_v5 }
 0x12c   : > { %1001 = vrot.lane.b32.xlu1 %v3586_v12, %s3206_s21 }
 0x12d   : > { %v613_v7 = vpop.permute.xlu0 %612 }
 0x12e   : > { %685 = vst.msk [vmem:[#allocation3 + $0xc0] sm:$0xff] %vm660_vm4, %v613_v7  ;;  %v615_v8 = vpop.permute.xlu1 %614 }
 0x12f   : > { %1003 = vrot.lane.b32.xlu0 %v3601_v15, %s3206_s21  ;;  %686 = vst.msk [vmem:[#allocation3 + $0xc8] sm:$0xff] %vm660_vm4, %v615_v8 }
 0x130   : > { %1005 = vrot.lane.b32.xlu1 %v3603_v16, %s3206_s21 }
 0x131   : > { %v617_v10 = vpop.permute.xlu0 %616 }
 0x132   : > { %687 = vst.msk [vmem:[#allocation3 + $0xd0] sm:$0xff] %vm660_vm4, %v617_v10  ;;  %v619_v11 = vpop.permute.xlu1 %618 }
 0x133   : > { %1007 = vrot.lane.b32.xlu0 %v3613_v19, %s3206_s21  ;;  %688 = vst.msk [vmem:[#allocation3 + $0xd8] sm:$0xff] %vm660_vm4, %v619_v11 }
 0x134   : > { %1009 = vrot.lane.b32.xlu1 %v3615_v20, %s3206_s21 }
 0x135   : > { %v621_v12 = vpop.permute.xlu0 %620 }
 0x136   : > { %689 = vst.msk [vmem:[#allocation3 + $0xe0] sm:$0xff] %vm660_vm4, %v621_v12  ;;  %v623_v15 = vpop.permute.xlu1 %622 }
 0x137   : > { %1011 = vrot.lane.b32.xlu0 %v3621_v21, %s3206_s21  ;;  %690 = vst.msk [vmem:[#allocation3 + $0xe8] sm:$0xff] %vm660_vm4, %v623_v15  ;;  %v919_v15 = vld [vmem:[#allocation2 + $0xe8] sm:$0x3] }
 0x138   : > { %1013 = vrot.lane.b32.xlu1 %v3623_v22, %s3206_s21 }
 0x139   : > { %v625_v16 = vpop.permute.xlu0 %624 }
 0x13a   : > { %691 = vst.msk [vmem:[#allocation3 + $0xf0] sm:$0xff] %vm660_vm4, %v625_v16  ;;  %v627_v51 = vpop.permute.xlu1 %626 }
 0x13b   : > { %1015 = vrot.lane.b32.xlu0 %v3625_v23, %s3206_s21  ;;  %692 = vst.msk [vmem:[#allocation3 + $0xf8] sm:$0xff] %vm660_vm4, %v627_v51 }
 0x13c   : > { %1017 = vrot.lane.b32.xlu1 %v3633_v24, %s3206_s21  ;;  %v932_v24 = vld [vmem:[#allocation2 + $0x150] sm:$0xff] }
 0x13d   : > { %v767_v40 = vpop.permute.xlu0 %766 }
 0x13e   : > { %863 = vst.msk [vmem:[#allocation3] sm:$0xff] %vm862_vm5, %v767_v40  ;;  %v769_v35 = vpop.permute.xlu1 %768  ;;  %v1147_v40 = vrot.slane %v919_v15, 1 }
 0x13f   : > { %1019 = vrot.lane.b32.xlu0 %v3637_v25, %s3206_s21  ;;  %864 = vst.msk [vmem:[#allocation3 + $0x8] sm:$0xff] %vm862_vm5, %v769_v35 }
 0x140   : > { %1021 = vrot.lane.b32.xlu1 %v3649_v29, %s3206_s21  ;;  %v4131_v29 = vld [vmem:[#allocation2 + $0x48] sm:$0x3] }
 0x141   : > { %v771_v23 = vpop.permute.xlu0 %770  ;;  %v1111_v49 = vrot.slane %v4131_v29, 1 }
 0x142   : > { %865 = vst.msk [vmem:[#allocation3 + $0x10] sm:$0xff] %vm862_vm5, %v771_v23  ;;  %v773_v45 = vpop.permute.xlu1 %772  ;;  %v2152_v23 = vld [vmem:[#allocation4 + $0x8] sm:$0xff] }
 0x143   : > { %1023 = vrot.lane.b32.xlu0 %v930_v32, %s3206_s21  ;;  %866 = vst.msk [vmem:[#allocation3 + $0x18] sm:$0xff] %vm862_vm5, %v773_v45  ;;  %v1112_v56 = vsel %vm491_vm2, %v3593_v14, %v1111_v49  ;;  %v2151_v32 = vld [vmem:[#allocation4] sm:$0xff] }
 0x144   : > { %1025 = vrot.lane.b32.xlu1 %v4123_v28, %s3206_s21  ;;  %v3011_v45 = vpack.c.bf16 %v2152_v23, %v2151_v32 }
 0x145   : > { %v775_v25 = vpop.permute.xlu0 %774 }
 0x146   : > { %867 = vst.msk [vmem:[#allocation3 + $0x20] sm:$0xff] %vm862_vm5, %v775_v25  ;;  %v777_v30 = vpop.permute.xlu1 %776  ;;  %3015 = vmatprep.subr.bf16.mxu1 %v3011_v45  ;;  %3012 = vmatprep.subr.bf16.mxu0 %v3011_v45 }
 0x147   : > { %1027 = vrot.lane.b32.xlu0 %v932_v24, %s3206_s21  ;;  %868 = vst.msk [vmem:[#allocation3 + $0x28] sm:$0xff] %vm862_vm5, %v777_v30  ;;  %v1148_v24 = vsel %vm491_vm2, %v3768_v63, %v1147_v40  ;;  %3017 = vmatpush3.bf16.msra.mxu1 %v3011_v45  ;;  %v5224_v40 = vld [vmem:[#allocation37_spill] sm:$0xff] }
 0x148   : > { %1029 = vrot.lane.b32.xlu1 %v933_v43, %s3206_s21  ;;  %v1920_v43 = vrot.slane %v4182_v3, 2  ;;  %3014 = vmatpush3.bf16.msra.mxu0 %v3011_v45 }
 0x149   : > { %v779_v48 = vpop.permute.xlu0 %778 }
 0x14a   : > { %869 = vst.msk [vmem:[#allocation3 + $0x30] sm:$0xff] %vm862_vm5, %v779_v48  ;;  %v781_v52 = vpop.permute.xlu1 %780  ;;  %v2153_v48 = vld [vmem:[#allocation4 + $0x10] sm:$0x3] }
 0x14b   : > { %1176 = vrot.lane.b32.xlu0 %v3589_v13, %s3207_s24  ;;  %870 = vst.msk [vmem:[#allocation3 + $0x38] sm:$0xff] %vm862_vm5, %v781_v52  ;;  %3016 = vmatprep.subr.msk.mxu1 %vm2257_vm6, %v2153_v48  ;;  %v1312_v52 = vrot.slane %v4131_v29, 2 }
 0x14c   : > { %1178 = vrot.lane.b32.xlu1 %v3606_v17, %s3207_s24  ;;  %3018 = vmatpush3.msk.msra.mxu1 %vm2257_vm6, %v2153_v48 }
 0x14d   : > { %v783_v55 = vpop.permute.xlu0 %782  ;;  %2961 = vmatprep.subr.msk.mxu0 %vm2257_vm6, %v2153_v48 }
 0x14e   : > { %871 = vst.msk [vmem:[#allocation3 + $0x40] sm:$0xff] %vm862_vm5, %v783_v55  ;;  %v785_v57 = vpop.permute.xlu1 %784  ;;  %2962 = vmatpush3.msk.msra.mxu0 %vm2257_vm6, %v2153_v48 }
 0x14f   : > { %1180 = vrot.lane.b32.xlu0 %v3641_v26, %s3207_s24  ;;  %872 = vst.msk [vmem:[#allocation3 + $0x48] sm:$0xff] %vm862_vm5, %v785_v57  ;;  %v1313_v57 = vsel %vm693_vm3, %v3858_v44, %v1312_v52  ;;  %v1510_v44 = vld [vmem:[#allocation2 + $0x68] sm:$0xff] }
 0x150   : > { %1182 = vrot.lane.b32.xlu1 %v1112_v56, %s3207_s24 }
 0x151   : > { %v787_v13 = vpop.permute.xlu0 %786 }
 0x152   : > { %873 = vst.msk [vmem:[#allocation3 + $0x50] sm:$0xff] %vm862_vm5, %v787_v13  ;;  %v789_v59 = vpop.permute.xlu1 %788 }
 0x153   : > { %1184 = vrot.lane.b32.xlu0 %v3663_v33, %s3207_s24  ;;  %874 = vst.msk [vmem:[#allocation3 + $0x58] sm:$0xff] %vm862_vm5, %v789_v59 }
 0x154   : > { %1208 = vrot.lane.b32.xlu1 %v3764_v58, %s3207_s24 }
 0x155   : > { %v791_v14 = vpop.permute.xlu0 %790 }
 0x156   : > { %875 = vst.msk [vmem:[#allocation3 + $0x60] sm:$0xff] %vm862_vm5, %v791_v14  ;;  %v793_v17 = vpop.permute.xlu1 %792 }
 0x157   : > { %1210 = vrot.lane.b32.xlu0 %v3771_v9, %s3207_s24  ;;  %876 = vst.msk [vmem:[#allocation3 + $0x68] sm:$0xff] %vm862_vm5, %v793_v17  ;;  %v1507_v9 = vld [vmem:[#allocation2 + $0x50] sm:$0xff] }
 0x158   : > { %1377 = vrot.lane.b32.xlu1 %v3853_v18, %s3208_s6  ;;  %v4173_v18 = vld [vmem:[#allocation2 + $0x58] sm:$0xff]  ;;  %v1716_v0 = vrot.slane %v1507_v9, 1  ;;  %v1917_v10 = vrot.slane %v1507_v9, 2 }
 0x159   : > { %v795_v26 = vpop.permute.xlu0 %794  ;;  %v1717_v1 = vrot.slane %v4173_v18, 1  ;;  %v1918_v11 = vrot.slane %v4173_v18, 2 }
 0x15a   : > { %877 = vst.msk [vmem:[#allocation3 + $0x70] sm:$0xff] %vm862_vm5, %v795_v26  ;;  %v797_v33 = vpop.permute.xlu1 %796 }
 0x15b   : > { %1409 = vrot.lane.b32.xlu0 %v3958_v41, %s3208_s6  ;;  %878 = vst.msk [vmem:[#allocation3 + $0x78] sm:$0xff] %vm862_vm5, %v797_v33  ;;  %v1718_v4 = vsel %vm491_vm2, %v1716_v0, %v1717_v1  ;;  %v1919_v51 = vsel %vm693_vm3, %v1917_v10, %v1918_v11  ;;  %v1921_v49 = vsel %vm693_vm3, %v1918_v11, %v1920_v43  ;;  %v1511_v33 = vld [vmem:[#allocation2 + $0x70] sm:$0x3] }
 0x15c   : > { %1379 = vrot.lane.b32.xlu1 %v3861_v42, %s3208_s6  ;;  %v1924_v10 = vrot.slane %v1511_v33, 2 }
 0x15d   : > { %v799_v58 = vpop.permute.xlu0 %798 }
 0x15e   : > { %879 = vst.msk [vmem:[#allocation3 + $0x80] sm:$0xff] %vm862_vm5, %v799_v58  ;;  %v801_v60 = vpop.permute.xlu1 %800 }
 0x15f   : > { %1411 = vrot.lane.b32.xlu0 %v3965_v34, %s3208_s6  ;;  %880 = vst.msk [vmem:[#allocation3 + $0x88] sm:$0xff] %vm862_vm5, %v801_v60  ;;  %v1531_v60 = vld [vmem:[#allocation2 + $0x110] sm:$0x3] }
 0x160   : > { %1579 = vrot.lane.b32.xlu1 %v1507_v9, %s3209_s7 }
 0x161   : > { %v803_v41 = vpop.permute.xlu0 %802 }
 0x162   : > { %881 = vst.msk [vmem:[#allocation3 + $0x90] sm:$0xff] %vm862_vm5, %v803_v41  ;;  %v805_v42 = vpop.permute.xlu1 %804  ;;  %v1759_v41 = vrot.slane %v1531_v60, 1 }
 0x163   : > { %1611 = vrot.lane.b32.xlu0 %v3613_v19, %s3209_s7  ;;  %882 = vst.msk [vmem:[#allocation3 + $0x98] sm:$0xff] %vm862_vm5, %v805_v42  ;;  %v1719_v19 = vrot.slane %v4182_v3, 1  ;;  %v1922_v42 = vrot.slane %v1510_v44, 2 }
 0x164   : > { %1581 = vrot.lane.b32.xlu1 %v4173_v18, %s3209_s7 }
 0x165   : > { %v807_v34 = vpop.permute.xlu0 %806 }
 0x166   : > { %883 = vst.msk [vmem:[#allocation3 + $0xa0] sm:$0xff] %vm862_vm5, %v807_v34  ;;  %v809_v5 = vpop.permute.xlu1 %808  ;;  %v1760_v34 = vsel %vm491_vm2, %v3796_v36, %v1759_v41 }
 0x167   : > { %1613 = vrot.lane.b32.xlu0 %v3615_v20, %s3209_s7  ;;  %884 = vst.msk [vmem:[#allocation3 + $0xa8] sm:$0xff] %vm862_vm5, %v809_v5  ;;  %v1720_v20 = vsel %vm491_vm2, %v1717_v1, %v1719_v19  ;;  %v1923_v5 = vsel %vm693_vm3, %v1920_v43, %v1922_v42 }
 0x168   : > { %1788 = vrot.lane.b32.xlu1 %v1718_v4, %s3210_s8 }
 0x169   : > { %v811_v7 = vpop.permute.xlu0 %810 }
 0x16a   : > { %885 = vst.msk [vmem:[#allocation3 + $0xb0] sm:$0xff] %vm862_vm5, %v811_v7  ;;  %v813_v8 = vpop.permute.xlu1 %812 }
 0x16b   : > { %1820 = vrot.lane.b32.xlu0 %v3792_v50, %s3210_s8  ;;  %886 = vst.msk [vmem:[#allocation3 + $0xb8] sm:$0xff] %vm862_vm5, %v813_v8 }
 0x16c   : > { %1212 = vrot.lane.b32.xlu1 %v3778_v27, %s3207_s24 }
 0x16d   : > { %v815_v12 = vpop.permute.xlu0 %814 }
 0x16e   : > { %887 = vst.msk [vmem:[#allocation3 + $0xc0] sm:$0xff] %vm862_vm5, %v815_v12  ;;  %v817_v16 = vpop.permute.xlu1 %816 }
 0x16f   : > { %1790 = vrot.lane.b32.xlu0 %v1720_v20, %s3210_s8  ;;  %888 = vst.msk [vmem:[#allocation3 + $0xc8] sm:$0xff] %vm862_vm5, %v817_v16  ;;  %v1960_v20 = vrot.slane %v1531_v60, 2  ;;  %v1925_v16 = vsel %vm693_vm3, %v1922_v42, %v1924_v10  ;;  %v904_v60 = vld [vmem:[#allocation2 + $0x70] sm:$0x3] }
 0x170   : > { %1822 = vrot.lane.b32.xlu1 %v3799_v39, %s3210_s8  ;;  %v924_v42 = vld [vmem:[#allocation2 + $0x110] sm:$0x3] }
 0x171   : > { %v819_v35 = vpop.permute.xlu0 %818 }
 0x172   : > { %889 = vst.msk [vmem:[#allocation3 + $0xd0] sm:$0xff] %vm862_vm5, %v819_v35  ;;  %v821_v27 = vpop.permute.xlu1 %820  ;;  %v1961_v35 = vsel %vm693_vm3, %v5224_v40, %v1960_v20 }
 0x173   : > { %1989 = vrot.lane.b32.xlu0 %v1919_v51, %s3211_s9  ;;  %890 = vst.msk [vmem:[#allocation3 + $0xd8] sm:$0xff] %vm862_vm5, %v821_v27  ;;  %v5225_v27 = vld [vmem:[#allocation27_spill] sm:$0xff] }
 0x174   : > { %2021 = vrot.lane.b32.xlu1 %v3984_v31, %s3211_s9 }
 0x175   : > { %v823_v25 = vpop.permute.xlu0 %822 }
 0x176   : > { %891 = vst.msk [vmem:[#allocation3 + $0xe0] sm:$0xff] %vm862_vm5, %v823_v25  ;;  %v825_v30 = vpop.permute.xlu1 %824  ;;  %v1532_v25 = vld [vmem:[#allocation2 + $0x118] sm:$0xff] }
 0x177   : > { %1214 = vrot.lane.b32.xlu0 %v1148_v24, %s3207_s24  ;;  %892 = vst.msk [vmem:[#allocation3 + $0xe8] sm:$0xff] %vm862_vm5, %v825_v30  ;;  %v4302_v24 = vld [vmem:[#allocation2 + $0x80] sm:$0xff] }
 0x178   : > { %1381 = vrot.lane.b32.xlu1 %v3868_v53, %s3208_s6  ;;  %v1348_v53 = vrot.slane %v919_v15, 2  ;;  %v5223_v15 = vld [vmem:[#allocation25_spill] sm:$0xff] }
 0x179   : > { %v827_v63 = vpop.permute.xlu0 %826  ;;  %v4305_v30 = vld [vmem:[#allocation2 + $0x120] sm:$0xff] }
 0x17a   : > { %893 = vst.msk [vmem:[#allocation3 + $0xf0] sm:$0xff] %vm862_vm5, %v827_v63  ;;  %v829_v55 = vpop.permute.xlu1 %828  ;;  %v1726_v63 = vrot.slane %v4302_v24, 1  ;;  %v1762_v52 = vrot.slane %v4305_v30, 1 }
 0x17b   : > { %1413 = vrot.lane.b32.xlu0 %v3972_v38, %s3208_s6  ;;  %894 = vst.msk [vmem:[#allocation3 + $0xf8] sm:$0xff] %vm862_vm5, %v829_v55  ;;  %v1349_v38 = vsel %vm693_vm3, %v3962_v47, %v1348_v53  ;;  %v1721_v47 = vrot.slane %v1510_v44, 1 }
 0x17c   : > { %1991 = vrot.lane.b32.xlu1 %v1921_v49, %s3211_s9 }
 0x17d   : > { %v968_v56 = vpop.permute.xlu0 %967  ;;  %v1722_v58 = vsel %vm491_vm2, %v1719_v19, %v1721_v47 }
 0x17e   : > { %1064 = vst.msk [vmem:[#allocation3] sm:$0xff] %vm1063_vm7, %v968_v56  ;;  %v970_v29 = vpop.permute.xlu1 %969 }
 0x17f   : > { %2023 = vrot.lane.b32.xlu0 %v3991_v46, %s3211_s9  ;;  %1065 = vst.msk [vmem:[#allocation3 + $0x8] sm:$0xff] %vm1063_vm7, %v970_v29 }
 0x180   : > { %1383 = vrot.lane.b32.xlu1 %v1313_v57, %s3208_s6  ;;  %v4319_v57 = vld [vmem:[#allocation2 + $0x88] sm:$0xff] }
 0x181   : > { %v972_v13 = vpop.permute.xlu0 %971  ;;  %v1929_v10 = vrot.slane %v4319_v57, 2 }
 0x182   : > { %1066 = vst.msk [vmem:[#allocation3 + $0x10] sm:$0xff] %vm1063_vm7, %v972_v13  ;;  %v974_v59 = vpop.permute.xlu1 %973  ;;  %v4323_v13 = vld [vmem:[#allocation2 + $0x128] sm:$0xff] }
 0x183   : > { %1415 = vrot.lane.b32.xlu0 %v1349_v38, %s3208_s6  ;;  %1067 = vst.msk [vmem:[#allocation3 + $0x18] sm:$0xff] %vm1063_vm7, %v974_v59  ;;  %v1728_v59 = vrot.slane %v4319_v57, 1  ;;  %v1965_v20 = vrot.slane %v4323_v13, 2 }
 0x184   : > { %1583 = vrot.lane.b32.xlu1 %v4182_v3, %s3209_s7  ;;  %v5222_v3 = vld [vmem:[#allocation11_spill] sm:$0xff] }
 0x185   : > { %v976_v14 = vpop.permute.xlu0 %975 }
 0x186   : > { %1068 = vst.msk [vmem:[#allocation3 + $0x20] sm:$0xff] %vm1063_vm7, %v976_v14  ;;  %v978_v17 = vpop.permute.xlu1 %977  ;;  %v1764_v14 = vrot.slane %v4323_v13, 1 }
 0x187   : > { %1615 = vrot.lane.b32.xlu0 %v3621_v21, %s3209_s7  ;;  %1069 = vst.msk [vmem:[#allocation3 + $0x28] sm:$0xff] %vm1063_vm7, %v978_v17  ;;  %v1723_v21 = vrot.slane %v1511_v33, 1  ;;  %v1927_v33 = vrot.slane %v4302_v24, 2 }
 0x188   : > { %1585 = vrot.lane.b32.xlu1 %v1510_v44, %s3209_s7  ;;  %v1765_v41 = vsel %vm491_vm2, %v1762_v52, %v1764_v14 }
 0x189   : > { %v980_v26 = vpop.permute.xlu0 %979  ;;  %v1724_v1 = vsel %vm491_vm2, %v1721_v47, %v1723_v21  ;;  %v5226_v47 = vld [vmem:[#allocation12_spill] sm:$0xff]  ;;  %v1962_v21 = vrot.slane %v1532_v25, 2 }
 0x18a   : > { %1070 = vst.msk [vmem:[#allocation3 + $0x30] sm:$0xff] %vm1063_vm7, %v980_v26  ;;  %v982_v9 = vpop.permute.xlu1 %981 }
 0x18b   : > { %1617 = vrot.lane.b32.xlu0 %v3623_v22, %s3209_s7  ;;  %1071 = vst.msk [vmem:[#allocation3 + $0x38] sm:$0xff] %vm1063_vm7, %v982_v9 }
 0x18c   : > { %1792 = vrot.lane.b32.xlu1 %v1722_v58, %s3210_s8  ;;  %v1729_v58 = vsel %vm491_vm2, %v1726_v63, %v1728_v59 }
 0x18d   : > { %v984_v18 = vpop.permute.xlu0 %983 }
 0x18e   : > { %1072 = vst.msk [vmem:[#allocation3 + $0x40] sm:$0xff] %vm1063_vm7, %v984_v18  ;;  %v986_v0 = vpop.permute.xlu1 %985  ;;  %v1963_v18 = vrot.slane %v4305_v30, 2 }
 0x18f   : > { %1824 = vrot.lane.b32.xlu0 %v3806_v37, %s3210_s8  ;;  %1073 = vst.msk [vmem:[#allocation3 + $0x48] sm:$0xff] %vm1063_vm7, %v986_v0 }
 0x190   : > { %1216 = vrot.lane.b32.xlu1 %v3792_v50, %s3207_s24 }
 0x191   : > { %v988_v22 = vpop.permute.xlu0 %987 }
 0x192   : > { %1074 = vst.msk [vmem:[#allocation3 + $0x50] sm:$0xff] %vm1063_vm7, %v988_v22  ;;  %v990_v4 = vpop.permute.xlu1 %989 }
 0x193   : > { %1794 = vrot.lane.b32.xlu0 %v1724_v1, %s3210_s8  ;;  %1075 = vst.msk [vmem:[#allocation3 + $0x58] sm:$0xff] %vm1063_vm7, %v990_v4  ;;  %v1120_v1 = vrot.slane %v904_v60, 1  ;;  %v1156_v4 = vrot.slane %v924_v42, 1 }
 0x194   : > { %1826 = vrot.lane.b32.xlu1 %v1760_v34, %s3210_s8  ;;  %v1964_v34 = vsel %vm693_vm3, %v1962_v21, %v1963_v18 }
 0x195   : > { %v992_v19 = vpop.permute.xlu0 %991 }
 0x196   : > { %1076 = vst.msk [vmem:[#allocation3 + $0x60] sm:$0xff] %vm1063_vm7, %v992_v19  ;;  %v994_v50 = vpop.permute.xlu1 %993  ;;  %v5227_v19 = vld [vmem:[#allocation10_spill] sm:$0xff] }
 0x197   : > { %1993 = vrot.lane.b32.xlu0 %v1923_v5, %s3211_s9  ;;  %1077 = vst.msk [vmem:[#allocation3 + $0x68] sm:$0xff] %vm1063_vm7, %v994_v50  ;;  %v1121_v50 = vsel %vm491_vm2, %v5227_v19, %v1120_v1  ;;  %v5232_v1 = vld [vmem:[#allocation15_spill] sm:$0xff] }
 0x198   : > { %2025 = vrot.lane.b32.xlu1 %v3998_v6, %s3211_s9 }
 0x199   : > { %v996_v7 = vpop.permute.xlu0 %995 }
 0x19a   : > { %1078 = vst.msk [vmem:[#allocation3 + $0x70] sm:$0xff] %vm1063_vm7, %v996_v7  ;;  %v998_v8 = vpop.permute.xlu1 %997 }
 0x19b   : > { %1186 = vrot.lane.b32.xlu0 %v5222_v3, %s3207_s24  ;;  %1079 = vst.msk [vmem:[#allocation3 + $0x78] sm:$0xff] %vm1063_vm7, %v998_v8  ;;  %v1157_v8 = vsel %vm491_vm2, %v3796_v36, %v1156_v4  ;;  %v1930_v36 = vsel %vm693_vm3, %v1927_v33, %v1929_v10 }
 0x19c   : > { %1218 = vrot.lane.b32.xlu1 %v3799_v39, %s3207_s24 }
 0x19d   : > { %v1000_v11 = vpop.permute.xlu0 %999 }
 0x19e   : > { %1080 = vst.msk [vmem:[#allocation3 + $0x80] sm:$0xff] %vm1063_vm7, %v1000_v11  ;;  %v1002_v12 = vpop.permute.xlu1 %1001 }
 0x19f   : > { %1385 = vrot.lane.b32.xlu0 %v5223_v15, %s3208_s6  ;;  %1081 = vst.msk [vmem:[#allocation3 + $0x88] sm:$0xff] %vm1063_vm7, %v1002_v12  ;;  %v5228_v15 = vld [vmem:[#allocation28_spill] sm:$0xff] }
 0x1a0   : > { %1417 = vrot.lane.b32.xlu1 %v3984_v31, %s3208_s6  ;;  %v1512_v31 = vld [vmem:[#allocation2 + $0x78] sm:$0xff] }
 0x1a1   : > { %v1004_v51 = vpop.permute.xlu0 %1003  ;;  %v1725_v48 = vrot.slane %v1512_v31, 1  ;;  %v1926_v26 = vrot.slane %v1512_v31, 2 }
 0x1a2   : > { %1082 = vst.msk [vmem:[#allocation3 + $0x90] sm:$0xff] %vm1063_vm7, %v1004_v51  ;;  %v1006_v39 = vpop.permute.xlu1 %1005 }
 0x1a3   : > { %1995 = vrot.lane.b32.xlu0 %v1925_v16, %s3211_s9  ;;  %1083 = vst.msk [vmem:[#allocation3 + $0x98] sm:$0xff] %vm1063_vm7, %v1006_v39  ;;  %v1727_v53 = vsel %vm491_vm2, %v1725_v48, %v1726_v63  ;;  %v1321_v16 = vrot.slane %v904_v60, 2  ;;  %v1357_v39 = vrot.slane %v924_v42, 2 }
 0x1a4   : > { %2027 = vrot.lane.b32.xlu1 %v1961_v35, %s3211_s9  ;;  %v1966_v35 = vsel %vm693_vm3, %v1963_v18, %v1965_v20 }
 0x1a5   : > { %v1008_v32 = vpop.permute.xlu0 %1007 }
 0x1a6   : > { %1084 = vst.msk [vmem:[#allocation3 + $0xa0] sm:$0xff] %vm1063_vm7, %v1008_v32  ;;  %v1010_v23 = vpop.permute.xlu1 %1009 }
 0x1a7   : > { %1387 = vrot.lane.b32.xlu0 %v5225_v27, %s3208_s6  ;;  %1085 = vst.msk [vmem:[#allocation3 + $0xa8] sm:$0xff] %vm1063_vm7, %v1010_v23  ;;  %v5229_v23 = vld [vmem:[#allocation26_spill] sm:$0xff] }
 0x1a8   : > { %1419 = vrot.lane.b32.xlu1 %v3991_v46, %s3208_s6  ;;  %v1761_v46 = vrot.slane %v1532_v25, 1  ;;  %v1322_v27 = vsel %vm693_vm3, %v5229_v23, %v1321_v16 }
 0x1a9   : > { %v1012_v45 = vpop.permute.xlu0 %1011 }
 0x1aa   : > { %1086 = vst.msk [vmem:[#allocation3 + $0xb0] sm:$0xff] %vm1063_vm7, %v1012_v45  ;;  %v1014_v43 = vpop.permute.xlu1 %1013  ;;  %v1763_v29 = vsel %vm491_vm2, %v1761_v46, %v1762_v52 }
 0x1ab   : > { %1587 = vrot.lane.b32.xlu0 %v1512_v31, %s3209_s7  ;;  %1087 = vst.msk [vmem:[#allocation3 + $0xb8] sm:$0xff] %vm1063_vm7, %v1014_v43  ;;  %v1358_v31 = vsel %vm693_vm3, %v5224_v40, %v1357_v39  ;;  %v1537_v39 = vld [vmem:[#allocation2 + $0x140] sm:$0xff] }
 0x1ac   : > { %1619 = vrot.lane.b32.xlu1 %v1532_v25, %s3209_s7  ;;  %v4388_v25 = vld [vmem:[#allocation2 + $0x90] sm:$0xff] }
 0x1ad   : > { %v1016_v49 = vpop.permute.xlu0 %1015  ;;  %v1730_v40 = vrot.slane %v4388_v25, 1 }
 0x1ae   : > { %1088 = vst.msk [vmem:[#allocation3 + $0xc0] sm:$0xff] %vm1063_vm7, %v1016_v49  ;;  %v1018_v55 = vpop.permute.xlu1 %1017 }
 0x1af   : > { %1589 = vrot.lane.b32.xlu0 %v4302_v24, %s3209_s7  ;;  %1089 = vst.msk [vmem:[#allocation3 + $0xc8] sm:$0xff] %vm1063_vm7, %v1018_v55  ;;  %v1731_v46 = vsel %vm491_vm2, %v1728_v59, %v1730_v40  ;;  %v1516_v55 = vld [vmem:[#allocation2 + $0x98] sm:$0x3] }
 0x1b0   : > { %1621 = vrot.lane.b32.xlu1 %v4305_v30, %s3209_s7  ;;  %v4391_v30 = vld [vmem:[#allocation2 + $0x130] sm:$0xff] }
 0x1b1   : > { %v1020_v56 = vpop.permute.xlu0 %1019  ;;  %v1766_v63 = vrot.slane %v4391_v30, 1 }
 0x1b2   : > { %1090 = vst.msk [vmem:[#allocation3 + $0xd0] sm:$0xff] %vm1063_vm7, %v1020_v56  ;;  %v1022_v38 = vpop.permute.xlu1 %1021 }
 0x1b3   : > { %1796 = vrot.lane.b32.xlu0 %v1727_v53, %s3210_s8  ;;  %1091 = vst.msk [vmem:[#allocation3 + $0xd8] sm:$0xff] %vm1063_vm7, %v1022_v38  ;;  %v1767_v53 = vsel %vm491_vm2, %v1764_v14, %v1766_v63  ;;  %v1732_v38 = vrot.slane %v1516_v55, 1  ;;  %v1931_v14 = vrot.slane %v4388_v25, 2 }
 0x1b4   : > { %1828 = vrot.lane.b32.xlu1 %v1763_v29, %s3210_s8  ;;  %v1536_v29 = vld [vmem:[#allocation2 + $0x138] sm:$0x3] }
 0x1b5   : > { %v1024_v44 = vpop.permute.xlu0 %1023  ;;  %v1932_v18 = vsel %vm693_vm3, %v1929_v10, %v1931_v14 }
 0x1b6   : > { %1092 = vst.msk [vmem:[#allocation3 + $0xe0] sm:$0xff] %vm1063_vm7, %v1024_v44  ;;  %v1026_v17 = vpop.permute.xlu1 %1025  ;;  %v1768_v44 = vrot.slane %v1536_v29, 1 }
 0x1b7   : > { %1188 = vrot.lane.b32.xlu0 %v5226_v47, %s3207_s24  ;;  %1093 = vst.msk [vmem:[#allocation3 + $0xe8] sm:$0xff] %vm1063_vm7, %v1026_v17  ;;  %v5230_v47 = vld [vmem:[#allocation13_spill] sm:$0xff] }
 0x1b8   : > { %1220 = vrot.lane.b32.xlu1 %v3806_v37, %s3207_s24  ;;  %v1928_v37 = vsel %vm693_vm3, %v1926_v26, %v1927_v33  ;;  %v1733_v26 = vsel %vm491_vm2, %v1730_v40, %v1732_v38  ;;  %v5231_v33 = vld [vmem:[#allocation21_spill] sm:$0xff]  ;;  %v1769_v60 = vsel %vm491_vm2, %v1766_v63, %v1768_v44  ;;  %v5237_v38 = vld [vmem:[#allocation24_spill] sm:$0xff] }
 0x1b9   : > { %v1028_v9 = vpop.permute.xlu0 %1027 }
 0x1ba   : > { %1094 = vst.msk [vmem:[#allocation3 + $0xf0] sm:$0xff] %vm1063_vm7, %v1028_v9  ;;  %v1030_v0 = vpop.permute.xlu1 %1029  ;;  %v1967_v9 = vrot.slane %v4391_v30, 2 }
 0x1bb   : > { %1798 = vrot.lane.b32.xlu0 %v1729_v58, %s3210_s8  ;;  %1095 = vst.msk [vmem:[#allocation3 + $0xf8] sm:$0xff] %vm1063_vm7, %v1030_v0 }
 0x1bc   : > { %1830 = vrot.lane.b32.xlu1 %v1765_v41, %s3210_s8  ;;  %v1968_v0 = vsel %vm693_vm3, %v1965_v20, %v1967_v9 }
 0x1bd   : > { %v1177_v22 = vpop.permute.xlu0 %1176 }
 0x1be   : > { %1273 = vst.msk [vmem:[#allocation3] sm:$0xff] %vm1272_vm8, %v1177_v22  ;;  %v1179_v5 = vpop.permute.xlu1 %1178  ;;  %v5233_v22 = vld [vmem:[#allocation23_spill] sm:$0xff] }
 0x1bf   : > { %1997 = vrot.lane.b32.xlu0 %v1928_v37, %s3211_s9  ;;  %1274 = vst.msk [vmem:[#allocation3 + $0x8] sm:$0xff] %vm1272_vm8, %v1179_v5  ;;  %v1969_v5 = vrot.slane %v1536_v29, 2 }
 0x1c0   : > { %2029 = vrot.lane.b32.xlu1 %v1964_v34, %s3211_s9 }
 0x1c1   : > { %v1181_v7 = vpop.permute.xlu0 %1180  ;;  %v1970_v10 = vsel %vm693_vm3, %v1967_v9, %v1969_v5 }
 0x1c2   : > { %1275 = vst.msk [vmem:[#allocation3 + $0x10] sm:$0xff] %vm1272_vm8, %v1181_v7  ;;  %v1183_v3 = vpop.permute.xlu1 %1182  ;;  %v5234_v7 = vld [vmem:[#allocation29_spill] sm:$0xff] }
 0x1c3   : > { %1190 = vrot.lane.b32.xlu0 %v1121_v50, %s3207_s24  ;;  %1276 = vst.msk [vmem:[#allocation3 + $0x18] sm:$0xff] %vm1272_vm8, %v1183_v3 }
 0x1c4   : > { %1222 = vrot.lane.b32.xlu1 %v1157_v8, %s3207_s24 }
 0x1c5   : > { %v1185_v11 = vpop.permute.xlu0 %1184 }
 0x1c6   : > { %1277 = vst.msk [vmem:[#allocation3 + $0x20] sm:$0xff] %vm1272_vm8, %v1185_v11  ;;  %v1209_v12 = vpop.permute.xlu1 %1208 }
 0x1c7   : > { %1389 = vrot.lane.b32.xlu0 %v5228_v15, %s3208_s6  ;;  %1289 = vst.msk [vmem:[#allocation3 + $0x80] sm:$0xff] %vm1272_vm8, %v1209_v12 }
 0x1c8   : > { %1421 = vrot.lane.b32.xlu1 %v3998_v6, %s3208_s6 }
 0x1c9   : > { %v1211_v51 = vpop.permute.xlu0 %1210 }
 0x1ca   : > { %1290 = vst.msk [vmem:[#allocation3 + $0x88] sm:$0xff] %vm1272_vm8, %v1211_v51  ;;  %v1378_v32 = vpop.permute.xlu1 %1377 }
 0x1cb   : > { %1999 = vrot.lane.b32.xlu0 %v1930_v36, %s3211_s9  ;;  %1474 = vst.msk [vmem:[#allocation3] sm:$0xff] %vm1473_vm9, %v1378_v32  ;;  %v5235_v36 = vld [vmem:[#allocation31_spill] sm:$0xff] }
 0x1cc   : > { %2031 = vrot.lane.b32.xlu1 %v1966_v35, %s3211_s9  ;;  %v4467_v35 = vld [vmem:[#allocation2 + $0xa8] sm:$0xff] }
 0x1cd   : > { %v1410_v6 = vpop.permute.xlu0 %1409 }
 0x1ce   : > { %1490 = vst.msk [vmem:[#allocation3 + $0x80] sm:$0xff] %vm1473_vm9, %v1410_v6  ;;  %v1380_v45 = vpop.permute.xlu1 %1379 }
 0x1cf   : > { %1391 = vrot.lane.b32.xlu0 %v1322_v27, %s3208_s6  ;;  %1475 = vst.msk [vmem:[#allocation3 + $0x8] sm:$0xff] %vm1473_vm9, %v1380_v45  ;;  %v1735_v27 = vrot.slane %v4467_v35, 1 }
 0x1d0   : > { %1423 = vrot.lane.b32.xlu1 %v1358_v31, %s3208_s6  ;;  %v1770_v31 = vrot.slane %v1537_v39, 1 }
 0x1d1   : > { %v1412_v24 = vpop.permute.xlu0 %1411 }
 0x1d2   : > { %1491 = vst.msk [vmem:[#allocation3 + $0x88] sm:$0xff] %vm1473_vm9, %v1412_v24  ;;  %v1580_v43 = vpop.permute.xlu1 %1579 }
 0x1d3   : > { %1591 = vrot.lane.b32.xlu0 %v4319_v57, %s3209_s7  ;;  %1676 = vst.msk [vmem:[#allocation3] sm:$0xff] %vm1675_vm10, %v1580_v43  ;;  %v4485_v43 = vld [vmem:[#allocation2 + $0xb0] sm:$0xff] }
 0x1d4   : > { %1623 = vrot.lane.b32.xlu1 %v4323_v13, %s3209_s7  ;;  %v1933_v13 = vrot.slane %v1516_v55, 2  ;;  %v1737_v63 = vrot.slane %v4485_v43, 1  ;;  %v5236_v55 = vld [vmem:[#allocation16_spill] sm:$0xff] }
 0x1d5   : > { %v1612_v48 = vpop.permute.xlu0 %1611 }
 0x1d6   : > { %1692 = vst.msk [vmem:[#allocation3 + $0x80] sm:$0xff] %vm1675_vm10, %v1612_v48  ;;  %v1582_v49 = vpop.permute.xlu1 %1581  ;;  %v1934_v8 = vsel %vm693_vm3, %v1931_v14, %v1933_v13  ;;  %v4490_v48 = vld [vmem:[#allocation2 + $0x150] sm:$0xff]  ;;  %v1738_v29 = vsel %vm491_vm2, %v1735_v27, %v1737_v63 }
 0x1d7   : > { %1593 = vrot.lane.b32.xlu0 %v4388_v25, %s3209_s7  ;;  %1677 = vst.msk [vmem:[#allocation3 + $0x8] sm:$0xff] %vm1675_vm10, %v1582_v49  ;;  %v1974_v5 = vrot.slane %v4490_v48, 2 }
 0x1d8   : > { %1625 = vrot.lane.b32.xlu1 %v4391_v30, %s3209_s7 }
 0x1d9   : > { %v1614_v52 = vpop.permute.xlu0 %1613 }
 0x1da   : > { %1693 = vst.msk [vmem:[#allocation3 + $0x88] sm:$0xff] %vm1675_vm10, %v1614_v52  ;;  %v1789_v56 = vpop.permute.xlu1 %1788 }
 0x1db   : > { %1800 = vrot.lane.b32.xlu0 %v1731_v46, %s3210_s8  ;;  %1885 = vst.msk [vmem:[#allocation3] sm:$0xff] %vm1884_vm11, %v1789_v56  ;;  %v1773_v46 = vrot.slane %v4490_v48, 1  ;;  %v1936_v56 = vrot.slane %v4467_v35, 2 }
 0x1dc   : > { %1832 = vrot.lane.b32.xlu1 %v1767_v53, %s3210_s8 }
 0x1dd   : > { %v1821_v59 = vpop.permute.xlu0 %1820 }
 0x1de   : > { %1901 = vst.msk [vmem:[#allocation3 + $0x80] sm:$0xff] %vm1884_vm11, %v1821_v59  ;;  %v1213_v17 = vpop.permute.xlu1 %1212  ;;  %v4508_v59 = vrot.slane %v4123_v28, 2 }
 0x1df   : > { %1192 = vrot.lane.b32.xlu0 %v5230_v47, %s3207_s24  ;;  %1291 = vst.msk [vmem:[#allocation3 + $0x90] sm:$0xff] %vm1272_vm8, %v1213_v17  ;;  %v909_v17 = vld [vmem:[#allocation2 + $0x98] sm:$0x3]  ;;  %v1971_v47 = vrot.slane %v1537_v39, 2 }
 0x1e0   : > { %1224 = vrot.lane.b32.xlu1 %v5231_v33, %s3207_s24  ;;  %v929_v33 = vld [vmem:[#allocation2 + $0x138] sm:$0x3] }
 0x1e1   : > { %v1791_v58 = vpop.permute.xlu0 %1790 }
 0x1e2   : > { %1886 = vst.msk [vmem:[#allocation3 + $0x8] sm:$0xff] %vm1884_vm11, %v1791_v58  ;;  %v1823_v21 = vpop.permute.xlu1 %1822 }
 0x1e3   : > { %1802 = vrot.lane.b32.xlu0 %v1733_v26, %s3210_s8  ;;  %1902 = vst.msk [vmem:[#allocation3 + $0x88] sm:$0xff] %vm1884_vm11, %v1823_v21  ;;  %v1165_v21 = vrot.slane %v929_v33, 1 }
 0x1e4   : > { %1834 = vrot.lane.b32.xlu1 %v1769_v60, %s3210_s8  ;;  %v1973_v60 = vsel %vm693_vm3, %v1971_v47, %v4508_v59 }
 0x1e5   : > { %v1990_v41 = vpop.permute.xlu0 %1989 }
 0x1e6   : > { %2086 = vst.msk [vmem:[#allocation3] sm:$0xff] %vm2085_vm12, %v1990_v41  ;;  %v2022_v42 = vpop.permute.xlu1 %2021  ;;  %v5238_v41 = vld [vmem:[#allocation14_spill] sm:$0xff] }
 0x1e7   : > { %2001 = vrot.lane.b32.xlu0 %v1932_v18, %s3211_s9  ;;  %2102 = vst.msk [vmem:[#allocation3 + $0x80] sm:$0xff] %vm2085_vm12, %v2022_v42 }
 0x1e8   : > { %2033 = vrot.lane.b32.xlu1 %v1968_v0, %s3211_s9 }
 0x1e9   : > { %v1215_v37 = vpop.permute.xlu0 %1214 }
 0x1ea   : > { %1292 = vst.msk [vmem:[#allocation3 + $0x98] sm:$0xff] %vm1272_vm8, %v1215_v37  ;;  %v1382_v57 = vpop.permute.xlu1 %1381 }
 0x1eb   : > { %1194 = vrot.lane.b32.xlu0 %v5232_v1, %s3207_s24  ;;  %1476 = vst.msk [vmem:[#allocation3 + $0x10] sm:$0xff] %vm1473_vm9, %v1382_v57  ;;  %v5239_v57 = vld [vmem:[#allocation22_spill] sm:$0xff] }
 0x1ec   : > { %1226 = vrot.lane.b32.xlu1 %v5233_v22, %s3207_s24  ;;  %v1166_v1 = vsel %vm491_vm2, %v5239_v57, %v1165_v21  ;;  %v5243_v57 = vld [vmem:[#allocation19_spill] sm:$0xff] }
 0x1ed   : > { %v1414_v34 = vpop.permute.xlu0 %1413  ;;  %v2119_v4 = vld [vmem:[#allocation3] sm:$0xff] }
 0x1ee   : > { %1492 = vst.msk [vmem:[#allocation3 + $0x90] sm:$0xff] %vm1473_vm9, %v1414_v34  ;;  %2963 = vmatprep.mubr.msk.f32.mxu0 %vm2160_vm13, %v2119_v4  ;;  %v1992_v19 = vpop.permute.xlu1 %1991  ;;  %v2135_v50 = vld [vmem:[#allocation3 + $0x80] sm:$0xff]  ;;  %v1938_v34 = vrot.slane %v4485_v43, 2 }
 0x1ef   : > { %1393 = vrot.lane.b32.xlu0 %v5234_v7, %s3208_s6  ;;  %2087 = vst.msk [vmem:[#allocation3 + $0x8] sm:$0xff] %vm2085_vm12, %v1992_v19  ;;  %2987 = vmatprep.mubr.msk.f32.mxu1 %vm2160_vm13, %v2135_v50  ;;  %v5240_v50 = vld [vmem:[#allocation32_spill] sm:$0xff] }
 0x1f0   : > { %1425 = vrot.lane.b32.xlu1 %v4012_v61, %s3208_s6  ;;  %v1517_v61 = vld [vmem:[#allocation2 + $0xa0] sm:$0xff]  ;;  %v1939_v7 = vsel %vm693_vm3, %v1936_v56, %v1938_v34 }
 0x1f1   : > { %v2024_v3 = vpop.permute.xlu0 %2023  ;;  %v1734_v23 = vrot.slane %v1517_v61, 1  ;;  %v1935_v53 = vrot.slane %v1517_v61, 2 }
 0x1f2   : > { %2103 = vst.msk [vmem:[#allocation3 + $0x88] sm:$0xff] %vm2085_vm12, %v2024_v3  ;;  %v1384_v11 = vpop.permute.xlu1 %1383 }
 0x1f3   : > { %2003 = vrot.lane.b32.xlu0 %v1934_v8, %s3211_s9  ;;  %1477 = vst.msk [vmem:[#allocation3 + $0x18] sm:$0xff] %vm1473_vm9, %v1384_v11  ;;  %v1736_v24 = vsel %vm491_vm2, %v1734_v23, %v1735_v27  ;;  %v1937_v58 = vsel %vm693_vm3, %v1935_v53, %v1936_v56  ;;  %v1330_v8 = vrot.slane %v909_v17, 2  ;;  %v1366_v11 = vrot.slane %v929_v33, 2 }
 0x1f4   : > { %2035 = vrot.lane.b32.xlu1 %v1970_v10, %s3211_s9  ;;  %v1975_v10 = vsel %vm693_vm3, %v4508_v59, %v1974_v5 }
 0x1f5   : > { %v1416_v20 = vpop.permute.xlu0 %1415 }
 0x1f6   : > { %1493 = vst.msk [vmem:[#allocation3 + $0x98] sm:$0xff] %vm1473_vm9, %v1416_v20  ;;  %v1584_v12 = vpop.permute.xlu1 %1583  ;;  %v2120_v15 = vld [vmem:[#allocation3 + $0x8] sm:$0xff] }
 0x1f7   : > { %1395 = vrot.lane.b32.xlu0 %v5235_v36, %s3208_s6  ;;  %1678 = vst.msk [vmem:[#allocation3 + $0x10] sm:$0xff] %vm1675_vm10, %v1584_v12  ;;  %2964 = vmatmul.mubr.msk.f32.vlgmr.msra.gmra.mrb[0].mxu0 %vm2160_vm13, %v2120_v15  ;;  %v5241_v12 = vld [vmem:[#allocation30_spill] sm:$0xff] }
 0x1f8   : > { %1427 = vrot.lane.b32.xlu1 %v4019_v62, %s3208_s6  ;;  %v4476_v62 = vrot.slane %v4123_v28, 1  ;;  %v1331_v15 = vsel %vm693_vm3, %v5241_v12, %v1330_v8 }
 0x1f9   : > { %v1616_v16 = vpop.permute.xlu0 %1615  ;;  %v2136_v51 = vld [vmem:[#allocation3 + $0x88] sm:$0xff] }
 0x1fa   : > { %1694 = vst.msk [vmem:[#allocation3 + $0x90] sm:$0xff] %vm1675_vm10, %v1616_v16  ;;  %2988 = vmatmul.mubr.msk.f32.vlgmr.msra.gmra.mrb[0].mxu1 %vm2160_vm13, %v2136_v51  ;;  %v1586_v32 = vpop.permute.xlu1 %1585  ;;  %v1772_v30 = vsel %vm491_vm2, %v1770_v31, %v4476_v62  ;;  %v1774_v14 = vsel %vm491_vm2, %v4476_v62, %v1773_v46 }
 0x1fb   : > { %1595 = vrot.lane.b32.xlu0 %v1517_v61, %s3209_s7  ;;  %1679 = vst.msk [vmem:[#allocation3 + $0x18] sm:$0xff] %vm1675_vm10, %v1586_v32  ;;  %v1367_v61 = vsel %vm693_vm3, %v4016_v2, %v1366_v11  ;;  %v4567_v32 = vld [vmem:[#allocation2 + $0x158] sm:$0xff] }
 0x1fc   : > { %1627 = vrot.lane.b32.xlu1 %v1537_v39, %s3209_s7  ;;  %v4564_v39 = vld [vmem:[#allocation2 + $0xb8] sm:$0xff] }
 0x1fd   : > { %v1618_v6 = vpop.permute.xlu0 %1617  ;;  %v1739_v23 = vrot.slane %v4564_v39, 1 }
 0x1fe   : > { %1695 = vst.msk [vmem:[#allocation3 + $0x98] sm:$0xff] %vm1675_vm10, %v1618_v6  ;;  %v1793_v45 = vpop.permute.xlu1 %1792  ;;  %v1775_v6 = vrot.slane %v4567_v32, 1 }
 0x1ff   : > { %1597 = vrot.lane.b32.xlu0 %v4467_v35, %s3209_s7  ;;  %1887 = vst.msk [vmem:[#allocation3 + $0x10] sm:$0xff] %vm1884_vm11, %v1793_v45  ;;  %v1740_v45 = vsel %vm491_vm2, %v1737_v63, %v1739_v23 }
 0x200   : > { %1629 = vrot.lane.b32.xlu1 %v4123_v28, %s3209_s7  ;;  %v1129_v28 = vrot.slane %v909_v17, 1 }
 0x201   : > { %v1825_v25 = vpop.permute.xlu0 %1824 }
 0x202   : > { %1903 = vst.msk [vmem:[#allocation3 + $0x90] sm:$0xff] %vm1884_vm11, %v1825_v25  ;;  %v1217_v40 = vpop.permute.xlu1 %1216  ;;  %v1130_v0 = vsel %vm491_vm2, %v5238_v41, %v1129_v28  ;;  %v4610_v28 = vld [vmem:[#allocation2 + $0x150] sm:$0xff] }
 0x203   : > { %1804 = vrot.lane.b32.xlu0 %v1736_v24, %s3210_s8  ;;  %1293 = vst.msk [vmem:[#allocation3 + $0xa0] sm:$0xff] %vm1272_vm8, %v1217_v40  ;;  %v3092_v24 = vld [vmem:[#allocation2 + $0x140] sm:$0xff] }
 0x204   : > { %1836 = vrot.lane.b32.xlu1 %v1772_v30, %s3210_s8  ;;  %v1167_v25 = vrot.slane %v3092_v24, 1  ;;  %v1521_v40 = vld [vmem:[#allocation2 + $0xc0] sm:$0x3] }
 0x205   : > { %v1795_v49 = vpop.permute.xlu0 %1794  ;;  %v1741_v63 = vrot.slane %v1521_v40, 1 }
 0x206   : > { %1888 = vst.msk [vmem:[#allocation3 + $0x18] sm:$0xff] %vm1884_vm11, %v1795_v49  ;;  %v1827_v52 = vpop.permute.xlu1 %1826  ;;  %v1776_v49 = vsel %vm491_vm2, %v1773_v46, %v1775_v6  ;;  %v1169_v56 = vsel %vm491_vm2, %v1167_v25, %v4476_v62  ;;  %v5242_v46 = vld [vmem:[#allocation17_spill] sm:$0xff]  ;;  %v4676_v25 = vld [vmem:[#allocation2 + $0xd8] sm:$0xff] }
 0x207   : > { %1196 = vrot.lane.b32.xlu0 %v5236_v55, %s3207_s24  ;;  %1904 = vst.msk [vmem:[#allocation3 + $0x98] sm:$0xff] %vm1884_vm11, %v1827_v52  ;;  %v1541_v55 = vld [vmem:[#allocation2 + $0x160] sm:$0x3]  ;;  %v1742_v17 = vsel %vm491_vm2, %v1739_v23, %v1741_v63 }
 0x208   : > { %1228 = vrot.lane.b32.xlu1 %v5237_v38, %s3207_s24 }
 0x209   : > { %v1994_v44 = vpop.permute.xlu0 %1993 }
 0x20a   : > { %2088 = vst.msk [vmem:[#allocation3 + $0x10] sm:$0xff] %vm2085_vm12, %v1994_v44  ;;  %v2026_v26 = vpop.permute.xlu1 %2025  ;;  %v1940_v44 = vrot.slane %v4564_v39, 2 }
 0x20b   : > { %1806 = vrot.lane.b32.xlu0 %v1738_v29, %s3210_s8  ;;  %2104 = vst.msk [vmem:[#allocation3 + $0x90] sm:$0xff] %vm2085_vm12, %v2026_v26  ;;  %v1777_v29 = vrot.slane %v1541_v55, 1 }
 0x20c   : > { %1838 = vrot.lane.b32.xlu1 %v1774_v14, %s3210_s8  ;;  %v1976_v14 = vrot.slane %v4567_v32, 2 }
 0x20d   : > { %v1187_v9 = vpop.permute.xlu0 %1186  ;;  %v1778_v26 = vsel %vm491_vm2, %v1775_v6, %v1777_v29  ;;  %v5246_v29 = vld [vmem:[#allocation20_spill] sm:$0xff] }
 0x20e   : > { %1278 = vst.msk [vmem:[#allocation3 + $0x28] sm:$0xff] %vm1272_vm8, %v1187_v9  ;;  %v1219_v18 = vpop.permute.xlu1 %1218  ;;  %v1170_v9 = vrot.slane %v4610_v28, 1  ;;  %v1977_v21 = vsel %vm693_vm3, %v1974_v5, %v1976_v14 }
 0x20f   : > { %2005 = vrot.lane.b32.xlu0 %v1937_v58, %s3211_s9  ;;  %1294 = vst.msk [vmem:[#allocation3 + $0xa8] sm:$0xff] %vm1272_vm8, %v1219_v18  ;;  %v1941_v58 = vsel %vm693_vm3, %v1938_v34, %v1940_v44 }
 0x210   : > { %2037 = vrot.lane.b32.xlu1 %v1973_v60, %s3211_s9 }
 0x211   : > { %v1386_v42 = vpop.permute.xlu0 %1385  ;;  %v2121_v37 = vld [vmem:[#allocation3 + $0x10] sm:$0xff] }
 0x212   : > { %1478 = vst.msk [vmem:[#allocation3 + $0x20] sm:$0xff] %vm1473_vm9, %v1386_v42  ;;  %2966 = vmatprep.mubr.msk.f32.mxu0 %vm2160_vm13, %v2121_v37  ;;  %v1418_v13 = vpop.permute.xlu1 %1417  ;;  %v2137_v22 = vld [vmem:[#allocation3 + $0x90] sm:$0xff]  ;;  %v1171_v42 = vsel %vm491_vm2, %v4476_v62, %v1170_v9 }
 0x213   : > { %1198 = vrot.lane.b32.xlu0 %v1130_v0, %s3207_s24  ;;  %1494 = vst.msk [vmem:[#allocation3 + $0xa0] sm:$0xff] %vm1473_vm9, %v1418_v13  ;;  %2990 = vmatprep.mubr.msk.f32.mxu1 %vm2160_vm13, %v2137_v22  ;;  %v1978_v22 = vrot.slane %v1541_v55, 2 }
 0x214   : > { %1230 = vrot.lane.b32.xlu1 %v1166_v1, %s3207_s24  ;;  %v1942_v1 = vrot.slane %v1521_v40, 2 }
 0x215   : > { %v1996_v4 = vpop.permute.xlu0 %1995 }
 0x216   : > { %2089 = vst.msk [vmem:[#allocation3 + $0x18] sm:$0xff] %vm2085_vm12, %v1996_v4  ;;  %v2028_v19 = vpop.permute.xlu1 %2027  ;;  %v5244_v4 = vld [vmem:[#allocation33_spill] sm:$0xff]  ;;  %v1943_v5 = vsel %vm693_vm3, %v1940_v44, %v1942_v1 }
 0x217   : > { %1397 = vrot.lane.b32.xlu0 %v5240_v50, %s3208_s6  ;;  %2105 = vst.msk [vmem:[#allocation3 + $0x98] sm:$0xff] %vm2085_vm12, %v2028_v19  ;;  %v1371_v19 = vrot.slane %v4610_v28, 2 }
 0x218   : > { %1429 = vrot.lane.b32.xlu1 %v4028_v54, %s3208_s6 }
 0x219   : > { %v1388_v3 = vpop.permute.xlu0 %1387  ;;  %v1372_v11 = vsel %vm693_vm3, %v4508_v59, %v1371_v19 }
 0x21a   : > { %1479 = vst.msk [vmem:[#allocation3 + $0x28] sm:$0xff] %vm1473_vm9, %v1388_v3  ;;  %v1420_v20 = vpop.permute.xlu1 %1419 }
 0x21b   : > { %2007 = vrot.lane.b32.xlu0 %v1939_v7, %s3211_s9  ;;  %1495 = vst.msk [vmem:[#allocation3 + $0xa8] sm:$0xff] %vm1473_vm9, %v1420_v20  ;;  %v1979_v7 = vsel %vm693_vm3, %v1976_v14, %v1978_v22 }
 0x21c   : > { %2039 = vrot.lane.b32.xlu1 %v1975_v10, %s3211_s9 }
 0x21d   : > { %v1588_v54 = vpop.permute.xlu0 %1587  ;;  %v2122_v36 = vld [vmem:[#allocation3 + $0x18] sm:$0xff] }
 0x21e   : > { %1680 = vst.msk [vmem:[#allocation3 + $0x20] sm:$0xff] %vm1675_vm10, %v1588_v54  ;;  %2967 = vmatmul.mubr.msk.f32.gmra.mrb[2].mxu0 %vm2160_vm13, %v2122_v36  ;;  %v1620_v16 = vpop.permute.xlu1 %1619  ;;  %v2138_v51 = vld [vmem:[#allocation3 + $0x98] sm:$0xff] }
 0x21f   : > { %1399 = vrot.lane.b32.xlu0 %v1331_v15, %s3208_s6  ;;  %1696 = vst.msk [vmem:[#allocation3 + $0xa0] sm:$0xff] %vm1675_vm10, %v1620_v16  ;;  %2991 = vmatmul.mubr.msk.f32.gmra.mrb[2].mxu1 %vm2160_vm13, %v2138_v51  ;;  %v5245_v15 = vld [vmem:[#allocation35_spill] sm:$0xff]  ;;  %v1522_v54 = vld [vmem:[#allocation2 + $0xc8] sm:$0xff] }
 0x220   : > { %1431 = vrot.lane.b32.xlu1 %v1367_v61, %s3208_s6  ;;  %v4656_v61 = vld [vmem:[#allocation2 + $0xd0] sm:$0xff] }
 0x221   : > { %v1590_v35 = vpop.permute.xlu0 %1589  ;;  %v4659_v51 = vld [vmem:[#allocation2 + $0x170] sm:$0xff] }
 0x222   : > { %1681 = vst.msk [vmem:[#allocation3 + $0x28] sm:$0xff] %vm1675_vm10, %v1590_v35  ;;  %v1622_v2 = vpop.permute.xlu1 %1621  ;;  %v1743_v35 = vrot.slane %v1522_v54, 1  ;;  %v1780_v23 = vrot.slane %v4659_v51, 1 }
 0x223   : > { %1599 = vrot.lane.b32.xlu0 %v4485_v43, %s3209_s7  ;;  %1697 = vst.msk [vmem:[#allocation3 + $0xa8] sm:$0xff] %vm1675_vm10, %v1622_v2  ;;  %v1368_v43 = vrot.slane %v3092_v24, 2 }
 0x224   : > { %1631 = vrot.lane.b32.xlu1 %v4490_v48, %s3209_s7 }
 0x225   : > { %v1797_v27 = vpop.permute.xlu0 %1796  ;;  %v1370_v62 = vsel %vm693_vm3, %v1368_v43, %v4508_v59  ;;  %v1542_v59 = vld [vmem:[#allocation2 + $0x168] sm:$0xff] }
 0x226   : > { %1889 = vst.msk [vmem:[#allocation3 + $0x20] sm:$0xff] %vm1884_vm11, %v1797_v27  ;;  %v1829_v31 = vpop.permute.xlu1 %1828  ;;  %v1980_v14 = vrot.slane %v1542_v59, 2 }
 0x227   : > { %1601 = vrot.lane.b32.xlu0 %v4564_v39, %s3209_s7  ;;  %1905 = vst.msk [vmem:[#allocation3 + $0xa0] sm:$0xff] %vm1884_vm11, %v1829_v31  ;;  %v1744_v39 = vrot.slane %v4656_v61, 1  ;;  %v4673_v31 = vld [vmem:[#allocation2 + $0x158] sm:$0xff] }
 0x228   : > { %1633 = vrot.lane.b32.xlu1 %v4567_v32, %s3209_s7  ;;  %v1779_v32 = vrot.slane %v1542_v59, 1 }
 0x229   : > { %v1189_v30 = vpop.permute.xlu0 %1188  ;;  %v1745_v6 = vsel %vm491_vm2, %v1743_v35, %v1744_v39  ;;  %v1525_v35 = vld [vmem:[#allocation2 + $0xe0] sm:$0xff] }
 0x22a   : > { %1279 = vst.msk [vmem:[#allocation3 + $0x30] sm:$0xff] %vm1272_vm8, %v1189_v30  ;;  %v1221_v52 = vpop.permute.xlu1 %1220  ;;  %v1781_v30 = vsel %vm491_vm2, %v1779_v32, %v1780_v23  ;;  %v1748_v32 = vrot.slane %v1525_v35, 1 }
 0x22b   : > { %1808 = vrot.lane.b32.xlu0 %v1740_v45, %s3210_s8  ;;  %1295 = vst.msk [vmem:[#allocation3 + $0xb0] sm:$0xff] %vm1272_vm8, %v1221_v52  ;;  %v1172_v45 = vrot.slane %v4673_v31, 1  ;;  %v1746_v52 = vrot.slane %v4676_v25, 1 }
 0x22c   : > { %1840 = vrot.lane.b32.xlu1 %v1776_v49, %s3210_s8  ;;  %v4680_v49 = vld [vmem:[#allocation2 + $0x178] sm:$0xff] }
 0x22d   : > { %v1799_v53 = vpop.permute.xlu0 %1798  ;;  %v1173_v63 = vsel %vm491_vm2, %v1170_v9, %v1172_v45  ;;  %v1747_v44 = vsel %vm491_vm2, %v1744_v39, %v1746_v52  ;;  %v934_v9 = vld [vmem:[#allocation2 + $0x160] sm:$0x3] }
 0x22e   : > { %1890 = vst.msk [vmem:[#allocation3 + $0x28] sm:$0xff] %vm1884_vm11, %v1799_v53  ;;  %v1831_v38 = vpop.permute.xlu1 %1830  ;;  %v1782_v53 = vrot.slane %v4680_v49, 1 }
 0x22f   : > { %1200 = vrot.lane.b32.xlu0 %v5242_v46, %s3207_s24  ;;  %1906 = vst.msk [vmem:[#allocation3 + $0xa8] sm:$0xff] %vm1884_vm11, %v1831_v38  ;;  %v1944_v38 = vrot.slane %v1522_v54, 2  ;;  %v1945_v46 = vrot.slane %v4656_v61, 2 }
 0x230   : > { %1232 = vrot.lane.b32.xlu1 %v1169_v56, %s3207_s24 }
 0x231   : > { %v1998_v47 = vpop.permute.xlu0 %1997 }
 0x232   : > { %2090 = vst.msk [vmem:[#allocation3 + $0x20] sm:$0xff] %vm2085_vm12, %v1998_v47  ;;  %v2030_v33 = vpop.permute.xlu1 %2029  ;;  %v914_v47 = vld [vmem:[#allocation2 + $0xc0] sm:$0x3] }
 0x233   : > { %1810 = vrot.lane.b32.xlu0 %v1742_v17, %s3210_s8  ;;  %2106 = vst.msk [vmem:[#allocation3 + $0xa0] sm:$0xff] %vm2085_vm12, %v2030_v33  ;;  %v1783_v33 = vsel %vm491_vm2, %v1780_v23, %v1782_v53 }
 0x234   : > { %1842 = vrot.lane.b32.xlu1 %v1778_v26, %s3210_s8  ;;  %v1981_v26 = vrot.slane %v4659_v51, 2 }
 0x235   : > { %v1191_v60 = vpop.permute.xlu0 %1190 }
 0x236   : > { %1280 = vst.msk [vmem:[#allocation3 + $0x38] sm:$0xff] %vm1272_vm8, %v1191_v60  ;;  %v1223_v18 = vpop.permute.xlu1 %1222  ;;  %v1946_v60 = vsel %vm693_vm3, %v1944_v38, %v1945_v46  ;;  %v1982_v43 = vsel %vm693_vm3, %v1980_v14, %v1981_v26 }
 0x237   : > { %2009 = vrot.lane.b32.xlu0 %v1941_v58, %s3211_s9  ;;  %1296 = vst.msk [vmem:[#allocation3 + $0xb8] sm:$0xff] %vm1272_vm8, %v1223_v18 }
 0x238   : > { %2041 = vrot.lane.b32.xlu1 %v1977_v21, %s3211_s9  ;;  %v1138_v21 = vrot.slane %v914_v47, 1 }
 0x239   : > { %v1390_v41 = vpop.permute.xlu0 %1389  ;;  %v2123_v0 = vld [vmem:[#allocation3 + $0x20] sm:$0xff] }
 0x23a   : > { %1480 = vst.msk [vmem:[#allocation3 + $0x30] sm:$0xff] %vm1473_vm9, %v1390_v41  ;;  %2969 = vmatprep.mubr.msk.f32.mxu0 %vm2160_vm13, %v2123_v0  ;;  %v1422_v48 = vpop.permute.xlu1 %1421  ;;  %v2139_v37 = vld [vmem:[#allocation3 + $0xa0] sm:$0xff]  ;;  %v1174_v41 = vrot.slane %v934_v9, 1 }
 0x23b   : > { %1202 = vrot.lane.b32.xlu0 %v5243_v57, %s3207_s24  ;;  %1496 = vst.msk [vmem:[#allocation3 + $0xb0] sm:$0xff] %vm1473_vm9, %v1422_v48  ;;  %2993 = vmatprep.mubr.msk.f32.mxu1 %vm2160_vm13, %v2139_v37  ;;  %v1373_v37 = vrot.slane %v4673_v31, 2 }
 0x23c   : > { %1234 = vrot.lane.b32.xlu1 %v1171_v42, %s3207_s24  ;;  %v5247_v42 = vld [vmem:[#allocation18_spill] sm:$0xff] }
 0x23d   : > { %v2000_v13 = vpop.permute.xlu0 %1999  ;;  %v1139_v48 = vsel %vm491_vm2, %v5247_v42, %v1138_v21 }
 0x23e   : > { %2091 = vst.msk [vmem:[#allocation3 + $0x28] sm:$0xff] %vm2085_vm12, %v2000_v13  ;;  %v2032_v34 = vpop.permute.xlu1 %2031  ;;  %v1175_v13 = vsel %vm491_vm2, %v1172_v45, %v1174_v41  ;;  %v1546_v45 = vld [vmem:[#allocation2 + $0x188] sm:$0x3] }
 0x23f   : > { %1401 = vrot.lane.b32.xlu0 %v5244_v4, %s3208_s6  ;;  %2107 = vst.msk [vmem:[#allocation3 + $0xa8] sm:$0xff] %vm2085_vm12, %v2032_v34  ;;  %v1947_v34 = vrot.slane %v4676_v25, 2 }
 0x240   : > { %1433 = vrot.lane.b32.xlu1 %v1370_v62, %s3208_s6 }
 0x241   : > { %v1392_v50 = vpop.permute.xlu0 %1391 }
 0x242   : > { %1481 = vst.msk [vmem:[#allocation3 + $0x38] sm:$0xff] %vm1473_vm9, %v1392_v50  ;;  %v1424_v8 = vpop.permute.xlu1 %1423  ;;  %v1983_v50 = vrot.slane %v4680_v49, 2 }
 0x243   : > { %2011 = vrot.lane.b32.xlu0 %v1943_v5, %s3211_s9  ;;  %1497 = vst.msk [vmem:[#allocation3 + $0xb8] sm:$0xff] %vm1473_vm9, %v1424_v8  ;;  %v1374_v5 = vsel %vm693_vm3, %v1371_v19, %v1373_v37  ;;  %v5248_v8 = vld [vmem:[#allocation36_spill] sm:$0xff] }
 0x244   : > { %2043 = vrot.lane.b32.xlu1 %v1979_v7, %s3211_s9  ;;  %v1984_v19 = vsel %vm693_vm3, %v1981_v26, %v1983_v50 }
 0x245   : > { %v1592_v3 = vpop.permute.xlu0 %1591  ;;  %v2124_v10 = vld [vmem:[#allocation3 + $0x28] sm:$0xff] }
 0x246   : > { %1682 = vst.msk [vmem:[#allocation3 + $0x30] sm:$0xff] %vm1675_vm10, %v1592_v3  ;;  %2970 = vmatmul.mubr.msk.f32.gmra.mrb[4].mxu0 %vm2160_vm13, %v2124_v10  ;;  %v1624_v20 = vpop.permute.xlu1 %1623  ;;  %v2140_v12 = vld [vmem:[#allocation3 + $0xa8] sm:$0xff]  ;;  %v1948_v3 = vsel %vm693_vm3, %v1945_v46, %v1947_v34  ;;  %v1339_v10 = vrot.slane %v914_v47, 2 }
 0x247   : > { %1403 = vrot.lane.b32.xlu0 %v5245_v15, %s3208_s6  ;;  %1698 = vst.msk [vmem:[#allocation3 + $0xb0] sm:$0xff] %vm1675_vm10, %v1624_v20  ;;  %2994 = vmatmul.mubr.msk.f32.gmra.mrb[4].mxu1 %vm2160_vm13, %v2140_v12  ;;  %v5249_v12 = vld [vmem:[#allocation34_spill] sm:$0xff] }
 0x248   : > { %1435 = vrot.lane.b32.xlu1 %v1372_v11, %s3208_s6  ;;  %v1375_v11 = vrot.slane %v934_v9, 2  ;;  %v1340_v15 = vsel %vm693_vm3, %v5249_v12, %v1339_v10 }
 0x249   : > { %v1594_v36 = vpop.permute.xlu0 %1593 }
 0x24a   : > { %1683 = vst.msk [vmem:[#allocation3 + $0x38] sm:$0xff] %vm1675_vm10, %v1594_v36  ;;  %v1626_v16 = vpop.permute.xlu1 %1625 }
 0x24b   : > { %1603 = vrot.lane.b32.xlu0 %v1522_v54, %s3209_s7  ;;  %1699 = vst.msk [vmem:[#allocation3 + $0xb8] sm:$0xff] %vm1675_vm10, %v1626_v16 }
 0x24c   : > { %1635 = vrot.lane.b32.xlu1 %v1542_v59, %s3209_s7 }
 0x24d   : > { %v1801_v2 = vpop.permute.xlu0 %1800 }
 0x24e   : > { %1891 = vst.msk [vmem:[#allocation3 + $0x30] sm:$0xff] %vm1884_vm11, %v1801_v2  ;;  %v1833_v27 = vpop.permute.xlu1 %1832  ;;  %v1545_v2 = vld [vmem:[#allocation2 + $0x180] sm:$0xff] }
 0x24f   : > { %1605 = vrot.lane.b32.xlu0 %v4656_v61, %s3209_s7  ;;  %1907 = vst.msk [vmem:[#allocation3 + $0xb0] sm:$0xff] %vm1884_vm11, %v1833_v27  ;;  %v1376_v61 = vsel %vm693_vm3, %v1373_v37, %v1375_v11  ;;  %v1526_v27 = vld [vmem:[#allocation2 + $0xe8] sm:$0x3]  ;;  %v1985_v46 = vrot.slane %v1545_v2, 2 }
 0x250   : > { %1637 = vrot.lane.b32.xlu1 %v4659_v51, %s3209_s7  ;;  %v1951_v47 = vrot.slane %v1526_v27, 2 }
 0x251   : > { %v1193_v24 = vpop.permute.xlu0 %1192  ;;  %v1986_v26 = vsel %vm693_vm3, %v1983_v50, %v1985_v46 }
 0x252   : > { %1281 = vst.msk [vmem:[#allocation3 + $0x40] sm:$0xff] %vm1272_vm8, %v1193_v24  ;;  %v1225_v40 = vpop.permute.xlu1 %1224  ;;  %v1749_v24 = vsel %vm491_vm2, %v1746_v52, %v1748_v32 }
 0x253   : > { %1812 = vrot.lane.b32.xlu0 %v1745_v6, %s3210_s8  ;;  %1297 = vst.msk [vmem:[#allocation3 + $0xc0] sm:$0xff] %vm1272_vm8, %v1225_v40  ;;  %v1784_v6 = vrot.slane %v1545_v2, 1 }
 0x254   : > { %1844 = vrot.lane.b32.xlu1 %v1781_v30, %s3210_s8  ;;  %v1750_v30 = vrot.slane %v1526_v27, 1 }
 0x255   : > { %v1803_v55 = vpop.permute.xlu0 %1802 }
 0x256   : > { %1892 = vst.msk [vmem:[#allocation3 + $0x38] sm:$0xff] %vm1884_vm11, %v1803_v55  ;;  %v1835_v56 = vpop.permute.xlu1 %1834  ;;  %v1785_v55 = vsel %vm491_vm2, %v1782_v53, %v1784_v6  ;;  %v1751_v38 = vsel %vm491_vm2, %v1748_v32, %v1750_v30 }
 0x257   : > { %1204 = vrot.lane.b32.xlu0 %v5246_v29, %s3207_s24  ;;  %1908 = vst.msk [vmem:[#allocation3 + $0xb8] sm:$0xff] %vm1884_vm11, %v1835_v56  ;;  %v1949_v29 = vrot.slane %v1525_v35, 2 }
 0x258   : > { %1236 = vrot.lane.b32.xlu1 %v1173_v63, %s3207_s24  ;;  %v1786_v63 = vrot.slane %v1546_v45, 1 }
 0x259   : > { %v2002_v17 = vpop.permute.xlu0 %2001 }
 0x25a   : > { %2092 = vst.msk [vmem:[#allocation3 + $0x30] sm:$0xff] %vm2085_vm12, %v2002_v17  ;;  %v2034_v58 = vpop.permute.xlu1 %2033  ;;  %v1950_v17 = vsel %vm693_vm3, %v1947_v34, %v1949_v29 }
 0x25b   : > { %1814 = vrot.lane.b32.xlu0 %v1747_v44, %s3210_s8  ;;  %2108 = vst.msk [vmem:[#allocation3 + $0xb0] sm:$0xff] %vm2085_vm12, %v2034_v58  ;;  %v1787_v44 = vsel %vm491_vm2, %v1784_v6, %v1786_v63 }
 0x25c   : > { %1846 = vrot.lane.b32.xlu1 %v1783_v33, %s3210_s8  ;;  %v1987_v33 = vrot.slane %v1546_v45, 2  ;;  %v4835_v45 = vld [vmem:[#allocation6] ss:$0 sm:$0xff] }
 0x25d   : > { %v1195_v18 = vpop.permute.xlu0 %1194 }
 0x25e   : > { %1282 = vst.msk [vmem:[#allocation3 + $0x48] sm:$0xff] %vm1272_vm8, %v1195_v18  ;;  %v1227_v0 = vpop.permute.xlu1 %1226 }
 0x25f   : > { %2013 = vrot.lane.b32.xlu0 %v1946_v60, %s3211_s9  ;;  %1298 = vst.msk [vmem:[#allocation3 + $0xc8] sm:$0xff] %vm1272_vm8, %v1227_v0  ;;  %v1988_v60 = vsel %vm693_vm3, %v1985_v46, %v1987_v33 }
 0x260   : > { %2045 = vrot.lane.b32.xlu1 %v1982_v43, %s3211_s9 }
 0x261   : > { %v1394_v57 = vpop.permute.xlu0 %1393  ;;  %v2125_v1 = vld [vmem:[#allocation3 + $0x30] sm:$0xff] }
 0x262   : > { %1482 = vst.msk [vmem:[#allocation3 + $0x40] sm:$0xff] %vm1473_vm9, %v1394_v57  ;;  %2972 = vmatprep.mubr.msk.f32.mxu0 %vm2160_vm13, %v2125_v1  ;;  %v1426_v62 = vpop.permute.xlu1 %1425  ;;  %v2141_v22 = vld [vmem:[#allocation3 + $0xb0] sm:$0xff] }
 0x263   : > { %1206 = vrot.lane.b32.xlu0 %v1139_v48, %s3207_s24  ;;  %1498 = vst.msk [vmem:[#allocation3 + $0xc0] sm:$0xff] %vm1473_vm9, %v1426_v62  ;;  %2996 = vmatprep.mubr.msk.f32.mxu1 %vm2160_vm13, %v2141_v22 }
 0x264   : > { %1238 = vrot.lane.b32.xlu1 %v1175_v13, %s3207_s24 }
 0x265   : > { %v2004_v4 = vpop.permute.xlu0 %2003 }
 0x266   : > { %2093 = vst.msk [vmem:[#allocation3 + $0x38] sm:$0xff] %vm2085_vm12, %v2004_v4  ;;  %v2036_v7 = vpop.permute.xlu1 %2035 }
 0x267   : > { %1405 = vrot.lane.b32.xlu0 %v5248_v8, %s3208_s6  ;;  %2109 = vst.msk [vmem:[#allocation3 + $0xb8] sm:$0xff] %vm2085_vm12, %v2036_v7 }
 0x268   : > { %1437 = vrot.lane.b32.xlu1 %v1374_v5, %s3208_s6 }
 0x269   : > { %v1396_v28 = vpop.permute.xlu0 %1395 }
 0x26a   : > { %1483 = vst.msk [vmem:[#allocation3 + $0x48] sm:$0xff] %vm1473_vm9, %v1396_v28  ;;  %v1428_v20 = vpop.permute.xlu1 %1427 }
 0x26b   : > { %2015 = vrot.lane.b32.xlu0 %v1948_v3, %s3211_s9  ;;  %1499 = vst.msk [vmem:[#allocation3 + $0xc8] sm:$0xff] %vm1473_vm9, %v1428_v20 }
 0x26c   : > { %2047 = vrot.lane.b32.xlu1 %v1984_v19, %s3211_s9 }
 0x26d   : > { %v1596_v54 = vpop.permute.xlu0 %1595  ;;  %v2126_v36 = vld [vmem:[#allocation3 + $0x38] sm:$0xff] }
 0x26e   : > { %1684 = vst.msk [vmem:[#allocation3 + $0x40] sm:$0xff] %vm1675_vm10, %v1596_v54  ;;  %2973 = vmatmul.mubr.msk.f32.gmra.mrb[6].mxu0 %vm2160_vm13, %v2126_v36  ;;  %v1628_v59 = vpop.permute.xlu1 %1627  ;;  %v2142_v16 = vld [vmem:[#allocation3 + $0xb8] sm:$0xff] }
 0x26f   : > { %1407 = vrot.lane.b32.xlu0 %v1340_v15, %s3208_s6  ;;  %1700 = vst.msk [vmem:[#allocation3 + $0xc0] sm:$0xff] %vm1675_vm10, %v1628_v59  ;;  %2997 = vmatmul.mubr.msk.f32.gmra.mrb[6].mxu1 %vm2160_vm13, %v2142_v16 }
 0x270   : > { %1439 = vrot.lane.b32.xlu1 %v1376_v61, %s3208_s6 }
 0x271   : > { %v1598_v51 = vpop.permute.xlu0 %1597 }
 0x272   : > { %1685 = vst.msk [vmem:[#allocation3 + $0x48] sm:$0xff] %vm1675_vm10, %v1598_v51  ;;  %v1630_v39 = vpop.permute.xlu1 %1629 }
 0x273   : > { %1607 = vrot.lane.b32.xlu0 %v4676_v25, %s3209_s7  ;;  %1701 = vst.msk [vmem:[#allocation3 + $0xc8] sm:$0xff] %vm1675_vm10, %v1630_v39  ;;  %v1952_v25 = vsel %vm693_vm3, %v1949_v29, %v1951_v47 }
 0x274   : > { %1639 = vrot.lane.b32.xlu1 %v4680_v49, %s3209_s7 }
 0x275   : > { %v1805_v23 = vpop.permute.xlu0 %1804 }
 0x276   : > { %1893 = vst.msk [vmem:[#allocation3 + $0x40] sm:$0xff] %vm1884_vm11, %v1805_v23  ;;  %v1837_v31 = vpop.permute.xlu1 %1836 }
 0x277   : > { %1609 = vrot.lane.b32.xlu0 %v1525_v35, %s3209_s7  ;;  %1909 = vst.msk [vmem:[#allocation3 + $0xc0] sm:$0xff] %vm1884_vm11, %v1837_v31 }
 0x278   : > { %1641 = vrot.lane.b32.xlu1 %v1545_v2, %s3209_s7 }
 0x279   : > { %v1197_v40 = vpop.permute.xlu0 %1196 }
 0x27a   : > { %1283 = vst.msk [vmem:[#allocation3 + $0x50] sm:$0xff] %vm1272_vm8, %v1197_v40  ;;  %v1229_v56 = vpop.permute.xlu1 %1228 }
 0x27b   : > { %1816 = vrot.lane.b32.xlu0 %v1749_v24, %s3210_s8  ;;  %1299 = vst.msk [vmem:[#allocation3 + $0xd0] sm:$0xff] %vm1272_vm8, %v1229_v56 }
 0x27c   : > { %1848 = vrot.lane.b32.xlu1 %v1785_v55, %s3210_s8 }
 0x27d   : > { %v1807_v52 = vpop.permute.xlu0 %1806 }
 0x27e   : > { %1894 = vst.msk [vmem:[#allocation3 + $0x48] sm:$0xff] %vm1884_vm11, %v1807_v52  ;;  %v1839_v53 = vpop.permute.xlu1 %1838 }
 0x27f   : > { %1818 = vrot.lane.b32.xlu0 %v1751_v38, %s3210_s8  ;;  %1910 = vst.msk [vmem:[#allocation3 + $0xc8] sm:$0xff] %vm1884_vm11, %v1839_v53 }
 0x280   : > { %1850 = vrot.lane.b32.xlu1 %v1787_v44, %s3210_s8 }
 0x281   : > { %v2006_v14 = vpop.permute.xlu0 %2005 }
 0x282   : > { %2094 = vst.msk [vmem:[#allocation3 + $0x40] sm:$0xff] %vm2085_vm12, %v2006_v14  ;;  %v2038_v58 = vpop.permute.xlu1 %2037 }
 0x283   : > { %2017 = vrot.lane.b32.xlu0 %v1950_v17, %s3211_s9  ;;  %2110 = vst.msk [vmem:[#allocation3 + $0xc0] sm:$0xff] %vm2085_vm12, %v2038_v58 }
 0x284   : > { %2049 = vrot.lane.b32.xlu1 %v1986_v26, %s3211_s9 }
 0x285   : > { %v1199_v9 = vpop.permute.xlu0 %1198 }
 0x286   : > { %1284 = vst.msk [vmem:[#allocation3 + $0x58] sm:$0xff] %vm1272_vm8, %v1199_v9  ;;  %v1231_v49 = vpop.permute.xlu1 %1230 }
 0x287   : > { %2019 = vrot.lane.b32.xlu0 %v1952_v25, %s3211_s9  ;;  %1300 = vst.msk [vmem:[#allocation3 + $0xd8] sm:$0xff] %vm1272_vm8, %v1231_v49 }
 0x288   : > { %2051 = vrot.lane.b32.xlu1 %v1988_v60, %s3211_s9 }
 0x289   : > { %v1398_v21 = vpop.permute.xlu0 %1397  ;;  %v2127_v18 = vld [vmem:[#allocation3 + $0x40] sm:$0xff] }
 0x28a   : > { %1484 = vst.msk [vmem:[#allocation3 + $0x50] sm:$0xff] %vm1473_vm9, %v1398_v21  ;;  %2975 = vmatprep.mubr.msk.f32.mxu0 %vm2160_vm13, %v2127_v18  ;;  %v1430_v43 = vpop.permute.xlu1 %1429  ;;  %v2143_v41 = vld [vmem:[#allocation3 + $0xc0] sm:$0xff] }
 0x28b   : > { %1500 = vst.msk [vmem:[#allocation3 + $0xd0] sm:$0xff] %vm1473_vm9, %v1430_v43  ;;  %2999 = vmatprep.mubr.msk.f32.mxu1 %vm2160_vm13, %v2143_v41 }
 0x28d   : > { %v2008_v0 = vpop.permute.xlu0 %2007 }
 0x28e   : > { %2095 = vst.msk [vmem:[#allocation3 + $0x48] sm:$0xff] %vm2085_vm12, %v2008_v0  ;;  %v2040_v42 = vpop.permute.xlu1 %2039 }
 0x28f   : > { %2111 = vst.msk [vmem:[#allocation3 + $0xc8] sm:$0xff] %vm2085_vm12, %v2040_v42 }
 0x291   : > { %v1400_v48 = vpop.permute.xlu0 %1399 }
 0x292   : > { %1485 = vst.msk [vmem:[#allocation3 + $0x58] sm:$0xff] %vm1473_vm9, %v1400_v48  ;;  %v1432_v37 = vpop.permute.xlu1 %1431 }
 0x293   : > { %1501 = vst.msk [vmem:[#allocation3 + $0xd8] sm:$0xff] %vm1473_vm9, %v1432_v37 }
 0x295   : > { %v1600_v57 = vpop.permute.xlu0 %1599  ;;  %v2128_v1 = vld [vmem:[#allocation3 + $0x48] sm:$0xff] }
 0x296   : > { %1686 = vst.msk [vmem:[#allocation3 + $0x50] sm:$0xff] %vm1675_vm10, %v1600_v57  ;;  %2976 = vmatmul.mubr.msk.f32.gmra.mrb[8].mxu0 %vm2160_vm13, %v2128_v1  ;;  %v1632_v13 = vpop.permute.xlu1 %1631  ;;  %v2144_v62 = vld [vmem:[#allocation3 + $0xc8] sm:$0xff] }
 0x297   : > { %1702 = vst.msk [vmem:[#allocation3 + $0xd0] sm:$0xff] %vm1675_vm10, %v1632_v13  ;;  %3000 = vmatmul.mubr.msk.f32.gmra.mrb[8].mxu1 %vm2160_vm13, %v2144_v62 }
 0x299   : > { %v1602_v22 = vpop.permute.xlu0 %1601 }
 0x29a   : > { %1687 = vst.msk [vmem:[#allocation3 + $0x58] sm:$0xff] %vm1675_vm10, %v1602_v22  ;;  %v1634_v34 = vpop.permute.xlu1 %1633 }
 0x29b   : > { %1703 = vst.msk [vmem:[#allocation3 + $0xd8] sm:$0xff] %vm1675_vm10, %v1634_v34 }
 0x29d   : > { %v1809_v4 = vpop.permute.xlu0 %1808 }
 0x29e   : > { %1895 = vst.msk [vmem:[#allocation3 + $0x50] sm:$0xff] %vm1884_vm11, %v1809_v4  ;;  %v1841_v5 = vpop.permute.xlu1 %1840 }
 0x29f   : > { %1911 = vst.msk [vmem:[#allocation3 + $0xd0] sm:$0xff] %vm1884_vm11, %v1841_v5 }
 0x2a1   : > { %v1201_v50 = vpop.permute.xlu0 %1200 }
 0x2a2   : > { %1285 = vst.msk [vmem:[#allocation3 + $0x60] sm:$0xff] %vm1272_vm8, %v1201_v50  ;;  %v1233_v7 = vpop.permute.xlu1 %1232 }
 0x2a3   : > { %1301 = vst.msk [vmem:[#allocation3 + $0xe0] sm:$0xff] %vm1272_vm8, %v1233_v7 }
 0x2a5   : > { %v1811_v8 = vpop.permute.xlu0 %1810 }
 0x2a6   : > { %1896 = vst.msk [vmem:[#allocation3 + $0x58] sm:$0xff] %vm1884_vm11, %v1811_v8  ;;  %v1843_v3 = vpop.permute.xlu1 %1842 }
 0x2a7   : > { %1912 = vst.msk [vmem:[#allocation3 + $0xd8] sm:$0xff] %vm1884_vm11, %v1843_v3 }
 0x2a9   : > { %v2010_v10 = vpop.permute.xlu0 %2009 }
 0x2aa   : > { %2096 = vst.msk [vmem:[#allocation3 + $0x50] sm:$0xff] %vm2085_vm12, %v2010_v10  ;;  %v2042_v28 = vpop.permute.xlu1 %2041 }
 0x2ab   : > { %2112 = vst.msk [vmem:[#allocation3 + $0xd0] sm:$0xff] %vm2085_vm12, %v2042_v28 }
 0x2ad   : > { %v1203_v19 = vpop.permute.xlu0 %1202 }
 0x2ae   : > { %1286 = vst.msk [vmem:[#allocation3 + $0x68] sm:$0xff] %vm1272_vm8, %v1203_v19  ;;  %v1235_v11 = vpop.permute.xlu1 %1234 }
 0x2af   : > { %1302 = vst.msk [vmem:[#allocation3 + $0xe8] sm:$0xff] %vm1272_vm8, %v1235_v11 }
 0x2b1   : > { %v1402_v20 = vpop.permute.xlu0 %1401  ;;  %v2129_v12 = vld [vmem:[#allocation3 + $0x50] sm:$0xff] }
 0x2b2   : > { %1486 = vst.msk [vmem:[#allocation3 + $0x60] sm:$0xff] %vm1473_vm9, %v1402_v20  ;;  %2978 = vmatprep.mubr.msk.f32.mxu0 %vm2160_vm13, %v2129_v12  ;;  %v1434_v15 = vpop.permute.xlu1 %1433  ;;  %v2145_v54 = vld [vmem:[#allocation3 + $0xd0] sm:$0xff] }
 0x2b3   : > { %1502 = vst.msk [vmem:[#allocation3 + $0xe0] sm:$0xff] %vm1473_vm9, %v1434_v15  ;;  %3002 = vmatprep.mubr.msk.f32.mxu1 %vm2160_vm13, %v2145_v54 }
 0x2b5   : > { %v2012_v36 = vpop.permute.xlu0 %2011 }
 0x2b6   : > { %2097 = vst.msk [vmem:[#allocation3 + $0x58] sm:$0xff] %vm2085_vm12, %v2012_v36  ;;  %v2044_v61 = vpop.permute.xlu1 %2043 }
 0x2b7   : > { %2113 = vst.msk [vmem:[#allocation3 + $0xd8] sm:$0xff] %vm2085_vm12, %v2044_v61 }
 0x2b9   : > { %v1404_v59 = vpop.permute.xlu0 %1403 }
 0x2ba   : > { %1487 = vst.msk [vmem:[#allocation3 + $0x68] sm:$0xff] %vm1473_vm9, %v1404_v59  ;;  %v1436_v16 = vpop.permute.xlu1 %1435 }
 0x2bb   : > { %1503 = vst.msk [vmem:[#allocation3 + $0xe8] sm:$0xff] %vm1473_vm9, %v1436_v16 }
 0x2bd   : > { %v1604_v51 = vpop.permute.xlu0 %1603  ;;  %v2130_v35 = vld [vmem:[#allocation3 + $0x58] sm:$0xff] }
 0x2be   : > { %1688 = vst.msk [vmem:[#allocation3 + $0x60] sm:$0xff] %vm1675_vm10, %v1604_v51  ;;  %2979 = vmatmul.mubr.msk.f32.gmra.mrb[10].mxu0 %vm2160_vm13, %v2130_v35  ;;  %v1636_v39 = vpop.permute.xlu1 %1635  ;;  %v2146_v2 = vld [vmem:[#allocation3 + $0xd8] sm:$0xff] }
 0x2bf   : > { %1704 = vst.msk [vmem:[#allocation3 + $0xe0] sm:$0xff] %vm1675_vm10, %v1636_v39  ;;  %3003 = vmatmul.mubr.msk.f32.gmra.mrb[10].mxu1 %vm2160_vm13, %v2146_v2 }
 0x2c1   : > { %v1606_v32 = vpop.permute.xlu0 %1605 }
 0x2c2   : > { %1689 = vst.msk [vmem:[#allocation3 + $0x68] sm:$0xff] %vm1675_vm10, %v1606_v32  ;;  %v1638_v23 = vpop.permute.xlu1 %1637 }
 0x2c3   : > { %1705 = vst.msk [vmem:[#allocation3 + $0xe8] sm:$0xff] %vm1675_vm10, %v1638_v23 }
 0x2c5   : > { %v1813_v27 = vpop.permute.xlu0 %1812 }
 0x2c6   : > { %1897 = vst.msk [vmem:[#allocation3 + $0x60] sm:$0xff] %vm1884_vm11, %v1813_v27  ;;  %v1845_v6 = vpop.permute.xlu1 %1844 }
 0x2c7   : > { %1913 = vst.msk [vmem:[#allocation3 + $0xe0] sm:$0xff] %vm1884_vm11, %v1845_v6 }
 0x2c9   : > { %v1205_v31 = vpop.permute.xlu0 %1204 }
 0x2ca   : > { %1287 = vst.msk [vmem:[#allocation3 + $0x70] sm:$0xff] %vm1272_vm8, %v1205_v31  ;;  %v1237_v24 = vpop.permute.xlu1 %1236  ;;  %v2965_v30 = vpop.f32.mrb[0].mxu0 }
 0x2cb   : > { %1303 = vst.msk [vmem:[#allocation3 + $0xf0] sm:$0xff] %vm1272_vm8, %v1237_v24  ;;  %v2333_v40 = vadd.f32 %v2965_v30, %v4835_v45  ;;  %v2327_v55 = vpop.f32.mrb[1].mxu0 }
 0x2cc   : > { %v2328_v63 = vadd.f32 %v4835_v45, %v2327_v55 }
 0x2cd   : > { %v2989_v56 = vpop.f32.mrb[0].mxu1  ;;  %v1815_v29 = vpop.permute.xlu0 %1814  ;;  %v2487_v38 = vmax.f32 %v2333_v40, 0.0 }
 0x2ce   : > { %v4841_v52 = vadd.f32 %v2989_v56, %v4835_v45  ;;  %1898 = vst.msk [vmem:[#allocation3 + $0x68] sm:$0xff] %vm1884_vm11, %v1815_v29  ;;  %v2407_v46 = vpop.f32.mrb[1].mxu1  ;;  %v2486_v44 = vmax.f32 %v2328_v63, 0.0  ;;  %v1847_v53 = vpop.permute.xlu1 %1846 }
 0x2cf   : > { %v4845_v17 = vadd.f32 %v4835_v45, %v2407_v46  ;;  %2520 = vst.msk [vmem:[%s3422_s27 + $0x8] sm:$0xff] %vm2518_vm14, %v2487_v38  ;;  %2585 = vrot.lane.b32.xlu1 %v2487_v38, %s3212_s10 }
 0x2d0   : > { %1914 = vst.msk [vmem:[#allocation3 + $0xe8] sm:$0xff] %vm1884_vm11, %v1847_v53  ;;  %v2503_v47 = vmax.f32 %v4841_v52, 0.0  ;;  %2583 = vrot.lane.b32.xlu0 %v2486_v44, %s3212_s10 }
 0x2d1   : > { %2519 = vst.msk [vmem:[%s3422_s27] sm:$0xff] %vm2518_vm14, %v2486_v44  ;;  %v2502_v14 = vmax.f32 %v4845_v17, 0.0  ;;  %v2014_v26 = vpop.permute.xlu0 %2013 }
 0x2d2   : > { %2536 = vst.msk [vmem:[%s3422_s27 + $0x108] sm:$0xff] %vm2518_vm14, %v2503_v47  ;;  %v2046_v33 = vpop.permute.xlu1 %2045 }
 0x2d3   : > { %2098 = vst.msk [vmem:[#allocation3 + $0x60] sm:$0xff] %vm2085_vm12, %v2014_v26  ;;  %2114 = vst.msk [vmem:[#allocation3 + $0xe0] sm:$0xff] %vm2085_vm12, %v2046_v33 }
 0x2d4   : > { %2535 = vst.msk [vmem:[%s3422_s27 + $0x100] sm:$0xff] %vm2518_vm14, %v2502_v14 }
 0x2d5   : > { %v1207_v58 = vpop.permute.xlu0 %1206 }
 0x2d6   : > { %1288 = vst.msk [vmem:[#allocation3 + $0x78] sm:$0xff] %vm1272_vm8, %v1207_v58  ;;  %v1239_v25 = vpop.permute.xlu1 %1238 }
 0x2d7   : > { %1304 = vst.msk [vmem:[#allocation3 + $0xf8] sm:$0xff] %vm1272_vm8, %v1239_v25 }
 0x2d9   : > { %v1406_v9 = vpop.permute.xlu0 %1405 }
 0x2da   : > { %v2131_v60 = vld [vmem:[#allocation3 + $0x60] sm:$0xff]  ;;  %1488 = vst.msk [vmem:[#allocation3 + $0x70] sm:$0xff] %vm1473_vm9, %v1406_v9  ;;  %v1438_v49 = vpop.permute.xlu1 %1437 }
 0x2db   : > { %2981 = vmatprep.mubr.msk.f32.mxu0 %vm2160_vm13, %v2131_v60  ;;  %v2147_v21 = vld [vmem:[#allocation3 + $0xe0] sm:$0xff]  ;;  %1504 = vst.msk [vmem:[#allocation3 + $0xf0] sm:$0xff] %vm1473_vm9, %v1438_v49 }
 0x2dc   : > { %3005 = vmatprep.mubr.msk.f32.mxu1 %vm2160_vm13, %v2147_v21 }
 0x2dd   : > { %v2016_v18 = vpop.permute.xlu0 %2015 }
 0x2de   : > { %2099 = vst.msk [vmem:[#allocation3 + $0x68] sm:$0xff] %vm2085_vm12, %v2016_v18  ;;  %v2048_v43 = vpop.permute.xlu1 %2047 }
 0x2df   : > { %2115 = vst.msk [vmem:[#allocation3 + $0xe8] sm:$0xff] %vm2085_vm12, %v2048_v43 }
 0x2e1   : > { %v1408_v41 = vpop.permute.xlu0 %1407 }
 0x2e2   : > { %1489 = vst.msk [vmem:[#allocation3 + $0x78] sm:$0xff] %vm1473_vm9, %v1408_v41  ;;  %v1440_v0 = vpop.permute.xlu1 %1439 }
 0x2e3   : > { %1505 = vst.msk [vmem:[#allocation3 + $0xf8] sm:$0xff] %vm1473_vm9, %v1440_v0 }
 0x2e5   : > { %v1608_v42 = vpop.permute.xlu0 %1607  ;;  %v2132_v48 = vld [vmem:[#allocation3 + $0x68] sm:$0xff] }
 0x2e6   : > { %1690 = vst.msk [vmem:[#allocation3 + $0x70] sm:$0xff] %vm1675_vm10, %v1608_v42  ;;  %2982 = vmatmul.mubr.msk.f32.gmra.mrb[12].mxu0 %vm2160_vm13, %v2132_v48  ;;  %v1640_v37 = vpop.permute.xlu1 %1639  ;;  %v2148_v57 = vld [vmem:[#allocation3 + $0xe8] sm:$0xff] }
 0x2e7   : > { %1706 = vst.msk [vmem:[#allocation3 + $0xf0] sm:$0xff] %vm1675_vm10, %v1640_v37  ;;  %3006 = vmatmul.mubr.msk.f32.gmra.mrb[12].mxu1 %vm2160_vm13, %v2148_v57 }
 0x2e9   : > { %v1610_v1 = vpop.permute.xlu0 %1609 }
 0x2ea   : > { %1691 = vst.msk [vmem:[#allocation3 + $0x78] sm:$0xff] %vm1675_vm10, %v1610_v1  ;;  %v1642_v13 = vpop.permute.xlu1 %1641 }
 0x2eb   : > { %1707 = vst.msk [vmem:[#allocation3 + $0xf8] sm:$0xff] %vm1675_vm10, %v1642_v13 }
 0x2ed   : > { %v1817_v62 = vpop.permute.xlu0 %1816 }
 0x2ee   : > { %1899 = vst.msk [vmem:[#allocation3 + $0x70] sm:$0xff] %vm1884_vm11, %v1817_v62  ;;  %v1849_v22 = vpop.permute.xlu1 %1848 }
 0x2ef   : > { %1915 = vst.msk [vmem:[#allocation3 + $0xf0] sm:$0xff] %vm1884_vm11, %v1849_v22 }
 0x2f1   : > { %v1819_v34 = vpop.permute.xlu0 %1818  ;;  %v2968_v4 = vpop.f32.mrb[2].mxu0 }
 0x2f2   : > { %1900 = vst.msk [vmem:[#allocation3 + $0x78] sm:$0xff] %vm1884_vm11, %v1819_v34  ;;  %v2343_v5 = vadd.f32 %v2968_v4, %v4835_v45  ;;  %v2337_v50 = vpop.f32.mrb[3].mxu0  ;;  %v1851_v7 = vpop.permute.xlu1 %1850 }
 0x2f3   : > { %v2338_v8 = vadd.f32 %v4835_v45, %v2337_v50  ;;  %1916 = vst.msk [vmem:[#allocation3 + $0xf8] sm:$0xff] %vm1884_vm11, %v1851_v7  ;;  %v2992_v3 = vpop.f32.mrb[2].mxu1 }
 0x2f4   : > { %v2489_v10 = vmax.f32 %v2343_v5, 0.0  ;;  %v4889_v28 = vadd.f32 %v2992_v3, %v4835_v45  ;;  %v2417_v19 = vpop.f32.mrb[3].mxu1 }
 0x2f5   : > { %v2488_v11 = vmax.f32 %v2338_v8, 0.0  ;;  %v2018_v20 = vpop.permute.xlu0 %2017  ;;  %v4892_v12 = vadd.f32 %v4835_v45, %v2417_v19 }
 0x2f6   : > { %2522 = vst.msk [vmem:[%s3422_s27 + $0x18] sm:$0xff] %vm2518_vm14, %v2489_v10  ;;  %2589 = vrot.lane.b32.xlu1 %v2489_v10, %s3212_s10  ;;  %v2505_v15 = vmax.f32 %v4889_v28, 0.0  ;;  %v2050_v54 = vpop.permute.xlu1 %2049 }
 0x2f7   : > { %2100 = vst.msk [vmem:[#allocation3 + $0x70] sm:$0xff] %vm2085_vm12, %v2018_v20  ;;  %2587 = vrot.lane.b32.xlu0 %v2488_v11, %s3212_s10  ;;  %v2504_v36 = vmax.f32 %v4892_v12, 0.0  ;;  %2116 = vst.msk [vmem:[#allocation3 + $0xf0] sm:$0xff] %vm2085_vm12, %v2050_v54 }
 0x2f8   : > { %2521 = vst.msk [vmem:[%s3422_s27 + $0x10] sm:$0xff] %vm2518_vm14, %v2488_v11  ;;  %2538 = vst.msk [vmem:[%s3422_s27 + $0x118] sm:$0xff] %vm2518_vm14, %v2505_v15 }
 0x2f9   : > { %v2020_v61 = vpop.permute.xlu0 %2019  ;;  %2537 = vst.msk [vmem:[%s3422_s27 + $0x110] sm:$0xff] %vm2518_vm14, %v2504_v36 }
 0x2fa   : > { %2101 = vst.msk [vmem:[#allocation3 + $0x78] sm:$0xff] %vm2085_vm12, %v2020_v61  ;;  %v2052_v59 = vpop.permute.xlu1 %2051 }
 0x2fb   : > { %2117 = vst.msk [vmem:[#allocation3 + $0xf8] sm:$0xff] %vm2085_vm12, %v2052_v59 }
 0x2fe   : > { %v2133_v16 = vld [vmem:[#allocation3 + $0x70] sm:$0xff] }
 0x2ff   : > { %2984 = vmatprep.mubr.msk.f32.mxu0 %vm2160_vm13, %v2133_v16  ;;  %v2149_v51 = vld [vmem:[#allocation3 + $0xf0] sm:$0xff] }
 0x300   : > { %3008 = vmatprep.mubr.msk.f32.mxu1 %vm2160_vm13, %v2149_v51 }
 0x301   : > { %v2134_v35 = vld [vmem:[#allocation3 + $0x78] sm:$0xff] }
 0x302   : > { %2985 = vmatmul.mubr.msk.f32.gmra.mrb[14].mxu0 %vm2160_vm13, %v2134_v35  ;;  %v2150_v39 = vld [vmem:[#allocation3 + $0xf8] sm:$0xff] }
 0x303   : > { %3009 = vmatmul.mubr.msk.f32.gmra.mrb[14].mxu1 %vm2160_vm13, %v2150_v39 }
 0x319   : > { %v2971_v2 = vpop.f32.mrb[4].mxu0 }
 0x31a   : > { %v2353_v32 = vadd.f32 %v2971_v2, %v4835_v45  ;;  %v2347_v23 = vpop.f32.mrb[5].mxu0  ;;  %v2995_v27 = vpop.f32.mrb[4].mxu1 }
 0x31b   : > { %v2348_v6 = vadd.f32 %v4835_v45, %v2347_v23  ;;  %v4921_v31 = vadd.f32 %v2995_v27, %v4835_v45  ;;  %v2427_v24 = vpop.f32.mrb[5].mxu1 }
 0x31c   : > { %v2491_v30 = vmax.f32 %v2353_v32, 0.0  ;;  %v4924_v40 = vadd.f32 %v4835_v45, %v2427_v24 }
 0x31d   : > { %v2490_v55 = vmax.f32 %v2348_v6, 0.0  ;;  %v2507_v63 = vmax.f32 %v4921_v31, 0.0 }
 0x31e   : > { %2524 = vst.msk [vmem:[%s3422_s27 + $0x48] sm:$0xff] %vm2518_vm14, %v2491_v30  ;;  %2593 = vrot.lane.b32.xlu1 %v2491_v30, %s3212_s10  ;;  %v2506_v56 = vmax.f32 %v4924_v40, 0.0 }
 0x31f   : > { %2523 = vst.msk [vmem:[%s3422_s27 + $0x40] sm:$0xff] %vm2518_vm14, %v2490_v55  ;;  %2591 = vrot.lane.b32.xlu0 %v2490_v55, %s3212_s10  ;;  %2540 = vst.msk [vmem:[%s3422_s27 + $0x148] sm:$0xff] %vm2518_vm14, %v2507_v63 }
 0x320   : > { %2539 = vst.msk [vmem:[%s3422_s27 + $0x140] sm:$0xff] %vm2518_vm14, %v2506_v56 }
 0x341   : > { %v2974_v29 = vpop.f32.mrb[6].mxu0  ;;  %v2586_v38 = vpop.permute.xlu1 %2585 }
 0x342   : > { %v2363_v46 = vadd.f32 %v2974_v29, %v4835_v45  ;;  %v2357_v44 = vpop.f32.mrb[7].mxu0  ;;  %v2998_v53 = vpop.f32.mrb[6].mxu1  ;;  %2887 = vst.msk [vmem:[%s3422_s27 + $0x28] sm:$0xff] %vm2518_vm14, %v2586_v38 }
 0x343   : > { %v2358_v26 = vadd.f32 %v4835_v45, %v2357_v44  ;;  %v4947_v33 = vadd.f32 %v2998_v53, %v4835_v45  ;;  %v2584_v58 = vpop.permute.xlu0 %2583  ;;  %v2437_v25 = vpop.f32.mrb[7].mxu1 }
 0x344   : > { %v2493_v9 = vmax.f32 %v2363_v46, 0.0  ;;  %2886 = vst.msk [vmem:[%s3422_s27 + $0x20] sm:$0xff] %vm2518_vm14, %v2584_v58  ;;  %v4952_v60 = vadd.f32 %v4835_v45, %v2437_v25 }
 0x345   : > { %v2492_v49 = vmax.f32 %v2358_v26, 0.0  ;;  %v2509_v21 = vmax.f32 %v4947_v33, 0.0 }
 0x346   : > { %2526 = vst.msk [vmem:[%s3422_s27 + $0x58] sm:$0xff] %vm2518_vm14, %v2493_v9  ;;  %2597 = vrot.lane.b32.xlu1 %v2493_v9, %s3212_s10  ;;  %v2508_v18 = vmax.f32 %v4952_v60, 0.0 }
 0x347   : > { %2525 = vst.msk [vmem:[%s3422_s27 + $0x50] sm:$0xff] %vm2518_vm14, %v2492_v49  ;;  %2595 = vrot.lane.b32.xlu0 %v2492_v49, %s3212_s10  ;;  %2542 = vst.msk [vmem:[%s3422_s27 + $0x158] sm:$0xff] %vm2518_vm14, %v2509_v21 }
 0x348   : > { %2541 = vst.msk [vmem:[%s3422_s27 + $0x150] sm:$0xff] %vm2518_vm14, %v2508_v18 }
 0x368   : > { %v2590_v43 = vpop.permute.xlu1 %2589 }
 0x369   : > { %2889 = vst.msk [vmem:[%s3422_s27 + $0x38] sm:$0xff] %vm2518_vm14, %v2590_v43  ;;  %v2977_v41 = vpop.f32.mrb[8].mxu0  ;;  %v2588_v0 = vpop.permute.xlu0 %2587 }
 0x36a   : > { %v2373_v42 = vadd.f32 %v2977_v41, %v4835_v45  ;;  %2888 = vst.msk [vmem:[%s3422_s27 + $0x30] sm:$0xff] %vm2518_vm14, %v2588_v0  ;;  %v2367_v48 = vpop.f32.mrb[9].mxu0  ;;  %v3001_v37 = vpop.f32.mrb[8].mxu1 }
 0x36b   : > { %v2368_v57 = vadd.f32 %v4835_v45, %v2367_v48  ;;  %v4977_v1 = vadd.f32 %v3001_v37, %v4835_v45  ;;  %v2447_v13 = vpop.f32.mrb[9].mxu1 }
 0x36c   : > { %v2495_v62 = vmax.f32 %v2373_v42, 0.0  ;;  %v4980_v22 = vadd.f32 %v4835_v45, %v2447_v13 }
 0x36d   : > { %v2494_v34 = vmax.f32 %v2368_v57, 0.0  ;;  %v2511_v4 = vmax.f32 %v4977_v1, 0.0 }
 0x36e   : > { %2528 = vst.msk [vmem:[%s3422_s27 + $0x88] sm:$0xff] %vm2518_vm14, %v2495_v62  ;;  %2601 = vrot.lane.b32.xlu1 %v2495_v62, %s3212_s10  ;;  %v2510_v5 = vmax.f32 %v4980_v22, 0.0 }
 0x36f   : > { %2527 = vst.msk [vmem:[%s3422_s27 + $0x80] sm:$0xff] %vm2518_vm14, %v2494_v34  ;;  %2599 = vrot.lane.b32.xlu0 %v2494_v34, %s3212_s10  ;;  %2544 = vst.msk [vmem:[%s3422_s27 + $0x188] sm:$0xff] %vm2518_vm14, %v2511_v4 }
 0x370   : > { %2543 = vst.msk [vmem:[%s3422_s27 + $0x180] sm:$0xff] %vm2518_vm14, %v2510_v5 }
 0x390   : > { %v2594_v50 = vpop.permute.xlu1 %2593 }
 0x391   : > { %2891 = vst.msk [vmem:[%s3422_s27 + $0x68] sm:$0xff] %vm2518_vm14, %v2594_v50  ;;  %v2980_v7 = vpop.f32.mrb[10].mxu0  ;;  %v2592_v8 = vpop.permute.xlu0 %2591 }
 0x392   : > { %v2383_v3 = vadd.f32 %v2980_v7, %v4835_v45  ;;  %2890 = vst.msk [vmem:[%s3422_s27 + $0x60] sm:$0xff] %vm2518_vm14, %v2592_v8  ;;  %v2377_v10 = vpop.f32.mrb[11].mxu0  ;;  %v3004_v19 = vpop.f32.mrb[10].mxu1 }
 0x393   : > { %v2378_v11 = vadd.f32 %v4835_v45, %v2377_v10  ;;  %v5005_v20 = vadd.f32 %v3004_v19, %v4835_v45  ;;  %v2457_v54 = vpop.f32.mrb[11].mxu1 }
 0x394   : > { %v2497_v61 = vmax.f32 %v2383_v3, 0.0  ;;  %v5008_v59 = vadd.f32 %v4835_v45, %v2457_v54 }
 0x395   : > { %v2496_v16 = vmax.f32 %v2378_v11, 0.0  ;;  %v2513_v51 = vmax.f32 %v5005_v20, 0.0 }
 0x396   : > { %2530 = vst.msk [vmem:[%s3422_s27 + $0x98] sm:$0xff] %vm2518_vm14, %v2497_v61  ;;  %2605 = vrot.lane.b32.xlu1 %v2497_v61, %s3212_s10  ;;  %v2512_v35 = vmax.f32 %v5008_v59, 0.0 }
 0x397   : > { %2529 = vst.msk [vmem:[%s3422_s27 + $0x90] sm:$0xff] %vm2518_vm14, %v2496_v16  ;;  %2603 = vrot.lane.b32.xlu0 %v2496_v16, %s3212_s10  ;;  %2546 = vst.msk [vmem:[%s3422_s27 + $0x198] sm:$0xff] %vm2518_vm14, %v2513_v51 }
 0x398   : > { %2545 = vst.msk [vmem:[%s3422_s27 + $0x190] sm:$0xff] %vm2518_vm14, %v2512_v35 }
 0x3b8   : > { %v2598_v39 = vpop.permute.xlu1 %2597 }
 0x3b9   : > { %2893 = vst.msk [vmem:[%s3422_s27 + $0x78] sm:$0xff] %vm2518_vm14, %v2598_v39  ;;  %v2983_v2 = vpop.f32.mrb[12].mxu0  ;;  %v2596_v32 = vpop.permute.xlu0 %2595 }
 0x3ba   : > { %v2393_v23 = vadd.f32 %v2983_v2, %v4835_v45  ;;  %2892 = vst.msk [vmem:[%s3422_s27 + $0x70] sm:$0xff] %vm2518_vm14, %v2596_v32  ;;  %v2387_v27 = vpop.f32.mrb[13].mxu0  ;;  %v3007_v6 = vpop.f32.mrb[12].mxu1 }
 0x3bb   : > { %v2388_v24 = vadd.f32 %v4835_v45, %v2387_v27  ;;  %v2473_v30 = vadd.f32 %v3007_v6, %v4835_v45  ;;  %v2467_v55 = vpop.f32.mrb[13].mxu1 }
 0x3bc   : > { %v2499_v29 = vmax.f32 %v2393_v23, 0.0  ;;  %v2468_v38 = vadd.f32 %v4835_v45, %v2467_v55 }
 0x3bd   : > { %v2498_v46 = vmax.f32 %v2388_v24, 0.0  ;;  %v2515_v44 = vmax.f32 %v2473_v30, 0.0 }
 0x3be   : > { %2532 = vst.msk [vmem:[%s3422_s27 + $0xc8] sm:$0xff] %vm2518_vm14, %v2499_v29  ;;  %2609 = vrot.lane.b32.xlu1 %v2499_v29, %s3212_s10  ;;  %v2514_v53 = vmax.f32 %v2468_v38, 0.0 }
 0x3bf   : > { %2531 = vst.msk [vmem:[%s3422_s27 + $0xc0] sm:$0xff] %vm2518_vm14, %v2498_v46  ;;  %2607 = vrot.lane.b32.xlu0 %v2498_v46, %s3212_s10  ;;  %2548 = vst.msk [vmem:[%s3422_s27 + $0x1c8] sm:$0xff] %vm2518_vm14, %v2515_v44 }
 0x3c0   : > { %2547 = vst.msk [vmem:[%s3422_s27 + $0x1c0] sm:$0xff] %vm2518_vm14, %v2514_v53 }
 0x3d5   : > { %v2986_v26 = vpop.f32.mrb[14].mxu0 }
 0x3d6   : > { %v2403_v58 = vadd.f32 %v2986_v26, %v4835_v45  ;;  %v2397_v25 = vpop.f32.mrb[15].mxu0  ;;  %v3010_v9 = vpop.f32.mrb[14].mxu1 }
 0x3d7   : > { %v2398_v49 = vadd.f32 %v4835_v45, %v2397_v25  ;;  %v2483_v43 = vadd.f32 %v3010_v9, %v4835_v45  ;;  %v2477_v41 = vpop.f32.mrb[15].mxu1 }
 0x3d8   : > { %v2501_v0 = vmax.f32 %v2403_v58, 0.0  ;;  %v2478_v42 = vadd.f32 %v4835_v45, %v2477_v41 }
 0x3d9   : > { %v2500_v48 = vmax.f32 %v2398_v49, 0.0  ;;  %v2517_v37 = vmax.f32 %v2483_v43, 0.0 }
 0x3da   : > { %2534 = vst.msk [vmem:[%s3422_s27 + $0xd8] sm:$0xff] %vm2518_vm14, %v2501_v0  ;;  %2613 = vrot.lane.b32.xlu1 %v2501_v0, %s3212_s10  ;;  %v2516_v57 = vmax.f32 %v2478_v42, 0.0 }
 0x3db   : > { %2533 = vst.msk [vmem:[%s3422_s27 + $0xd0] sm:$0xff] %vm2518_vm14, %v2500_v48  ;;  %2611 = vrot.lane.b32.xlu0 %v2500_v48, %s3212_s10  ;;  %2550 = vst.msk [vmem:[%s3422_s27 + $0x1d8] sm:$0xff] %vm2518_vm14, %v2517_v37 }
 0x3dc   : > { %2549 = vst.msk [vmem:[%s3422_s27 + $0x1d0] sm:$0xff] %vm2518_vm14, %v2516_v57 }
 0x3de   : > { %2617 = vrot.lane.b32.xlu1 %v2503_v47, %s3212_s10 }
 0x3df   : > { %2615 = vrot.lane.b32.xlu0 %v2502_v14, %s3212_s10 }
 0x3e0   : > { %v2602_v45 = vpop.permute.xlu1 %2601 }
 0x3e1   : > { %2895 = vst.msk [vmem:[%s3422_s27 + $0xa8] sm:$0xff] %vm2518_vm14, %v2602_v45  ;;  %v2600_v13 = vpop.permute.xlu0 %2599 }
 0x3e2   : > { %2894 = vst.msk [vmem:[%s3422_s27 + $0xa0] sm:$0xff] %vm2518_vm14, %v2600_v13  ;;  %2621 = vrot.lane.b32.xlu1 %v2505_v15, %s3212_s10 }
 0x3e3   : > { %2619 = vrot.lane.b32.xlu0 %v2504_v36, %s3212_s10 }
 0x3e6   : > { %2625 = vrot.lane.b32.xlu1 %v2507_v63, %s3212_s10 }
 0x3e7   : > { %2623 = vrot.lane.b32.xlu0 %v2506_v56, %s3212_s10 }
 0x3ea   : > { %2629 = vrot.lane.b32.xlu1 %v2509_v21, %s3212_s10 }
 0x3eb   : > { %2627 = vrot.lane.b32.xlu0 %v2508_v18, %s3212_s10 }
 0x3ee   : > { %2633 = vrot.lane.b32.xlu1 %v2511_v4, %s3212_s10 }
 0x3ef   : > { %2631 = vrot.lane.b32.xlu0 %v2510_v5, %s3212_s10 }
 0x3f2   : > { %2637 = vrot.lane.b32.xlu1 %v2513_v51, %s3212_s10 }
 0x3f3   : > { %2635 = vrot.lane.b32.xlu0 %v2512_v35, %s3212_s10 }
 0x3f6   : > { %2641 = vrot.lane.b32.xlu1 %v2515_v44, %s3212_s10 }
 0x3f7   : > { %2639 = vrot.lane.b32.xlu0 %v2514_v53, %s3212_s10 }
 0x3fa   : > { %2645 = vrot.lane.b32.xlu1 %v2517_v37, %s3212_s10 }
 0x3fb   : > { %2643 = vrot.lane.b32.xlu0 %v2516_v57, %s3212_s10 }
 0x408   : > { %v2606_v52 = vpop.permute.xlu1 %2605 }
 0x409   : > { %2897 = vst.msk [vmem:[%s3422_s27 + $0xb8] sm:$0xff] %vm2518_vm14, %v2606_v52  ;;  %v2604_v17 = vpop.permute.xlu0 %2603 }
 0x40a   : > { %2896 = vst.msk [vmem:[%s3422_s27 + $0xb0] sm:$0xff] %vm2518_vm14, %v2604_v17 }
 0x430   : > { %v2610_v47 = vpop.permute.xlu1 %2609 }
 0x431   : > { %2899 = vst.msk [vmem:[%s3422_s27 + $0xe8] sm:$0xff] %vm2518_vm14, %v2610_v47  ;;  %v2608_v14 = vpop.permute.xlu0 %2607 }
 0x432   : > { %2898 = vst.msk [vmem:[%s3422_s27 + $0xe0] sm:$0xff] %vm2518_vm14, %v2608_v14 }
 0x44c   : > { %v2614_v28 = vpop.permute.xlu1 %2613 }
 0x44d   : > { %2901 = vst.msk [vmem:[%s3422_s27 + $0xf8] sm:$0xff] %vm2518_vm14, %v2614_v28  ;;  %v2612_v12 = vpop.permute.xlu0 %2611 }
 0x44e   : > { %2900 = vst.msk [vmem:[%s3422_s27 + $0xf0] sm:$0xff] %vm2518_vm14, %v2612_v12 }
 0x450   : > { %v2618_v15 = vpop.permute.xlu1 %2617 }
 0x451   : > { %2903 = vst.msk [vmem:[%s3422_s27 + $0x128] sm:$0xff] %vm2518_vm14, %v2618_v15  ;;  %v2616_v36 = vpop.permute.xlu0 %2615 }
 0x452   : > { %2902 = vst.msk [vmem:[%s3422_s27 + $0x120] sm:$0xff] %vm2518_vm14, %v2616_v36 }
 0x454   : > { %v2622_v31 = vpop.permute.xlu1 %2621 }
 0x455   : > { %2905 = vst.msk [vmem:[%s3422_s27 + $0x138] sm:$0xff] %vm2518_vm14, %v2622_v31  ;;  %v2620_v40 = vpop.permute.xlu0 %2619 }
 0x456   : > { %2904 = vst.msk [vmem:[%s3422_s27 + $0x130] sm:$0xff] %vm2518_vm14, %v2620_v40 }
 0x458   : > { %v2626_v63 = vpop.permute.xlu1 %2625 }
 0x459   : > { %2907 = vst.msk [vmem:[%s3422_s27 + $0x168] sm:$0xff] %vm2518_vm14, %v2626_v63  ;;  %v2624_v56 = vpop.permute.xlu0 %2623 }
 0x45a   : > { %2906 = vst.msk [vmem:[%s3422_s27 + $0x160] sm:$0xff] %vm2518_vm14, %v2624_v56 }
 0x45c   : > { %v2630_v33 = vpop.permute.xlu1 %2629 }
 0x45d   : > { %2909 = vst.msk [vmem:[%s3422_s27 + $0x178] sm:$0xff] %vm2518_vm14, %v2630_v33  ;;  %v2628_v60 = vpop.permute.xlu0 %2627 }
 0x45e   : > { %2908 = vst.msk [vmem:[%s3422_s27 + $0x170] sm:$0xff] %vm2518_vm14, %v2628_v60 }
 0x460   : > { %v2634_v21 = vpop.permute.xlu1 %2633 }
 0x461   : > { %2911 = vst.msk [vmem:[%s3422_s27 + $0x1a8] sm:$0xff] %vm2518_vm14, %v2634_v21  ;;  %v2632_v18 = vpop.permute.xlu0 %2631 }
 0x462   : > { %2910 = vst.msk [vmem:[%s3422_s27 + $0x1a0] sm:$0xff] %vm2518_vm14, %v2632_v18 }
 0x464   : > { %v2638_v1 = vpop.permute.xlu1 %2637 }
 0x465   : > { %2913 = vst.msk [vmem:[%s3422_s27 + $0x1b8] sm:$0xff] %vm2518_vm14, %v2638_v1  ;;  %v2636_v62 = vpop.permute.xlu0 %2635 }
 0x466   : > { %2912 = vst.msk [vmem:[%s3422_s27 + $0x1b0] sm:$0xff] %vm2518_vm14, %v2636_v62 }
 0x468   : > { %v2642_v22 = vpop.permute.xlu1 %2641 }
 0x469   : > { %2915 = vst.msk [vmem:[%s3422_s27 + $0x1e8] sm:$0xff] %vm2518_vm14, %v2642_v22  ;;  %v2640_v34 = vpop.permute.xlu0 %2639 }
 0x46a   : > { %2914 = vst.msk [vmem:[%s3422_s27 + $0x1e0] sm:$0xff] %vm2518_vm14, %v2640_v34 }
 0x46c   : > { %v2646_v4 = vpop.permute.xlu1 %2645 }
 0x46d   : > { %2917 = vst.msk [vmem:[%s3422_s27 + $0x1f8] sm:$0xff] %vm2518_vm14, %v2646_v4  ;;  %v2644_v5 = vpop.permute.xlu0 %2643 }
 0x46e   : > { %2916 = vst.msk [vmem:[%s3422_s27 + $0x1f0] sm:$0xff] %vm2518_vm14, %v2644_v5 }
 0x46f PF: > { %s15_s16 = sadd.s32 1, %s3197_s16   ;;  %s5250_s12 = smov %s3189_s14 }
 0x470   : > { %p12_p13 = scmp.ge.s32.totalorder %s15_s16, 10   ;;  %s5251_s13 = smov %s3193_s15 }
 0x471   : > { %s5252_s14 = smov %s5255_s18  ;;  %s5253_s15 = smov %s5259_s19 }
 0x472   :  { %14 = sbr.rel (!%p12_p13) target bundleno = 4 (0x4), region = 86 }
 0x479   :  { %2744 = vsyncpa [#allocation5], 1 }
 0x47a   :  { %2746 = vsyncpa [#allocation5 + $0x1], 1 }
 0x47b   :  { %2747 = vsyncpa [#allocation7], 1 }

</bundles_post_ra>
